<compile_context>
chip_gen: v5e
topology: v5e:2x2
jax: 0.10.0
libtpu: 0.0.40
codegen_flags: <defaults>
</compile_context>

<pallas_src>
import math

import jax
import jax.numpy as jnp
from jax import lax
from jax.experimental import pallas as pl
from jax.experimental.pallas import tpu as pltpu

BANDS = [(0.0, 0.1), (0.1, 0.25), (0.25, 0.5), (0.5, 0.75), (0.75, 1.0)]
CH_HIDDEN = 32
LEAKY_SLOPE = 0.1

# (cin, cout, kh, kw, stride_w, pad_t, pad_f, act)
LAYER_CFG = [
    (2, CH_HIDDEN, 3, 9, 1, 1, 4, True),
    (CH_HIDDEN, CH_HIDDEN, 3, 9, 2, 1, 4, True),
    (CH_HIDDEN, CH_HIDDEN, 3, 9, 2, 1, 4, True),
    (CH_HIDDEN, CH_HIDDEN, 3, 9, 2, 1, 4, True),
    (CH_HIDDEN, CH_HIDDEN, 3, 3, 1, 1, 1, True),
]
POST_CFG = (CH_HIDDEN, 1, 3, 3, 1, 1, 1, False)


def _cdiv(a, b):
    return -(-a // b)


def _round_up(a, b):
    return _cdiv(a, b) * b


# --------------------------- STFT: column-tiled matmul against [cos|-sin] matrix ---------------
def _stft_kernel(fr_ref, dft_ref, o_ref):
    o_ref[...] = jnp.dot(fr_ref[...], dft_ref[...],
                         preferred_element_type=jnp.float32,
                         precision=lax.Precision.HIGHEST)


def stft_pallas(frames_2d, dft):
    # frames_2d: (R, WL) f32 ; dft: (WL, 2*NF) f32 (hann pre-multiplied) -> (R, 2*NF) f32
    r, wl = frames_2d.shape
    two_nf = dft.shape[1]
    tr = 256 if r >= 256 else _round_up(r, 8)          # frame-row tile
    r_pad = _round_up(r, tr)
    if r_pad != r:
        frames_2d = jnp.pad(frames_2d, ((0, r_pad - r), (0, 0)))
    # column tile: keep each resident f32 DFT block <= ~2 MiB so double-buffered totals
    # fit v5e's 16 MiB scoped default and v7x's 64 MiB physical VMEM even for WL=2048.
    tn = min(512, max(128, ((2 << 20) // (4 * wl)) // 128 * 128))
    tn = min(tn, _round_up(two_nf, 128))
    nf_pad = _round_up(two_nf, tn)
    if nf_pad != two_nf:
        dft = jnp.pad(dft, ((0, 0), (0, nf_pad - two_nf)))
    out = pl.pallas_call(
        _stft_kernel,
        grid=(r_pad // tr, nf_pad // tn),
        in_specs=[pl.BlockSpec((tr, wl), lambda i, j: (i, 0)),   # resident across j
                  pl.BlockSpec((wl, tn), lambda i, j: (0, j))],
        out_specs=pl.BlockSpec((tr, tn), lambda i, j: (i, j)),
        out_shape=jax.ShapeDtypeStruct((r_pad, nf_pad), jnp.float32),
        compiler_params=pltpu.CompilerParams(
            dimension_semantics=("parallel", "parallel")),
    )(frames_2d, dft)
    return out[:r, :two_nf]


# --------------------------- WNConv2d: tap-folded fat-GEMM kernel -------------------------------
_M_TARGET = 8192       # target collapsed (time * freq-phase) rows per grid step
_CHUNK_ROWS = 512      # collapsed rows per in-kernel chunk (f32 acc ~16 vregs)


def _make_conv_kernel(kh, n_q, k_dim, fp, tc, n_chunks, cout_p, act):
    mc = tc * fp
    n_taps = kh * n_q

    def chunk_body(c, x_ref, w_ref, b_ref, o_ref, lhs_scr):
        row0 = c * mc
        if n_taps == 1:
            lhs = x_ref[pl.ds(row0, mc), :]
        else:
            # Build the fat (mc, n_taps*k_dim) LHS: each tap is a contiguous shifted
            # row-window of the collapsed (time*phase, k_dim) tile written side-by-side.
            for khi in range(kh):
                for q in range(n_q):
                    ti = khi * n_q + q
                    lhs_scr[:, ti * k_dim:(ti + 1) * k_dim] = (
                        x_ref[pl.ds(row0 + khi * fp + q, mc), :])
            lhs = lhs_scr[...]
        acc = jnp.dot(lhs, w_ref[...], preferred_element_type=jnp.float32)
        acc = acc + b_ref[...]                                  # bias in f32
        if act:
            acc = jnp.where(acc >= 0.0, acc, LEAKY_SLOPE * acc)  # LeakyReLU(0.1)
        o_ref[pl.ds(row0, mc), :] = acc.astype(o_ref.dtype)

    def run_chunks(x_ref, w_ref, b_ref, o_ref, lhs_scr):
        if n_chunks == 1:
            chunk_body(0, x_ref, w_ref, b_ref, o_ref, lhs_scr)
        else:
            def body(c, carry):
                chunk_body(c, x_ref, w_ref, b_ref, o_ref, lhs_scr)
                return carry
            lax.fori_loop(0, n_chunks, body, 0)

    if n_taps == 1:
        def kernel(x_ref, w_ref, b_ref, o_ref):
            run_chunks(x_ref, w_ref, b_ref, o_ref, None)
    else:
        def kernel(x_ref, w_ref, b_ref, o_ref, lhs_scr):
            run_chunks(x_ref, w_ref, b_ref, o_ref, lhs_scr)
    return kernel


def wnconv2d(x, w, b, *, stride_w, pad_t, pad_f, act):
    # x: (N, T, F, Cin) NHWC ; w: (KH, KW, Cin, Cout) ; b: (Cout,)
    n, t, f, cin = x.shape
    kh, kw, wcin, cout = w.shape
    assert wcin == cin
    sw = stride_w

    # --- layer-1 special case (cin=2): fold the whole kh*kw*cin receptive field into
    # channels with a cheap XLA im2col -> the kernel runs one K=64 dot per chunk.
    if cin < 8:
        t_out1 = t + 2 * pad_t - kh + 1
        f_out1 = (f + 2 * pad_f - kw) // sw + 1
        xp1 = jnp.pad(x, ((0, 0), (pad_t, pad_t), (pad_f, pad_f), (0, 0)))
        pats = [xp1[:, dh:dh + t_out1, dw:dw + (f_out1 - 1) * sw + 1:sw, :]
                for dh in range(kh) for dw in range(kw)]
        x = jnp.concatenate(pats, axis=-1)
        k0 = kh * kw * cin
        k_pad = _round_up(k0, 64)
        x = jnp.pad(x, ((0, 0), (0, 0), (0, 0), (0, k_pad - k0)))
        w = jnp.pad(w.reshape(1, 1, k0, cout),
                    ((0, 0), (0, 0), (0, k_pad - k0), (0, 0)))
        t, f, cin = t_out1, f_out1, k_pad
        kh, kw, sw, pad_t, pad_f = 1, 1, 1, 0, 0

    t_out = t + 2 * pad_t - kh + 1
    f_out = (f + 2 * pad_f - kw) // sw + 1
    n_q = _cdiv(kw, sw)                 # freq taps grouped by stride phase
    k_dim = sw * cin                    # contraction size per tap
    n_taps = kh * n_q
    k_fat = n_taps * k_dim              # folded contraction: 64 / 288 / 960
    fp = _cdiv(f + 2 * pad_f, sw)       # freq-phase columns
    f_lin = fp * sw
    cout_p = _round_up(cout, 32)        # lane-pad cout (post conv 1 -> 32)

    # tiling: tc output time rows per in-kernel chunk, tt rows per grid step
    tc = max(1, min(t_out, _CHUNK_ROWS // fp))
    n_chunks = max(1, min(_cdiv(t_out, tc), max(1, _M_TARGET // (tc * fp))))
    tt = tc * n_chunks
    n_tb = _cdiv(t_out, tt)
    t_rows = n_tb * tt + kh
    mc = tc * fp
    r_blk = (tt + kh) * fp

    xp = jnp.pad(x.astype(jnp.bfloat16),
                 ((0, 0), (pad_t, t_rows - t - pad_t),
                  (pad_f, f_lin - f - pad_f), (0, 0)))
    xph = xp.reshape(n, t_rows, fp, k_dim)     # even/odd freq-phase fold (free reshape)
    # TODO(synk): stream the tt+kh halo window straight from HBM (memory_space=pl.ANY +
    # manual DMA) instead of materializing this gathered activation copy per layer.
    tidx = (jnp.arange(n_tb) * tt)[:, None] + jnp.arange(tt + kh)[None, :]
    xb = xph[:, tidx].reshape(n * n_tb, r_blk, k_dim)

    # fat weight: pad kw -> n_q*sw, flatten (kh, n_q, sw, cin) -> rows; lane-pad cout
    w_fat = jnp.pad(w, ((0, 0), (0, n_q * sw - kw), (0, 0), (0, cout_p - cout)))
    w_fat = w_fat.reshape(k_fat, cout_p).astype(jnp.bfloat16)
    b2 = jnp.pad(b, ((0, cout_p - cout),)).reshape(1, cout_p).astype(jnp.float32)

    in_specs = [pl.BlockSpec((None, r_blk, k_dim), lambda i: (i, 0, 0)),
                pl.BlockSpec((k_fat, cout_p), lambda i: (0, 0)),
                pl.BlockSpec((1, cout_p), lambda i: (0, 0))]
    scratch = [] if n_taps == 1 else [pltpu.VMEM((mc, k_fat), jnp.bfloat16)]

    out = pl.pallas_call(
        _make_conv_kernel(kh, n_q, k_dim, fp, tc, n_chunks, cout_p, act),
        grid=(n * n_tb,),
        in_specs=in_specs,
        out_specs=pl.BlockSpec((None, tt * fp, cout_p), lambda i: (i, 0, 0)),
        out_shape=jax.ShapeDtypeStruct((n * n_tb, tt * fp, cout_p), jnp.bfloat16),
        scratch_shapes=scratch,
        compiler_params=pltpu.CompilerParams(dimension_semantics=("parallel",)),
    )(xb, w_fat, b2)

    # drop junk phase columns / padded time rows / padded cout in XLA
    out = out.reshape(n, n_tb * tt, fp, cout_p)[:, :t_out, :f_out, :cout]
    return out


# --------------------------- parameters (deterministic, weight-norm) ---------------------------
def init_wnconv_params(key, cin, cout, kh, kw):
    kv, kb = jax.random.split(key)
    v = 0.05 * jax.random.normal(kv, (cout, cin, kh, kw), jnp.float32)
    # weight_norm: w = g * v / ||v|| over dims (1,2,3); at init g = ||v|| (PyTorch behavior)
    v_norm = jnp.sqrt(jnp.sum(v * v, axis=(1, 2, 3), keepdims=True))
    g = v_norm
    w = g * v / v_norm
    b = 0.01 * jax.random.normal(kb, (cout,), jnp.float32)
    w_t = jnp.transpose(w, (2, 3, 1, 0))   # (KH, KW, Cin, Cout) for NHWC conv
    return w_t, b


def init_mrd_params(key, n_bands):
    params = {"bands": [], "post": None}
    keys = jax.random.split(key, n_bands * len(LAYER_CFG) + 1)
    ki = 0
    for _ in range(n_bands):
        stack = []
        for (cin, cout, kh, kw, _, _, _, _) in LAYER_CFG:
            stack.append(init_wnconv_params(keys[ki], cin, cout, kh, kw))
            ki += 1
        params["bands"].append(stack)
    cin, cout, kh, kw, _, _, _, _ = POST_CFG
    params["post"] = init_wnconv_params(keys[ki], cin, cout, kh, kw)
    return params


# --------------------------- MRD forward ---------------------------
def mrd_forward(x, params, *, window_length, hop_factor=0.25, channels=1):
    b, ch, length = x.shape
    assert ch == channels
    wl = window_length
    hop = int(wl * hop_factor)
    n_fft_bins = wl // 2 + 1
    bands = [(int(lo * n_fft_bins), int(hi * n_fft_bins)) for (lo, hi) in BANDS]

    # --- audiotools AudioSignal.stft semantics (match_stride=True, hann, reflect) ---
    xa = x.reshape(b * ch, length)
    right_pad = int(math.ceil(length / hop) * hop) - length
    pad = (wl - hop) // 2
    assert pad < length, "signal too short for reflect padding"
    xa = jnp.pad(xa, ((0, 0), (pad, pad + right_pad)), mode="reflect")
    xa = jnp.pad(xa, ((0, 0), (wl // 2, wl // 2)), mode="reflect")   # torch.stft center=True
    n_frames = 1 + (xa.shape[-1] - wl) // hop
    keep = jnp.arange(2, n_frames - 2)                               # match_stride drops 2/side
    # TODO(synk): stream frames straight from HBM with manual DMA instead of
    # materializing the 4x-overlapped (N, T, WL) frame tensor in HBM.
    idx = keep[:, None] * hop + jnp.arange(wl)[None, :]
    frames = xa[:, idx]                                              # (N, T, WL)
    n_sig, t_frames, _ = frames.shape

    # Windowed DFT matrix [cos | -sin], hann pre-multiplied.  (n*k) mod wl done in int32
    # so the angle stays accurate at realistic window lengths.
    nk = (jnp.arange(wl, dtype=jnp.int32)[:, None]
          * jnp.arange(n_fft_bins, dtype=jnp.int32)[None, :]) % wl
    ang = (2.0 * jnp.pi / wl) * nk.astype(jnp.float32)
    nn_ = jnp.arange(wl, dtype=jnp.float32)
    window = (0.5 - 0.5 * jnp.cos(2.0 * jnp.pi * nn_ / wl))[:, None]  # periodic hann
    dft = jnp.concatenate([window * jnp.cos(ang), -window * jnp.sin(ang)], axis=1)

    stft_out = stft_pallas(frames.reshape(n_sig * t_frames, wl), dft)
    re = stft_out[:, :n_fft_bins].reshape(n_sig, t_frames, n_fft_bins)
    im = stft_out[:, n_fft_bins:].reshape(n_sig, t_frames, n_fft_bins)
    spec = jnp.stack([re, im], axis=-1)          # (N, T, F, 2)  ~  '(b ch) t f c'
    x_bands = [spec[:, :, lo:hi, :] for (lo, hi) in bands]

    # --- per-band conv stacks ---
    # TODO(synk): band-batch the 5 per-band stacks at each depth into one pallas_call
    # (ragged band widths need zero padding + per-band weight index_map) to cut launch
    # count 5x and give v7x's two TensorCores an even grid.
    fmap = []
    outs = []
    for band, stack in zip(x_bands, params["bands"]):
        h = band
        for (w, bias), (_, _, _, _, sw, pt, pf, act) in zip(stack, LAYER_CFG):
            h = wnconv2d(h, w, bias, stride_w=sw, pad_t=pt, pad_f=pf, act=act)
            fmap.append(h)
        outs.append(h)

    h = jnp.concatenate(outs, axis=2)            # cat along freq (dim=-1 in NCHW)
    (w, bias) = params["post"]
    _, _, _, _, sw, pt, pf, act = POST_CFG
    h = wnconv2d(h, w, bias, stride_w=sw, pad_t=pt, pad_f=pf, act=act)
    fmap.append(h)

    # back to PyTorch NCHW + f32 so returned shapes/dtype match the reference module
    return [jnp.transpose(f_, (0, 3, 1, 2)).astype(jnp.float32) for f_ in fmap]


# --------------------------- demo ---------------------------
if __name__ == "__main__":
    WL = 32          # window_length (small, shapes consistent with the module)
    B, CH, L = 2, 1, 64
    key = jax.random.PRNGKey(0)
    kx, kp = jax.random.split(key)
    x = jax.random.normal(kx, (B, CH, L), jnp.float32)
    params = init_mrd_params(kp, n_bands=len(BANDS))

    fwd = jax.jit(lambda audio, p: mrd_forward(audio, p, window_length=WL,
                                               hop_factor=0.25, channels=CH))
    fmap = fwd(x, params)
    fmap = jax.block_until_ready(fmap)

    # sanity: 5 bands x 5 layers + conv_post, final map (B*CH, 1, T=8, F=5)
    assert len(fmap) == len(BANDS) * len(LAYER_CFG) + 1
    assert fmap[-1].shape == (B * CH, 1, 8, 5)
    assert all(bool(jnp.all(jnp.isfinite(f_))) for f_ in fmap)
    print("KERNEL_OK")
</pallas_src>

<mosaic_0001>
module attributes {stable_mosaic.version = 11 : i64} {
  func.func @_stft_kernel(%arg0: i32, %arg1: i32, %arg2: memref<16x32xf32, #tpu.memory_space<vmem>>, %arg3: memref<32x128xf32, #tpu.memory_space<vmem>>, %arg4: memref<16x128xf32, #tpu.memory_space<vmem>>) attributes {dimension_semantics = [#tpu.dimension_semantics<parallel>, #tpu.dimension_semantics<parallel>], iteration_bounds = array<i64: 1, 1>, scalar_prefetch = 0 : i64, scratch_operands = 0 : i64, tpu.core_type = #tpu.core_type<tc>, window_params = [{transform_indices = @transform_0, window_bounds = array<i64: 16, 32>}, {transform_indices = @transform_1, window_bounds = array<i64: 32, 128>}, {transform_indices = @transform_2, window_bounds = array<i64: 16, 128>}]} {
    %c0 = arith.constant 0 : index
    %c0_0 = arith.constant 0 : index
    %0 = vector.load %arg2[%c0, %c0_0] : memref<16x32xf32, #tpu.memory_space<vmem>>, vector<16x32xf32>
    %c0_1 = arith.constant 0 : index
    %c0_2 = arith.constant 0 : index
    %1 = vector.load %arg3[%c0_1, %c0_2] : memref<32x128xf32, #tpu.memory_space<vmem>>, vector<32x128xf32>
    %cst = arith.constant dense<0.000000e+00> : vector<16x128xf32>
    %2 = tpu.matmul %0, %1, %cst {dimension_numbers = #tpu.dot_dimension_numbers<[1], [0], [0], [1], [0, 0, 1, 1], [], []>, precision = #tpu.contract_precision<fp32>} : vector<16x32xf32>, vector<32x128xf32>, vector<16x128xf32> -> vector<16x128xf32>
    %c0_3 = arith.constant 0 : index
    %c0_4 = arith.constant 0 : index
    %3 = vector.load %arg4[%c0_3, %c0_4] : memref<16x128xf32, #tpu.memory_space<vmem>>, vector<16x128xf32>
    tpu.vector_store %arg4[%c0_3, %c0_4], %2 {strides = array<i32>} : memref<16x128xf32, #tpu.memory_space<vmem>>, vector<16x128xf32>,
    return
  }
  func.func @transform_0(%arg0: i32, %arg1: i32) -> (i32, i32) {
    %c0_i32 = arith.constant 0 : i32
    %c0_i32_0 = arith.constant 0 : i32
    return %arg0, %c0_i32 : i32, i32
  }
  func.func @transform_1(%arg0: i32, %arg1: i32) -> (i32, i32) {
    %c0_i32 = arith.constant 0 : i32
    %c0_i32_0 = arith.constant 0 : i32
    return %c0_i32, %arg1 : i32, i32
  }
  func.func @transform_2(%arg0: i32, %arg1: i32) -> (i32, i32) {
    %c0_i32 = arith.constant 0 : i32
    return %arg0, %arg1 : i32, i32
  }
}

module attributes {stable_mosaic.version = 11 : i64} {
  func.func @kernel(%arg0: i32, %arg1: memref<1x45x64xbf16, #tpu.memory_space<vmem>>, %arg2: memref<64x32xbf16, #tpu.memory_space<vmem>>, %arg3: memref<1x32xf32, #tpu.memory_space<vmem>>, %arg4: memref<1x40x32xbf16, #tpu.memory_space<vmem>>) attributes {dimension_semantics = [#tpu.dimension_semantics<parallel>], iteration_bounds = array<i64: 2>, scalar_prefetch = 0 : i64, scratch_operands = 0 : i64, tpu.core_type = #tpu.core_type<tc>, window_params = [{transform_indices = @transform_0, window_bounds = array<i64: 1, 45, 64>}, {pipeline_mode = #tpu.pipeline_mode<synchronous>, transform_indices = @transform_1, window_bounds = array<i64: 64, 32>}, {pipeline_mode = #tpu.pipeline_mode<synchronous>, transform_indices = @transform_2, window_bounds = array<i64: 1, 32>}, {transform_indices = @transform_3, window_bounds = array<i64: 1, 40, 32>}]} {
    %c0 = arith.constant 0 : index
    %c0_0 = arith.constant 0 : index
    %c0_1 = arith.constant 0 : index
    %0 = vector.load %arg1[%c0, %c0_0, %c0_1] : memref<1x45x64xbf16, #tpu.memory_space<vmem>>, vector<1x40x64xbf16>
    %1 = vector.shape_cast %0 : vector<1x40x64xbf16> to vector<40x64xbf16>
    %c0_2 = arith.constant 0 : index
    %c0_3 = arith.constant 0 : index
    %2 = vector.load %arg2[%c0_2, %c0_3] : memref<64x32xbf16, #tpu.memory_space<vmem>>, vector<64x32xbf16>
    %cst = arith.constant dense<0.000000e+00> : vector<40x32xf32>
    %3 = tpu.matmul %1, %2, %cst {dimension_numbers = #tpu.dot_dimension_numbers<[1], [0], [0], [1], [0, 0, 1, 1], [], []>} : vector<40x64xbf16>, vector<64x32xbf16>, vector<40x32xf32> -> vector<40x32xf32>
    %c0_4 = arith.constant 0 : index
    %c0_5 = arith.constant 0 : index
    %4 = vector.load %arg3[%c0_4, %c0_5] : memref<1x32xf32, #tpu.memory_space<vmem>>, vector<1x32xf32>
    %5 = vector.broadcast %4 : vector<1x32xf32> to vector<40x32xf32>
    %6 = arith.addf %3, %5 : vector<40x32xf32>
    %cst_6 = arith.constant 0.000000e+00 : f32
    %7 = vector.broadcast %cst_6 : f32 to vector<40x32xf32>
    %8 = arith.cmpf oge, %6, %7 : vector<40x32xf32>
    %cst_7 = arith.constant 1.000000e-01 : f32
    %9 = vector.broadcast %cst_7 : f32 to vector<40x32xf32>
    %10 = arith.mulf %9, %6 : vector<40x32xf32>
    %11 = arith.select %8, %6, %10 : vector<40x32xi1>, vector<40x32xf32>
    %12 = arith.truncf %11 : vector<40x32xf32> to vector<40x32xbf16>
    %c0_8 = arith.constant 0 : index
    %c0_9 = arith.constant 0 : index
    %c0_10 = arith.constant 0 : index
    %13 = vector.load %arg4[%c0_8, %c0_9, %c0_10] : memref<1x40x32xbf16, #tpu.memory_space<vmem>>, vector<1x40x32xbf16>
    %14 = vector.shape_cast %13 : vector<1x40x32xbf16> to vector<40x32xbf16>
    %15 = vector.shape_cast %12 : vector<40x32xbf16> to vector<1x40x32xbf16>
    tpu.vector_store %arg4[%c0_8, %c0_9, %c0_10], %15 {strides = array<i32>} : memref<1x40x32xbf16, #tpu.memory_space<vmem>>, vector<1x40x32xbf16>,
    return
  }
  func.func @transform_0(%arg0: i32) -> (i32, i32, i32) {
    %c0_i32 = arith.constant 0 : i32
    %c0_i32_0 = arith.constant 0 : i32
    %c0_i32_1 = arith.constant 0 : i32
    return %arg0, %c0_i32, %c0_i32_0 : i32, i32, i32
  }
  func.func @transform_1(%arg0: i32) -> (i32, i32) {
    %c0_i32 = arith.constant 0 : i32
    %c0_i32_0 = arith.constant 0 : i32
    %c0_i32_1 = arith.constant 0 : i32
    return %c0_i32, %c0_i32_0 : i32, i32
  }
  func.func @transform_2(%arg0: i32) -> (i32, i32) {
    %c0_i32 = arith.constant 0 : i32
    %c0_i32_0 = arith.constant 0 : i32
    %c0_i32_1 = arith.constant 0 : i32
    return %c0_i32, %c0_i32_0 : i32, i32
  }
  func.func @transform_3(%arg0: i32) -> (i32, i32, i32) {
    %c0_i32 = arith.constant 0 : i32
    %c0_i32_0 = arith.constant 0 : i32
    %c0_i32_1 = arith.constant 0 : i32
    return %arg0, %c0_i32, %c0_i32_0 : i32, i32, i32
  }
}

module attributes {stable_mosaic.version = 11 : i64} {
  func.func @kernel(%arg0: i32, %arg1: memref<1x77x64xbf16, #tpu.memory_space<vmem>>, %arg2: memref<960x32xbf16, #tpu.memory_space<vmem>>, %arg3: memref<1x32xf32, #tpu.memory_space<vmem>>, %arg4: memref<1x56x32xbf16, #tpu.memory_space<vmem>>, %arg5: memref<56x960xbf16, #tpu.memory_space<vmem>>) attributes {dimension_semantics = [#tpu.dimension_semantics<parallel>], iteration_bounds = array<i64: 2>, scalar_prefetch = 0 : i64, scratch_operands = 1 : i64, tpu.core_type = #tpu.core_type<tc>, window_params = [{transform_indices = @transform_0, window_bounds = array<i64: 1, 77, 64>}, {pipeline_mode = #tpu.pipeline_mode<synchronous>, transform_indices = @transform_1, window_bounds = array<i64: 960, 32>}, {pipeline_mode = #tpu.pipeline_mode<synchronous>, transform_indices = @transform_2, window_bounds = array<i64: 1, 32>}, {transform_indices = @transform_3, window_bounds = array<i64: 1, 56, 32>}]} {
    %c0 = arith.constant 0 : index
    %c0_0 = arith.constant 0 : index
    %c0_1 = arith.constant 0 : index
    %0 = vector.load %arg1[%c0, %c0_0, %c0_1] : memref<1x77x64xbf16, #tpu.memory_space<vmem>>, vector<1x56x64xbf16>
    %1 = vector.shape_cast %0 : vector<1x56x64xbf16> to vector<56x64xbf16>
    %c0_2 = arith.constant 0 : index
    %c0_3 = arith.constant 0 : index
    %2 = vector.load %arg5[%c0_2, %c0_3] : memref<56x960xbf16, #tpu.memory_space<vmem>>, vector<56x64xbf16>
    tpu.vector_store %arg5[%c0_2, %c0_3], %1 {strides = array<i32>} : memref<56x960xbf16, #tpu.memory_space<vmem>>, vector<56x64xbf16>,
    %c0_4 = arith.constant 0 : index
    %c1 = arith.constant 1 : index
    %c0_5 = arith.constant 0 : index
    %3 = vector.load %arg1[%c0_4, %c1, %c0_5] : memref<1x77x64xbf16, #tpu.memory_space<vmem>>, vector<1x56x64xbf16>
    %4 = vector.shape_cast %3 : vector<1x56x64xbf16> to vector<56x64xbf16>
    %c0_6 = arith.constant 0 : index
    %c64 = arith.constant 64 : index
    %5 = vector.load %arg5[%c0_6, %c64] : memref<56x960xbf16, #tpu.memory_space<vmem>>, vector<56x64xbf16>
    tpu.vector_store %arg5[%c0_6, %c64], %4 {strides = array<i32>} : memref<56x960xbf16, #tpu.memory_space<vmem>>, vector<56x64xbf16>,
    %c0_7 = arith.constant 0 : index
    %c2 = arith.constant 2 : index
    %c0_8 = arith.constant 0 : index
    %6 = vector.load %arg1[%c0_7, %c2, %c0_8] : memref<1x77x64xbf16, #tpu.memory_space<vmem>>, vector<1x56x64xbf16>
    %7 = vector.shape_cast %6 : vector<1x56x64xbf16> to vector<56x64xbf16>
    %c0_9 = arith.constant 0 : index
    %c128 = arith.constant 128 : index
    %8 = vector.load %arg5[%c0_9, %c128] : memref<56x960xbf16, #tpu.memory_space<vmem>>, vector<56x64xbf16>
    tpu.vector_store %arg5[%c0_9, %c128], %7 {strides = array<i32>} : memref<56x960xbf16, #tpu.memory_space<vmem>>, vector<56x64xbf16>,
    %c0_10 = arith.constant 0 : index
    %c3 = arith.constant 3 : index
    %c0_11 = arith.constant 0 : index
    %9 = vector.load %arg1[%c0_10, %c3, %c0_11] : memref<1x77x64xbf16, #tpu.memory_space<vmem>>, vector<1x56x64xbf16>
    %10 = vector.shape_cast %9 : vector<1x56x64xbf16> to vector<56x64xbf16>
    %c0_12 = arith.constant 0 : index
    %c192 = arith.constant 192 : index
    %11 = vector.load %arg5[%c0_12, %c192] : memref<56x960xbf16, #tpu.memory_space<vmem>>, vector<56x64xbf16>
    tpu.vector_store %arg5[%c0_12, %c192], %10 {strides = array<i32>} : memref<56x960xbf16, #tpu.memory_space<vmem>>, vector<56x64xbf16>,
    %c0_13 = arith.constant 0 : index
    %c4 = arith.constant 4 : index
    %c0_14 = arith.constant 0 : index
    %12 = vector.load %arg1[%c0_13, %c4, %c0_14] : memref<1x77x64xbf16, #tpu.memory_space<vmem>>, vector<1x56x64xbf16>
    %13 = vector.shape_cast %12 : vector<1x56x64xbf16> to vector<56x64xbf16>
    %c0_15 = arith.constant 0 : index
    %c256 = arith.constant 256 : index
    %14 = vector.load %arg5[%c0_15, %c256] : memref<56x960xbf16, #tpu.memory_space<vmem>>, vector<56x64xbf16>
    tpu.vector_store %arg5[%c0_15, %c256], %13 {strides = array<i32>} : memref<56x960xbf16, #tpu.memory_space<vmem>>, vector<56x64xbf16>,
    %c0_16 = arith.constant 0 : index
    %c7 = arith.constant 7 : index
    %c0_17 = arith.constant 0 : index
    %15 = vector.load %arg1[%c0_16, %c7, %c0_17] : memref<1x77x64xbf16, #tpu.memory_space<vmem>>, vector<1x56x64xbf16>
    %16 = vector.shape_cast %15 : vector<1x56x64xbf16> to vector<56x64xbf16>
    %c0_18 = arith.constant 0 : index
    %c320 = arith.constant 320 : index
    %17 = vector.load %arg5[%c0_18, %c320] : memref<56x960xbf16, #tpu.memory_space<vmem>>, vector<56x64xbf16>
    tpu.vector_store %arg5[%c0_18, %c320], %16 {strides = array<i32>} : memref<56x960xbf16, #tpu.memory_space<vmem>>, vector<56x64xbf16>,
    %c0_19 = arith.constant 0 : index
    %c8 = arith.constant 8 : index
    %c0_20 = arith.constant 0 : index
    %18 = vector.load %arg1[%c0_19, %c8, %c0_20] : memref<1x77x64xbf16, #tpu.memory_space<vmem>>, vector<1x56x64xbf16>
    %19 = vector.shape_cast %18 : vector<1x56x64xbf16> to vector<56x64xbf16>
    %c0_21 = arith.constant 0 : index
    %c384 = arith.constant 384 : index
    %20 = vector.load %arg5[%c0_21, %c384] : memref<56x960xbf16, #tpu.memory_space<vmem>>, vector<56x64xbf16>
    tpu.vector_store %arg5[%c0_21, %c384], %19 {strides = array<i32>} : memref<56x960xbf16, #tpu.memory_space<vmem>>, vector<56x64xbf16>,
    %c0_22 = arith.constant 0 : index
    %c9 = arith.constant 9 : index
    %c0_23 = arith.constant 0 : index
    %21 = vector.load %arg1[%c0_22, %c9, %c0_23] : memref<1x77x64xbf16, #tpu.memory_space<vmem>>, vector<1x56x64xbf16>
    %22 = vector.shape_cast %21 : vector<1x56x64xbf16> to vector<56x64xbf16>
    %c0_24 = arith.constant 0 : index
    %c448 = arith.constant 448 : index
    %23 = vector.load %arg5[%c0_24, %c448] : memref<56x960xbf16, #tpu.memory_space<vmem>>, vector<56x64xbf16>
    tpu.vector_store %arg5[%c0_24, %c448], %22 {strides = array<i32>} : memref<56x960xbf16, #tpu.memory_space<vmem>>, vector<56x64xbf16>,
    %c0_25 = arith.constant 0 : index
    %c10 = arith.constant 10 : index
    %c0_26 = arith.constant 0 : index
    %24 = vector.load %arg1[%c0_25, %c10, %c0_26] : memref<1x77x64xbf16, #tpu.memory_space<vmem>>, vector<1x56x64xbf16>
    %25 = vector.shape_cast %24 : vector<1x56x64xbf16> to vector<56x64xbf16>
    %c0_27 = arith.constant 0 : index
    %c512 = arith.constant 512 : index
    %26 = vector.load %arg5[%c0_27, %c512] : memref<56x960xbf16, #tpu.memory_space<vmem>>, vector<56x64xbf16>
    tpu.vector_store %arg5[%c0_27, %c512], %25 {strides = array<i32>} : memref<56x960xbf16, #tpu.memory_space<vmem>>, vector<56x64xbf16>,
    %c0_28 = arith.constant 0 : index
    %c11 = arith.constant 11 : index
    %c0_29 = arith.constant 0 : index
    %27 = vector.load %arg1[%c0_28, %c11, %c0_29] : memref<1x77x64xbf16, #tpu.memory_space<vmem>>, vector<1x56x64xbf16>
    %28 = vector.shape_cast %27 : vector<1x56x64xbf16> to vector<56x64xbf16>
    %c0_30 = arith.constant 0 : index
    %c576 = arith.constant 576 : index
    %29 = vector.load %arg5[%c0_30, %c576] : memref<56x960xbf16, #tpu.memory_space<vmem>>, vector<56x64xbf16>
    tpu.vector_store %arg5[%c0_30, %c576], %28 {strides = array<i32>} : memref<56x960xbf16, #tpu.memory_space<vmem>>, vector<56x64xbf16>,
    %c0_31 = arith.constant 0 : index
    %c14 = arith.constant 14 : index
    %c0_32 = arith.constant 0 : index
    %30 = vector.load %arg1[%c0_31, %c14, %c0_32] : memref<1x77x64xbf16, #tpu.memory_space<vmem>>, vector<1x56x64xbf16>
    %31 = vector.shape_cast %30 : vector<1x56x64xbf16> to vector<56x64xbf16>
    %c0_33 = arith.constant 0 : index
    %c640 = arith.constant 640 : index
    %32 = vector.load %arg5[%c0_33, %c640] : memref<56x960xbf16, #tpu.memory_space<vmem>>, vector<56x64xbf16>
    tpu.vector_store %arg5[%c0_33, %c640], %31 {strides = array<i32>} : memref<56x960xbf16, #tpu.memory_space<vmem>>, vector<56x64xbf16>,
    %c0_34 = arith.constant 0 : index
    %c15 = arith.constant 15 : index
    %c0_35 = arith.constant 0 : index
    %33 = vector.load %arg1[%c0_34, %c15, %c0_35] : memref<1x77x64xbf16, #tpu.memory_space<vmem>>, vector<1x56x64xbf16>
    %34 = vector.shape_cast %33 : vector<1x56x64xbf16> to vector<56x64xbf16>
    %c0_36 = arith.constant 0 : index
    %c704 = arith.constant 704 : index
    %35 = vector.load %arg5[%c0_36, %c704] : memref<56x960xbf16, #tpu.memory_space<vmem>>, vector<56x64xbf16>
    tpu.vector_store %arg5[%c0_36, %c704], %34 {strides = array<i32>} : memref<56x960xbf16, #tpu.memory_space<vmem>>, vector<56x64xbf16>,
    %c0_37 = arith.constant 0 : index
    %c16 = arith.constant 16 : index
    %c0_38 = arith.constant 0 : index
    %36 = vector.load %arg1[%c0_37, %c16, %c0_38] : memref<1x77x64xbf16, #tpu.memory_space<vmem>>, vector<1x56x64xbf16>
    %37 = vector.shape_cast %36 : vector<1x56x64xbf16> to vector<56x64xbf16>
    %c0_39 = arith.constant 0 : index
    %c768 = arith.constant 768 : index
    %38 = vector.load %arg5[%c0_39, %c768] : memref<56x960xbf16, #tpu.memory_space<vmem>>, vector<56x64xbf16>
    tpu.vector_store %arg5[%c0_39, %c768], %37 {strides = array<i32>} : memref<56x960xbf16, #tpu.memory_space<vmem>>, vector<56x64xbf16>,
    %c0_40 = arith.constant 0 : index
    %c17 = arith.constant 17 : index
    %c0_41 = arith.constant 0 : index
    %39 = vector.load %arg1[%c0_40, %c17, %c0_41] : memref<1x77x64xbf16, #tpu.memory_space<vmem>>, vector<1x56x64xbf16>
    %40 = vector.shape_cast %39 : vector<1x56x64xbf16> to vector<56x64xbf16>
    %c0_42 = arith.constant 0 : index
    %c832 = arith.constant 832 : index
    %41 = vector.load %arg5[%c0_42, %c832] : memref<56x960xbf16, #tpu.memory_space<vmem>>, vector<56x64xbf16>
    tpu.vector_store %arg5[%c0_42, %c832], %40 {strides = array<i32>} : memref<56x960xbf16, #tpu.memory_space<vmem>>, vector<56x64xbf16>,
    %c0_43 = arith.constant 0 : index
    %c18 = arith.constant 18 : index
    %c0_44 = arith.constant 0 : index
    %42 = vector.load %arg1[%c0_43, %c18, %c0_44] : memref<1x77x64xbf16, #tpu.memory_space<vmem>>, vector<1x56x64xbf16>
    %43 = vector.shape_cast %42 : vector<1x56x64xbf16> to vector<56x64xbf16>
    %c0_45 = arith.constant 0 : index
    %c896 = arith.constant 896 : index
    %44 = vector.load %arg5[%c0_45, %c896] : memref<56x960xbf16, #tpu.memory_space<vmem>>, vector<56x64xbf16>
    tpu.vector_store %arg5[%c0_45, %c896], %43 {strides = array<i32>} : memref<56x960xbf16, #tpu.memory_space<vmem>>, vector<56x64xbf16>,
    %c0_46 = arith.constant 0 : index
    %c0_47 = arith.constant 0 : index
    %45 = vector.load %arg5[%c0_46, %c0_47] : memref<56x960xbf16, #tpu.memory_space<vmem>>, vector<56x960xbf16>
    %c0_48 = arith.constant 0 : index
    %c0_49 = arith.constant 0 : index
    %46 = vector.load %arg2[%c0_48, %c0_49] : memref<960x32xbf16, #tpu.memory_space<vmem>>, vector<960x32xbf16>
    %cst = arith.constant dense<0.000000e+00> : vector<56x32xf32>
    %47 = tpu.matmul %45, %46, %cst {dimension_numbers = #tpu.dot_dimension_numbers<[1], [0], [0], [1], [0, 0, 1, 1], [], []>} : vector<56x960xbf16>, vector<960x32xbf16>, vector<56x32xf32> -> vector<56x32xf32>
    %c0_50 = arith.constant 0 : index
    %c0_51 = arith.constant 0 : index
    %48 = vector.load %arg3[%c0_50, %c0_51] : memref<1x32xf32, #tpu.memory_space<vmem>>, vector<1x32xf32>
    %49 = vector.broadcast %48 : vector<1x32xf32> to vector<56x32xf32>
    %50 = arith.addf %47, %49 : vector<56x32xf32>
    %cst_52 = arith.constant 0.000000e+00 : f32
    %51 = vector.broadcast %cst_52 : f32 to vector<56x32xf32>
    %52 = arith.cmpf oge, %50, %51 : vector<56x32xf32>
    %cst_53 = arith.constant 1.000000e-01 : f32
    %53 = vector.broadcast %cst_53 : f32 to vector<56x32xf32>
    %54 = arith.mulf %53, %50 : vector<56x32xf32>
    %55 = arith.select %52, %50, %54 : vector<56x32xi1>, vector<56x32xf32>
    %56 = arith.truncf %55 : vector<56x32xf32> to vector<56x32xbf16>
    %c0_54 = arith.constant 0 : index
    %c0_55 = arith.constant 0 : index
    %c0_56 = arith.constant 0 : index
    %57 = vector.load %arg4[%c0_54, %c0_55, %c0_56] : memref<1x56x32xbf16, #tpu.memory_space<vmem>>, vector<1x56x32xbf16>
    %58 = vector.shape_cast %57 : vector<1x56x32xbf16> to vector<56x32xbf16>
    %59 = vector.shape_cast %56 : vector<56x32xbf16> to vector<1x56x32xbf16>
    tpu.vector_store %arg4[%c0_54, %c0_55, %c0_56], %59 {strides = array<i32>} : memref<1x56x32xbf16, #tpu.memory_space<vmem>>, vector<1x56x32xbf16>,
    return
  }
  func.func @transform_0(%arg0: i32) -> (i32, i32, i32) {
    %c0_i32 = arith.constant 0 : i32
    %c0_i32_0 = arith.constant 0 : i32
    %c0_i32_1 = arith.constant 0 : i32
    return %arg0, %c0_i32, %c0_i32_0 : i32, i32, i32
  }
  func.func @transform_1(%arg0: i32) -> (i32, i32) {
    %c0_i32 = arith.constant 0 : i32
    %c0_i32_0 = arith.constant 0 : i32
    %c0_i32_1 = arith.constant 0 : i32
    return %c0_i32, %c0_i32_0 : i32, i32
  }
  func.func @transform_2(%arg0: i32) -> (i32, i32) {
    %c0_i32 = arith.constant 0 : i32
    %c0_i32_0 = arith.constant 0 : i32
    %c0_i32_1 = arith.constant 0 : i32
    return %c0_i32, %c0_i32_0 : i32, i32
  }
  func.func @transform_3(%arg0: i32) -> (i32, i32, i32) {
    %c0_i32 = arith.constant 0 : i32
    %c0_i32_0 = arith.constant 0 : i32
    %c0_i32_1 = arith.constant 0 : i32
    return %arg0, %c0_i32, %c0_i32_0 : i32, i32, i32
  }
}

module attributes {stable_mosaic.version = 11 : i64} {
  func.func @kernel(%arg0: i32, %arg1: memref<1x66x64xbf16, #tpu.memory_space<vmem>>, %arg2: memref<960x32xbf16, #tpu.memory_space<vmem>>, %arg3: memref<1x32xf32, #tpu.memory_space<vmem>>, %arg4: memref<1x48x32xbf16, #tpu.memory_space<vmem>>, %arg5: memref<48x960xbf16, #tpu.memory_space<vmem>>) attributes {dimension_semantics = [#tpu.dimension_semantics<parallel>], iteration_bounds = array<i64: 2>, scalar_prefetch = 0 : i64, scratch_operands = 1 : i64, tpu.core_type = #tpu.core_type<tc>, window_params = [{transform_indices = @transform_0, window_bounds = array<i64: 1, 66, 64>}, {pipeline_mode = #tpu.pipeline_mode<synchronous>, transform_indices = @transform_1, window_bounds = array<i64: 960, 32>}, {pipeline_mode = #tpu.pipeline_mode<synchronous>, transform_indices = @transform_2, window_bounds = array<i64: 1, 32>}, {transform_indices = @transform_3, window_bounds = array<i64: 1, 48, 32>}]} {
    %c0 = arith.constant 0 : index
    %c0_0 = arith.constant 0 : index
    %c0_1 = arith.constant 0 : index
    %0 = vector.load %arg1[%c0, %c0_0, %c0_1] : memref<1x66x64xbf16, #tpu.memory_space<vmem>>, vector<1x48x64xbf16>
    %1 = vector.shape_cast %0 : vector<1x48x64xbf16> to vector<48x64xbf16>
    %c0_2 = arith.constant 0 : index
    %c0_3 = arith.constant 0 : index
    %2 = vector.load %arg5[%c0_2, %c0_3] : memref<48x960xbf16, #tpu.memory_space<vmem>>, vector<48x64xbf16>
    tpu.vector_store %arg5[%c0_2, %c0_3], %1 {strides = array<i32>} : memref<48x960xbf16, #tpu.memory_space<vmem>>, vector<48x64xbf16>,
    %c0_4 = arith.constant 0 : index
    %c1 = arith.constant 1 : index
    %c0_5 = arith.constant 0 : index
    %3 = vector.load %arg1[%c0_4, %c1, %c0_5] : memref<1x66x64xbf16, #tpu.memory_space<vmem>>, vector<1x48x64xbf16>
    %4 = vector.shape_cast %3 : vector<1x48x64xbf16> to vector<48x64xbf16>
    %c0_6 = arith.constant 0 : index
    %c64 = arith.constant 64 : index
    %5 = vector.load %arg5[%c0_6, %c64] : memref<48x960xbf16, #tpu.memory_space<vmem>>, vector<48x64xbf16>
    tpu.vector_store %arg5[%c0_6, %c64], %4 {strides = array<i32>} : memref<48x960xbf16, #tpu.memory_space<vmem>>, vector<48x64xbf16>,
    %c0_7 = arith.constant 0 : index
    %c2 = arith.constant 2 : index
    %c0_8 = arith.constant 0 : index
    %6 = vector.load %arg1[%c0_7, %c2, %c0_8] : memref<1x66x64xbf16, #tpu.memory_space<vmem>>, vector<1x48x64xbf16>
    %7 = vector.shape_cast %6 : vector<1x48x64xbf16> to vector<48x64xbf16>
    %c0_9 = arith.constant 0 : index
    %c128 = arith.constant 128 : index
    %8 = vector.load %arg5[%c0_9, %c128] : memref<48x960xbf16, #tpu.memory_space<vmem>>, vector<48x64xbf16>
    tpu.vector_store %arg5[%c0_9, %c128], %7 {strides = array<i32>} : memref<48x960xbf16, #tpu.memory_space<vmem>>, vector<48x64xbf16>,
    %c0_10 = arith.constant 0 : index
    %c3 = arith.constant 3 : index
    %c0_11 = arith.constant 0 : index
    %9 = vector.load %arg1[%c0_10, %c3, %c0_11] : memref<1x66x64xbf16, #tpu.memory_space<vmem>>, vector<1x48x64xbf16>
    %10 = vector.shape_cast %9 : vector<1x48x64xbf16> to vector<48x64xbf16>
    %c0_12 = arith.constant 0 : index
    %c192 = arith.constant 192 : index
    %11 = vector.load %arg5[%c0_12, %c192] : memref<48x960xbf16, #tpu.memory_space<vmem>>, vector<48x64xbf16>
    tpu.vector_store %arg5[%c0_12, %c192], %10 {strides = array<i32>} : memref<48x960xbf16, #tpu.memory_space<vmem>>, vector<48x64xbf16>,
    %c0_13 = arith.constant 0 : index
    %c4 = arith.constant 4 : index
    %c0_14 = arith.constant 0 : index
    %12 = vector.load %arg1[%c0_13, %c4, %c0_14] : memref<1x66x64xbf16, #tpu.memory_space<vmem>>, vector<1x48x64xbf16>
    %13 = vector.shape_cast %12 : vector<1x48x64xbf16> to vector<48x64xbf16>
    %c0_15 = arith.constant 0 : index
    %c256 = arith.constant 256 : index
    %14 = vector.load %arg5[%c0_15, %c256] : memref<48x960xbf16, #tpu.memory_space<vmem>>, vector<48x64xbf16>
    tpu.vector_store %arg5[%c0_15, %c256], %13 {strides = array<i32>} : memref<48x960xbf16, #tpu.memory_space<vmem>>, vector<48x64xbf16>,
    %c0_16 = arith.constant 0 : index
    %c6 = arith.constant 6 : index
    %c0_17 = arith.constant 0 : index
    %15 = vector.load %arg1[%c0_16, %c6, %c0_17] : memref<1x66x64xbf16, #tpu.memory_space<vmem>>, vector<1x48x64xbf16>
    %16 = vector.shape_cast %15 : vector<1x48x64xbf16> to vector<48x64xbf16>
    %c0_18 = arith.constant 0 : index
    %c320 = arith.constant 320 : index
    %17 = vector.load %arg5[%c0_18, %c320] : memref<48x960xbf16, #tpu.memory_space<vmem>>, vector<48x64xbf16>
    tpu.vector_store %arg5[%c0_18, %c320], %16 {strides = array<i32>} : memref<48x960xbf16, #tpu.memory_space<vmem>>, vector<48x64xbf16>,
    %c0_19 = arith.constant 0 : index
    %c7 = arith.constant 7 : index
    %c0_20 = arith.constant 0 : index
    %18 = vector.load %arg1[%c0_19, %c7, %c0_20] : memref<1x66x64xbf16, #tpu.memory_space<vmem>>, vector<1x48x64xbf16>
    %19 = vector.shape_cast %18 : vector<1x48x64xbf16> to vector<48x64xbf16>
    %c0_21 = arith.constant 0 : index
    %c384 = arith.constant 384 : index
    %20 = vector.load %arg5[%c0_21, %c384] : memref<48x960xbf16, #tpu.memory_space<vmem>>, vector<48x64xbf16>
    tpu.vector_store %arg5[%c0_21, %c384], %19 {strides = array<i32>} : memref<48x960xbf16, #tpu.memory_space<vmem>>, vector<48x64xbf16>,
    %c0_22 = arith.constant 0 : index
    %c8 = arith.constant 8 : index
    %c0_23 = arith.constant 0 : index
    %21 = vector.load %arg1[%c0_22, %c8, %c0_23] : memref<1x66x64xbf16, #tpu.memory_space<vmem>>, vector<1x48x64xbf16>
    %22 = vector.shape_cast %21 : vector<1x48x64xbf16> to vector<48x64xbf16>
    %c0_24 = arith.constant 0 : index
    %c448 = arith.constant 448 : index
    %23 = vector.load %arg5[%c0_24, %c448] : memref<48x960xbf16, #tpu.memory_space<vmem>>, vector<48x64xbf16>
    tpu.vector_store %arg5[%c0_24, %c448], %22 {strides = array<i32>} : memref<48x960xbf16, #tpu.memory_space<vmem>>, vector<48x64xbf16>,
    %c0_25 = arith.constant 0 : index
    %c9 = arith.constant 9 : index
    %c0_26 = arith.constant 0 : index
    %24 = vector.load %arg1[%c0_25, %c9, %c0_26] : memref<1x66x64xbf16, #tpu.memory_space<vmem>>, vector<1x48x64xbf16>
    %25 = vector.shape_cast %24 : vector<1x48x64xbf16> to vector<48x64xbf16>
    %c0_27 = arith.constant 0 : index
    %c512 = arith.constant 512 : index
    %26 = vector.load %arg5[%c0_27, %c512] : memref<48x960xbf16, #tpu.memory_space<vmem>>, vector<48x64xbf16>
    tpu.vector_store %arg5[%c0_27, %c512], %25 {strides = array<i32>} : memref<48x960xbf16, #tpu.memory_space<vmem>>, vector<48x64xbf16>,
    %c0_28 = arith.constant 0 : index
    %c10 = arith.constant 10 : index
    %c0_29 = arith.constant 0 : index
    %27 = vector.load %arg1[%c0_28, %c10, %c0_29] : memref<1x66x64xbf16, #tpu.memory_space<vmem>>, vector<1x48x64xbf16>
    %28 = vector.shape_cast %27 : vector<1x48x64xbf16> to vector<48x64xbf16>
    %c0_30 = arith.constant 0 : index
    %c576 = arith.constant 576 : index
    %29 = vector.load %arg5[%c0_30, %c576] : memref<48x960xbf16, #tpu.memory_space<vmem>>, vector<48x64xbf16>
    tpu.vector_store %arg5[%c0_30, %c576], %28 {strides = array<i32>} : memref<48x960xbf16, #tpu.memory_space<vmem>>, vector<48x64xbf16>,
    %c0_31 = arith.constant 0 : index
    %c12 = arith.constant 12 : index
    %c0_32 = arith.constant 0 : index
    %30 = vector.load %arg1[%c0_31, %c12, %c0_32] : memref<1x66x64xbf16, #tpu.memory_space<vmem>>, vector<1x48x64xbf16>
    %31 = vector.shape_cast %30 : vector<1x48x64xbf16> to vector<48x64xbf16>
    %c0_33 = arith.constant 0 : index
    %c640 = arith.constant 640 : index
    %32 = vector.load %arg5[%c0_33, %c640] : memref<48x960xbf16, #tpu.memory_space<vmem>>, vector<48x64xbf16>
    tpu.vector_store %arg5[%c0_33, %c640], %31 {strides = array<i32>} : memref<48x960xbf16, #tpu.memory_space<vmem>>, vector<48x64xbf16>,
    %c0_34 = arith.constant 0 : index
    %c13 = arith.constant 13 : index
    %c0_35 = arith.constant 0 : index
    %33 = vector.load %arg1[%c0_34, %c13, %c0_35] : memref<1x66x64xbf16, #tpu.memory_space<vmem>>, vector<1x48x64xbf16>
    %34 = vector.shape_cast %33 : vector<1x48x64xbf16> to vector<48x64xbf16>
    %c0_36 = arith.constant 0 : index
    %c704 = arith.constant 704 : index
    %35 = vector.load %arg5[%c0_36, %c704] : memref<48x960xbf16, #tpu.memory_space<vmem>>, vector<48x64xbf16>
    tpu.vector_store %arg5[%c0_36, %c704], %34 {strides = array<i32>} : memref<48x960xbf16, #tpu.memory_space<vmem>>, vector<48x64xbf16>,
    %c0_37 = arith.constant 0 : index
    %c14 = arith.constant 14 : index
    %c0_38 = arith.constant 0 : index
    %36 = vector.load %arg1[%c0_37, %c14, %c0_38] : memref<1x66x64xbf16, #tpu.memory_space<vmem>>, vector<1x48x64xbf16>
    %37 = vector.shape_cast %36 : vector<1x48x64xbf16> to vector<48x64xbf16>
    %c0_39 = arith.constant 0 : index
    %c768 = arith.constant 768 : index
    %38 = vector.load %arg5[%c0_39, %c768] : memref<48x960xbf16, #tpu.memory_space<vmem>>, vector<48x64xbf16>
    tpu.vector_store %arg5[%c0_39, %c768], %37 {strides = array<i32>} : memref<48x960xbf16, #tpu.memory_space<vmem>>, vector<48x64xbf16>,
    %c0_40 = arith.constant 0 : index
    %c15 = arith.constant 15 : index
    %c0_41 = arith.constant 0 : index
    %39 = vector.load %arg1[%c0_40, %c15, %c0_41] : memref<1x66x64xbf16, #tpu.memory_space<vmem>>, vector<1x48x64xbf16>
    %40 = vector.shape_cast %39 : vector<1x48x64xbf16> to vector<48x64xbf16>
    %c0_42 = arith.constant 0 : index
    %c832 = arith.constant 832 : index
    %41 = vector.load %arg5[%c0_42, %c832] : memref<48x960xbf16, #tpu.memory_space<vmem>>, vector<48x64xbf16>
    tpu.vector_store %arg5[%c0_42, %c832], %40 {strides = array<i32>} : memref<48x960xbf16, #tpu.memory_space<vmem>>, vector<48x64xbf16>,
    %c0_43 = arith.constant 0 : index
    %c16 = arith.constant 16 : index
    %c0_44 = arith.constant 0 : index
    %42 = vector.load %arg1[%c0_43, %c16, %c0_44] : memref<1x66x64xbf16, #tpu.memory_space<vmem>>, vector<1x48x64xbf16>
    %43 = vector.shape_cast %42 : vector<1x48x64xbf16> to vector<48x64xbf16>
    %c0_45 = arith.constant 0 : index
    %c896 = arith.constant 896 : index
    %44 = vector.load %arg5[%c0_45, %c896] : memref<48x960xbf16, #tpu.memory_space<vmem>>, vector<48x64xbf16>
    tpu.vector_store %arg5[%c0_45, %c896], %43 {strides = array<i32>} : memref<48x960xbf16, #tpu.memory_space<vmem>>, vector<48x64xbf16>,
    %c0_46 = arith.constant 0 : index
    %c0_47 = arith.constant 0 : index
    %45 = vector.load %arg5[%c0_46, %c0_47] : memref<48x960xbf16, #tpu.memory_space<vmem>>, vector<48x960xbf16>
    %c0_48 = arith.constant 0 : index
    %c0_49 = arith.constant 0 : index
    %46 = vector.load %arg2[%c0_48, %c0_49] : memref<960x32xbf16, #tpu.memory_space<vmem>>, vector<960x32xbf16>
    %cst = arith.constant dense<0.000000e+00> : vector<48x32xf32>
    %47 = tpu.matmul %45, %46, %cst {dimension_numbers = #tpu.dot_dimension_numbers<[1], [0], [0], [1], [0, 0, 1, 1], [], []>} : vector<48x960xbf16>, vector<960x32xbf16>, vector<48x32xf32> -> vector<48x32xf32>
    %c0_50 = arith.constant 0 : index
    %c0_51 = arith.constant 0 : index
    %48 = vector.load %arg3[%c0_50, %c0_51] : memref<1x32xf32, #tpu.memory_space<vmem>>, vector<1x32xf32>
    %49 = vector.broadcast %48 : vector<1x32xf32> to vector<48x32xf32>
    %50 = arith.addf %47, %49 : vector<48x32xf32>
    %cst_52 = arith.constant 0.000000e+00 : f32
    %51 = vector.broadcast %cst_52 : f32 to vector<48x32xf32>
    %52 = arith.cmpf oge, %50, %51 : vector<48x32xf32>
    %cst_53 = arith.constant 1.000000e-01 : f32
    %53 = vector.broadcast %cst_53 : f32 to vector<48x32xf32>
    %54 = arith.mulf %53, %50 : vector<48x32xf32>
    %55 = arith.select %52, %50, %54 : vector<48x32xi1>, vector<48x32xf32>
    %56 = arith.truncf %55 : vector<48x32xf32> to vector<48x32xbf16>
    %c0_54 = arith.constant 0 : index
    %c0_55 = arith.constant 0 : index
    %c0_56 = arith.constant 0 : index
    %57 = vector.load %arg4[%c0_54, %c0_55, %c0_56] : memref<1x48x32xbf16, #tpu.memory_space<vmem>>, vector<1x48x32xbf16>
    %58 = vector.shape_cast %57 : vector<1x48x32xbf16> to vector<48x32xbf16>
    %59 = vector.shape_cast %56 : vector<48x32xbf16> to vector<1x48x32xbf16>
    tpu.vector_store %arg4[%c0_54, %c0_55, %c0_56], %59 {strides = array<i32>} : memref<1x48x32xbf16, #tpu.memory_space<vmem>>, vector<1x48x32xbf16>,
    return
  }
  func.func @transform_0(%arg0: i32) -> (i32, i32, i32) {
    %c0_i32 = arith.constant 0 : i32
    %c0_i32_0 = arith.constant 0 : i32
    %c0_i32_1 = arith.constant 0 : i32
    return %arg0, %c0_i32, %c0_i32_0 : i32, i32, i32
  }
  func.func @transform_1(%arg0: i32) -> (i32, i32) {
    %c0_i32 = arith.constant 0 : i32
    %c0_i32_0 = arith.constant 0 : i32
    %c0_i32_1 = arith.constant 0 : i32
    return %c0_i32, %c0_i32_0 : i32, i32
  }
  func.func @transform_2(%arg0: i32) -> (i32, i32) {
    %c0_i32 = arith.constant 0 : i32
    %c0_i32_0 = arith.constant 0 : i32
    %c0_i32_1 = arith.constant 0 : i32
    return %c0_i32, %c0_i32_0 : i32, i32
  }
  func.func @transform_3(%arg0: i32) -> (i32, i32, i32) {
    %c0_i32 = arith.constant 0 : i32
    %c0_i32_0 = arith.constant 0 : i32
    %c0_i32_1 = arith.constant 0 : i32
    return %arg0, %c0_i32, %c0_i32_0 : i32, i32, i32
  }
}

module attributes {stable_mosaic.version = 11 : i64} {
  func.func @kernel(%arg0: i32, %arg1: memref<1x55x64xbf16, #tpu.memory_space<vmem>>, %arg2: memref<960x32xbf16, #tpu.memory_space<vmem>>, %arg3: memref<1x32xf32, #tpu.memory_space<vmem>>, %arg4: memref<1x40x32xbf16, #tpu.memory_space<vmem>>, %arg5: memref<40x960xbf16, #tpu.memory_space<vmem>>) attributes {dimension_semantics = [#tpu.dimension_semantics<parallel>], iteration_bounds = array<i64: 2>, scalar_prefetch = 0 : i64, scratch_operands = 1 : i64, tpu.core_type = #tpu.core_type<tc>, window_params = [{transform_indices = @transform_0, window_bounds = array<i64: 1, 55, 64>}, {pipeline_mode = #tpu.pipeline_mode<synchronous>, transform_indices = @transform_1, window_bounds = array<i64: 960, 32>}, {pipeline_mode = #tpu.pipeline_mode<synchronous>, transform_indices = @transform_2, window_bounds = array<i64: 1, 32>}, {transform_indices = @transform_3, window_bounds = array<i64: 1, 40, 32>}]} {
    %c0 = arith.constant 0 : index
    %c0_0 = arith.constant 0 : index
    %c0_1 = arith.constant 0 : index
    %0 = vector.load %arg1[%c0, %c0_0, %c0_1] : memref<1x55x64xbf16, #tpu.memory_space<vmem>>, vector<1x40x64xbf16>
    %1 = vector.shape_cast %0 : vector<1x40x64xbf16> to vector<40x64xbf16>
    %c0_2 = arith.constant 0 : index
    %c0_3 = arith.constant 0 : index
    %2 = vector.load %arg5[%c0_2, %c0_3] : memref<40x960xbf16, #tpu.memory_space<vmem>>, vector<40x64xbf16>
    tpu.vector_store %arg5[%c0_2, %c0_3], %1 {strides = array<i32>} : memref<40x960xbf16, #tpu.memory_space<vmem>>, vector<40x64xbf16>,
    %c0_4 = arith.constant 0 : index
    %c1 = arith.constant 1 : index
    %c0_5 = arith.constant 0 : index
    %3 = vector.load %arg1[%c0_4, %c1, %c0_5] : memref<1x55x64xbf16, #tpu.memory_space<vmem>>, vector<1x40x64xbf16>
    %4 = vector.shape_cast %3 : vector<1x40x64xbf16> to vector<40x64xbf16>
    %c0_6 = arith.constant 0 : index
    %c64 = arith.constant 64 : index
    %5 = vector.load %arg5[%c0_6, %c64] : memref<40x960xbf16, #tpu.memory_space<vmem>>, vector<40x64xbf16>
    tpu.vector_store %arg5[%c0_6, %c64], %4 {strides = array<i32>} : memref<40x960xbf16, #tpu.memory_space<vmem>>, vector<40x64xbf16>,
    %c0_7 = arith.constant 0 : index
    %c2 = arith.constant 2 : index
    %c0_8 = arith.constant 0 : index
    %6 = vector.load %arg1[%c0_7, %c2, %c0_8] : memref<1x55x64xbf16, #tpu.memory_space<vmem>>, vector<1x40x64xbf16>
    %7 = vector.shape_cast %6 : vector<1x40x64xbf16> to vector<40x64xbf16>
    %c0_9 = arith.constant 0 : index
    %c128 = arith.constant 128 : index
    %8 = vector.load %arg5[%c0_9, %c128] : memref<40x960xbf16, #tpu.memory_space<vmem>>, vector<40x64xbf16>
    tpu.vector_store %arg5[%c0_9, %c128], %7 {strides = array<i32>} : memref<40x960xbf16, #tpu.memory_space<vmem>>, vector<40x64xbf16>,
    %c0_10 = arith.constant 0 : index
    %c3 = arith.constant 3 : index
    %c0_11 = arith.constant 0 : index
    %9 = vector.load %arg1[%c0_10, %c3, %c0_11] : memref<1x55x64xbf16, #tpu.memory_space<vmem>>, vector<1x40x64xbf16>
    %10 = vector.shape_cast %9 : vector<1x40x64xbf16> to vector<40x64xbf16>
    %c0_12 = arith.constant 0 : index
    %c192 = arith.constant 192 : index
    %11 = vector.load %arg5[%c0_12, %c192] : memref<40x960xbf16, #tpu.memory_space<vmem>>, vector<40x64xbf16>
    tpu.vector_store %arg5[%c0_12, %c192], %10 {strides = array<i32>} : memref<40x960xbf16, #tpu.memory_space<vmem>>, vector<40x64xbf16>,
    %c0_13 = arith.constant 0 : index
    %c4 = arith.constant 4 : index
    %c0_14 = arith.constant 0 : index
    %12 = vector.load %arg1[%c0_13, %c4, %c0_14] : memref<1x55x64xbf16, #tpu.memory_space<vmem>>, vector<1x40x64xbf16>
    %13 = vector.shape_cast %12 : vector<1x40x64xbf16> to vector<40x64xbf16>
    %c0_15 = arith.constant 0 : index
    %c256 = arith.constant 256 : index
    %14 = vector.load %arg5[%c0_15, %c256] : memref<40x960xbf16, #tpu.memory_space<vmem>>, vector<40x64xbf16>
    tpu.vector_store %arg5[%c0_15, %c256], %13 {strides = array<i32>} : memref<40x960xbf16, #tpu.memory_space<vmem>>, vector<40x64xbf16>,
    %c0_16 = arith.constant 0 : index
    %c5 = arith.constant 5 : index
    %c0_17 = arith.constant 0 : index
    %15 = vector.load %arg1[%c0_16, %c5, %c0_17] : memref<1x55x64xbf16, #tpu.memory_space<vmem>>, vector<1x40x64xbf16>
    %16 = vector.shape_cast %15 : vector<1x40x64xbf16> to vector<40x64xbf16>
    %c0_18 = arith.constant 0 : index
    %c320 = arith.constant 320 : index
    %17 = vector.load %arg5[%c0_18, %c320] : memref<40x960xbf16, #tpu.memory_space<vmem>>, vector<40x64xbf16>
    tpu.vector_store %arg5[%c0_18, %c320], %16 {strides = array<i32>} : memref<40x960xbf16, #tpu.memory_space<vmem>>, vector<40x64xbf16>,
    %c0_19 = arith.constant 0 : index
    %c6 = arith.constant 6 : index
    %c0_20 = arith.constant 0 : index
    %18 = vector.load %arg1[%c0_19, %c6, %c0_20] : memref<1x55x64xbf16, #tpu.memory_space<vmem>>, vector<1x40x64xbf16>
    %19 = vector.shape_cast %18 : vector<1x40x64xbf16> to vector<40x64xbf16>
    %c0_21 = arith.constant 0 : index
    %c384 = arith.constant 384 : index
    %20 = vector.load %arg5[%c0_21, %c384] : memref<40x960xbf16, #tpu.memory_space<vmem>>, vector<40x64xbf16>
    tpu.vector_store %arg5[%c0_21, %c384], %19 {strides = array<i32>} : memref<40x960xbf16, #tpu.memory_space<vmem>>, vector<40x64xbf16>,
    %c0_22 = arith.constant 0 : index
    %c7 = arith.constant 7 : index
    %c0_23 = arith.constant 0 : index
    %21 = vector.load %arg1[%c0_22, %c7, %c0_23] : memref<1x55x64xbf16, #tpu.memory_space<vmem>>, vector<1x40x64xbf16>
    %22 = vector.shape_cast %21 : vector<1x40x64xbf16> to vector<40x64xbf16>
    %c0_24 = arith.constant 0 : index
    %c448 = arith.constant 448 : index
    %23 = vector.load %arg5[%c0_24, %c448] : memref<40x960xbf16, #tpu.memory_space<vmem>>, vector<40x64xbf16>
    tpu.vector_store %arg5[%c0_24, %c448], %22 {strides = array<i32>} : memref<40x960xbf16, #tpu.memory_space<vmem>>, vector<40x64xbf16>,
    %c0_25 = arith.constant 0 : index
    %c8 = arith.constant 8 : index
    %c0_26 = arith.constant 0 : index
    %24 = vector.load %arg1[%c0_25, %c8, %c0_26] : memref<1x55x64xbf16, #tpu.memory_space<vmem>>, vector<1x40x64xbf16>
    %25 = vector.shape_cast %24 : vector<1x40x64xbf16> to vector<40x64xbf16>
    %c0_27 = arith.constant 0 : index
    %c512 = arith.constant 512 : index
    %26 = vector.load %arg5[%c0_27, %c512] : memref<40x960xbf16, #tpu.memory_space<vmem>>, vector<40x64xbf16>
    tpu.vector_store %arg5[%c0_27, %c512], %25 {strides = array<i32>} : memref<40x960xbf16, #tpu.memory_space<vmem>>, vector<40x64xbf16>,
    %c0_28 = arith.constant 0 : index
    %c9 = arith.constant 9 : index
    %c0_29 = arith.constant 0 : index
    %27 = vector.load %arg1[%c0_28, %c9, %c0_29] : memref<1x55x64xbf16, #tpu.memory_space<vmem>>, vector<1x40x64xbf16>
    %28 = vector.shape_cast %27 : vector<1x40x64xbf16> to vector<40x64xbf16>
    %c0_30 = arith.constant 0 : index
    %c576 = arith.constant 576 : index
    %29 = vector.load %arg5[%c0_30, %c576] : memref<40x960xbf16, #tpu.memory_space<vmem>>, vector<40x64xbf16>
    tpu.vector_store %arg5[%c0_30, %c576], %28 {strides = array<i32>} : memref<40x960xbf16, #tpu.memory_space<vmem>>, vector<40x64xbf16>,
    %c0_31 = arith.constant 0 : index
    %c10 = arith.constant 10 : index
    %c0_32 = arith.constant 0 : index
    %30 = vector.load %arg1[%c0_31, %c10, %c0_32] : memref<1x55x64xbf16, #tpu.memory_space<vmem>>, vector<1x40x64xbf16>
    %31 = vector.shape_cast %30 : vector<1x40x64xbf16> to vector<40x64xbf16>
    %c0_33 = arith.constant 0 : index
    %c640 = arith.constant 640 : index
    %32 = vector.load %arg5[%c0_33, %c640] : memref<40x960xbf16, #tpu.memory_space<vmem>>, vector<40x64xbf16>
    tpu.vector_store %arg5[%c0_33, %c640], %31 {strides = array<i32>} : memref<40x960xbf16, #tpu.memory_space<vmem>>, vector<40x64xbf16>,
    %c0_34 = arith.constant 0 : index
    %c11 = arith.constant 11 : index
    %c0_35 = arith.constant 0 : index
    %33 = vector.load %arg1[%c0_34, %c11, %c0_35] : memref<1x55x64xbf16, #tpu.memory_space<vmem>>, vector<1x40x64xbf16>
    %34 = vector.shape_cast %33 : vector<1x40x64xbf16> to vector<40x64xbf16>
    %c0_36 = arith.constant 0 : index
    %c704 = arith.constant 704 : index
    %35 = vector.load %arg5[%c0_36, %c704] : memref<40x960xbf16, #tpu.memory_space<vmem>>, vector<40x64xbf16>
    tpu.vector_store %arg5[%c0_36, %c704], %34 {strides = array<i32>} : memref<40x960xbf16, #tpu.memory_space<vmem>>, vector<40x64xbf16>,
    %c0_37 = arith.constant 0 : index
    %c12 = arith.constant 12 : index
    %c0_38 = arith.constant 0 : index
    %36 = vector.load %arg1[%c0_37, %c12, %c0_38] : memref<1x55x64xbf16, #tpu.memory_space<vmem>>, vector<1x40x64xbf16>
    %37 = vector.shape_cast %36 : vector<1x40x64xbf16> to vector<40x64xbf16>
    %c0_39 = arith.constant 0 : index
    %c768 = arith.constant 768 : index
    %38 = vector.load %arg5[%c0_39, %c768] : memref<40x960xbf16, #tpu.memory_space<vmem>>, vector<40x64xbf16>
    tpu.vector_store %arg5[%c0_39, %c768], %37 {strides = array<i32>} : memref<40x960xbf16, #tpu.memory_space<vmem>>, vector<40x64xbf16>,
    %c0_40 = arith.constant 0 : index
    %c13 = arith.constant 13 : index
    %c0_41 = arith.constant 0 : index
    %39 = vector.load %arg1[%c0_40, %c13, %c0_41] : memref<1x55x64xbf16, #tpu.memory_space<vmem>>, vector<1x40x64xbf16>
    %40 = vector.shape_cast %39 : vector<1x40x64xbf16> to vector<40x64xbf16>
    %c0_42 = arith.constant 0 : index
    %c832 = arith.constant 832 : index
    %41 = vector.load %arg5[%c0_42, %c832] : memref<40x960xbf16, #tpu.memory_space<vmem>>, vector<40x64xbf16>
    tpu.vector_store %arg5[%c0_42, %c832], %40 {strides = array<i32>} : memref<40x960xbf16, #tpu.memory_space<vmem>>, vector<40x64xbf16>,
    %c0_43 = arith.constant 0 : index
    %c14 = arith.constant 14 : index
    %c0_44 = arith.constant 0 : index
    %42 = vector.load %arg1[%c0_43, %c14, %c0_44] : memref<1x55x64xbf16, #tpu.memory_space<vmem>>, vector<1x40x64xbf16>
    %43 = vector.shape_cast %42 : vector<1x40x64xbf16> to vector<40x64xbf16>
    %c0_45 = arith.constant 0 : index
    %c896 = arith.constant 896 : index
    %44 = vector.load %arg5[%c0_45, %c896] : memref<40x960xbf16, #tpu.memory_space<vmem>>, vector<40x64xbf16>
    tpu.vector_store %arg5[%c0_45, %c896], %43 {strides = array<i32>} : memref<40x960xbf16, #tpu.memory_space<vmem>>, vector<40x64xbf16>,
    %c0_46 = arith.constant 0 : index
    %c0_47 = arith.constant 0 : index
    %45 = vector.load %arg5[%c0_46, %c0_47] : memref<40x960xbf16, #tpu.memory_space<vmem>>, vector<40x960xbf16>
    %c0_48 = arith.constant 0 : index
    %c0_49 = arith.constant 0 : index
    %46 = vector.load %arg2[%c0_48, %c0_49] : memref<960x32xbf16, #tpu.memory_space<vmem>>, vector<960x32xbf16>
    %cst = arith.constant dense<0.000000e+00> : vector<40x32xf32>
    %47 = tpu.matmul %45, %46, %cst {dimension_numbers = #tpu.dot_dimension_numbers<[1], [0], [0], [1], [0, 0, 1, 1], [], []>} : vector<40x960xbf16>, vector<960x32xbf16>, vector<40x32xf32> -> vector<40x32xf32>
    %c0_50 = arith.constant 0 : index
    %c0_51 = arith.constant 0 : index
    %48 = vector.load %arg3[%c0_50, %c0_51] : memref<1x32xf32, #tpu.memory_space<vmem>>, vector<1x32xf32>
    %49 = vector.broadcast %48 : vector<1x32xf32> to vector<40x32xf32>
    %50 = arith.addf %47, %49 : vector<40x32xf32>
    %cst_52 = arith.constant 0.000000e+00 : f32
    %51 = vector.broadcast %cst_52 : f32 to vector<40x32xf32>
    %52 = arith.cmpf oge, %50, %51 : vector<40x32xf32>
    %cst_53 = arith.constant 1.000000e-01 : f32
    %53 = vector.broadcast %cst_53 : f32 to vector<40x32xf32>
    %54 = arith.mulf %53, %50 : vector<40x32xf32>
    %55 = arith.select %52, %50, %54 : vector<40x32xi1>, vector<40x32xf32>
    %56 = arith.truncf %55 : vector<40x32xf32> to vector<40x32xbf16>
    %c0_54 = arith.constant 0 : index
    %c0_55 = arith.constant 0 : index
    %c0_56 = arith.constant 0 : index
    %57 = vector.load %arg4[%c0_54, %c0_55, %c0_56] : memref<1x40x32xbf16, #tpu.memory_space<vmem>>, vector<1x40x32xbf16>
    %58 = vector.shape_cast %57 : vector<1x40x32xbf16> to vector<40x32xbf16>
    %59 = vector.shape_cast %56 : vector<40x32xbf16> to vector<1x40x32xbf16>
    tpu.vector_store %arg4[%c0_54, %c0_55, %c0_56], %59 {strides = array<i32>} : memref<1x40x32xbf16, #tpu.memory_space<vmem>>, vector<1x40x32xbf16>,
    return
  }
  func.func @transform_0(%arg0: i32) -> (i32, i32, i32) {
    %c0_i32 = arith.constant 0 : i32
    %c0_i32_0 = arith.constant 0 : i32
    %c0_i32_1 = arith.constant 0 : i32
    return %arg0, %c0_i32, %c0_i32_0 : i32, i32, i32
  }
  func.func @transform_1(%arg0: i32) -> (i32, i32) {
    %c0_i32 = arith.constant 0 : i32
    %c0_i32_0 = arith.constant 0 : i32
    %c0_i32_1 = arith.constant 0 : i32
    return %c0_i32, %c0_i32_0 : i32, i32
  }
  func.func @transform_2(%arg0: i32) -> (i32, i32) {
    %c0_i32 = arith.constant 0 : i32
    %c0_i32_0 = arith.constant 0 : i32
    %c0_i32_1 = arith.constant 0 : i32
    return %c0_i32, %c0_i32_0 : i32, i32
  }
  func.func @transform_3(%arg0: i32) -> (i32, i32, i32) {
    %c0_i32 = arith.constant 0 : i32
    %c0_i32_0 = arith.constant 0 : i32
    %c0_i32_1 = arith.constant 0 : i32
    return %arg0, %c0_i32, %c0_i32_0 : i32, i32, i32
  }
}

module attributes {stable_mosaic.version = 11 : i64} {
  func.func @kernel(%arg0: i32, %arg1: memref<1x33x32xbf16, #tpu.memory_space<vmem>>, %arg2: memref<288x32xbf16, #tpu.memory_space<vmem>>, %arg3: memref<1x32xf32, #tpu.memory_space<vmem>>, %arg4: memref<1x24x32xbf16, #tpu.memory_space<vmem>>, %arg5: memref<24x288xbf16, #tpu.memory_space<vmem>>) attributes {dimension_semantics = [#tpu.dimension_semantics<parallel>], iteration_bounds = array<i64: 2>, scalar_prefetch = 0 : i64, scratch_operands = 1 : i64, tpu.core_type = #tpu.core_type<tc>, window_params = [{transform_indices = @transform_0, window_bounds = array<i64: 1, 33, 32>}, {pipeline_mode = #tpu.pipeline_mode<synchronous>, transform_indices = @transform_1, window_bounds = array<i64: 288, 32>}, {pipeline_mode = #tpu.pipeline_mode<synchronous>, transform_indices = @transform_2, window_bounds = array<i64: 1, 32>}, {transform_indices = @transform_3, window_bounds = array<i64: 1, 24, 32>}]} {
    %c0 = arith.constant 0 : index
    %c0_0 = arith.constant 0 : index
    %c0_1 = arith.constant 0 : index
    %0 = vector.load %arg1[%c0, %c0_0, %c0_1] : memref<1x33x32xbf16, #tpu.memory_space<vmem>>, vector<1x24x32xbf16>
    %1 = vector.shape_cast %0 : vector<1x24x32xbf16> to vector<24x32xbf16>
    %c0_2 = arith.constant 0 : index
    %c0_3 = arith.constant 0 : index
    %2 = vector.load %arg5[%c0_2, %c0_3] : memref<24x288xbf16, #tpu.memory_space<vmem>>, vector<24x32xbf16>
    tpu.vector_store %arg5[%c0_2, %c0_3], %1 {strides = array<i32>} : memref<24x288xbf16, #tpu.memory_space<vmem>>, vector<24x32xbf16>,
    %c0_4 = arith.constant 0 : index
    %c1 = arith.constant 1 : index
    %c0_5 = arith.constant 0 : index
    %3 = vector.load %arg1[%c0_4, %c1, %c0_5] : memref<1x33x32xbf16, #tpu.memory_space<vmem>>, vector<1x24x32xbf16>
    %4 = vector.shape_cast %3 : vector<1x24x32xbf16> to vector<24x32xbf16>
    %c0_6 = arith.constant 0 : index
    %c32 = arith.constant 32 : index
    %5 = vector.load %arg5[%c0_6, %c32] : memref<24x288xbf16, #tpu.memory_space<vmem>>, vector<24x32xbf16>
    tpu.vector_store %arg5[%c0_6, %c32], %4 {strides = array<i32>} : memref<24x288xbf16, #tpu.memory_space<vmem>>, vector<24x32xbf16>,
    %c0_7 = arith.constant 0 : index
    %c2 = arith.constant 2 : index
    %c0_8 = arith.constant 0 : index
    %6 = vector.load %arg1[%c0_7, %c2, %c0_8] : memref<1x33x32xbf16, #tpu.memory_space<vmem>>, vector<1x24x32xbf16>
    %7 = vector.shape_cast %6 : vector<1x24x32xbf16> to vector<24x32xbf16>
    %c0_9 = arith.constant 0 : index
    %c64 = arith.constant 64 : index
    %8 = vector.load %arg5[%c0_9, %c64] : memref<24x288xbf16, #tpu.memory_space<vmem>>, vector<24x32xbf16>
    tpu.vector_store %arg5[%c0_9, %c64], %7 {strides = array<i32>} : memref<24x288xbf16, #tpu.memory_space<vmem>>, vector<24x32xbf16>,
    %c0_10 = arith.constant 0 : index
    %c3 = arith.constant 3 : index
    %c0_11 = arith.constant 0 : index
    %9 = vector.load %arg1[%c0_10, %c3, %c0_11] : memref<1x33x32xbf16, #tpu.memory_space<vmem>>, vector<1x24x32xbf16>
    %10 = vector.shape_cast %9 : vector<1x24x32xbf16> to vector<24x32xbf16>
    %c0_12 = arith.constant 0 : index
    %c96 = arith.constant 96 : index
    %11 = vector.load %arg5[%c0_12, %c96] : memref<24x288xbf16, #tpu.memory_space<vmem>>, vector<24x32xbf16>
    tpu.vector_store %arg5[%c0_12, %c96], %10 {strides = array<i32>} : memref<24x288xbf16, #tpu.memory_space<vmem>>, vector<24x32xbf16>,
    %c0_13 = arith.constant 0 : index
    %c4 = arith.constant 4 : index
    %c0_14 = arith.constant 0 : index
    %12 = vector.load %arg1[%c0_13, %c4, %c0_14] : memref<1x33x32xbf16, #tpu.memory_space<vmem>>, vector<1x24x32xbf16>
    %13 = vector.shape_cast %12 : vector<1x24x32xbf16> to vector<24x32xbf16>
    %c0_15 = arith.constant 0 : index
    %c128 = arith.constant 128 : index
    %14 = vector.load %arg5[%c0_15, %c128] : memref<24x288xbf16, #tpu.memory_space<vmem>>, vector<24x32xbf16>
    tpu.vector_store %arg5[%c0_15, %c128], %13 {strides = array<i32>} : memref<24x288xbf16, #tpu.memory_space<vmem>>, vector<24x32xbf16>,
    %c0_16 = arith.constant 0 : index
    %c5 = arith.constant 5 : index
    %c0_17 = arith.constant 0 : index
    %15 = vector.load %arg1[%c0_16, %c5, %c0_17] : memref<1x33x32xbf16, #tpu.memory_space<vmem>>, vector<1x24x32xbf16>
    %16 = vector.shape_cast %15 : vector<1x24x32xbf16> to vector<24x32xbf16>
    %c0_18 = arith.constant 0 : index
    %c160 = arith.constant 160 : index
    %17 = vector.load %arg5[%c0_18, %c160] : memref<24x288xbf16, #tpu.memory_space<vmem>>, vector<24x32xbf16>
    tpu.vector_store %arg5[%c0_18, %c160], %16 {strides = array<i32>} : memref<24x288xbf16, #tpu.memory_space<vmem>>, vector<24x32xbf16>,
    %c0_19 = arith.constant 0 : index
    %c6 = arith.constant 6 : index
    %c0_20 = arith.constant 0 : index
    %18 = vector.load %arg1[%c0_19, %c6, %c0_20] : memref<1x33x32xbf16, #tpu.memory_space<vmem>>, vector<1x24x32xbf16>
    %19 = vector.shape_cast %18 : vector<1x24x32xbf16> to vector<24x32xbf16>
    %c0_21 = arith.constant 0 : index
    %c192 = arith.constant 192 : index
    %20 = vector.load %arg5[%c0_21, %c192] : memref<24x288xbf16, #tpu.memory_space<vmem>>, vector<24x32xbf16>
    tpu.vector_store %arg5[%c0_21, %c192], %19 {strides = array<i32>} : memref<24x288xbf16, #tpu.memory_space<vmem>>, vector<24x32xbf16>,
    %c0_22 = arith.constant 0 : index
    %c7 = arith.constant 7 : index
    %c0_23 = arith.constant 0 : index
    %21 = vector.load %arg1[%c0_22, %c7, %c0_23] : memref<1x33x32xbf16, #tpu.memory_space<vmem>>, vector<1x24x32xbf16>
    %22 = vector.shape_cast %21 : vector<1x24x32xbf16> to vector<24x32xbf16>
    %c0_24 = arith.constant 0 : index
    %c224 = arith.constant 224 : index
    %23 = vector.load %arg5[%c0_24, %c224] : memref<24x288xbf16, #tpu.memory_space<vmem>>, vector<24x32xbf16>
    tpu.vector_store %arg5[%c0_24, %c224], %22 {strides = array<i32>} : memref<24x288xbf16, #tpu.memory_space<vmem>>, vector<24x32xbf16>,
    %c0_25 = arith.constant 0 : index
    %c8 = arith.constant 8 : index
    %c0_26 = arith.constant 0 : index
    %24 = vector.load %arg1[%c0_25, %c8, %c0_26] : memref<1x33x32xbf16, #tpu.memory_space<vmem>>, vector<1x24x32xbf16>
    %25 = vector.shape_cast %24 : vector<1x24x32xbf16> to vector<24x32xbf16>
    %c0_27 = arith.constant 0 : index
    %c256 = arith.constant 256 : index
    %26 = vector.load %arg5[%c0_27, %c256] : memref<24x288xbf16, #tpu.memory_space<vmem>>, vector<24x32xbf16>
    tpu.vector_store %arg5[%c0_27, %c256], %25 {strides = array<i32>} : memref<24x288xbf16, #tpu.memory_space<vmem>>, vector<24x32xbf16>,
    %c0_28 = arith.constant 0 : index
    %c0_29 = arith.constant 0 : index
    %27 = vector.load %arg5[%c0_28, %c0_29] : memref<24x288xbf16, #tpu.memory_space<vmem>>, vector<24x288xbf16>
    %c0_30 = arith.constant 0 : index
    %c0_31 = arith.constant 0 : index
    %28 = vector.load %arg2[%c0_30, %c0_31] : memref<288x32xbf16, #tpu.memory_space<vmem>>, vector<288x32xbf16>
    %cst = arith.constant dense<0.000000e+00> : vector<24x32xf32>
    %29 = tpu.matmul %27, %28, %cst {dimension_numbers = #tpu.dot_dimension_numbers<[1], [0], [0], [1], [0, 0, 1, 1], [], []>} : vector<24x288xbf16>, vector<288x32xbf16>, vector<24x32xf32> -> vector<24x32xf32>
    %c0_32 = arith.constant 0 : index
    %c0_33 = arith.constant 0 : index
    %30 = vector.load %arg3[%c0_32, %c0_33] : memref<1x32xf32, #tpu.memory_space<vmem>>, vector<1x32xf32>
    %31 = vector.broadcast %30 : vector<1x32xf32> to vector<24x32xf32>
    %32 = arith.addf %29, %31 : vector<24x32xf32>
    %cst_34 = arith.constant 0.000000e+00 : f32
    %33 = vector.broadcast %cst_34 : f32 to vector<24x32xf32>
    %34 = arith.cmpf oge, %32, %33 : vector<24x32xf32>
    %cst_35 = arith.constant 1.000000e-01 : f32
    %35 = vector.broadcast %cst_35 : f32 to vector<24x32xf32>
    %36 = arith.mulf %35, %32 : vector<24x32xf32>
    %37 = arith.select %34, %32, %36 : vector<24x32xi1>, vector<24x32xf32>
    %38 = arith.truncf %37 : vector<24x32xf32> to vector<24x32xbf16>
    %c0_36 = arith.constant 0 : index
    %c0_37 = arith.constant 0 : index
    %c0_38 = arith.constant 0 : index
    %39 = vector.load %arg4[%c0_36, %c0_37, %c0_38] : memref<1x24x32xbf16, #tpu.memory_space<vmem>>, vector<1x24x32xbf16>
    %40 = vector.shape_cast %39 : vector<1x24x32xbf16> to vector<24x32xbf16>
    %41 = vector.shape_cast %38 : vector<24x32xbf16> to vector<1x24x32xbf16>
    tpu.vector_store %arg4[%c0_36, %c0_37, %c0_38], %41 {strides = array<i32>} : memref<1x24x32xbf16, #tpu.memory_space<vmem>>, vector<1x24x32xbf16>,
    return
  }
  func.func @transform_0(%arg0: i32) -> (i32, i32, i32) {
    %c0_i32 = arith.constant 0 : i32
    %c0_i32_0 = arith.constant 0 : i32
    %c0_i32_1 = arith.constant 0 : i32
    return %arg0, %c0_i32, %c0_i32_0 : i32, i32, i32
  }
  func.func @transform_1(%arg0: i32) -> (i32, i32) {
    %c0_i32 = arith.constant 0 : i32
    %c0_i32_0 = arith.constant 0 : i32
    %c0_i32_1 = arith.constant 0 : i32
    return %c0_i32, %c0_i32_0 : i32, i32
  }
  func.func @transform_2(%arg0: i32) -> (i32, i32) {
    %c0_i32 = arith.constant 0 : i32
    %c0_i32_0 = arith.constant 0 : i32
    %c0_i32_1 = arith.constant 0 : i32
    return %c0_i32, %c0_i32_0 : i32, i32
  }
  func.func @transform_3(%arg0: i32) -> (i32, i32, i32) {
    %c0_i32 = arith.constant 0 : i32
    %c0_i32_0 = arith.constant 0 : i32
    %c0_i32_1 = arith.constant 0 : i32
    return %arg0, %c0_i32, %c0_i32_0 : i32, i32, i32
  }
}

module attributes {stable_mosaic.version = 11 : i64} {
  func.func @kernel(%arg0: i32, %arg1: memref<1x36x64xbf16, #tpu.memory_space<vmem>>, %arg2: memref<64x32xbf16, #tpu.memory_space<vmem>>, %arg3: memref<1x32xf32, #tpu.memory_space<vmem>>, %arg4: memref<1x32x32xbf16, #tpu.memory_space<vmem>>) attributes {dimension_semantics = [#tpu.dimension_semantics<parallel>], iteration_bounds = array<i64: 2>, scalar_prefetch = 0 : i64, scratch_operands = 0 : i64, tpu.core_type = #tpu.core_type<tc>, window_params = [{transform_indices = @transform_0, window_bounds = array<i64: 1, 36, 64>}, {pipeline_mode = #tpu.pipeline_mode<synchronous>, transform_indices = @transform_1, window_bounds = array<i64: 64, 32>}, {pipeline_mode = #tpu.pipeline_mode<synchronous>, transform_indices = @transform_2, window_bounds = array<i64: 1, 32>}, {transform_indices = @transform_3, window_bounds = array<i64: 1, 32, 32>}]} {
    %c0 = arith.constant 0 : index
    %c0_0 = arith.constant 0 : index
    %c0_1 = arith.constant 0 : index
    %0 = vector.load %arg1[%c0, %c0_0, %c0_1] : memref<1x36x64xbf16, #tpu.memory_space<vmem>>, vector<1x32x64xbf16>
    %1 = vector.shape_cast %0 : vector<1x32x64xbf16> to vector<32x64xbf16>
    %c0_2 = arith.constant 0 : index
    %c0_3 = arith.constant 0 : index
    %2 = vector.load %arg2[%c0_2, %c0_3] : memref<64x32xbf16, #tpu.memory_space<vmem>>, vector<64x32xbf16>
    %cst = arith.constant dense<0.000000e+00> : vector<32x32xf32>
    %3 = tpu.matmul %1, %2, %cst {dimension_numbers = #tpu.dot_dimension_numbers<[1], [0], [0], [1], [0, 0, 1, 1], [], []>} : vector<32x64xbf16>, vector<64x32xbf16>, vector<32x32xf32> -> vector<32x32xf32>
    %c0_4 = arith.constant 0 : index
    %c0_5 = arith.constant 0 : index
    %4 = vector.load %arg3[%c0_4, %c0_5] : memref<1x32xf32, #tpu.memory_space<vmem>>, vector<1x32xf32>
    %5 = vector.broadcast %4 : vector<1x32xf32> to vector<32x32xf32>
    %6 = arith.addf %3, %5 : vector<32x32xf32>
    %cst_6 = arith.constant 0.000000e+00 : f32
    %7 = vector.broadcast %cst_6 : f32 to vector<32x32xf32>
    %8 = arith.cmpf oge, %6, %7 : vector<32x32xf32>
    %cst_7 = arith.constant 1.000000e-01 : f32
    %9 = vector.broadcast %cst_7 : f32 to vector<32x32xf32>
    %10 = arith.mulf %9, %6 : vector<32x32xf32>
    %11 = arith.select %8, %6, %10 : vector<32x32xi1>, vector<32x32xf32>
    %12 = arith.truncf %11 : vector<32x32xf32> to vector<32x32xbf16>
    %c0_8 = arith.constant 0 : index
    %c0_9 = arith.constant 0 : index
    %c0_10 = arith.constant 0 : index
    %13 = vector.load %arg4[%c0_8, %c0_9, %c0_10] : memref<1x32x32xbf16, #tpu.memory_space<vmem>>, vector<1x32x32xbf16>
    %14 = vector.shape_cast %13 : vector<1x32x32xbf16> to vector<32x32xbf16>
    %15 = vector.shape_cast %12 : vector<32x32xbf16> to vector<1x32x32xbf16>
    tpu.vector_store %arg4[%c0_8, %c0_9, %c0_10], %15 {strides = array<i32>} : memref<1x32x32xbf16, #tpu.memory_space<vmem>>, vector<1x32x32xbf16>,
    return
  }
  func.func @transform_0(%arg0: i32) -> (i32, i32, i32) {
    %c0_i32 = arith.constant 0 : i32
    %c0_i32_0 = arith.constant 0 : i32
    %c0_i32_1 = arith.constant 0 : i32
    return %arg0, %c0_i32, %c0_i32_0 : i32, i32, i32
  }
  func.func @transform_1(%arg0: i32) -> (i32, i32) {
    %c0_i32 = arith.constant 0 : i32
    %c0_i32_0 = arith.constant 0 : i32
    %c0_i32_1 = arith.constant 0 : i32
    return %c0_i32, %c0_i32_0 : i32, i32
  }
  func.func @transform_2(%arg0: i32) -> (i32, i32) {
    %c0_i32 = arith.constant 0 : i32
    %c0_i32_0 = arith.constant 0 : i32
    %c0_i32_1 = arith.constant 0 : i32
    return %c0_i32, %c0_i32_0 : i32, i32
  }
  func.func @transform_3(%arg0: i32) -> (i32, i32, i32) {
    %c0_i32 = arith.constant 0 : i32
    %c0_i32_0 = arith.constant 0 : i32
    %c0_i32_1 = arith.constant 0 : i32
    return %arg0, %c0_i32, %c0_i32_0 : i32, i32, i32
  }
}

module attributes {stable_mosaic.version = 11 : i64} {
  func.func @kernel(%arg0: i32, %arg1: memref<1x27x64xbf16, #tpu.memory_space<vmem>>, %arg2: memref<64x32xbf16, #tpu.memory_space<vmem>>, %arg3: memref<1x32xf32, #tpu.memory_space<vmem>>, %arg4: memref<1x24x32xbf16, #tpu.memory_space<vmem>>) attributes {dimension_semantics = [#tpu.dimension_semantics<parallel>], iteration_bounds = array<i64: 2>, scalar_prefetch = 0 : i64, scratch_operands = 0 : i64, tpu.core_type = #tpu.core_type<tc>, window_params = [{transform_indices = @transform_0, window_bounds = array<i64: 1, 27, 64>}, {pipeline_mode = #tpu.pipeline_mode<synchronous>, transform_indices = @transform_1, window_bounds = array<i64: 64, 32>}, {pipeline_mode = #tpu.pipeline_mode<synchronous>, transform_indices = @transform_2, window_bounds = array<i64: 1, 32>}, {transform_indices = @transform_3, window_bounds = array<i64: 1, 24, 32>}]} {
    %c0 = arith.constant 0 : index
    %c0_0 = arith.constant 0 : index
    %c0_1 = arith.constant 0 : index
    %0 = vector.load %arg1[%c0, %c0_0, %c0_1] : memref<1x27x64xbf16, #tpu.memory_space<vmem>>, vector<1x24x64xbf16>
    %1 = vector.shape_cast %0 : vector<1x24x64xbf16> to vector<24x64xbf16>
    %c0_2 = arith.constant 0 : index
    %c0_3 = arith.constant 0 : index
    %2 = vector.load %arg2[%c0_2, %c0_3] : memref<64x32xbf16, #tpu.memory_space<vmem>>, vector<64x32xbf16>
    %cst = arith.constant dense<0.000000e+00> : vector<24x32xf32>
    %3 = tpu.matmul %1, %2, %cst {dimension_numbers = #tpu.dot_dimension_numbers<[1], [0], [0], [1], [0, 0, 1, 1], [], []>} : vector<24x64xbf16>, vector<64x32xbf16>, vector<24x32xf32> -> vector<24x32xf32>
    %c0_4 = arith.constant 0 : index
    %c0_5 = arith.constant 0 : index
    %4 = vector.load %arg3[%c0_4, %c0_5] : memref<1x32xf32, #tpu.memory_space<vmem>>, vector<1x32xf32>
    %5 = vector.broadcast %4 : vector<1x32xf32> to vector<24x32xf32>
    %6 = arith.addf %3, %5 : vector<24x32xf32>
    %cst_6 = arith.constant 0.000000e+00 : f32
    %7 = vector.broadcast %cst_6 : f32 to vector<24x32xf32>
    %8 = arith.cmpf oge, %6, %7 : vector<24x32xf32>
    %cst_7 = arith.constant 1.000000e-01 : f32
    %9 = vector.broadcast %cst_7 : f32 to vector<24x32xf32>
    %10 = arith.mulf %9, %6 : vector<24x32xf32>
    %11 = arith.select %8, %6, %10 : vector<24x32xi1>, vector<24x32xf32>
    %12 = arith.truncf %11 : vector<24x32xf32> to vector<24x32xbf16>
    %c0_8 = arith.constant 0 : index
    %c0_9 = arith.constant 0 : index
    %c0_10 = arith.constant 0 : index
    %13 = vector.load %arg4[%c0_8, %c0_9, %c0_10] : memref<1x24x32xbf16, #tpu.memory_space<vmem>>, vector<1x24x32xbf16>
    %14 = vector.shape_cast %13 : vector<1x24x32xbf16> to vector<24x32xbf16>
    %15 = vector.shape_cast %12 : vector<24x32xbf16> to vector<1x24x32xbf16>
    tpu.vector_store %arg4[%c0_8, %c0_9, %c0_10], %15 {strides = array<i32>} : memref<1x24x32xbf16, #tpu.memory_space<vmem>>, vector<1x24x32xbf16>,
    return
  }
  func.func @transform_0(%arg0: i32) -> (i32, i32, i32) {
    %c0_i32 = arith.constant 0 : i32
    %c0_i32_0 = arith.constant 0 : i32
    %c0_i32_1 = arith.constant 0 : i32
    return %arg0, %c0_i32, %c0_i32_0 : i32, i32, i32
  }
  func.func @transform_1(%arg0: i32) -> (i32, i32) {
    %c0_i32 = arith.constant 0 : i32
    %c0_i32_0 = arith.constant 0 : i32
    %c0_i32_1 = arith.constant 0 : i32
    return %c0_i32, %c0_i32_0 : i32, i32
  }
  func.func @transform_2(%arg0: i32) -> (i32, i32) {
    %c0_i32 = arith.constant 0 : i32
    %c0_i32_0 = arith.constant 0 : i32
    %c0_i32_1 = arith.constant 0 : i32
    return %c0_i32, %c0_i32_0 : i32, i32
  }
  func.func @transform_3(%arg0: i32) -> (i32, i32, i32) {
    %c0_i32 = arith.constant 0 : i32
    %c0_i32_0 = arith.constant 0 : i32
    %c0_i32_1 = arith.constant 0 : i32
    return %arg0, %c0_i32, %c0_i32_0 : i32, i32, i32
  }
}

module attributes {stable_mosaic.version = 11 : i64} {
  func.func @kernel(%arg0: i32, %arg1: memref<1x9x64xbf16, #tpu.memory_space<vmem>>, %arg2: memref<64x32xbf16, #tpu.memory_space<vmem>>, %arg3: memref<1x32xf32, #tpu.memory_space<vmem>>, %arg4: memref<1x8x32xbf16, #tpu.memory_space<vmem>>) attributes {dimension_semantics = [#tpu.dimension_semantics<parallel>], iteration_bounds = array<i64: 2>, scalar_prefetch = 0 : i64, scratch_operands = 0 : i64, tpu.core_type = #tpu.core_type<tc>, window_params = [{transform_indices = @transform_0, window_bounds = array<i64: 1, 9, 64>}, {pipeline_mode = #tpu.pipeline_mode<synchronous>, transform_indices = @transform_1, window_bounds = array<i64: 64, 32>}, {pipeline_mode = #tpu.pipeline_mode<synchronous>, transform_indices = @transform_2, window_bounds = array<i64: 1, 32>}, {transform_indices = @transform_3, window_bounds = array<i64: 1, 8, 32>}]} {
    %c0 = arith.constant 0 : index
    %c0_0 = arith.constant 0 : index
    %c0_1 = arith.constant 0 : index
    %0 = vector.load %arg1[%c0, %c0_0, %c0_1] : memref<1x9x64xbf16, #tpu.memory_space<vmem>>, vector<1x8x64xbf16>
    %1 = vector.shape_cast %0 : vector<1x8x64xbf16> to vector<8x64xbf16>
    %c0_2 = arith.constant 0 : index
    %c0_3 = arith.constant 0 : index
    %2 = vector.load %arg2[%c0_2, %c0_3] : memref<64x32xbf16, #tpu.memory_space<vmem>>, vector<64x32xbf16>
    %cst = arith.constant dense<0.000000e+00> : vector<8x32xf32>
    %3 = tpu.matmul %1, %2, %cst {dimension_numbers = #tpu.dot_dimension_numbers<[1], [0], [0], [1], [0, 0, 1, 1], [], []>} : vector<8x64xbf16>, vector<64x32xbf16>, vector<8x32xf32> -> vector<8x32xf32>
    %c0_4 = arith.constant 0 : index
    %c0_5 = arith.constant 0 : index
    %4 = vector.load %arg3[%c0_4, %c0_5] : memref<1x32xf32, #tpu.memory_space<vmem>>, vector<1x32xf32>
    %5 = vector.broadcast %4 : vector<1x32xf32> to vector<8x32xf32>
    %6 = arith.addf %3, %5 : vector<8x32xf32>
    %cst_6 = arith.constant 0.000000e+00 : f32
    %7 = vector.broadcast %cst_6 : f32 to vector<8x32xf32>
    %8 = arith.cmpf oge, %6, %7 : vector<8x32xf32>
    %cst_7 = arith.constant 1.000000e-01 : f32
    %9 = vector.broadcast %cst_7 : f32 to vector<8x32xf32>
    %10 = arith.mulf %9, %6 : vector<8x32xf32>
    %11 = arith.select %8, %6, %10 : vector<8x32xi1>, vector<8x32xf32>
    %12 = arith.truncf %11 : vector<8x32xf32> to vector<8x32xbf16>
    %c0_8 = arith.constant 0 : index
    %c0_9 = arith.constant 0 : index
    %c0_10 = arith.constant 0 : index
    %13 = vector.load %arg4[%c0_8, %c0_9, %c0_10] : memref<1x8x32xbf16, #tpu.memory_space<vmem>>, vector<1x8x32xbf16>
    %14 = vector.shape_cast %13 : vector<1x8x32xbf16> to vector<8x32xbf16>
    %15 = vector.shape_cast %12 : vector<8x32xbf16> to vector<1x8x32xbf16>
    tpu.vector_store %arg4[%c0_8, %c0_9, %c0_10], %15 {strides = array<i32>} : memref<1x8x32xbf16, #tpu.memory_space<vmem>>, vector<1x8x32xbf16>,
    return
  }
  func.func @transform_0(%arg0: i32) -> (i32, i32, i32) {
    %c0_i32 = arith.constant 0 : i32
    %c0_i32_0 = arith.constant 0 : i32
    %c0_i32_1 = arith.constant 0 : i32
    return %arg0, %c0_i32, %c0_i32_0 : i32, i32, i32
  }
  func.func @transform_1(%arg0: i32) -> (i32, i32) {
    %c0_i32 = arith.constant 0 : i32
    %c0_i32_0 = arith.constant 0 : i32
    %c0_i32_1 = arith.constant 0 : i32
    return %c0_i32, %c0_i32_0 : i32, i32
  }
  func.func @transform_2(%arg0: i32) -> (i32, i32) {
    %c0_i32 = arith.constant 0 : i32
    %c0_i32_0 = arith.constant 0 : i32
    %c0_i32_1 = arith.constant 0 : i32
    return %c0_i32, %c0_i32_0 : i32, i32
  }
  func.func @transform_3(%arg0: i32) -> (i32, i32, i32) {
    %c0_i32 = arith.constant 0 : i32
    %c0_i32_0 = arith.constant 0 : i32
    %c0_i32_1 = arith.constant 0 : i32
    return %arg0, %c0_i32, %c0_i32_0 : i32, i32, i32
  }
}

module attributes {stable_mosaic.version = 11 : i64} {
  func.func @kernel(%arg0: i32, %arg1: memref<1x77x32xbf16, #tpu.memory_space<vmem>>, %arg2: memref<288x32xbf16, #tpu.memory_space<vmem>>, %arg3: memref<1x32xf32, #tpu.memory_space<vmem>>, %arg4: memref<1x56x32xbf16, #tpu.memory_space<vmem>>, %arg5: memref<56x288xbf16, #tpu.memory_space<vmem>>) attributes {dimension_semantics = [#tpu.dimension_semantics<parallel>], iteration_bounds = array<i64: 2>, scalar_prefetch = 0 : i64, scratch_operands = 1 : i64, tpu.core_type = #tpu.core_type<tc>, window_params = [{transform_indices = @transform_0, window_bounds = array<i64: 1, 77, 32>}, {pipeline_mode = #tpu.pipeline_mode<synchronous>, transform_indices = @transform_1, window_bounds = array<i64: 288, 32>}, {pipeline_mode = #tpu.pipeline_mode<synchronous>, transform_indices = @transform_2, window_bounds = array<i64: 1, 32>}, {transform_indices = @transform_3, window_bounds = array<i64: 1, 56, 32>}]} {
    %c0 = arith.constant 0 : index
    %c0_0 = arith.constant 0 : index
    %c0_1 = arith.constant 0 : index
    %0 = vector.load %arg1[%c0, %c0_0, %c0_1] : memref<1x77x32xbf16, #tpu.memory_space<vmem>>, vector<1x56x32xbf16>
    %1 = vector.shape_cast %0 : vector<1x56x32xbf16> to vector<56x32xbf16>
    %c0_2 = arith.constant 0 : index
    %c0_3 = arith.constant 0 : index
    %2 = vector.load %arg5[%c0_2, %c0_3] : memref<56x288xbf16, #tpu.memory_space<vmem>>, vector<56x32xbf16>
    tpu.vector_store %arg5[%c0_2, %c0_3], %1 {strides = array<i32>} : memref<56x288xbf16, #tpu.memory_space<vmem>>, vector<56x32xbf16>,
    %c0_4 = arith.constant 0 : index
    %c1 = arith.constant 1 : index
    %c0_5 = arith.constant 0 : index
    %3 = vector.load %arg1[%c0_4, %c1, %c0_5] : memref<1x77x32xbf16, #tpu.memory_space<vmem>>, vector<1x56x32xbf16>
    %4 = vector.shape_cast %3 : vector<1x56x32xbf16> to vector<56x32xbf16>
    %c0_6 = arith.constant 0 : index
    %c32 = arith.constant 32 : index
    %5 = vector.load %arg5[%c0_6, %c32] : memref<56x288xbf16, #tpu.memory_space<vmem>>, vector<56x32xbf16>
    tpu.vector_store %arg5[%c0_6, %c32], %4 {strides = array<i32>} : memref<56x288xbf16, #tpu.memory_space<vmem>>, vector<56x32xbf16>,
    %c0_7 = arith.constant 0 : index
    %c2 = arith.constant 2 : index
    %c0_8 = arith.constant 0 : index
    %6 = vector.load %arg1[%c0_7, %c2, %c0_8] : memref<1x77x32xbf16, #tpu.memory_space<vmem>>, vector<1x56x32xbf16>
    %7 = vector.shape_cast %6 : vector<1x56x32xbf16> to vector<56x32xbf16>
    %c0_9 = arith.constant 0 : index
    %c64 = arith.constant 64 : index
    %8 = vector.load %arg5[%c0_9, %c64] : memref<56x288xbf16, #tpu.memory_space<vmem>>, vector<56x32xbf16>
    tpu.vector_store %arg5[%c0_9, %c64], %7 {strides = array<i32>} : memref<56x288xbf16, #tpu.memory_space<vmem>>, vector<56x32xbf16>,
    %c0_10 = arith.constant 0 : index
    %c7 = arith.constant 7 : index
    %c0_11 = arith.constant 0 : index
    %9 = vector.load %arg1[%c0_10, %c7, %c0_11] : memref<1x77x32xbf16, #tpu.memory_space<vmem>>, vector<1x56x32xbf16>
    %10 = vector.shape_cast %9 : vector<1x56x32xbf16> to vector<56x32xbf16>
    %c0_12 = arith.constant 0 : index
    %c96 = arith.constant 96 : index
    %11 = vector.load %arg5[%c0_12, %c96] : memref<56x288xbf16, #tpu.memory_space<vmem>>, vector<56x32xbf16>
    tpu.vector_store %arg5[%c0_12, %c96], %10 {strides = array<i32>} : memref<56x288xbf16, #tpu.memory_space<vmem>>, vector<56x32xbf16>,
    %c0_13 = arith.constant 0 : index
    %c8 = arith.constant 8 : index
    %c0_14 = arith.constant 0 : index
    %12 = vector.load %arg1[%c0_13, %c8, %c0_14] : memref<1x77x32xbf16, #tpu.memory_space<vmem>>, vector<1x56x32xbf16>
    %13 = vector.shape_cast %12 : vector<1x56x32xbf16> to vector<56x32xbf16>
    %c0_15 = arith.constant 0 : index
    %c128 = arith.constant 128 : index
    %14 = vector.load %arg5[%c0_15, %c128] : memref<56x288xbf16, #tpu.memory_space<vmem>>, vector<56x32xbf16>
    tpu.vector_store %arg5[%c0_15, %c128], %13 {strides = array<i32>} : memref<56x288xbf16, #tpu.memory_space<vmem>>, vector<56x32xbf16>,
    %c0_16 = arith.constant 0 : index
    %c9 = arith.constant 9 : index
    %c0_17 = arith.constant 0 : index
    %15 = vector.load %arg1[%c0_16, %c9, %c0_17] : memref<1x77x32xbf16, #tpu.memory_space<vmem>>, vector<1x56x32xbf16>
    %16 = vector.shape_cast %15 : vector<1x56x32xbf16> to vector<56x32xbf16>
    %c0_18 = arith.constant 0 : index
    %c160 = arith.constant 160 : index
    %17 = vector.load %arg5[%c0_18, %c160] : memref<56x288xbf16, #tpu.memory_space<vmem>>, vector<56x32xbf16>
    tpu.vector_store %arg5[%c0_18, %c160], %16 {strides = array<i32>} : memref<56x288xbf16, #tpu.memory_space<vmem>>, vector<56x32xbf16>,
    %c0_19 = arith.constant 0 : index
    %c14 = arith.constant 14 : index
    %c0_20 = arith.constant 0 : index
    %18 = vector.load %arg1[%c0_19, %c14, %c0_20] : memref<1x77x32xbf16, #tpu.memory_space<vmem>>, vector<1x56x32xbf16>
    %19 = vector.shape_cast %18 : vector<1x56x32xbf16> to vector<56x32xbf16>
    %c0_21 = arith.constant 0 : index
    %c192 = arith.constant 192 : index
    %20 = vector.load %arg5[%c0_21, %c192] : memref<56x288xbf16, #tpu.memory_space<vmem>>, vector<56x32xbf16>
    tpu.vector_store %arg5[%c0_21, %c192], %19 {strides = array<i32>} : memref<56x288xbf16, #tpu.memory_space<vmem>>, vector<56x32xbf16>,
    %c0_22 = arith.constant 0 : index
    %c15 = arith.constant 15 : index
    %c0_23 = arith.constant 0 : index
    %21 = vector.load %arg1[%c0_22, %c15, %c0_23] : memref<1x77x32xbf16, #tpu.memory_space<vmem>>, vector<1x56x32xbf16>
    %22 = vector.shape_cast %21 : vector<1x56x32xbf16> to vector<56x32xbf16>
    %c0_24 = arith.constant 0 : index
    %c224 = arith.constant 224 : index
    %23 = vector.load %arg5[%c0_24, %c224] : memref<56x288xbf16, #tpu.memory_space<vmem>>, vector<56x32xbf16>
    tpu.vector_store %arg5[%c0_24, %c224], %22 {strides = array<i32>} : memref<56x288xbf16, #tpu.memory_space<vmem>>, vector<56x32xbf16>,
    %c0_25 = arith.constant 0 : index
    %c16 = arith.constant 16 : index
    %c0_26 = arith.constant 0 : index
    %24 = vector.load %arg1[%c0_25, %c16, %c0_26] : memref<1x77x32xbf16, #tpu.memory_space<vmem>>, vector<1x56x32xbf16>
    %25 = vector.shape_cast %24 : vector<1x56x32xbf16> to vector<56x32xbf16>
    %c0_27 = arith.constant 0 : index
    %c256 = arith.constant 256 : index
    %26 = vector.load %arg5[%c0_27, %c256] : memref<56x288xbf16, #tpu.memory_space<vmem>>, vector<56x32xbf16>
    tpu.vector_store %arg5[%c0_27, %c256], %25 {strides = array<i32>} : memref<56x288xbf16, #tpu.memory_space<vmem>>, vector<56x32xbf16>,
    %c0_28 = arith.constant 0 : index
    %c0_29 = arith.constant 0 : index
    %27 = vector.load %arg5[%c0_28, %c0_29] : memref<56x288xbf16, #tpu.memory_space<vmem>>, vector<56x288xbf16>
    %c0_30 = arith.constant 0 : index
    %c0_31 = arith.constant 0 : index
    %28 = vector.load %arg2[%c0_30, %c0_31] : memref<288x32xbf16, #tpu.memory_space<vmem>>, vector<288x32xbf16>
    %cst = arith.constant dense<0.000000e+00> : vector<56x32xf32>
    %29 = tpu.matmul %27, %28, %cst {dimension_numbers = #tpu.dot_dimension_numbers<[1], [0], [0], [1], [0, 0, 1, 1], [], []>} : vector<56x288xbf16>, vector<288x32xbf16>, vector<56x32xf32> -> vector<56x32xf32>
    %c0_32 = arith.constant 0 : index
    %c0_33 = arith.constant 0 : index
    %30 = vector.load %arg3[%c0_32, %c0_33] : memref<1x32xf32, #tpu.memory_space<vmem>>, vector<1x32xf32>
    %31 = vector.broadcast %30 : vector<1x32xf32> to vector<56x32xf32>
    %32 = arith.addf %29, %31 : vector<56x32xf32>
    %33 = arith.truncf %32 : vector<56x32xf32> to vector<56x32xbf16>
    %c0_34 = arith.constant 0 : index
    %c0_35 = arith.constant 0 : index
    %c0_36 = arith.constant 0 : index
    %34 = vector.load %arg4[%c0_34, %c0_35, %c0_36] : memref<1x56x32xbf16, #tpu.memory_space<vmem>>, vector<1x56x32xbf16>
    %35 = vector.shape_cast %34 : vector<1x56x32xbf16> to vector<56x32xbf16>
    %36 = vector.shape_cast %33 : vector<56x32xbf16> to vector<1x56x32xbf16>
    tpu.vector_store %arg4[%c0_34, %c0_35, %c0_36], %36 {strides = array<i32>} : memref<1x56x32xbf16, #tpu.memory_space<vmem>>, vector<1x56x32xbf16>,
    return
  }
  func.func @transform_0(%arg0: i32) -> (i32, i32, i32) {
    %c0_i32 = arith.constant 0 : i32
    %c0_i32_0 = arith.constant 0 : i32
    %c0_i32_1 = arith.constant 0 : i32
    return %arg0, %c0_i32, %c0_i32_0 : i32, i32, i32
  }
  func.func @transform_1(%arg0: i32) -> (i32, i32) {
    %c0_i32 = arith.constant 0 : i32
    %c0_i32_0 = arith.constant 0 : i32
    %c0_i32_1 = arith.constant 0 : i32
    return %c0_i32, %c0_i32_0 : i32, i32
  }
  func.func @transform_2(%arg0: i32) -> (i32, i32) {
    %c0_i32 = arith.constant 0 : i32
    %c0_i32_0 = arith.constant 0 : i32
    %c0_i32_1 = arith.constant 0 : i32
    return %c0_i32, %c0_i32_0 : i32, i32
  }
  func.func @transform_3(%arg0: i32) -> (i32, i32, i32) {
    %c0_i32 = arith.constant 0 : i32
    %c0_i32_0 = arith.constant 0 : i32
    %c0_i32_1 = arith.constant 0 : i32
    return %arg0, %c0_i32, %c0_i32_0 : i32, i32, i32
  }
}

</mosaic_0001>

<bundles_post_ra>
// kernel: _lambda_.27
= control target key start
LH: loop header
LB: loop body
LE: loop exit
PB: predicated region body
PF: predicated region fallthrough
CT: control target
= control target key end

     0   :  { %vm17_vm0 = vcmask 261120   ;;  %s320_s1 = inlined_call_operand.vmem [shape: f32[32,128], index: 1, kind: input, shape index: {}]   ;;  %s321_s0 = inlined_call_operand.vmem [shape: f32[16,32], index: 0, kind: input, shape index: {}]   ;;  %s322_s2 = inlined_call_operand.vmem [shape: f32[16,128], index: 2, kind: output, shape index: {}]  }
   0x1   :  { %v16_v0 = vld [vmem:[%s320_s1 + $0x18] sm:$0xff]  ;;  %v15_v1 = vld [vmem:[%s320_s1 + $0x10] sm:$0xff]  ;;  %v14_v2 = vld [vmem:[%s320_s1 + $0x8] sm:$0xff] }
   0x2   :  { %v36_v3 = vand.u32 4294901760, %v16_v0  ;;  %v278_v4 = vand.u32 4294901760, %v15_v1  ;;  %v280_v5 = vand.u32 4294901760, %v14_v2  ;;  %v13_v6 = vld [vmem:[%s320_s1] sm:$0xff]  ;;  %v12_v7 = vld [vmem:[%s321_s0 + $0x8] sm:$0xff] }
   0x3   :  { %v11_v8 = vld [vmem:[%s321_s0] sm:$0xff]  ;;  %v291_v9 = vand.u32 4294901760, %v13_v6  ;;  %v22_v10 = vsel %vm17_vm0, %v12_v7, 0 }
   0x4   :  { %v19_v11 = vsel %vm17_vm0, %v11_v8, 0  ;;  %246 = vmatpush.msra.mxu2 %v36_v3  ;;  %v74_v12 = vsub.f32 %v16_v0, %v36_v3  ;;  %v293_v13 = vand.u32 4294901760, %v22_v10  ;;  %v80_v14 = vsub.f32 %v15_v1, %v278_v4  ;;  %37 = vmatpush.msra.mxu0 %v36_v3 }
   0x5   :  { %v86_v15 = vsub.f32 %v14_v2, %v280_v5  ;;  %v92_v16 = vsub.f32 %v13_v6, %v291_v9  ;;  %v44_v17 = vand.u32 4294901760, %v19_v11 }
   0x6   :  { %247 = vmatpush.msra.mxu2 %v278_v4  ;;  %v75_v18 = vand.u32 4294901760, %v74_v12  ;;  %v53_v19 = vsub.f32 %v22_v10, %v293_v13  ;;  %v81_v20 = vand.u32 4294901760, %v80_v14  ;;  %39 = vmatpush.msra.mxu0 %v278_v4 }
   0x7   :  { %v87_v21 = vand.u32 4294901760, %v86_v15  ;;  %v93_v22 = vand.u32 4294901760, %v92_v16  ;;  %v45_v23 = vsub.f32 %v19_v11, %v44_v17 }
   0x8   :  { %248 = vmatpush.msra.mxu2 %v280_v5  ;;  %v76_v24 = vsub.f32 %v74_v12, %v75_v18  ;;  %v54_v25 = vand.u32 4294901760, %v53_v19  ;;  %v82_v26 = vsub.f32 %v80_v14, %v81_v20  ;;  %41 = vmatpush.msra.mxu0 %v280_v5 }
   0x9   :  { %v88_v27 = vsub.f32 %v86_v15, %v87_v21  ;;  %v46_v28 = vand.u32 4294901760, %v45_v23  ;;  %v94_v32 = vsub.f32 %v92_v16, %v93_v22 }
   0xa   :  { %249 = vmatpush.msra.mxu2 %v291_v9  ;;  %v77_v29 = vand.u32 4294901760, %v76_v24  ;;  %v55_v30 = vsub.f32 %v53_v19, %v54_v25  ;;  %v83_v31 = vand.u32 4294901760, %v82_v26  ;;  %43 = vmatpush.msra.mxu0 %v291_v9 }
   0xb   :  { %v47_v33 = vsub.f32 %v45_v23, %v46_v28  ;;  %v89_v35 = vand.u32 4294901760, %v88_v27  ;;  %v95_v37 = vand.u32 4294901760, %v94_v32 }
   0xc   :  { %120 = vmatpush.msrb.mxu2 %v74_v12  ;;  %189 = vmatpush.msrb.mxu0 %v75_v18  ;;  %v56_v34 = vand.u32 4294901760, %v55_v30 }
   0xd   :  { %250 = vmatpush.msra.mxu3 %v77_v29  ;;  %78 = vmatpush.msra.mxu1 %v77_v29  ;;  %v48_v36 = vand.u32 4294901760, %v47_v33 }
   0xe   :  { %123 = vmatpush.msrb.mxu2 %v80_v14  ;;  %193 = vmatpush.msrb.mxu0 %v81_v20 }
   0xf   :  { %57 = vmatmul.f32.vlgmr.msra.gmra.mxu2 %v56_v34  ;;  %251 = vmatpush.msra.mxu3 %v83_v31 }
  0x10   :  { %126 = vmatpush.msrb.mxu2 %v86_v15  ;;  %84 = vmatpush.msra.mxu1 %v83_v31 }
  0x11   :  { %252 = vmatpush.msra.mxu3 %v89_v35  ;;  %49 = vmatmul.f32.vlgmr.msra.gmra.mxu0 %v48_v36 }
  0x12   :  { %129 = vmatpush.msrb.mxu2 %v92_v16  ;;  %90 = vmatpush.msra.mxu1 %v89_v35 }
  0x13   :  { %253 = vmatpush.msra.mxu3 %v95_v37  ;;  %197 = vmatpush.msrb.mxu0 %v87_v21 }
  0x14   :  { %102 = vmatmul.f32.vlgmr.msra.gmra.mxu3 %v293_v13  ;;  %96 = vmatpush.msra.mxu1 %v95_v37 }
  0x15   :  { %154 = vmatpush.msrb.mxu3 %v36_v3  ;;  %98 = vmatmul.f32.vlgmr.msra.gmra.mxu1 %v44_v17 }
  0x16   :  { %224 = vmatpush.msrb.mxu1 %v36_v3  ;;  %201 = vmatpush.msrb.mxu0 %v93_v22 }
  0x17   :  { %132 = vmatmul.f32.vlgmr.msrb.gmra.mxu2 %v45_v23  ;;  %156 = vmatpush.msrb.mxu3 %v278_v4 }
  0x18   :  { %226 = vmatpush.msrb.mxu1 %v278_v4 }
  0x19   :  { %158 = vmatpush.msrb.mxu3 %v280_v5  ;;  %203 = vmatmul.f32.vlgmr.msrb.gmra.mxu0 %v44_v17 }
  0x1a   :  { %228 = vmatpush.msrb.mxu1 %v280_v5 }
  0x1b   :  { %160 = vmatpush.msrb.mxu3 %v291_v9 }
  0x1c   :  { %164 = vmatmul.f32.vlgmr.msrb.gmra.mxu3 %v46_v28  ;;  %230 = vmatpush.msrb.mxu1 %v291_v9 }
  0x1d   :  { %232 = vmatmul.f32.vlgmr.msrb.gmra.mxu1 %v44_v17 }
  0x1f   :  { %137 = vmatmul.f32.gmra.mxu2 %v53_v19 }
  0x21   :  { %207 = vmatmul.f32.gmra.mxu0 %v293_v13 }
  0x24   :  { %170 = vmatmul.f32.gmra.mxu3 %v54_v25 }
  0x25   :  { %236 = vmatmul.f32.gmra.mxu1 %v293_v13 }
  0x8e   :  { %v50_v39 = vpop.f32.mrf.mxu0 }
  0x92   :  { %v58_v38 = vpop.f32.mrf.mxu2  ;;  %v99_v41 = vpop.f32.mrf.mxu1 }
  0x93   :  { %v100_v42 = vadd.f32 %v99_v41, %v50_v39 }
  0x96   :  { %v204_v44 = vpop.f32.mrf.mxu0 }
  0x97   :  { %v103_v40 = vpop.f32.mrf.mxu3 }
  0x98   :  { %v104_v51 = vadd.f32 %v103_v40, %v58_v38 }
  0x9a   :  { %v133_v43 = vpop.f32.mrf.mxu2  ;;  %v233_v47 = vpop.f32.mrf.mxu1 }
  0x9b   :  { %v134_v45 = vadd.f32 %v133_v43, %v100_v42 }
  0x9e   :  { %v208_v55 = vpop.f32.mrf.mxu0 }
  0x9f   :  { %v165_v46 = vpop.f32.mrf.mxu3 }
  0xa0   :  { %v166_v48 = vadd.f32 %v165_v46, %v134_v45 }
  0xa2   :  { %v205_v49 = vadd.f32 %v204_v44, %v166_v48  ;;  %v138_v50 = vpop.f32.mrf.mxu2  ;;  %v237_v57 = vpop.f32.mrf.mxu1 }
  0xa3   :  { %v139_v53 = vadd.f32 %v138_v50, %v104_v51 }
  0xa4   :  { %v234_v52 = vadd.f32 %v233_v47, %v205_v49 }
  0xa6   :  { %240 = vst [vmem:[%s322_s2] sm:$0xff] %v234_v52 }
  0xa7   :  { %v171_v54 = vpop.f32.mrf.mxu3 }
  0xa8   :  { %v172_v56 = vadd.f32 %v171_v54, %v139_v53 }
  0xaa   :  { %v209_v58 = vadd.f32 %v208_v55, %v172_v56 }
  0xac   :  { %v238_v59 = vadd.f32 %v237_v57, %v209_v58 }
  0xae   :  { %241 = vst [vmem:[%s322_s2 + $0x8] sm:$0xff] %v238_v59 }

// kernel: _lambda_.48
= control target key start
LH: loop header
LB: loop body
LE: loop exit
PB: predicated region body
PF: predicated region fallthrough
CT: control target
= control target key end

     0   :  { %s429_s12 = smov 0   ;;  %s470_s0 = inlined_call_operand.vmem [shape: bf16[2,45,64], index: 0, kind: input, shape index: {}]   ;;  %s471_s1 = inlined_call_operand.vmem [shape: bf16[64,32], index: 1, kind: input, shape index: {}]   ;;  %s472_s2 = inlined_call_operand.vmem [shape: f32[1,32], index: 2, kind: input, shape index: {}]   ;;  %s473_s3 = inlined_call_operand.vmem [shape: bf16[2,40,32], index: 3, kind: output, shape index: {}]  }
   0x1 LB: > { %s340_s13 = sadd.s32 4294967295, %s407_s12   ;;  %p344_p0 = scmp.ge.s32.totalorder %s407_s12, 1  ;;  %s407_s12 = sphi %s429_s12, %s13_s12  }
   0x2   : > { %p137_p1 = scmp.lt.s32.totalorder %s407_s12, 3 }
   0x4   : > { %p138_p2 = pnand %p344_p0, %p137_p1 }
   0x5   : > { %p161_p3 = scmp.lt.s32.totalorder (!%p138_p2), %s340_s13, 1 }
   0x6   : > { %141 = sbr.rel (%p138_p2) target bundleno = 170 (0xaa), region = 32 }
   0xb   : > { %v381_v0 = vld [vmem:[%s471_s1 + $0x18] sm:$0xff]  ;;  %v380_v1 = vld [vmem:[%s471_s1 + $0x10] sm:$0xff]  ;;  %s475_s13 = smov (!%p161_p3, %s340_s13), 1  ;;  %v379_v2 = vld [vmem:[%s471_s1 + $0x8] sm:$0xff]  ;;  %vm226_vm0 = vcmask 523264   ;;  %vm279_vm3 = vcmask 257024  }
   0xc   : > { %240 = vmatpush.bf16.msra.mxu0 %v381_v0  ;;  %382 = vmatpush.bf16.msra.mxu1 %v381_v0  ;;  %s390_s18 = smul.u32 24, %s475_s13  ;;  %v378_v4 = vld [vmem:[%s471_s1] sm:$0xff] }
   0xd   : > { %383 = vmatpush.bf16.msra.mxu2 %v381_v0  ;;  %v400_v9 = vld [vmem:[%s472_s2] ss:$0 sm:$0xff]  ;;  %s391_s28 = smul.u32 20, %s475_s13 }
   0xe   : > { %s165_s23 = scalar_lea.vmem %s470_s0, %s390_s18 }
   0xf   : > { %v176_v3 = vld [vmem:[%s165_s23 + $0x10] sm:$0xf]  ;;  %v376_v6 = vld [vmem:[%s165_s23] sm:$0xff]  ;;  %v377_v7 = vld [vmem:[%s165_s23 + $0x8] sm:$0xff]  ;;  %s170_s4 = scalar_lea.vmem %s473_s3, %s391_s28 }
  0x10   : > { %241 = vmatpush.bf16.msra.mxu0 %v380_v1  ;;  %384 = vmatpush.bf16.msra.mxu1 %v380_v1  ;;  %v198_v5 = vunpack.c.l.b16 %v176_v3 }
  0x11   : > { %385 = vmatpush.bf16.msra.mxu2 %v380_v1 }
  0x12   : > { %v201_v8 = vpack.c.b16 %v198_v5, %v198_v5 }
  0x14   : > { %242 = vmatpush.bf16.msra.mxu0 %v379_v2  ;;  %386 = vmatpush.bf16.msra.mxu1 %v379_v2 }
  0x15   : > { %387 = vmatpush.bf16.msra.mxu2 %v379_v2 }
  0x18   : > { %243 = vmatpush.bf16.msra.mxu0 %v378_v4  ;;  %388 = vmatpush.bf16.msra.mxu1 %v378_v4 }
  0x19   : > { %389 = vmatpush.bf16.msra.mxu2 %v378_v4 }
  0x1b   : > { %371 = vmatmul.msk.bf16.vlgmr.msra.gmra.mxu0 %vm226_vm0, %v376_v6  ;;  %372 = vmatmul.msk.bf16.vlgmr.msra.gmra.mxu1 %vm226_vm0, %v377_v7 }
  0x1c   : > { %373 = vmatmul.msk.bf16.vlgmr.msra.gmra.mxu2 %vm226_vm0, %v201_v8 }
  0x98   : > { %v245_v10 = vpop.f32.mrf.mxu0  ;;  %v250_v11 = vpop.f32.mrf.mxu1 }
  0x99   : > { %v246_v12 = vadd.f32 %v400_v9, %v245_v10  ;;  %v251_v13 = vadd.f32 %v400_v9, %v250_v11 }
  0x9b   : > { %vm259_vm1 = vcmp.ge.f32.partialorder %v246_v12, 0.0  ;;  %v264_v14 = vmul.f32 0.1, %v246_v12  ;;  %vm261_vm2 = vcmp.ge.f32.partialorder %v251_v13, 0.0  ;;  %v266_v15 = vmul.f32 0.1, %v251_v13 }
  0x9d   : > { %v269_v16 = vsel %vm259_vm1, %v246_v12, %v264_v14  ;;  %v271_v17 = vsel %vm261_vm2, %v251_v13, %v266_v15 }
  0x9e   : > { %v274_v18 = vpack.c.bf16 %v269_v16, %v269_v16  ;;  %v276_v19 = vpack.c.bf16 %v271_v17, %v271_v17 }
  0x9f   : > { %v255_v20 = vpop.f32.mrf.mxu2 }
  0xa0   : > { %280 = vst.msk [vmem:[%s170_s4] sm:$0xf] %vm279_vm3, %v274_v18  ;;  %v256_v21 = vadd.f32 %v400_v9, %v255_v20  ;;  %v247_v22 = vpop.f32.mrf.mxu0  ;;  %v252_v23 = vpop.f32.mrf.mxu1 }
  0xa1   : > { %282 = vst.msk [vmem:[%s170_s4 + $0x8] sm:$0xf] %vm279_vm3, %v276_v19  ;;  %v248_v24 = vadd.f32 %v400_v9, %v247_v22  ;;  %v253_v25 = vadd.f32 %v400_v9, %v252_v23 }
  0xa2   : > { %vm263_vm4 = vcmp.ge.f32.partialorder %v256_v21, 0.0  ;;  %v268_v26 = vmul.f32 0.1, %v256_v21 }
  0xa3   : > { %vm260_vm5 = vcmp.ge.f32.partialorder %v248_v24, 0.0  ;;  %v265_v27 = vmul.f32 0.1, %v248_v24  ;;  %vm262_vm6 = vcmp.ge.f32.partialorder %v253_v25, 0.0  ;;  %v267_v28 = vmul.f32 0.1, %v253_v25 }
  0xa4   : > { %v273_v29 = vsel %vm263_vm4, %v256_v21, %v268_v26 }
  0xa5   : > { %v278_v30 = vpack.c.bf16 %v273_v29, %v273_v29  ;;  %v270_v31 = vsel %vm260_vm5, %v248_v24, %v265_v27  ;;  %v272_v32 = vsel %vm262_vm6, %v253_v25, %v267_v28 }
  0xa6   : > { %v275_v33 = vpack.c.bf16 %v270_v31, %v270_v31  ;;  %v277_v34 = vpack.c.bf16 %v272_v32, %v272_v32 }
  0xa7   : > { %284 = vst.msk [vmem:[%s170_s4 + $0x10] sm:$0xf] %vm279_vm3, %v278_v30  ;;  %v257_v35 = vpop.f32.mrf.mxu2 }
  0xa8   : > { %281 = vst.msk [vmem:[%s170_s4 + $0x4] sm:$0xf] %vm279_vm3, %v275_v33 }
  0xa9   : > { %283 = vst.msk [vmem:[%s170_s4 + $0xc] sm:$0xf] %vm279_vm3, %v277_v34 }
  0xaa PF: > { %s13_s12 = sadd.s32 1, %s407_s12  }
  0xab   : > { %p10_p4 = scmp.ge.s32.totalorder %s13_s12, 4  }
  0xad   :  { %12 = sbr.rel (!%p10_p4) target bundleno = 1 (0x1), region = 62 }

// kernel: _lambda_.49
= control target key start
LH: loop header
LB: loop body
LE: loop exit
PB: predicated region body
PF: predicated region fallthrough
CT: control target
= control target key end

     0   :  { %s2723_s12 = smov 0   ;;  %s3631_s0 = inlined_call_operand.vmem [shape: bf16[2,77,64], index: 0, kind: input, shape index: {}]   ;;  %s3632_s1 = inlined_call_operand.vmem [shape: bf16[960,32], index: 1, kind: input, shape index: {}]   ;;  %s3633_s2 = inlined_call_operand.vmem [shape: f32[1,32], index: 2, kind: input, shape index: {}]   ;;  %s3634_s3 = inlined_call_operand.vmem [shape: bf16[2,56,32], index: 3, kind: output, shape index: {}]  }
   0x1 LB: > { %s2242_s13 = sadd.s32 4294967295, %s2700_s12   ;;  %p2246_p0 = scmp.ge.s32.totalorder %s2700_s12, 1  ;;  %s2700_s12 = sphi %s2723_s12, %s13_s12  }
   0x2   : > { %p137_p1 = scmp.lt.s32.totalorder %s2700_s12, 3 }
   0x4   : > { %p138_p2 = pnand %p2246_p0, %p137_p1 }
   0x5   : > { %p161_p3 = scmp.lt.s32.totalorder (!%p138_p2), %s2242_s13, 1  ;;  %s2702_s18 = smov (!%p138_p2), 64  }
   0x6   : > { %141 = sbr.rel (%p138_p2) target bundleno = 426 (0x1aa), region = 32 }
   0xb   : > { %s3648_s13 = smov (!%p161_p3, %s2242_s13), 1  ;;  %vm536_vm0 = vsmask.f32 256  ;;  %vm537_vm1 = vsmask.f32 4368  ;;  %vm489_vm9 = vcmask 1041408  }
   0xc   : > { %s2682_s14 = smul.u32 40, %s3648_s13  ;;  %vm195_vm2 = vsmask.f32 3328  ;;  %vm196_vm3 = vsmask.f32 7440  ;;  %vm2749_vm4 = vmor %vm536_vm0, %vm537_vm1  ;;  %vm490_vm10 = vcmask 1045508  }
   0xd   : > { %vm2761_vm5 = vmor %vm195_vm2, %vm196_vm3  ;;  %vm364_vm6 = vsmask.f32 2304  ;;  %vm365_vm7 = vsmask.f32 6416  ;;  %vm179_vm12 = vcmask 519168   ;;  %vm293_vm13 = vcmask 1043968  }
   0xe   : > { %s2737_s17 = scalar_lea.vmem %s3631_s0, %s2682_s14  ;;  %vm2789_vm8 = vmor %vm364_vm6, %vm365_vm7  ;;  %vm317_vm14 = vcmask 1042432   ;;  %vm318_vm15 = vcmask 1046532   ;;  %v2669_v32 = vld [vmem:[%s3632_s1 + $0x178] sm:$0xff]  ;;  %vm940_vm1 = vcmask 1040384   ;;  %vm941_vm2 = vcmask 1044484   ;;  %s2683_s23 = smul.u32 28, %s3648_s13 }
   0xf   : > { %v528_v0 = vld [vmem:[%s2737_s17] sm:$0x8]  ;;  %v529_v1 = vld [vmem:[%s2737_s17 + $0x4] sm:$0xf]  ;;  %v530_v11 = vld [vmem:[%s2737_s17 + $0x8] sm:$0xf] }
  0x10   : > { %v187_v2 = vld [vmem:[%s2737_s17] sm:$0xf]  ;;  %v540_v3 = vshrl.u32 %v528_v0, 16  ;;  %v545_v4 = vshrl.u32 %v529_v1, 16  ;;  %v548_v5 = vshll.u32 %v529_v1, 16  ;;  %v554_v15 = vshrl.u32 %v530_v11, 16  ;;  %vm2956_vm11 = vmor %vm489_vm9, %vm490_vm10  ;;  %s3594_s26 = scalar_lea.vmem %s3634_s3, %s2683_s23 }
  0x11   : > { %v188_v6 = vld [vmem:[%s2737_s17 + $0x4] sm:$0xf]  ;;  %v199_v7 = vshrl.u32 %v187_v2, 16  ;;  %v202_v8 = vshll.u32 %v187_v2, 16  ;;  %v2745_v16 = vld [vmem:[%s2737_s17 + $0x8] sm:$0xf]  ;;  %vm3123_vm0 = vmor %vm317_vm14, %vm318_vm15 }
  0x12   : > { %v208_v9 = vshll.u32 %v188_v6, 16  ;;  %v212_v10 = vshrl.u32 %v188_v6, 16  ;;  %v2251_v12 = vrot.slane %v540_v3, 11  ;;  %v547_v13 = vrot.slane %v545_v4, 7  ;;  %v531_v22 = vld [vmem:[%s2737_s17 + $0xc] sm:$0xf]  ;;  %vm3408_vm3 = vmor %vm940_vm1, %vm941_vm2 }
  0x13   : > { %v201_v14 = vrot.slane %v199_v7, 4  ;;  %v204_v18 = vrot.slane %v202_v8, 5  ;;  %v557_v21 = vshll.u32 %v530_v11, 16  ;;  %v556_v24 = vrot.slane %v554_v15, 7  ;;  %v356_v29 = vld [vmem:[%s2737_s17] sm:$0xe] }
  0x14   : > { %v210_v19 = vrot.slane %v208_v9, 5  ;;  %v214_v20 = vrot.slane %v212_v10, 4  ;;  %v550_v23 = vor.u32 %v548_v5, %v547_v13  ;;  %v218_v25 = vshll.u32 %v2745_v16, 16  ;;  %v357_v30 = vld [vmem:[%s2737_s17 + $0x4] sm:$0xf] }
  0x15   : > { %v205_v26 = vor.u32 %v204_v18, %v201_v14  ;;  %v563_v28 = vshrl.u32 %v531_v22, 16  ;;  %v552_v33 = vrot.slane %v547_v13, 4  ;;  %v559_v34 = vor.u32 %v557_v21, %v556_v24  ;;  %v358_v39 = vld [vmem:[%s2737_s17 + $0x8] sm:$0xf]  ;;  %v648_v44 = vld [vmem:[%s2737_s17 + $0x4] sm:$0xf] }
  0x16   : > { %v215_v27 = vor.u32 %v214_v20, %v210_v19  ;;  %v551_v31 = vsel %vm2749_vm4, %v2251_v12, %v550_v23  ;;  %v561_v36 = vrot.slane %v556_v24, 4  ;;  %v566_v38 = vshll.u32 %v531_v22, 16  ;;  %v649_v49 = vld [vmem:[%s2737_s17 + $0x8] sm:$0xf]  ;;  %v532_v0 = vld [vmem:[%s2737_s17 + $0x10] sm:$0xf] }
  0x17   : > { %606 = vrot.lane.b32.xlu0 %v551_v31, %s2702_s18  ;;  %v206_v35 = vrot.slane %v205_v26, 4  ;;  %v2766_v37 = vrot.slane %v563_v28, 7  ;;  %v2769_v40 = vrot.slane %v218_v25, 5  ;;  %v368_v41 = vshrl.u32 %v356_v29, 16  ;;  %v650_v7 = vld [vmem:[%s2737_s17 + $0xc] sm:$0xf] }
  0x18   : > { %v371_v42 = vshll.u32 %v356_v29, 16  ;;  %v377_v43 = vshrl.u32 %v357_v30, 16  ;;  %v216_v46 = vrot.slane %v215_v27, 4  ;;  %v380_v48 = vshll.u32 %v357_v30, 16  ;;  %v190_v26 = vld [vmem:[%s2737_s17 + $0xc] sm:$0xf] }
  0x19   : > { %v211_v45 = vsel %vm2761_vm5, %v206_v35, %v210_v19  ;;  %v568_v47 = vor.u32 %v566_v38, %v2766_v37  ;;  %v370_v50 = vrot.slane %v368_v41, 5  ;;  %v387_v53 = vshrl.u32 %v358_v39, 16  ;;  %v651_v19 = vld [vmem:[%s2737_s17 + $0x10] sm:$0xf]  ;;  %v359_v41 = vld [vmem:[%s2737_s17 + $0xc] sm:$0xf] }
  0x1a   : > { %272 = vrot.lane.b32.xlu1 %v211_v45, %s2702_s18  ;;  %v373_v51 = vrot.slane %v371_v42, 6  ;;  %v379_v52 = vrot.slane %v377_v43, 5  ;;  %v382_v55 = vrot.slane %v380_v48, 6  ;;  %v390_v56 = vshll.u32 %v358_v39, 16 }
  0x1b   : > { %v569_v54 = vsel %vm2749_vm4, %v561_v36, %v568_v47  ;;  %v657_v57 = vshrl.u32 %v648_v44, 16  ;;  %v560_v58 = vsel %vm2749_vm4, %v552_v33, %v559_v34  ;;  %v660_v60 = vshll.u32 %v648_v44, 16  ;;  %v360_v47 = vld [vmem:[%s2737_s17 + $0x10] sm:$0xf] }
  0x1c   : > { %610 = vrot.lane.b32.xlu2 %v569_v54, %s2702_s18  ;;  %v374_v59 = vor.u32 %v373_v51, %v370_v50  ;;  %v666_v61 = vshll.u32 %v649_v49, 16  ;;  %v670_v63 = vshrl.u32 %v649_v49, 16  ;;  %v383_v1 = vor.u32 %v382_v55, %v379_v52 }
  0x1d   : > { %v659_v62 = vrot.slane %v657_v57, 4  ;;  %v662_v2 = vrot.slane %v660_v60, 5  ;;  %v221_v3 = vsel %vm2761_vm5, %v216_v46, %v2769_v40  ;;  %v222_v4 = vshrl.u32 %v2745_v16, 16  ;;  %v2817_v46 = vld [vmem:[%s2737_s17 + $0x14] sm:$0xf] }
  0x1e   : > { %v389_v5 = vrot.slane %v387_v53, 5  ;;  %v392_v6 = vrot.slane %v390_v56, 6  ;;  %v375_v8 = vrot.slane %v374_v59, 4  ;;  %v668_v10 = vrot.slane %v666_v61, 5 }
  0x1f   : > { %608 = vrot.lane.b32.xlu0 %v560_v58, %s2702_s18  ;;  %v663_v9 = vor.u32 %v662_v2, %v659_v62  ;;  %v572_v11 = vshrl.u32 %v532_v0, 16  ;;  %v672_v13 = vrot.slane %v670_v63, 4  ;;  %v385_v14 = vrot.slane %v383_v1, 4  ;;  %v533_v63 = vld [vmem:[%s2737_s17 + $0x14] sm:$0xf] }
  0x20   : > { %v676_v18 = vshll.u32 %v650_v7, 16  ;;  %v2795_v16 = vor.u32 %v392_v6, %v389_v5  ;;  %v575_v20 = vshll.u32 %v532_v0, 16  ;;  %v224_v21 = vrot.slane %v222_v4, 4 }
  0x21   : > { %v664_v15 = vrot.slane %v663_v9, 4  ;;  %v673_v22 = vor.u32 %v672_v13, %v668_v10  ;;  %v384_v23 = vsel %vm2789_vm8, %v375_v8, %v383_v1  ;;  %v2801_v25 = vrot.slane %v572_v11, 7 }
  0x22   : > { %274 = vrot.lane.b32.xlu1 %v221_v3, %s2702_s18  ;;  %v680_v27 = vshrl.u32 %v650_v7, 16  ;;  %v686_v28 = vshll.u32 %v651_v19, 16  ;;  %v690_v29 = vshrl.u32 %v651_v19, 16  ;;  %v678_v31 = vrot.slane %v676_v18, 5 }
  0x23   : > { %v669_v24 = vsel %vm2761_vm5, %v664_v15, %v668_v10  ;;  %v674_v30 = vrot.slane %v673_v22, 4  ;;  %v394_v33 = vsel %vm2789_vm8, %v385_v14, %v2795_v16  ;;  %v225_v34 = vor.u32 %v224_v21, %v2769_v40  ;;  %v192_v10 = vld [vmem:[%s2737_s17 + $0x14] sm:$0xf]  ;;  %v534_v14 = vld [vmem:[%s2737_s17 + $0x18] sm:$0xf] }
  0x24   : > { %730 = vrot.lane.b32.xlu2 %v669_v24, %s2702_s18  ;;  %v228_v35 = vshll.u32 %v190_v26, 16  ;;  %v570_v36 = vrot.slane %v2766_v37, 4  ;;  %v577_v38 = vor.u32 %v575_v20, %v2801_v25  ;;  %v682_v39 = vrot.slane %v680_v27, 4  ;;  %v191_v37 = vld [vmem:[%s2737_s17 + $0x10] sm:$0xf] }
  0x25   : > { %v688_v42 = vrot.slane %v686_v28, 5  ;;  %v692_v43 = vrot.slane %v690_v29, 4  ;;  %v232_v44 = vshrl.u32 %v190_v26, 16  ;;  %v679_v45 = vsel %vm2761_vm5, %v674_v30, %v678_v31  ;;  %v653_v28 = vld [vmem:[%s2737_s17 + $0x18] sm:$0xf] }
  0x26   : > { %v226_v40 = vrot.slane %v225_v34, 4  ;;  %v230_v48 = vrot.slane %v228_v35, 5  ;;  %v397_v49 = vshrl.u32 %v359_v41, 16  ;;  %v400_v50 = vshll.u32 %v359_v41, 16 }
  0x27   : > { %445 = vrot.lane.b32.xlu0 %v384_v23, %s2702_s18  ;;  %v578_v51 = vsel %vm2749_vm4, %v570_v36, %v577_v38  ;;  %v683_v52 = vor.u32 %v682_v39, %v678_v31  ;;  %v693_v53 = vor.u32 %v692_v43, %v688_v42  ;;  %v696_v54 = vshll.u32 %v2817_v46, 16  ;;  %v2856_v36 = vld [vmem:[%s2737_s17 + $0x18] sm:$0xf] }
  0x28   : > { %v407_v55 = vshrl.u32 %v360_v47, 16  ;;  %v410_v56 = vshll.u32 %v360_v47, 16  ;;  %v238_v57 = vshll.u32 %v191_v37, 16  ;;  %v234_v58 = vrot.slane %v232_v44, 4 }
  0x29   : > { %v231_v59 = vsel %vm2761_vm5, %v226_v40, %v230_v48  ;;  %v399_v60 = vrot.slane %v397_v49, 5  ;;  %v402_v61 = vrot.slane %v400_v50, 6  ;;  %v684_v62 = vrot.slane %v683_v52, 4 }
  0x2a   : > { %447 = vrot.lane.b32.xlu1 %v394_v33, %s2702_s18  ;;  %v235_v0 = vor.u32 %v234_v58, %v230_v48  ;;  %v694_v1 = vrot.slane %v693_v53, 4  ;;  %v2829_v2 = vrot.slane %v696_v54, 5  ;;  %v409_v3 = vrot.slane %v407_v55, 5  ;;  %v654_v48 = vld [vmem:[%s2737_s17 + $0x1c] sm:$0xf] }
  0x2b   : > { %v412_v4 = vrot.slane %v410_v56, 6  ;;  %v240_v5 = vrot.slane %v238_v57, 5  ;;  %v403_v7 = vor.u32 %v402_v61, %v399_v60  ;;  %v581_v8 = vshrl.u32 %v533_v63, 16  ;;  %v535_v61 = vld [vmem:[%s2737_s17 + $0x1c] sm:$0xf] }
  0x2c   : > { %732 = vrot.lane.b32.xlu2 %v679_v45, %s2702_s18  ;;  %v236_v6 = vrot.slane %v235_v0, 4  ;;  %v689_v9 = vsel %vm2761_vm5, %v684_v62, %v688_v42  ;;  %v242_v11 = vshrl.u32 %v191_v37, 16  ;;  %v699_v15 = vsel %vm2761_vm5, %v694_v1, %v2829_v2  ;;  %v362_v62 = vld [vmem:[%s2737_s17 + $0x18] sm:$0xf] }
  0x2d   : > { %v2842_v18 = vor.u32 %v412_v4, %v409_v3  ;;  %v584_v19 = vshll.u32 %v533_v63, 16  ;;  %v395_v20 = vrot.slane %v2795_v16, 4  ;;  %v405_v21 = vrot.slane %v403_v7, 4 }
  0x2e   : > { %v241_v13 = vsel %vm2761_vm5, %v236_v6, %v240_v5  ;;  %v583_v22 = vrot.slane %v581_v8, 7  ;;  %v248_v23 = vshll.u32 %v192_v10, 16  ;;  %v252_v24 = vshrl.u32 %v192_v10, 16 }
  0x2f   : > { %612 = vrot.lane.b32.xlu0 %v578_v51, %s2702_s18  ;;  %v244_v26 = vrot.slane %v242_v11, 4  ;;  %v590_v27 = vshrl.u32 %v534_v14, 16  ;;  %v700_v29 = vshrl.u32 %v2817_v46, 16  ;;  %v579_v30 = vrot.slane %v2801_v25, 4  ;;  %v361_v51 = vld [vmem:[%s2737_s17 + $0x14] sm:$0xf] }
  0x30   : > { %v404_v31 = vsel %vm2789_vm8, %v395_v20, %v403_v7  ;;  %v593_v16 = vshll.u32 %v534_v14, 16  ;;  %v414_v33 = vsel %vm2789_vm8, %v405_v21, %v2842_v18  ;;  %v586_v34 = vor.u32 %v584_v19, %v583_v22  ;;  %v363_v11 = vld [vmem:[%s2737_s17 + $0x1c] sm:$0x3] }
  0x31   : > { %v250_v35 = vrot.slane %v248_v23, 5  ;;  %v254_v38 = vrot.slane %v252_v24, 4  ;;  %v245_v39 = vor.u32 %v244_v26, %v240_v5  ;;  %v706_v41 = vshll.u32 %v653_v28, 16  ;;  %v1096_v24 = vld [vmem:[%s2737_s17 + $0x8] sm:$0xf] }
  0x32   : > { %276 = vrot.lane.b32.xlu1 %v231_v59, %s2702_s18  ;;  %v710_v42 = vshrl.u32 %v653_v28, 16  ;;  %v2858_v43 = vrot.slane %v590_v27, 7  ;;  %v258_v25 = vshll.u32 %v2856_v36, 16  ;;  %v588_v44 = vrot.slane %v583_v22, 4 }
  0x33   : > { %v702_v46 = vrot.slane %v700_v29, 4  ;;  %v587_v47 = vsel %vm2749_vm4, %v579_v30, %v586_v34  ;;  %v255_v40 = vor.u32 %v254_v38, %v250_v35  ;;  %v246_v49 = vrot.slane %v245_v39, 4 }
  0x34   : > { %278 = vrot.lane.b32.xlu2 %v241_v13, %s2702_s18  ;;  %v595_v45 = vor.u32 %v593_v16, %v2858_v43  ;;  %v708_v50 = vrot.slane %v706_v41, 5  ;;  %v712_v37 = vrot.slane %v710_v42, 4  ;;  %v2869_v52 = vrot.slane %v258_v25, 5  ;;  %v810_v42 = vld [vmem:[%s2737_s17 + $0x4] sm:$0xe] }
  0x35   : > { %v703_v54 = vor.u32 %v702_v46, %v2829_v2  ;;  %v256_v55 = vrot.slane %v255_v40, 4  ;;  %v716_v56 = vshll.u32 %v654_v48, 16  ;;  %v417_v57 = vshrl.u32 %v361_v51, 16 }
  0x36   : > { %v596_v53 = vsel %vm2749_vm4, %v588_v44, %v595_v45  ;;  %v420_v58 = vshll.u32 %v361_v51, 16  ;;  %v251_v59 = vsel %vm2761_vm5, %v246_v49, %v250_v35  ;;  %v713_v60 = vor.u32 %v712_v37, %v708_v50  ;;  %v1097_v45 = vld [vmem:[%s2737_s17 + $0xc] sm:$0xf]  ;;  %v811_v49 = vld [vmem:[%s2737_s17 + $0x8] sm:$0xf] }
  0x37   : > { %734 = vrot.lane.b32.xlu0 %v689_v9, %s2702_s18  ;;  %v720_v63 = vshrl.u32 %v654_v48, 16  ;;  %v704_v0 = vrot.slane %v703_v54, 4  ;;  %v261_v1 = vsel %vm2761_vm5, %v256_v55, %v2869_v52  ;;  %v718_v2 = vrot.slane %v716_v56, 5  ;;  %v655_v9 = vld [vmem:[%s2737_s17 + $0x20] sm:$0x1] }
  0x38   : > { %v419_v3 = vrot.slane %v417_v57, 5  ;;  %v422_v4 = vrot.slane %v420_v58, 6  ;;  %v714_v5 = vrot.slane %v713_v60, 4  ;;  %v599_v6 = vshrl.u32 %v535_v61, 16  ;;  %v812_v60 = vld [vmem:[%s2737_s17 + $0xc] sm:$0xf] }
  0x39   : > { %v427_v7 = vshrl.u32 %v362_v62, 16  ;;  %v430_v8 = vshll.u32 %v362_v62, 16  ;;  %v722_v10 = vrot.slane %v720_v63, 4  ;;  %v709_v13 = vsel %vm2761_vm5, %v704_v0, %v708_v50 }
  0x3a   : > { %736 = vrot.lane.b32.xlu1 %v699_v15, %s2702_s18  ;;  %v415_v14 = vrot.slane %v2842_v18, 4  ;;  %v423_v15 = vor.u32 %v422_v4, %v419_v3  ;;  %v602_v19 = vshll.u32 %v535_v61, 16  ;;  %v719_v20 = vsel %vm2761_vm5, %v714_v5, %v718_v2 }
  0x3b   : > { %v601_v21 = vrot.slane %v599_v6, 7  ;;  %v429_v22 = vrot.slane %v427_v7, 5  ;;  %v432_v23 = vrot.slane %v430_v8, 6  ;;  %v262_v26 = vshrl.u32 %v2856_v36, 16  ;;  %v1098_v6 = vld [vmem:[%s2737_s17 + $0x10] sm:$0xf] }
  0x3c   : > { %449 = vrot.lane.b32.xlu2 %v404_v31, %s2702_s18  ;;  %v726_v27 = vshll.u32 %v655_v9, 16  ;;  %v437_v28 = vshrl.u32 %v363_v11, 16  ;;  %v440_v29 = vshll.u32 %v363_v11, 16  ;;  %v723_v30 = vor.u32 %v722_v10, %v718_v2  ;;  %v2921_v10 = vld [vmem:[%s2737_s17 + $0x8] sm:$0xf] }
  0x3d   : > { %v425_v18 = vrot.slane %v423_v15, 4  ;;  %v424_v31 = vsel %vm2789_vm8, %v415_v14, %v423_v15  ;;  %v1105_v16 = vshrl.u32 %v1096_v24, 16  ;;  %v597_v34 = vrot.slane %v2858_v43, 4  ;;  %v2653_v43 = vld [vmem:[%s3632_s1 + $0xf8] sm:$0xff]  ;;  %v2652_v14 = vld [vmem:[%s3632_s1 + $0xf0] sm:$0xff] }
  0x3e   : > { %v604_v35 = vor.u32 %v602_v19, %v601_v21  ;;  %v433_v36 = vor.u32 %v432_v23, %v429_v22  ;;  %v728_v38 = vrot.slane %v726_v27, 5  ;;  %v439_v39 = vrot.slane %v437_v28, 5  ;;  %2011 = vmatpush.bf16.msra.mxu3 %v2653_v43  ;;  %v2932_v15 = vld [vmem:[%s2737_s17 + $0x8] sm:$0xf]  ;;  %v2644_v27 = vld [vmem:[%s3632_s1 + $0xb0] sm:$0xff] }
  0x3f   : > { %451 = vrot.lane.b32.xlu0 %v414_v33, %s2702_s18  ;;  %v1108_v33 = vshll.u32 %v1096_v24, 16  ;;  %v442_v41 = vrot.slane %v440_v29, 6  ;;  %v264_v25 = vrot.slane %v262_v26, 4  ;;  %v724_v44 = vrot.slane %v723_v30, 4  ;;  %v2629_v26 = vld [vmem:[%s3632_s1 + $0x38] sm:$0xff] }
  0x40   : > { %v434_v46 = vsel %vm2789_vm8, %v425_v18, %v433_v36  ;;  %v1107_v40 = vrot.slane %v1105_v16, 4  ;;  %v605_v51 = vsel %vm2749_vm4, %v597_v34, %v604_v35  ;;  %v822_v54 = vshll.u32 %v810_v42, 16  ;;  %v2946_v29 = vld [vmem:[%s2737_s17 + $0xc] sm:$0xf]  ;;  %1927 = vmatpush.bf16.msra.mxu0 %v2629_v26 }
  0x41   : > { %v1110_v48 = vrot.slane %v1108_v33, 5  ;;  %v265_v50 = vor.u32 %v264_v25, %v2869_v52  ;;  %v435_v55 = vrot.slane %v433_v36, 4  ;;  %v443_v56 = vor.u32 %v442_v41, %v439_v39 }
  0x42   : > { %614 = vrot.lane.b32.xlu1 %v587_v47, %s2702_s18  ;;  %v194_v47 = vld [vmem:[%s2737_s17 + $0x1c] sm:$0x1]  ;;  %v1114_v57 = vshll.u32 %v1097_v45, 16  ;;  %v828_v58 = vshrl.u32 %v811_v49, 16  ;;  %v729_v52 = vsel %vm2761_vm5, %v724_v44, %v728_v38  ;;  %v1118_v0 = vshrl.u32 %v1097_v45, 16  ;;  %2012 = vmatpush.bf16.msra.mxu3 %v2652_v14 }
  0x43   : > { %v268_v37 = vshll.u32 %v194_v47, 16  ;;  %v266_v61 = vrot.slane %v265_v50, 4  ;;  %v1111_v63 = vor.u32 %v1110_v48, %v1107_v40  ;;  %v824_v2 = vrot.slane %v822_v54, 6  ;;  %v1099_v47 = vld [vmem:[%s2737_s17 + $0x14] sm:$0xf] }
  0x44   : > { %616 = vrot.lane.b32.xlu2 %v596_v53, %s2702_s18  ;;  %v819_v53 = vshrl.u32 %v810_v42, 16  ;;  %v1116_v3 = vrot.slane %v1114_v57, 5  ;;  %v838_v4 = vshrl.u32 %v812_v60, 16  ;;  %v841_v5 = vshll.u32 %v812_v60, 16  ;;  %v2628_v42 = vld [vmem:[%s3632_s1 + $0x30] sm:$0xff]  ;;  %v2637_v57 = vld [vmem:[%s3632_s1 + $0x78] sm:$0xff] }
  0x45   : > { %v270_v62 = vrot.slane %v268_v37, 5  ;;  %v444_v7 = vsel %vm2789_vm8, %v435_v55, %v443_v56  ;;  %v830_v8 = vrot.slane %v828_v58, 5  ;;  %v1112_v19 = vrot.slane %v1111_v63, 4  ;;  %v813_v40 = vld [vmem:[%s2737_s17 + $0x10] sm:$0xf]  ;;  %1928 = vmatpush.bf16.msra.mxu0 %v2628_v42  ;;  %v2643_v37 = vld [vmem:[%s3632_s1 + $0xa8] sm:$0xff]  ;;  %1955 = vmatpush.bf16.msra.mxu1 %v2637_v57 }
  0x46   : > { %v497_v21 = vrot.slane %v2932_v15, 6  ;;  %v1124_v23 = vshll.u32 %v1098_v6, 16  ;;  %v1120_v28 = vrot.slane %v1118_v0, 4  ;;  %v1128_v30 = vshrl.u32 %v1098_v6, 16  ;;  %v2627_v56 = vld [vmem:[%s3632_s1 + $0x28] sm:$0xff]  ;;  %v2624_v15 = vld [vmem:[%s3632_s1 + $0x10] sm:$0xff] }
  0x47   : > { %280 = vrot.lane.b32.xlu0 %v251_v59, %s2702_s18  ;;  %v831_v59 = vshll.u32 %v811_v49, 16  ;;  %v271_v11 = vsel %vm2761_vm5, %v266_v61, %v270_v62  ;;  %v840_v33 = vrot.slane %v838_v4, 5  ;;  %v843_v34 = vrot.slane %v841_v5, 6  ;;  %v2642_v61 = vld [vmem:[%s3632_s1 + $0xa0] sm:$0xff]  ;;  %v2649_v62 = vld [vmem:[%s3632_s1 + $0xd8] sm:$0xff] }
  0x48   : > { %v499_v18 = vrot.slane %v497_v21, 4  ;;  %v1121_v36 = vor.u32 %v1120_v28, %v1116_v3  ;;  %v1117_v38 = vsel %vm2761_vm5, %v1112_v19, %v1116_v3  ;;  %v993_v39 = vshrl.u32 %v2921_v10, 16  ;;  %v473_v4 = vld [vmem:[%s2737_s17] sm:$0xc]  ;;  %v474_v5 = vld [vmem:[%s2737_s17 + $0x4] sm:$0xf] }
  0x49   : > { %v833_v9 = vrot.slane %v831_v59, 6  ;;  %v1002_v44 = vshrl.u32 %v2946_v29, 16  ;;  %v1126_v45 = vrot.slane %v1124_v23, 5  ;;  %v1130_v43 = vrot.slane %v1128_v30, 4  ;;  %1929 = vmatpush.bf16.msra.mxu0 %v2627_v56  ;;  %v1100_v28 = vld [vmem:[%s2737_s17 + $0x18] sm:$0xf] }
  0x4a   : > { %282 = vrot.lane.b32.xlu1 %v261_v1, %s2702_s18  ;;  %v821_v1 = vrot.slane %v819_v53, 5  ;;  %v2976_v49 = vor.u32 %v843_v34, %v840_v33  ;;  %v634_v53 = vld [vmem:[%s2737_s17 + $0x4] sm:$0xf]  ;;  %v995_v54 = vrot.slane %v993_v39, 7  ;;  %v1005_v55 = vshll.u32 %v2946_v29, 16  ;;  %v2636_v33 = vld [vmem:[%s3632_s1 + $0x70] sm:$0xff] }
  0x4b   : > { %v834_v16 = vor.u32 %v833_v9, %v830_v8  ;;  %641 = vst.msk [vmem:[#allocation2 + $0xc] sm:$0xf] %vm179_vm12, %v634_v53  ;;  %v2997_v59 = vrot.slane %v1002_v44, 7  ;;  %v1134_v60 = vshll.u32 %v1099_v47, 16  ;;  %v1131_v63 = vor.u32 %v1130_v43, %v1126_v45  ;;  %v814_v9 = vld [vmem:[%s2737_s17 + $0x14] sm:$0xf]  ;;  %1956 = vmatpush.bf16.msra.mxu1 %v2636_v33 }
  0x4c   : > { %738 = vrot.lane.b32.xlu2 %v709_v13, %s2702_s18  ;;  %v2645_v13 = vld [vmem:[%s3632_s1 + $0xb8] sm:$0xff]  ;;  %v825_v22 = vor.u32 %v824_v2, %v821_v1  ;;  %v848_v0 = vshrl.u32 %v813_v40, 16  ;;  %v851_v1 = vshll.u32 %v813_v40, 16  ;;  %v996_v6 = vshll.u32 %v2921_v10, 16  ;;  %v172_v44 = vld [vmem:[%s2737_s17] sm:$0xf] }
  0x4d   : > { %1983 = vmatpush.bf16.msra.mxu2 %v2645_v13  ;;  %v836_v48 = vrot.slane %v834_v16, 4  ;;  %v1138_v8 = vshrl.u32 %v1099_v47, 16  ;;  %v494_v13 = vrot.slane %v474_v5, 6  ;;  %v1007_v14 = vor.u32 %v1005_v55, %v2997_v59  ;;  %180 = vst.msk [vmem:[#allocation2] sm:$0xf] %vm179_vm12, %v172_v44  ;;  %v2625_v40 = vld [vmem:[%s3632_s1 + $0x18] sm:$0xff] }
  0x4e   : > { %v826_v25 = vrot.slane %v825_v22, 4  ;;  %v1136_v19 = vrot.slane %v1134_v60, 5  ;;  %v998_v23 = vor.u32 %v996_v6, %v995_v54  ;;  %v1132_v26 = vrot.slane %v1131_v63, 4  ;;  %v635_v43 = vld [vmem:[%s2737_s17 + $0x8] sm:$0xf]  ;;  %v2640_v53 = vld [vmem:[%s3632_s1 + $0x90] sm:$0xff] }
  0x4f   : > { %740 = vrot.lane.b32.xlu0 %v719_v20, %s2702_s18  ;;  %v2935_v20 = vld [vmem:[%s2737_s17 + $0xc] sm:$0xf]  ;;  %v845_v3 = vsel %vm2789_vm8, %v836_v48, %v2976_v49  ;;  %v853_v10 = vrot.slane %v851_v1, 6  ;;  %v858_v30 = vshrl.u32 %v814_v9, 16  ;;  %v846_v34 = vrot.slane %v2976_v49, 4 }
  0x50   : > { %v500_v24 = vrot.slane %v2935_v20, 6  ;;  %v835_v58 = vsel %vm2789_vm8, %v826_v25, %v834_v16  ;;  %v2626_v16 = vld [vmem:[%s3632_s1 + $0x20] sm:$0xff]  ;;  %v1140_v39 = vrot.slane %v1138_v8, 4  ;;  %v1144_v42 = vshll.u32 %v1100_v28, 16  ;;  %v2635_v48 = vld [vmem:[%s3632_s1 + $0x68] sm:$0xff] }
  0x51   : > { %1984 = vmatpush.bf16.msra.mxu2 %v2644_v27  ;;  %v850_v27 = vrot.slane %v848_v0, 5  ;;  %v1148_v25 = vshrl.u32 %v1100_v28, 16  ;;  %1930 = vmatpush.bf16.msra.mxu0 %v2626_v16  ;;  %642 = vst.msk [vmem:[#allocation2 + $0x2c] sm:$0xf] %vm179_vm12, %v635_v43  ;;  %v2647_v56 = vld [vmem:[%s3632_s1 + $0xc8] sm:$0xff]  ;;  %v496_v57 = vrot.slane %v494_v13, 4 }
  0x52   : > { %453 = vrot.lane.b32.xlu1 %v424_v31, %s2702_s18  ;;  %v2651_v31 = vld [vmem:[%s3632_s1 + $0xe8] sm:$0xff]  ;;  %v501_v41 = vsel %vm2956_vm11, %v499_v18, %v500_v24  ;;  %v861_v18 = vshll.u32 %v814_v9, 16  ;;  %v1141_v49 = vor.u32 %v1140_v39, %v1136_v19  ;;  %v3067_v60 = vld [vmem:[%s2737_s17 + $0x1c] sm:$0xf]  ;;  %1957 = vmatpush.bf16.msra.mxu1 %v2635_v48  ;;  %v173_v9 = vld [vmem:[%s2737_s17 + $0x4] sm:$0xf] }
  0x53   : > { %523 = vst.msk [vmem:[#allocation2 + $0x48] sm:$0xf] %vm179_vm12, %v501_v41  ;;  %2013 = vmatpush.bf16.msra.mxu3 %v2651_v31  ;;  %v854_v47 = vor.u32 %v853_v10, %v850_v27  ;;  %v498_v0 = vsel %vm2956_vm11, %v496_v57, %v497_v21  ;;  %v2634_v21 = vld [vmem:[%s3632_s1 + $0x60] sm:$0xff]  ;;  %v1154_v6 = vshll.u32 %v3067_v60, 16  ;;  %vm2179_vm6 = vcmask 257024  }
  0x54   : > { %455 = vrot.lane.b32.xlu2 %v434_v46, %s2702_s18  ;;  %v1122_v46 = vrot.slane %v1121_v36, 4  ;;  %v3031_v36 = vld [vmem:[%s2737_s17 + $0x10] sm:$0xf]  ;;  %522 = vst.msk [vmem:[#allocation2 + $0x28] sm:$0xf] %vm179_vm12, %v498_v0  ;;  %v2638_v27 = vld [vmem:[%s3632_s1 + $0x80] sm:$0xff] }
  0x55   : > { %1985 = vmatpush.bf16.msra.mxu2 %v2643_v37  ;;  %v863_v37 = vrot.slane %v861_v18, 6  ;;  %1931 = vmatpush.bf16.msra.mxu0 %v2625_v40  ;;  %v856_v63 = vrot.slane %v854_v47, 4  ;;  %181 = vst.msk [vmem:[#allocation2 + $0x20] sm:$0xf] %vm179_vm12, %v173_v9  ;;  %v1014_v10 = vshll.u32 %v3031_v36, 16 }
  0x56   : > { %v1127_v50 = vsel %vm2761_vm5, %v1122_v46, %v1126_v45  ;;  %v2641_v45 = vld [vmem:[%s3632_s1 + $0x98] sm:$0xff]  ;;  %v2648_v46 = vld [vmem:[%s3632_s1 + $0xd0] sm:$0xff]  ;;  %1958 = vmatpush.bf16.msra.mxu1 %v2634_v21  ;;  %v301_v16 = vld [vmem:[%s2737_s17] sm:$0xe]  ;;  %v502_v21 = vrot.slane %v500_v24, 4 }
  0x57   : > { %618 = vrot.lane.b32.xlu0 %v605_v51, %s2702_s18  ;;  %v2650_v51 = vld [vmem:[%s3632_s1 + $0xe0] sm:$0xff] }
  0x58   : > { %2014 = vmatpush.bf16.msra.mxu3 %v2650_v51  ;;  %v1011_v51 = vshrl.u32 %v3031_v36, 16  ;;  %v302_v33 = vld [vmem:[%s2737_s17 + $0x4] sm:$0xf]  ;;  %v1102_v43 = vld [vmem:[%s2737_s17 + $0x20] sm:$0xf] }
  0x59   : > { %1986 = vmatpush.bf16.msra.mxu2 %v2642_v61  ;;  %v1146_v61 = vrot.slane %v1144_v42, 5  ;;  %1932 = vmatpush.bf16.msra.mxu0 %v2624_v15  ;;  %v322_v36 = vrot.slane %v302_v33, 5  ;;  %v1164_v57 = vshll.u32 %v1102_v43, 16  ;;  %v1168_v15 = vshrl.u32 %v1102_v43, 16  ;;  %v304_v43 = vld [vmem:[%s2737_s17 + $0xc] sm:$0xf] }
  0x5a   : > { %742 = vrot.lane.b32.xlu1 %v729_v52, %s2702_s18  ;;  %v979_v52 = vld [vmem:[%s2737_s17 + $0x4] sm:$0x8] }
  0x5b   : > { %v988_v2 = vshrl.u32 %v979_v52, 16  ;;  %v3070_v52 = vld [vmem:[%s2737_s17 + $0x18] sm:$0xf]  ;;  %v324_v40 = vrot.slane %v322_v36, 4 }
  0x5c   : > { %284 = vrot.lane.b32.xlu2 %v271_v11, %s2702_s18  ;;  %v2250_v11 = vrot.slane %v473_v4, 10  ;;  %2015 = vmatpush.bf16.msra.mxu3 %v2649_v62  ;;  %v1150_v62 = vrot.slane %v1148_v25, 4  ;;  %v868_v8 = vshrl.u32 %v3070_v52, 16  ;;  %v871_v18 = vshll.u32 %v3070_v52, 16 }
  0x5d   : > { %v2254_v22 = vrot.slane %v988_v2, 11  ;;  %1987 = vmatpush.bf16.msra.mxu2 %v2641_v45  ;;  %v3079_v2 = vrot.slane %v1011_v51, 7  ;;  %v1156_v25 = vrot.slane %v1154_v6, 5  ;;  %v3135_v45 = vld [vmem:[%s2737_s17 + $0x8] sm:$0xf]  ;;  %v2632_v51 = vld [vmem:[%s3632_s1 + $0x50] sm:$0xff] }
  0x5e   : > { %v495_v29 = vsel %vm2956_vm11, %v2250_v11, %v494_v13  ;;  %v855_v11 = vsel %vm2789_vm8, %v846_v34, %v854_v47  ;;  %v1151_v13 = vor.u32 %v1150_v62, %v1146_v61  ;;  %v2249_v34 = vrot.slane %v301_v16, 9 }
  0x5f   : > { %457 = vrot.lane.b32.xlu0 %v444_v7, %s2702_s18  ;;  %v1000_v7 = vrot.slane %v995_v54, 4  ;;  %521 = vst.msk [vmem:[#allocation2 + $0x8] sm:$0xf] %vm179_vm12, %v495_v29  ;;  %v999_v31 = vsel %vm2749_vm4, %v2254_v22, %v998_v23  ;;  %v1137_v54 = vsel %vm2761_vm5, %v1132_v26, %v1136_v19  ;;  %v2639_v19 = vld [vmem:[%s3632_s1 + $0x88] sm:$0xff]  ;;  %v2646_v22 = vld [vmem:[%s3632_s1 + $0xc0] sm:$0xff]  ;;  %v2633_v26 = vld [vmem:[%s3632_s1 + $0x58] sm:$0xff]  ;;  %v1016_v39 = vor.u32 %v1014_v10, %v3079_v2 }
  0x60   : > { %2016 = vmatpush.bf16.msra.mxu3 %v2648_v46  ;;  %v2623_v23 = vld [vmem:[%s3632_s1 + $0x8] sm:$0xff]  ;;  %v1152_v42 = vrot.slane %v1151_v13, 4  ;;  %1959 = vmatpush.bf16.msra.mxu1 %v2633_v26  ;;  %v870_v46 = vrot.slane %v868_v8, 5  ;;  %v323_v47 = vsel %vm3123_vm0, %v2249_v34, %v322_v36  ;;  %v873_v48 = vrot.slane %v871_v18, 6 }
  0x61   : > { %v1008_v41 = vsel %vm2749_vm4, %v1000_v7, %v1007_v14  ;;  %1988 = vmatpush.bf16.msra.mxu2 %v2640_v53  ;;  %v1158_v7 = vshrl.u32 %v3067_v60, 16  ;;  %v816_v14 = vld [vmem:[%s2737_s17 + $0x1c] sm:$0xf]  ;;  %1933 = vmatpush.bf16.msra.mxu0 %v2623_v23  ;;  %349 = vst.msk [vmem:[#allocation2 + $0x4] sm:$0xf] %vm179_vm12, %v323_v47  ;;  %v1170_v23 = vrot.slane %v1168_v15, 4 }
  0x62   : > { %1178 = vrot.lane.b32.xlu1 %v1117_v38, %s2702_s18  ;;  %v3034_v38 = vld [vmem:[%s2737_s17 + $0x14] sm:$0xf]  ;;  %v878_v44 = vshrl.u32 %v816_v14, 16  ;;  %v984_v53 = vld [vmem:[%s2737_s17 + $0x18] sm:$0xf]  ;;  %v874_v62 = vor.u32 %v873_v48, %v870_v46 }
  0x63   : > { %v1020_v55 = vshrl.u32 %v3034_v38, 16  ;;  %v985_v60 = vld [vmem:[%s2737_s17 + $0x1c] sm:$0xf]  ;;  %v1029_v0 = vshrl.u32 %v984_v53, 16  ;;  %v174_v26 = vld [vmem:[%s2737_s17 + $0x8] sm:$0xf] }
  0x64   : > { %1180 = vrot.lane.b32.xlu2 %v1127_v50, %s2702_s18  ;;  %v860_v50 = vrot.slane %v858_v30, 5  ;;  %2017 = vmatpush.bf16.msra.mxu3 %v2647_v56  ;;  %v1018_v30 = vrot.slane %v3079_v2, 4  ;;  %v880_v52 = vrot.slane %v878_v44, 5  ;;  %v2631_v2 = vld [vmem:[%s3632_s1 + $0x48] sm:$0xff]  ;;  %v1038_v9 = vshrl.u32 %v985_v60, 16 }
  0x65   : > { %v3091_v5 = vrot.slane %v1020_v55, 7  ;;  %1989 = vmatpush.bf16.msra.mxu2 %v2639_v19  ;;  %v1160_v55 = vrot.slane %v1158_v7, 4  ;;  %1960 = vmatpush.bf16.msra.mxu1 %v2632_v51  ;;  %v876_v20 = vrot.slane %v874_v62, 4  ;;  %v175_v19 = vld [vmem:[%s2737_s17 + $0xc] sm:$0xf]  ;;  %v1032_v18 = vshll.u32 %v984_v53, 16 }
  0x66   : > { %v3077_v1 = vor.u32 %v863_v37, %v860_v50  ;;  %v2622_v37 = vld [vmem:[%s3632_s1] sm:$0xff]  ;;  %183 = vst.msk [vmem:[#allocation2 + $0x60] sm:$0xf] %vm179_vm12, %v175_v19  ;;  %v3193_v10 = vrot.slane %v1038_v9, 7 }
  0x67   : > { %896 = vrot.lane.b32.xlu0 %v835_v58, %s2702_s18  ;;  %v1142_v58 = vrot.slane %v1141_v49, 4  ;;  %v881_v49 = vshll.u32 %v816_v14, 16  ;;  %1934 = vmatpush.bf16.msra.mxu0 %v2622_v37  ;;  %v2630_v14 = vld [vmem:[%s3632_s1 + $0x40] sm:$0xff]  ;;  %182 = vst.msk [vmem:[#allocation2 + $0x40] sm:$0xf] %vm179_vm12, %v174_v26 }
  0x68   : > { %v865_v28 = vsel %vm2789_vm8, %v856_v63, %v3077_v1  ;;  %2018 = vmatpush.bf16.msra.mxu3 %v2646_v22  ;;  %v866_v8 = vrot.slane %v3077_v1, 4  ;;  %v1031_v22 = vrot.slane %v1029_v0, 7 }
  0x69   : > { %v1147_v4 = vsel %vm2761_vm5, %v1142_v58, %v1146_v61  ;;  %1990 = vmatpush.bf16.msra.mxu2 %v2638_v27  ;;  %v1157_v58 = vsel %vm2761_vm5, %v1152_v42, %v1156_v25  ;;  %v1161_v61 = vor.u32 %v1160_v55, %v1156_v25  ;;  %v883_v63 = vrot.slane %v881_v49, 6  ;;  %1961 = vmatpush.bf16.msra.mxu1 %v2631_v2 }
  0x6a   : > { %898 = vrot.lane.b32.xlu1 %v845_v3, %s2702_s18  ;;  %v1023_v3 = vshll.u32 %v3034_v38, 16  ;;  %v1009_v38 = vrot.slane %v2997_v59, 4  ;;  %v325_v59 = vrot.slane %v3135_v45, 5  ;;  %v875_v27 = vsel %vm2789_vm8, %v866_v8, %v874_v62 }
  0x6b   : > { %v1162_v7 = vrot.slane %v1161_v61, 4  ;;  %v3180_v24 = vor.u32 %v883_v63, %v880_v52  ;;  %v1036_v42 = vrot.slane %v1031_v22, 4  ;;  %v328_v49 = vrot.slane %v304_v43, 5  ;;  %v2661_v52 = vld [vmem:[%s3632_s1 + $0x138] sm:$0xff] }
  0x6c   : > { %1054 = vrot.lane.b32.xlu2 %v999_v31, %s2702_s18  ;;  %v1017_v50 = vsel %vm2749_vm4, %v1009_v38, %v1016_v39  ;;  %v636_v38 = vld [vmem:[%s2737_s17 + $0xc] sm:$0xf]  ;;  %v1027_v39 = vrot.slane %v3091_v5, 4  ;;  %v1045_v45 = vrot.slane %v3193_v10, 4  ;;  %v2681_v63 = vld [vmem:[%s3632_s1 + $0x1d8] sm:$0xff]  ;;  %2039 = vmatpush.bf16.msrb.mxu0 %v2661_v52 }
  0x6d   : > { %1962 = vmatpush.bf16.msra.mxu1 %v2630_v14  ;;  %v885_v16 = vsel %vm2789_vm8, %v876_v20, %v3180_v24  ;;  %643 = vst.msk [vmem:[#allocation2 + $0x4c] sm:$0xf] %vm179_vm12, %v636_v38  ;;  %v330_v0 = vrot.slane %v328_v49, 4  ;;  %2127 = vmatpush.bf16.msrb.mxu3 %v2681_v63  ;;  %v817_v20 = vld [vmem:[%s2737_s17 + $0x20] sm:$0x3] }
  0x6e   : > { %v888_v14 = vshrl.u32 %v817_v20, 16  ;;  %v891_v19 = vshll.u32 %v817_v20, 16  ;;  %v2658_v63 = vld [vmem:[%s3632_s1 + $0x120] sm:$0xff]  ;;  %v640_v20 = vld [vmem:[%s2737_s17 + $0x1c] sm:$0xf] }
  0x6f   : > { %1056 = vrot.lane.b32.xlu0 %v1008_v41, %s2702_s18  ;;  %v1025_v41 = vor.u32 %v1023_v3, %v3091_v5  ;;  %v3167_v3 = vld [vmem:[%s2737_s17 + $0x10] sm:$0xf]  ;;  %v327_v5 = vrot.slane %v325_v59, 4  ;;  %647 = vst.msk [vmem:[#allocation2 + $0xcc] sm:$0xf] %vm179_vm12, %v640_v20 }
  0x70   : > { %v503_v6 = vrot.slane %v3167_v3, 6  ;;  %v890_v26 = vrot.slane %v888_v14, 5  ;;  %v2673_v14 = vld [vmem:[%s3632_s1 + $0x198] sm:$0xff] }
  0x71   : > { %v1026_v56 = vsel %vm2749_vm4, %v1018_v30, %v1025_v41  ;;  %v986_v30 = vld [vmem:[%s2737_s17 + $0x20] sm:$0xf]  ;;  %v1034_v41 = vor.u32 %v1032_v18, %v1031_v22  ;;  %2067 = vmatpush.bf16.msrb.mxu1 %v2669_v32  ;;  %v2668_v18 = vld [vmem:[%s3632_s1 + $0x170] sm:$0xff] }
  0x72   : > { %1182 = vrot.lane.b32.xlu1 %v1137_v54, %s2702_s18  ;;  %v326_v54 = vsel %vm3123_vm0, %v324_v40, %v325_v59  ;;  %v504_v13 = vsel %vm2956_vm11, %v502_v21, %v503_v6  ;;  %v1047_v44 = vshrl.u32 %v986_v30, 16  ;;  %v329_v59 = vsel %vm3123_vm0, %v327_v5, %v328_v49  ;;  %v3247_v21 = vld [vmem:[%s2737_s17 + $0x18] sm:$0xf]  ;;  %v2659_v5 = vld [vmem:[%s3632_s1 + $0x128] sm:$0xff] }
  0x73   : > { %350 = vst.msk [vmem:[#allocation2 + $0x24] sm:$0xf] %vm179_vm12, %v326_v54  ;;  %v1035_v47 = vsel %vm2749_vm4, %v1027_v39, %v1034_v41  ;;  %v1050_v54 = vshll.u32 %v986_v30, 16  ;;  %v2660_v30 = vld [vmem:[%s3632_s1 + $0x130] sm:$0xff]  ;;  %v2667_v49 = vld [vmem:[%s3632_s1 + $0x168] sm:$0xff] }
  0x74   : > { %1184 = vrot.lane.b32.xlu2 %v1147_v4, %s2702_s18  ;;  %524 = vst.msk [vmem:[#allocation2 + $0x68] sm:$0xf] %vm179_vm12, %v504_v13  ;;  %v1049_v53 = vrot.slane %v1047_v44, 7  ;;  %v505_v13 = vrot.slane %v503_v6, 4  ;;  %2040 = vmatpush.bf16.msrb.mxu0 %v2660_v30  ;;  %v638_v39 = vld [vmem:[%s2737_s17 + $0x14] sm:$0xf] }
  0x75   : > { %351 = vst.msk [vmem:[#allocation2 + $0x44] sm:$0xf] %vm179_vm12, %v329_v59  ;;  %2068 = vmatpush.bf16.msrb.mxu1 %v2668_v18  ;;  %v177_v41 = vld [vmem:[%s2737_s17 + $0x14] sm:$0xf] }
  0x76   : > { %v611_v29 = vpop.permute.xlu2 %610  ;;  %v1052_v15 = vor.u32 %v1050_v54, %v1049_v53  ;;  %645 = vst.msk [vmem:[#allocation2 + $0x8c] sm:$0xf] %vm179_vm12, %v638_v39  ;;  %v759_v39 = vld [vmem:[%s2737_s17 + $0x8] sm:$0xf] }
  0x77   : > { %900 = vrot.lane.b32.xlu0 %v855_v11, %s2702_s18  ;;  %629 = vst.msk [vmem:[#allocation2 + $0x48] sm:$0xf] %vm293_vm13, %v611_v29  ;;  %v1166_v11 = vrot.slane %v1164_v57, 5  ;;  %v1103_v29 = vld [vmem:[%s2737_s17 + $0x24] sm:$0x1] }
  0x78   : > { %v1174_v36 = vshll.u32 %v1103_v29, 16  ;;  %v3229_v57 = vld [vmem:[%s2737_s17 + $0x10] sm:$0xf]  ;;  %v1053_v3 = vsel %vm2749_vm4, %v1045_v45, %v1052_v15  ;;  %185 = vst.msk [vmem:[#allocation2 + $0xa0] sm:$0xf] %vm179_vm12, %v177_v41  ;;  %2041 = vmatpush.bf16.msrb.mxu0 %v2659_v5 }
  0x79   : > { %v1167_v1 = vsel %vm2761_vm5, %v1162_v7, %v1166_v11  ;;  %v1171_v34 = vor.u32 %v1170_v23, %v1166_v11  ;;  %v331_v2 = vrot.slane %v3229_v57, 5  ;;  %v509_v11 = vrot.slane %v3247_v21, 6  ;;  %2069 = vmatpush.bf16.msrb.mxu1 %v2667_v49  ;;  %v480_v57 = vld [vmem:[%s2737_s17 + $0x1c] sm:$0x3]  ;;  %v3380_v5 = vld [vmem:[%s2737_s17 + $0xc] sm:$0xf] }
  0x7a   : > { %902 = vrot.lane.b32.xlu1 %v865_v28, %s2702_s18  ;;  %v1041_v28 = vshll.u32 %v985_v60, 16  ;;  %v1176_v48 = vrot.slane %v1174_v36, 5  ;;  %v176_v36 = vld [vmem:[%s2737_s17 + $0x10] sm:$0xf] }
  0x7b   : > { %v1172_v40 = vrot.slane %v1171_v34, 4  ;;  %v332_v9 = vsel %vm3123_vm0, %v330_v0, %v331_v2  ;;  %184 = vst.msk [vmem:[#allocation2 + $0x80] sm:$0xf] %vm179_vm12, %v176_v36  ;;  %v2666_v0 = vld [vmem:[%s3632_s1 + $0x160] sm:$0xff] }
  0x7c   : > { %1058 = vrot.lane.b32.xlu2 %v1017_v50, %s2702_s18  ;;  %v1043_v25 = vor.u32 %v1041_v28, %v3193_v10  ;;  %v637_v50 = vld [vmem:[%s2737_s17 + $0x10] sm:$0xf]  ;;  %352 = vst.msk [vmem:[#allocation2 + $0x64] sm:$0xf] %vm179_vm12, %v332_v9  ;;  %v886_v28 = vrot.slane %v3180_v24, 4  ;;  %2042 = vmatpush.bf16.msrb.mxu0 %v2658_v63 }
  0x7d   : > { %644 = vst.msk [vmem:[#allocation2 + $0x6c] sm:$0xf] %vm179_vm12, %v637_v50  ;;  %v1177_v61 = vsel %vm2761_vm5, %v1172_v40, %v1176_v48  ;;  %v2676_v10 = vld [vmem:[%s3632_s1 + $0x1b0] sm:$0xff]  ;;  %v639_v50 = vld [vmem:[%s2737_s17 + $0x18] sm:$0xf]  ;;  %2070 = vmatpush.bf16.msrb.mxu1 %v2666_v0 }
  0x7e   : > { %v731_v4 = vpop.permute.xlu2 %730  ;;  %v1044_v51 = vsel %vm2749_vm4, %v1036_v42, %v1043_v25  ;;  %v2680_v40 = vld [vmem:[%s3632_s1 + $0x1d0] sm:$0xff]  ;;  %646 = vst.msk [vmem:[#allocation2 + $0xac] sm:$0xf] %vm179_vm12, %v639_v50  ;;  %v2298_v32 = vld [vmem:[#allocation2 + $0x48] sm:$0xf]  ;;  %vm1914_vm4 = vcmask 523264  }
  0x7f   : > { %1060 = vrot.lane.b32.xlu0 %v1026_v56, %s2702_s18  ;;  %751 = vst.msk [vmem:[#allocation2 + $0xc] sm:$0xf] %vm293_vm13, %v731_v4  ;;  %v2677_v56 = vld [vmem:[%s3632_s1 + $0x1b8] sm:$0xff]  ;;  %2128 = vmatpush.bf16.msrb.mxu3 %v2680_v40  ;;  %v924_v0 = vld [vmem:[%s2737_s17 + $0x4] sm:$0x8] }
  0x80   : > { %2095 = vmatpush.bf16.msrb.mxu2 %v2677_v56 }
  0x82   : > { %1186 = vrot.lane.b32.xlu1 %v1157_v58, %s2702_s18  ;;  %v478_v58 = vld [vmem:[%s2737_s17 + $0x14] sm:$0xf] }
  0x83   : > { %v506_v7 = vrot.slane %v478_v58, 6 }
  0x84   : > { %1188 = vrot.lane.b32.xlu2 %v1167_v1, %s2702_s18  ;;  %2096 = vmatpush.bf16.msrb.mxu2 %v2676_v10 }
  0x85   : > { %v508_v1 = vrot.slane %v506_v7, 4  ;;  %v507_v22 = vsel %vm2956_vm11, %v505_v13, %v506_v7 }
  0x86   : > { %v733_v33 = vpop.permute.xlu2 %732  ;;  %v2599_v55 = vld [vmem:[#allocation2 + $0xc] sm:$0xf]  ;;  %525 = vst.msk [vmem:[#allocation2 + $0x88] sm:$0xf] %vm179_vm12, %v507_v22  ;;  %v2657_v22 = vld [vmem:[%s3632_s1 + $0x118] sm:$0xff] }
  0x87   : > { %904 = vrot.lane.b32.xlu0 %v875_v27, %s2702_s18  ;;  %752 = vst.msk [vmem:[#allocation2 + $0x2c] sm:$0xf] %vm293_vm13, %v733_v33  ;;  %v510_v6 = vsel %vm2956_vm11, %v508_v1, %v509_v11  ;;  %v893_v27 = vrot.slane %v891_v19, 6  ;;  %v308_v19 = vld [vmem:[%s2737_s17 + $0x1c] sm:$0x1]  ;;  %2043 = vmatpush.bf16.msrb.mxu0 %v2657_v22  ;;  %v2662_v22 = vld [vmem:[%s3632_s1 + $0x140] sm:$0xff] }
  0x88   : > { %526 = vst.msk [vmem:[#allocation2 + $0xa8] sm:$0xf] %vm179_vm12, %v510_v6  ;;  %v340_v6 = vrot.slane %v308_v19, 5 }
  0x89   : > { %v607_v46 = vpop.permute.xlu0 %606  ;;  %v894_v17 = vor.u32 %v893_v27, %v890_v26  ;;  %v2665_v26 = vld [vmem:[%s3632_s1 + $0x158] sm:$0xff] }
  0x8a   : > { %627 = vst.msk [vmem:[#allocation2 + $0x8] sm:$0xf] %vm293_vm13, %v607_v46  ;;  %906 = vrot.lane.b32.xlu1 %v885_v16, %s2702_s18  ;;  %v2675_v46 = vld [vmem:[%s3632_s1 + $0x1a8] sm:$0xff]  ;;  %2071 = vmatpush.bf16.msrb.mxu1 %v2665_v26 }
  0x8b   : > { %v895_v24 = vsel %vm2789_vm8, %v886_v28, %v894_v17  ;;  %2097 = vmatpush.bf16.msrb.mxu2 %v2675_v46  ;;  %v178_v28 = vld [vmem:[%s2737_s17 + $0x18] sm:$0xf]  ;;  %v2672_v17 = vld [vmem:[%s3632_s1 + $0x190] sm:$0xff] }
  0x8c   : > { %v273_v37 = vpop.permute.xlu1 %272  ;;  %1062 = vrot.lane.b32.xlu2 %v1035_v47, %s2702_s18  ;;  %v306_v47 = vld [vmem:[%s2737_s17 + $0x14] sm:$0xf]  ;;  %186 = vst.msk [vmem:[#allocation2 + $0xc0] sm:$0xf] %vm179_vm12, %v178_v28 }
  0x8d   : > { %294 = vst.msk [vmem:[#allocation2] sm:$0xf] %vm293_vm13, %v273_v37  ;;  %v334_v48 = vrot.slane %v306_v47, 5 }
  0x8e   : > { %v2268_v60 = vld [vmem:[#allocation2 + $0x28] sm:$0xf0]  ;;  %v279_v62 = vpop.permute.xlu2 %278 }
  0x8f   : > { %1064 = vrot.lane.b32.xlu0 %v1044_v51, %s2702_s18  ;;  %v2271_v4 = vor.u32 %v2599_v55, %v2268_v60  ;;  %297 = vst.msk [vmem:[#allocation2 + $0x60] sm:$0xf] %vm293_vm13, %v279_v62  ;;  %v307_v51 = vld [vmem:[%s2737_s17 + $0x18] sm:$0xf]  ;;  %v336_v53 = vrot.slane %v334_v48, 4  ;;  %v333_v55 = vrot.slane %v331_v2, 4 }
  0x90   : > { %v337_v54 = vrot.slane %v307_v51, 5  ;;  %v2674_v62 = vld [vmem:[%s3632_s1 + $0x1a0] sm:$0xff]  ;;  %v511_v2 = vrot.slane %v509_v11, 4  ;;  %v779_v51 = vrot.slane %v3380_v5, 5  ;;  %v3459_v5 = vld [vmem:[%s2737_s17 + $0x14] sm:$0xf] }
  0x91   : > { %v609_v8 = vpop.permute.xlu0 %608  ;;  %2019 = vmatmul.bf16.vlgmr.msra.gmra.mxu3 %v2271_v4  ;;  %v2266_v33 = vld [vmem:[#allocation2 + $0x8] sm:$0xf]  ;;  %v335_v60 = vsel %vm3123_vm0, %v333_v55, %v334_v48  ;;  %2098 = vmatpush.bf16.msrb.mxu2 %v2674_v62  ;;  %v512_v4 = vrot.slane %v480_v57, 6 }
  0x92   : > { %628 = vst.msk [vmem:[#allocation2 + $0x28] sm:$0xf] %vm293_vm13, %v609_v8  ;;  %1190 = vrot.lane.b32.xlu1 %v1177_v61, %s2702_s18  ;;  %v338_v58 = vsel %vm3123_vm0, %v336_v53, %v337_v54  ;;  %v925_v55 = vld [vmem:[%s2737_s17 + $0x8] sm:$0xf] }
  0x93   : > { %354 = vst.msk [vmem:[#allocation2 + $0xa4] sm:$0xf] %vm179_vm12, %v338_v58  ;;  %v513_v13 = vsel %vm2956_vm11, %v511_v2, %v512_v4  ;;  %v2678_v58 = vld [vmem:[%s3632_s1 + $0x1c0] sm:$0xff]  ;;  %v945_v62 = vrot.slane %v925_v55, 7  ;;  %v1086_v55 = vld [vmem:[%s2737_s17 + $0x18] sm:$0xf] }
  0x94   : > { %v275_v23 = vpop.permute.xlu1 %274  ;;  %908 = vrot.lane.b32.xlu2 %v895_v24, %s2702_s18  ;;  %v2258_v12 = vld [vmem:[#allocation2] sm:$0xf]  ;;  %353 = vst.msk [vmem:[#allocation2 + $0x84] sm:$0xf] %vm179_vm12, %v335_v60  ;;  %v2663_v60 = vld [vmem:[%s3632_s1 + $0x148] sm:$0xff] }
  0x95   : > { %295 = vst.msk [vmem:[#allocation2 + $0x20] sm:$0xf] %vm293_vm13, %v275_v23  ;;  %2099 = vmatpush.bf16.msrb.mxu2 %v2673_v14  ;;  %v2679_v23 = vld [vmem:[%s3632_s1 + $0x1c8] sm:$0xff]  ;;  %v947_v4 = vrot.slane %v945_v62, 4 }
  0x96   : > { %v450_v29 = vpop.permute.xlu2 %449  ;;  %v2610_v9 = vld [vmem:[#allocation2 + $0x5c] sm:$0xf0]  ;;  %527 = vst.msk [vmem:[#allocation2 + $0xc8] sm:$0xf] %vm179_vm12, %v513_v13  ;;  %2129 = vmatpush.bf16.msrb.mxu3 %v2679_v23  ;;  %v1208_v13 = vld [vmem:[%s2737_s17 + $0x10] sm:$0xf] }
  0x97   : > { %1066 = vrot.lane.b32.xlu0 %v1053_v3, %s2702_s18  ;;  %468 = vst.msk [vmem:[#allocation2 + $0x44] sm:$0xf] %vm293_vm13, %v450_v29  ;;  %v339_v3 = vrot.slane %v337_v54, 4  ;;  %v1082_v29 = vld [vmem:[%s2737_s17 + $0x8] sm:$0xf]  ;;  %v1227_v26 = vrot.slane %v1208_v13, 5 }
  0x98   : > { %1089 = vst.msk [vmem:[#allocation2 + $0x18] sm:$0xf] %vm179_vm12, %v1082_v29  ;;  %v781_v29 = vrot.slane %v779_v51, 4 }
  0x99   : > { %v446_v16 = vpop.permute.xlu0 %445  ;;  %v2603_v34 = vld [vmem:[#allocation2 + $0x24] sm:$0xf0]  ;;  %v341_v10 = vsel %vm3123_vm0, %v339_v3, %v340_v6  ;;  %2100 = vmatpush.bf16.msrb.mxu2 %v2672_v17  ;;  %1093 = vst.msk [vmem:[#allocation2 + $0x98] sm:$0xf] %vm179_vm12, %v1086_v55 }
  0x9a   : > { %466 = vst.msk [vmem:[#allocation2 + $0x4] sm:$0xf] %vm293_vm13, %v446_v16  ;;  %v2267_v38 = vor.u32 %v2603_v34, %v2266_v33  ;;  %v2656_v33 = vld [vmem:[%s3632_s1 + $0x110] sm:$0xff]  ;;  %2130 = vmatpush.bf16.msrb.mxu3 %v2678_v58 }
  0x9b   : > { %355 = vst.msk [vmem:[#allocation2 + $0xc4] sm:$0xf] %vm179_vm12, %v341_v10  ;;  %2044 = vmatpush.bf16.msrb.mxu0 %v2656_v33  ;;  %v761_v10 = vld [vmem:[%s2737_s17 + $0x10] sm:$0xf] }
  0x9c   : > { %v448_v42 = vpop.permute.xlu1 %447  ;;  %1991 = vmatmul.bf16.vlgmr.msra.gmra.mxu2 %v2267_v38  ;;  %v2602_v25 = vld [vmem:[#allocation2 + $0x1c] sm:$0xf0] }
  0x9d   : > { %467 = vst.msk [vmem:[#allocation2 + $0x24] sm:$0xf] %vm293_vm13, %v448_v42  ;;  %v2259_v44 = vor.u32 %v2602_v25, %v2258_v12  ;;  %v2664_v12 = vld [vmem:[%s3632_s1 + $0x150] sm:$0xff]  ;;  %v758_v25 = vld [vmem:[%s2737_s17 + $0x4] sm:$0xe] }
  0x9e   : > { %v617_v43 = vpop.permute.xlu2 %616  ;;  %v2606_v34 = vld [vmem:[#allocation2 + $0x44] sm:$0xf]  ;;  %v2252_v47 = vrot.slane %v758_v25, 9  ;;  %2072 = vmatpush.bf16.msrb.mxu1 %v2664_v12  ;;  %v1209_v25 = vld [vmem:[%s2737_s17 + $0x14] sm:$0xf] }
  0x9f   : > { %1935 = vmatmul.bf16.vlgmr.msra.gmra.mxu0 %v2259_v44  ;;  %632 = vst.msk [vmem:[#allocation2 + $0xa8] sm:$0xf] %vm293_vm13, %v617_v43  ;;  %v776_v44 = vrot.slane %v759_v39, 5  ;;  %v1083_v43 = vld [vmem:[%s2737_s17 + $0xc] sm:$0xf] }
  0xa0   : > { %1090 = vst.msk [vmem:[#allocation2 + $0x38] sm:$0xf] %vm179_vm12, %v1083_v43 }
  0xa1   : > { %v613_v37 = vpop.permute.xlu0 %612  ;;  %v2598_v59 = vld [vmem:[#allocation2 + $0x4] sm:$0xf]  ;;  %v778_v40 = vrot.slane %v776_v44, 4  ;;  %v777_v50 = vsel %vm3123_vm0, %v2252_v47, %v776_v44  ;;  %v1230_v47 = vrot.slane %v1209_v25, 5 }
  0xa2   : > { %630 = vst.msk [vmem:[#allocation2 + $0x68] sm:$0xf] %vm293_vm13, %v613_v37  ;;  %v2671_v37 = vld [vmem:[%s3632_s1 + $0x188] sm:$0xff]  ;;  %2073 = vmatpush.bf16.msrb.mxu1 %v2663_v60 }
  0xa3   : > { %803 = vst.msk [vmem:[#allocation2 + $0x10] sm:$0xf] %vm179_vm12, %v777_v50  ;;  %2101 = vmatpush.bf16.msrb.mxu2 %v2671_v37  ;;  %v780_v54 = vsel %vm3123_vm0, %v778_v40, %v779_v51  ;;  %v1210_v37 = vld [vmem:[%s2737_s17 + $0x18] sm:$0xf]  ;;  %v1229_v51 = vrot.slane %v1227_v26, 4 }
  0xa4   : > { %v277_v45 = vpop.permute.xlu1 %276  ;;  %v2260_v56 = vld [vmem:[#allocation2 + $0x20] sm:$0xf0]  ;;  %804 = vst.msk [vmem:[#allocation2 + $0x30] sm:$0xf] %vm179_vm12, %v780_v54 }
  0xa5   : > { %296 = vst.msk [vmem:[#allocation2 + $0x40] sm:$0xf] %vm293_vm13, %v277_v45  ;;  %v2263_v61 = vor.u32 %v2598_v59, %v2260_v56  ;;  %v1207_v45 = vld [vmem:[%s2737_s17 + $0xc] sm:$0xf] }
  0xa6   : > { %v739_v52 = vpop.permute.xlu2 %738  ;;  %v2619_v38 = vld [vmem:[#allocation2 + $0xa4] sm:$0xf0]  ;;  %2074 = vmatpush.bf16.msrb.mxu1 %v2662_v22 }
  0xa7   : > { %1963 = vmatmul.bf16.vlgmr.msra.gmra.mxu1 %v2263_v61  ;;  %755 = vst.msk [vmem:[#allocation2 + $0x8c] sm:$0xf] %vm293_vm13, %v739_v52  ;;  %v2655_v56 = vld [vmem:[%s3632_s1 + $0x108] sm:$0xff] }
  0xa8   : > { %v3406_v61 = vld [vmem:[%s2737_s17 + $0xc] sm:$0xf]  ;;  %2045 = vmatpush.bf16.msrb.mxu0 %v2655_v56 }
  0xa9   : > { %v735_v15 = vpop.permute.xlu0 %734  ;;  %v2611_v7 = vld [vmem:[#allocation2 + $0x64] sm:$0xf0]  ;;  %v948_v63 = vrot.slane %v3406_v61, 7  ;;  %v1231_v61 = vsel %vm3123_vm0, %v1229_v51, %v1230_v47 }
  0xaa   : > { %753 = vst.msk [vmem:[#allocation2 + $0x4c] sm:$0xf] %vm293_vm13, %v735_v15  ;;  %v2299_v8 = vor.u32 %v2611_v7, %v2298_v32  ;;  %v2253_v15 = vrot.slane %v924_v0, 11  ;;  %v2670_v32 = vld [vmem:[%s3632_s1 + $0x180] sm:$0xff]  ;;  %v1224_v7 = vrot.slane %v1207_v45, 5  ;;  %v1233_v45 = vrot.slane %v1210_v37, 5 }
  0xab   : > { %2102 = vmatpush.bf16.msrb.mxu2 %v2670_v32  ;;  %v950_v50 = vrot.slane %v948_v63, 4  ;;  %1253 = vst.msk [vmem:[#allocation2 + $0x5c] sm:$0xf] %vm179_vm12, %v1231_v61  ;;  %v931_v61 = vld [vmem:[%s2737_s17 + $0x20] sm:$0x7] }
  0xac   : > { %v737_v1 = vpop.permute.xlu1 %736  ;;  %1996 = vmatmul.bf16.gmra.mxu2 %v2299_v8  ;;  %v2290_v21 = vld [vmem:[#allocation2 + $0x40] sm:$0xf]  ;;  %v1084_v8 = vld [vmem:[%s2737_s17 + $0x10] sm:$0xf]  ;;  %v1226_v6 = vrot.slane %v1224_v7, 4 }
  0xad   : > { %754 = vst.msk [vmem:[#allocation2 + $0x6c] sm:$0xf] %vm293_vm13, %v737_v1  ;;  %v2291_v11 = vor.u32 %v2610_v9, %v2290_v21  ;;  %v1206_v9 = vld [vmem:[%s2737_s17 + $0x8] sm:$0xe]  ;;  %v949_v21 = vsel %vm3408_vm3, %v947_v4, %v948_v63  ;;  %v763_v4 = vld [vmem:[%s2737_s17 + $0x18] sm:$0xf] }
  0xae   : > { %v456_v35 = vpop.permute.xlu2 %455  ;;  %1091 = vst.msk [vmem:[#allocation2 + $0x58] sm:$0xf] %vm179_vm12, %v1084_v8  ;;  %v2255_v14 = vrot.slane %v1206_v9, 9  ;;  %v788_v8 = vrot.slane %v763_v4, 5 }
  0xaf   : > { %1940 = vmatmul.bf16.gmra.mxu0 %v2291_v11  ;;  %471 = vst.msk [vmem:[#allocation2 + $0xa4] sm:$0xf] %vm293_vm13, %v456_v35  ;;  %v946_v11 = vsel %vm3408_vm3, %v2253_v15, %v945_v62  ;;  %v2654_v35 = vld [vmem:[%s3632_s1 + $0x100] sm:$0xff] }
  0xb0   : > { %973 = vst.msk [vmem:[#allocation2 + $0x34] sm:$0xf] %vm179_vm12, %v949_v21  ;;  %v1225_v23 = vsel %vm3123_vm0, %v2255_v14, %v1224_v7  ;;  %2046 = vmatpush.bf16.msrb.mxu0 %v2654_v35  ;;  %v3489_v21 = vld [vmem:[%s2737_s17 + $0x1c] sm:$0xf]  ;;  %v790_v14 = vrot.slane %v788_v8, 4 }
  0xb1   : > { %v452_v27 = vpop.permute.xlu0 %451  ;;  %v2607_v18 = vld [vmem:[#allocation2 + $0x4c] sm:$0xf]  ;;  %972 = vst.msk [vmem:[#allocation2 + $0x14] sm:$0xf] %vm179_vm12, %v946_v11 }
  0xb2   : > { %469 = vst.msk [vmem:[#allocation2 + $0x64] sm:$0xf] %vm293_vm13, %v452_v27  ;;  %v2615_v27 = vld [vmem:[#allocation2 + $0x8c] sm:$0xf] }
  0xb3   : > { %1251 = vst.msk [vmem:[#allocation2 + $0x1c] sm:$0xf] %vm179_vm12, %v1225_v23 }
  0xb4   : > { %v615_v30 = vpop.permute.xlu1 %614  ;;  %v2300_v24 = vld [vmem:[#allocation2 + $0x68] sm:$0xf0] }
  0xb5   : > { %631 = vst.msk [vmem:[#allocation2 + $0x88] sm:$0xf] %vm293_vm13, %v615_v30  ;;  %v2303_v16 = vor.u32 %v2607_v18, %v2300_v24  ;;  %v782_v30 = vrot.slane %v761_v10, 5  ;;  %v930_v10 = vld [vmem:[%s2737_s17 + $0x1c] sm:$0xf] }
  0xb6   : > { %v285_v36 = vpop.permute.xlu2 %284  ;;  %v2324_v24 = vld [vmem:[#allocation2 + $0xa0] sm:$0xf0] }
  0xb7   : > { %2024 = vmatmul.bf16.gmra.mxu3 %v2303_v16  ;;  %300 = vst.msk [vmem:[#allocation2 + $0xc0] sm:$0xf] %vm293_vm13, %v285_v36  ;;  %v1085_v16 = vld [vmem:[%s2737_s17 + $0x14] sm:$0xf]  ;;  %v783_v33 = vsel %vm3123_vm0, %v781_v29, %v782_v30  ;;  %v960_v29 = vrot.slane %v930_v10, 7 }
  0xb8   : > { %1092 = vst.msk [vmem:[#allocation2 + $0x78] sm:$0xf] %vm179_vm12, %v1085_v16  ;;  %v762_v36 = vld [vmem:[%s2737_s17 + $0x14] sm:$0xf] }
  0xb9   : > { %v281_v41 = vpop.permute.xlu0 %280  ;;  %v2292_v42 = vld [vmem:[#allocation2 + $0x60] sm:$0xf0]  ;;  %805 = vst.msk [vmem:[#allocation2 + $0x50] sm:$0xf] %vm179_vm12, %v783_v33  ;;  %v1212_v33 = vld [vmem:[%s2737_s17 + $0x20] sm:$0xf] }
  0xba   : > { %298 = vst.msk [vmem:[#allocation2 + $0x80] sm:$0xf] %vm293_vm13, %v281_v41  ;;  %v2295_v46 = vor.u32 %v2606_v34, %v2292_v42  ;;  %v1228_v34 = vsel %vm3123_vm0, %v1226_v6, %v1227_v26  ;;  %v785_v42 = vrot.slane %v762_v36, 5  ;;  %v1211_v6 = vld [vmem:[%s2737_s17 + $0x1c] sm:$0xf] }
  0xbb   : > { %1252 = vst.msk [vmem:[#allocation2 + $0x3c] sm:$0xf] %vm179_vm12, %v1228_v34  ;;  %v929_v26 = vld [vmem:[%s2737_s17 + $0x18] sm:$0xf] }
  0xbc   : > { %v283_v48 = vpop.permute.xlu1 %282  ;;  %1968 = vmatmul.bf16.gmra.mxu1 %v2295_v46  ;;  %v2330_v49 = vld [vmem:[#allocation2 + $0x88] sm:$0xf]  ;;  %v927_v46 = vld [vmem:[%s2737_s17 + $0x10] sm:$0xf]  ;;  %v787_v7 = vrot.slane %v785_v42, 4 }
  0xbd   : > { %299 = vst.msk [vmem:[#allocation2 + $0xa0] sm:$0xf] %vm293_vm13, %v283_v48  ;;  %v2331_v53 = vor.u32 %v2619_v38, %v2330_v49  ;;  %v784_v38 = vrot.slane %v782_v30, 4  ;;  %v951_v40 = vrot.slane %v927_v46, 7  ;;  %v954_v48 = vrot.slane %v3459_v5, 7 }
  0xbe   : > { %v1181_v59 = vpop.permute.xlu2 %1180  ;;  %v789_v11 = vsel %vm3123_vm0, %v787_v7, %v788_v8  ;;  %v1235_v30 = vrot.slane %v1233_v45, 4  ;;  %v2601_v46 = vld [vmem:[#allocation2 + $0x1c] sm:$0xf] }
  0xbf   : > { %2001 = vmatmul.bf16.gmra.mxu2 %v2331_v53  ;;  %1200 = vst.msk [vmem:[#allocation2 + $0x38] sm:$0xf] %vm293_vm13, %v1181_v59  ;;  %v786_v44 = vsel %vm3123_vm0, %v784_v38, %v785_v42  ;;  %v1232_v53 = vrot.slane %v1230_v47, 4  ;;  %v953_v54 = vrot.slane %v951_v40, 4  ;;  %v952_v59 = vsel %vm3408_vm3, %v950_v50, %v951_v40 }
  0xc0   : > { %806 = vst.msk [vmem:[#allocation2 + $0x70] sm:$0xf] %vm179_vm12, %v786_v44  ;;  %v956_v16 = vrot.slane %v954_v48, 4  ;;  %v1239_v38 = vrot.slane %v1212_v33, 5 }
  0xc1   : > { %v741_v57 = vpop.permute.xlu0 %740  ;;  %v2322_v2 = vld [vmem:[#allocation2 + $0x80] sm:$0xf]  ;;  %v955_v60 = vsel %vm3408_vm3, %v953_v54, %v954_v48  ;;  %974 = vst.msk [vmem:[#allocation2 + $0x54] sm:$0xf] %vm179_vm12, %v952_v59  ;;  %v1234_v63 = vsel %vm3123_vm0, %v1232_v53, %v1233_v45  ;;  %v1213_v54 = vld [vmem:[%s2737_s17 + $0x24] sm:$0x1] }
  0xc2   : > { %756 = vst.msk [vmem:[#allocation2 + $0xac] sm:$0xf] %vm293_vm13, %v741_v57  ;;  %v2284_v47 = vld [vmem:[#allocation2 + $0x38] sm:$0xf0]  ;;  %v1088_v53 = vld [vmem:[%s2737_s17 + $0x20] sm:$0xf] }
  0xc3   : > { %975 = vst.msk [vmem:[#allocation2 + $0x74] sm:$0xf] %vm179_vm12, %v955_v60  ;;  %v2287_v48 = vor.u32 %v2601_v46, %v2284_v47  ;;  %v1241_v55 = vrot.slane %v1239_v38, 4  ;;  %v1242_v45 = vrot.slane %v1213_v54, 5 }
  0xc4   : > { %v454_v20 = vpop.permute.xlu1 %453  ;;  %v2618_v1 = vld [vmem:[#allocation2 + $0x9c] sm:$0xf0]  ;;  %1254 = vst.msk [vmem:[#allocation2 + $0x7c] sm:$0xf] %vm179_vm12, %v1234_v63  ;;  %v963_v63 = vrot.slane %v931_v61, 7 }
  0xc5   : > { %470 = vst.msk [vmem:[#allocation2 + $0x84] sm:$0xf] %vm293_vm13, %v454_v20  ;;  %v2323_v19 = vor.u32 %v2618_v1, %v2322_v2  ;;  %v1087_v1 = vld [vmem:[%s2737_s17 + $0x1c] sm:$0xf]  ;;  %v1243_v60 = vsel %vm3123_vm0, %v1241_v55, %v1242_v45 }
  0xc6   : > { %v1055_v3 = vpop.permute.xlu2 %1054  ;;  %1094 = vst.msk [vmem:[#allocation2 + $0xb8] sm:$0xf] %vm179_vm12, %v1087_v1  ;;  %v2605_v25 = vld [vmem:[#allocation2 + $0x34] sm:$0xf0] }
  0xc7   : > { %1945 = vmatmul.bf16.gmra.mxu0 %v2323_v19  ;;  %1075 = vst.msk [vmem:[#allocation2 + $0x14] sm:$0xf] %vm293_vm13, %v1055_v3  ;;  %v791_v19 = vrot.slane %v3489_v21, 5 }
  0xc8   : > { %807 = vst.msk [vmem:[#allocation2 + $0x90] sm:$0xf] %vm179_vm12, %v789_v11 }
  0xc9   : > { %v619_v28 = vpop.permute.xlu0 %618  ;;  %v2332_v17 = vld [vmem:[#allocation2 + $0xa8] sm:$0xf0]  ;;  %v792_v3 = vsel %vm3123_vm0, %v790_v14, %v791_v19  ;;  %1095 = vst.msk [vmem:[#allocation2 + $0xd8] sm:$0xf] %vm179_vm12, %v1088_v53 }
  0xca   : > { %633 = vst.msk [vmem:[#allocation2 + $0xc8] sm:$0xf] %vm293_vm13, %v619_v28  ;;  %v2335_v18 = vor.u32 %v2615_v27, %v2332_v17  ;;  %v957_v28 = vrot.slane %v929_v26, 7  ;;  %v1236_v17 = vrot.slane %v1211_v6, 5 }
  0xcb   : > { %808 = vst.msk [vmem:[#allocation2 + $0xb0] sm:$0xf] %vm179_vm12, %v792_v3  ;;  %v2316_v1 = vld [vmem:[#allocation2 + $0x78] sm:$0xf0] }
  0xcc   : > { %v743_v39 = vpop.permute.xlu1 %742  ;;  %2029 = vmatmul.bf16.gmra.mxu3 %v2335_v18  ;;  %v2614_v41 = vld [vmem:[#allocation2 + $0x84] sm:$0xf]  ;;  %v1237_v34 = vsel %vm3123_vm0, %v1235_v30, %v1236_v17  ;;  %v1238_v36 = vrot.slane %v1236_v17, 4  ;;  %1257 = vst.msk [vmem:[#allocation2 + $0xdc] sm:$0xf] %vm179_vm12, %v1243_v60 }
  0xcd   : > { %757 = vst.msk [vmem:[#allocation2 + $0xcc] sm:$0xf] %vm293_vm13, %v743_v39  ;;  %v2327_v12 = vor.u32 %v2614_v41, %v2324_v24  ;;  %v959_v24 = vrot.slane %v957_v28, 4  ;;  %v958_v41 = vsel %vm3408_vm3, %v956_v16, %v957_v28 }
  0xce   : > { %v1185_v43 = vpop.permute.xlu2 %1184  ;;  %1255 = vst.msk [vmem:[#allocation2 + $0x9c] sm:$0xf] %vm179_vm12, %v1237_v34  ;;  %v1240_v44 = vsel %vm3123_vm0, %v1238_v36, %v1239_v38  ;;  %v2600_v5 = vld [vmem:[#allocation2 + $0x14] sm:$0xf] }
  0xcf   : > { %1973 = vmatmul.bf16.gmra.mxu1 %v2327_v12  ;;  %1202 = vst.msk [vmem:[#allocation2 + $0x78] sm:$0xf] %vm293_vm13, %v1185_v43  ;;  %v961_v39 = vsel %vm3408_vm3, %v959_v24, %v960_v29 }
  0xd0   : > { %977 = vst.msk [vmem:[#allocation2 + $0xb4] sm:$0xf] %vm179_vm12, %v961_v39 }
  0xd1   : > { %v458_v49 = vpop.permute.xlu0 %457  ;;  %976 = vst.msk [vmem:[#allocation2 + $0x94] sm:$0xf] %vm179_vm12, %v958_v41 }
  0xd2   : > { %472 = vst.msk [vmem:[#allocation2 + $0xc4] sm:$0xf] %vm293_vm13, %v458_v49 }
  0xd3   : > { %1256 = vst.msk [vmem:[#allocation2 + $0xbc] sm:$0xf] %vm179_vm12, %v1240_v44 }
  0xd4   : > { %v1179_v56 = vpop.permute.xlu1 %1178  ;;  %v1283_v58 = vld [vmem:[#allocation2 + $0xc8] sm:$0xff] }
  0xd5   : > { %1199 = vst.msk [vmem:[#allocation2 + $0x18] sm:$0xf] %vm293_vm13, %v1179_v56  ;;  %v1488_v62 = vunpack.c.l.b16 %v1283_v58  ;;  %v1489_v57 = vunpack.c.h.b16 %v1283_v58  ;;  %v2617_v28 = vld [vmem:[#allocation2 + $0x9c] sm:$0xf] }
  0xd6   : > { %v1059_v2 = vpop.permute.xlu2 %1058 }
  0xd7   : > { %v1520_v0 = vpack.c.b16 %v1488_v62, %v1488_v62  ;;  %1077 = vst.msk [vmem:[#allocation2 + $0x54] sm:$0xf] %vm293_vm13, %v1059_v2  ;;  %v1521_v9 = vpack.c.b16 %v1489_v57, %v1489_v57  ;;  %v765_v62 = vld [vmem:[%s2737_s17 + $0x20] sm:$0x1]  ;;  %v962_v57 = vrot.slane %v960_v29, 4 }
  0xd8   : > { %v794_v2 = vrot.slane %v765_v62, 5 }
  0xd9   : > { %2006 = vmatmul.bf16.gmra.mxu2 %v1520_v0  ;;  %v897_v15 = vpop.permute.xlu0 %896  ;;  %v1282_v32 = vld [vmem:[#allocation2 + $0xc0] sm:$0xff]  ;;  %v793_v0 = vrot.slane %v791_v19, 4 }
  0xda   : > { %917 = vst.msk [vmem:[#allocation2 + $0x10] sm:$0xf] %vm293_vm13, %v897_v15  ;;  %v1486_v13 = vunpack.c.l.b16 %v1282_v32  ;;  %v1487_v20 = vunpack.c.h.b16 %v1282_v32  ;;  %v964_v15 = vsel %vm3408_vm3, %v962_v57, %v963_v63  ;;  %v2348_v17 = vld [vmem:[#allocation2 + $0xb8] sm:$0xf0] }
  0xdb   : > { %v795_v32 = vsel %vm3123_vm0, %v793_v0, %v794_v2  ;;  %978 = vst.msk [vmem:[#allocation2 + $0xd4] sm:$0xf] %vm179_vm12, %v964_v15  ;;  %v2351_v30 = vor.u32 %v2617_v28, %v2348_v17 }
  0xdc   : > { %2034 = vmatmul.bf16.gmra.mxu3 %v1521_v9  ;;  %v899_v35 = vpop.permute.xlu1 %898  ;;  %v1518_v22 = vpack.c.b16 %v1486_v13, %v1486_v13  ;;  %v1519_v23 = vpack.c.b16 %v1487_v20, %v1487_v20  ;;  %v2282_v12 = vld [vmem:[#allocation2 + $0x18] sm:$0xf]  ;;  %809 = vst.msk [vmem:[#allocation2 + $0xd0] sm:$0xf] %vm179_vm12, %v795_v32  ;;  %v2609_v20 = vld [vmem:[#allocation2 + $0x5c] sm:$0xf] }
  0xdd   : > { %918 = vst.msk [vmem:[#allocation2 + $0x30] sm:$0xf] %vm293_vm13, %v899_v35  ;;  %v2283_v43 = vor.u32 %v2605_v25, %v2282_v12  ;;  %v2613_v13 = vld [vmem:[#allocation2 + $0x74] sm:$0xf0]  ;;  %v2319_v21 = vor.u32 %v2609_v20, %v2316_v1 }
  0xde   : > { %1950 = vmatmul.bf16.gmra.mxu0 %v1518_v22  ;;  %v1189_v27 = vpop.permute.xlu2 %1188  ;;  %v2608_v11 = vld [vmem:[#allocation2 + $0x54] sm:$0xf] }
  0xdf   : > { %1978 = vmatmul.bf16.gmra.mxu1 %v1519_v23  ;;  %1204 = vst.msk [vmem:[#allocation2 + $0xb8] sm:$0xf] %vm293_vm13, %v1189_v27 }
  0xe1   : > { %v1057_v18 = vpop.permute.xlu0 %1056  ;;  %v2274_v49 = vld [vmem:[#allocation2 + $0x10] sm:$0xf] }
  0xe2   : > { %1076 = vst.msk [vmem:[#allocation2 + $0x34] sm:$0xf] %vm293_vm13, %v1057_v18 }
  0xe4   : > { %v1183_v42 = vpop.permute.xlu1 %1182  ;;  %v2604_v50 = vld [vmem:[#allocation2 + $0x2c] sm:$0xf0] }
  0xe5   : > { %1201 = vst.msk [vmem:[#allocation2 + $0x58] sm:$0xf] %vm293_vm13, %v1183_v42  ;;  %v2275_v58 = vor.u32 %v2604_v50, %v2274_v49 }
  0xe6   : > { %v1063_v40 = vpop.permute.xlu2 %1062  ;;  %v2621_v27 = vld [vmem:[#allocation2 + $0xb4] sm:$0xf0] }
  0xe7   : > { %1079 = vst.msk [vmem:[#allocation2 + $0x94] sm:$0xf] %vm293_vm13, %v1063_v40 }
  0xe9   : > { %2103 = vmatmul.bf16.vlgmr.msrb.gmra.mxu2 %v2283_v43  ;;  %v901_v37 = vpop.permute.xlu0 %900  ;;  %v2276_v51 = vld [vmem:[#allocation2 + $0x30] sm:$0xf0] }
  0xea   : > { %919 = vst.msk [vmem:[#allocation2 + $0x50] sm:$0xf] %vm293_vm13, %v901_v37  ;;  %v2279_v59 = vor.u32 %v2600_v5, %v2276_v51 }
  0xec   : > { %2592 = vmatmul.msk.bf16.vlgmr.msrb.gmra.mxu3 %vm1914_vm4, %v2287_v48  ;;  %v903_v56 = vpop.permute.xlu1 %902  ;;  %v2314_v9 = vld [vmem:[#allocation2 + $0x58] sm:$0xf] }
  0xed   : > { %920 = vst.msk [vmem:[#allocation2 + $0x70] sm:$0xf] %vm293_vm13, %v903_v56  ;;  %v2315_v52 = vor.u32 %v2613_v13, %v2314_v9  ;;  %v3579_v9 = vld [vmem:[%s3633_s2] ss:$0 sm:$0xff] }
  0xee   : > { %2047 = vmatmul.bf16.vlgmr.msrb.gmra.mxu0 %v2275_v58  ;;  %v909_v7 = vpop.permute.xlu2 %908  ;;  %v2616_v18 = vld [vmem:[#allocation2 + $0x94] sm:$0xf] }
  0xef   : > { %2075 = vmatmul.bf16.vlgmr.msrb.gmra.mxu1 %v2279_v59  ;;  %923 = vst.msk [vmem:[#allocation2 + $0xd0] sm:$0xf] %vm293_vm13, %v909_v7 }
  0xf1   : > { %v1061_v4 = vpop.permute.xlu0 %1060  ;;  %v2306_v14 = vld [vmem:[#allocation2 + $0x50] sm:$0xf] }
  0xf2   : > { %1078 = vst.msk [vmem:[#allocation2 + $0x74] sm:$0xf] %vm293_vm13, %v1061_v4 }
  0xf4   : > { %v1187_v8 = vpop.permute.xlu1 %1186  ;;  %v2612_v19 = vld [vmem:[#allocation2 + $0x6c] sm:$0xf0] }
  0xf5   : > { %1203 = vst.msk [vmem:[#allocation2 + $0x98] sm:$0xf] %vm293_vm13, %v1187_v8  ;;  %v2307_v3 = vor.u32 %v2612_v19, %v2306_v14 }
  0xf9   : > { %2108 = vmatmul.bf16.gmra.mxu2 %v2315_v52  ;;  %v905_v31 = vpop.permute.xlu0 %904  ;;  %v2308_v35 = vld [vmem:[#allocation2 + $0x70] sm:$0xf0] }
  0xfa   : > { %921 = vst.msk [vmem:[#allocation2 + $0x90] sm:$0xf] %vm293_vm13, %v905_v31  ;;  %v2311_v22 = vor.u32 %v2608_v11, %v2308_v35 }
  0xfc   : > { %2593 = vmatmul.msk.bf16.gmra.mxu3 %vm1914_vm4, %v2319_v21  ;;  %v907_v23 = vpop.permute.xlu1 %906  ;;  %v2346_v26 = vld [vmem:[#allocation2 + $0x98] sm:$0xf] }
  0xfd   : > { %922 = vst.msk [vmem:[#allocation2 + $0xb0] sm:$0xf] %vm293_vm13, %v907_v23  ;;  %v2347_v29 = vor.u32 %v2621_v27, %v2346_v26 }
  0xfe   : > { %2052 = vmatmul.bf16.gmra.mxu0 %v2307_v3 }
  0xff   : > { %2080 = vmatmul.bf16.gmra.mxu1 %v2311_v22 }
 0x101   : > { %v1065_v6 = vpop.permute.xlu0 %1064  ;;  %v2338_v24 = vld [vmem:[#allocation2 + $0x90] sm:$0xf] }
 0x102   : > { %1080 = vst.msk [vmem:[#allocation2 + $0xb4] sm:$0xf] %vm293_vm13, %v1065_v6 }
 0x104   : > { %v1191_v10 = vpop.permute.xlu1 %1190  ;;  %v2620_v16 = vld [vmem:[#allocation2 + $0xac] sm:$0xf0] }
 0x105   : > { %1205 = vst.msk [vmem:[#allocation2 + $0xd8] sm:$0xf] %vm293_vm13, %v1191_v10  ;;  %v2339_v38 = vor.u32 %v2620_v16, %v2338_v24 }
 0x109   : > { %2113 = vmatmul.bf16.gmra.mxu2 %v2347_v29  ;;  %v2340_v33 = vld [vmem:[#allocation2 + $0xb0] sm:$0xf0]  ;;  %v1067_v34 = vpop.permute.xlu0 %1066 }
 0x10a   : > { %1081 = vst.msk [vmem:[#allocation2 + $0xd4] sm:$0xf] %vm293_vm13, %v1067_v34  ;;  %v2343_v36 = vor.u32 %v2616_v18, %v2340_v33 }
 0x10c   : > { %2594 = vmatmul.msk.bf16.gmra.mxu3 %vm1914_vm4, %v2351_v30  ;;  %v1285_v39 = vld [vmem:[#allocation2 + $0xd8] sm:$0xff] }
 0x10d   : > { %v1492_v41 = vunpack.c.l.b16 %v1285_v39  ;;  %v1493_v12 = vunpack.c.h.b16 %v1285_v39 }
 0x10e   : > { %2057 = vmatmul.bf16.gmra.mxu0 %v2339_v38 }
 0x10f   : > { %2085 = vmatmul.bf16.gmra.mxu1 %v2343_v36  ;;  %v1524_v25 = vpack.c.b16 %v1492_v41, %v1492_v41  ;;  %v1525_v47 = vpack.c.b16 %v1493_v12, %v1493_v12 }
 0x111   : > { %v1284_v42 = vld [vmem:[#allocation2 + $0xd0] sm:$0xff] }
 0x112   : > { %v1490_v44 = vunpack.c.l.b16 %v1284_v42  ;;  %v1491_v46 = vunpack.c.h.b16 %v1284_v42 }
 0x114   : > { %v1522_v43 = vpack.c.b16 %v1490_v44, %v1490_v44  ;;  %v1523_v5 = vpack.c.b16 %v1491_v46, %v1491_v46  ;;  %v2020_v50 = vpop.f32.mrf.mxu3 }
 0x119   : > { %2118 = vmatmul.bf16.gmra.mxu2 %v1524_v25 }
 0x11c   : > { %2595 = vmatmul.msk.bf16.gmra.mxu3 %vm1914_vm4, %v1525_v47  ;;  %v1936_v40 = vpop.f32.mrf.mxu0  ;;  %v2022_v54 = vpop.f32.mrf.mxu3 }
 0x11d   : > { %v1937_v52 = vadd.f32 %v3579_v9, %v1936_v40 }
 0x11e   : > { %2062 = vmatmul.bf16.gmra.mxu0 %v1522_v43 }
 0x11f   : > { %2090 = vmatmul.bf16.gmra.mxu1 %v1523_v5  ;;  %v1992_v48 = vpop.f32.mrf.mxu2 }
 0x124   : > { %v1964_v49 = vpop.f32.mrf.mxu1  ;;  %v1938_v37 = vpop.f32.mrf.mxu0 }
 0x125   : > { %v1965_v21 = vadd.f32 %v1964_v49, %v1937_v52  ;;  %v1939_v22 = vadd.f32 %v3579_v9, %v1938_v37 }
 0x127   : > { %v1994_v51 = vpop.f32.mrf.mxu2  ;;  %v1993_v19 = vadd.f32 %v1992_v48, %v1965_v21 }
 0x129   : > { %v2021_v3 = vadd.f32 %v2020_v50, %v1993_v19 }
 0x12c   : > { %v1966_v53 = vpop.f32.mrf.mxu1  ;;  %v1941_v55 = vpop.f32.mrf.mxu0 }
 0x12d   : > { %v1967_v23 = vadd.f32 %v1966_v53, %v1939_v22  ;;  %v1942_v30 = vadd.f32 %v3579_v9, %v1941_v55 }
 0x12f   : > { %v1997_v45 = vpop.f32.mrf.mxu2  ;;  %v1995_v28 = vadd.f32 %v1994_v51, %v1967_v23 }
 0x131   : > { %v2023_v33 = vadd.f32 %v2022_v54, %v1995_v28 }
 0x134   : > { %v1943_v58 = vpop.f32.mrf.mxu0 }
 0x135   : > { %v1944_v47 = vadd.f32 %v3579_v9, %v1943_v58 }
 0x137   : > { %v3554_v60 = vpop.f32.mrf.mxu2 }
 0x139   : > { %v1969_v59 = vpop.f32.mrf.mxu1 }
 0x13a   : > { %v2025_v56 = vpop.f32.mrf.mxu3  ;;  %v1970_v24 = vadd.f32 %v1969_v59, %v1942_v30 }
 0x13c   : > { %v1998_v42 = vadd.f32 %v1997_v45, %v1970_v24 }
 0x13e   : > { %v2026_v5 = vadd.f32 %v2025_v56, %v1998_v42 }
 0x141   : > { %v1971_v61 = vpop.f32.mrf.mxu1 }
 0x142   : > { %v3556_v62 = vpop.f32.mrf.mxu3  ;;  %v3560_v63 = vpop.f32.mrf.mxu2  ;;  %v1972_v40 = vadd.f32 %v1971_v61, %v1944_v47 }
 0x144   : > { %v3558_v57 = vpop.f32.mrf.mxu0  ;;  %v2000_v54 = vadd.f32 %v3554_v60, %v1972_v40 }
 0x145   : > { %v1947_v58 = vadd.f32 %v3579_v9, %v3558_v57 }
 0x146   : > { %v2028_v56 = vadd.f32 %v3556_v62, %v2000_v54 }
 0x14a   : > { %v3568_v15 = vpop.f32.mrf.mxu2 }
 0x14c   : > { %v3562_v0 = vpop.f32.mrf.mxu1  ;;  %v3566_v4 = vpop.f32.mrf.mxu0 }
 0x14d   : > { %v1975_v61 = vadd.f32 %v3562_v0, %v1947_v58 }
 0x14f   : > { %v3564_v2 = vpop.f32.mrf.mxu3  ;;  %v2003_v22 = vadd.f32 %v3560_v63, %v1975_v61 }
 0x151   : > { %v2031_v0 = vadd.f32 %v3564_v2, %v2003_v22 }
 0x154   : > { %v3570_v32 = vpop.f32.mrf.mxu1 }
 0x157   : > { %v3572_v7 = vpop.f32.mrf.mxu3 }
 0x15b   : > { %v3574_v8 = vpop.f32.mrf.mxu0 }
 0x15c   : > { %v3581_v13 = vpop.f32.mrf.mxu1  ;;  %v3583_v20 = vpop.f32.mrf.mxu2 }
 0x15f   : > { %v3585_v1 = vpop.f32.mrf.mxu3 }
 0x163   : > { %v1953_v11 = vpop.f32.mrf.mxu0 }
 0x164   : > { %v1981_v31 = vpop.f32.mrf.mxu1  ;;  %v2009_v14 = vpop.f32.mrf.mxu2 }
 0x167   : > { %v2037_v35 = vpop.f32.mrf.mxu3 }
 0x16b   : > { %v2048_v6 = vpop.f32.mrf.mxu0 }
 0x16c   : > { %v2049_v26 = vadd.f32 %v2048_v6, %v2021_v3  ;;  %v2076_v27 = vpop.f32.mrf.mxu1  ;;  %v2104_v10 = vpop.f32.mrf.mxu2 }
 0x16e   : > { %v2077_v17 = vadd.f32 %v2076_v27, %v2049_v26  ;;  %v1949_v26 = vadd.f32 %v3579_v9, %v3566_v4  ;;  %v1952_v4 = vadd.f32 %v3579_v9, %v3574_v8 }
 0x16f   : > { %v2132_v29 = vpop.f32.mrf.mxu3 }
 0x170   : > { %v2105_v18 = vadd.f32 %v2104_v10, %v2077_v17  ;;  %v1977_v27 = vadd.f32 %v3570_v32, %v1949_v26 }
 0x172   : > { %v2133_v16 = vadd.f32 %v2132_v29, %v2105_v18  ;;  %v2005_v18 = vadd.f32 %v3568_v15, %v1977_v27 }
 0x173   : > { %v2050_v34 = vpop.f32.mrf.mxu0 }
 0x174   : > { %vm2151_vm5 = vcmp.ge.f32.partialorder %v2133_v16, 0.0  ;;  %v2158_v36 = vmul.f32 0.1, %v2133_v16  ;;  %v2051_v38 = vadd.f32 %v2050_v34, %v2023_v33  ;;  %v2078_v39 = vpop.f32.mrf.mxu1  ;;  %v2106_v41 = vpop.f32.mrf.mxu2  ;;  %v2033_v32 = vadd.f32 %v3572_v7, %v2005_v18 }
 0x176   : > { %v2165_v12 = vsel %vm2151_vm5, %v2133_v16, %v2158_v36  ;;  %v2079_v25 = vadd.f32 %v2078_v39, %v2051_v38  ;;  %v1980_v36 = vadd.f32 %v3581_v13, %v1952_v4 }
 0x177   : > { %v2172_v44 = vpack.c.bf16 %v2165_v12, %v2165_v12  ;;  %v2134_v46 = vpop.f32.mrf.mxu3 }
 0x178   : > { %v2107_v43 = vadd.f32 %v2106_v41, %v2079_v25  ;;  %v2008_v8 = vadd.f32 %v3583_v20, %v1980_v36 }
 0x179   : > { %2180 = vst.msk [vmem:[%s3594_s26] sm:$0xf] %vm2179_vm6, %v2172_v44 }
 0x17a   : > { %v2135_v48 = vadd.f32 %v2134_v46, %v2107_v43  ;;  %v2036_v7 = vadd.f32 %v3585_v1, %v2008_v8 }
 0x17b   : > { %v2053_v49 = vpop.f32.mrf.mxu0 }
 0x17c   : > { %vm2152_vm7 = vcmp.ge.f32.partialorder %v2135_v48, 0.0  ;;  %v2159_v50 = vmul.f32 0.1, %v2135_v48  ;;  %v2054_v37 = vadd.f32 %v2053_v49, %v2026_v5  ;;  %v2081_v51 = vpop.f32.mrf.mxu1  ;;  %v2109_v53 = vpop.f32.mrf.mxu2 }
 0x17e   : > { %v2166_v55 = vsel %vm2152_vm7, %v2135_v48, %v2159_v50  ;;  %v2082_v45 = vadd.f32 %v2081_v51, %v2054_v37 }
 0x17f   : > { %v2173_v59 = vpack.c.bf16 %v2166_v55, %v2166_v55  ;;  %v2137_v52 = vpop.f32.mrf.mxu3 }
 0x180   : > { %v2110_v21 = vadd.f32 %v2109_v53, %v2082_v45 }
 0x181   : > { %2181 = vst.msk [vmem:[%s3594_s26 + $0x4] sm:$0xf] %vm2179_vm6, %v2173_v59 }
 0x182   : > { %v2138_v11 = vadd.f32 %v2137_v52, %v2110_v21 }
 0x183   : > { %v2055_v31 = vpop.f32.mrf.mxu0 }
 0x184   : > { %vm2153_vm8 = vcmp.ge.f32.partialorder %v2138_v11, 0.0  ;;  %v2160_v14 = vmul.f32 0.1, %v2138_v11  ;;  %v2056_v60 = vadd.f32 %v2055_v31, %v2028_v56  ;;  %v2083_v19 = vpop.f32.mrf.mxu1  ;;  %v2111_v35 = vpop.f32.mrf.mxu2 }
 0x186   : > { %v2167_v23 = vsel %vm2153_vm8, %v2138_v11, %v2160_v14  ;;  %v2084_v3 = vadd.f32 %v2083_v19, %v2056_v60 }
 0x187   : > { %v2174_v57 = vpack.c.bf16 %v2167_v23, %v2167_v23  ;;  %v2139_v6 = vpop.f32.mrf.mxu3 }
 0x188   : > { %v2112_v62 = vadd.f32 %v2111_v35, %v2084_v3 }
 0x189   : > { %2182 = vst.msk [vmem:[%s3594_s26 + $0x8] sm:$0xf] %vm2179_vm6, %v2174_v57 }
 0x18a   : > { %v2140_v10 = vadd.f32 %v2139_v6, %v2112_v62 }
 0x18b   : > { %v2058_v28 = vpop.f32.mrf.mxu0 }
 0x18c   : > { %vm2154_vm9 = vcmp.ge.f32.partialorder %v2140_v10, 0.0  ;;  %v2161_v17 = vmul.f32 0.1, %v2140_v10  ;;  %v2059_v63 = vadd.f32 %v2058_v28, %v2031_v0  ;;  %v2086_v29 = vpop.f32.mrf.mxu1  ;;  %v2114_v30 = vpop.f32.mrf.mxu2 }
 0x18e   : > { %v2168_v24 = vsel %vm2154_vm9, %v2140_v10, %v2161_v17  ;;  %v2087_v16 = vadd.f32 %v2086_v29, %v2059_v63 }
 0x18f   : > { %v2175_v33 = vpack.c.bf16 %v2168_v24, %v2168_v24  ;;  %v2142_v34 = vpop.f32.mrf.mxu3 }
 0x190   : > { %v2115_v2 = vadd.f32 %v2114_v30, %v2087_v16 }
 0x191   : > { %2183 = vst.msk [vmem:[%s3594_s26 + $0xc] sm:$0xf] %vm2179_vm6, %v2175_v33 }
 0x192   : > { %v2143_v38 = vadd.f32 %v2142_v34, %v2115_v2 }
 0x193   : > { %v2060_v39 = vpop.f32.mrf.mxu0 }
 0x194   : > { %vm2155_vm10 = vcmp.ge.f32.partialorder %v2143_v38, 0.0  ;;  %v2162_v41 = vmul.f32 0.1, %v2143_v38  ;;  %v2061_v15 = vadd.f32 %v2060_v39, %v2033_v32  ;;  %v2088_v42 = vpop.f32.mrf.mxu1  ;;  %v2116_v12 = vpop.f32.mrf.mxu2 }
 0x196   : > { %v2169_v9 = vsel %vm2155_vm10, %v2143_v38, %v2162_v41  ;;  %v2089_v25 = vadd.f32 %v2088_v42, %v2061_v15 }
 0x197   : > { %v2176_v44 = vpack.c.bf16 %v2169_v9, %v2169_v9  ;;  %v2144_v46 = vpop.f32.mrf.mxu3 }
 0x198   : > { %v2117_v47 = vadd.f32 %v2116_v12, %v2089_v25 }
 0x199   : > { %2184 = vst.msk [vmem:[%s3594_s26 + $0x10] sm:$0xf] %vm2179_vm6, %v2176_v44 }
 0x19a   : > { %v2145_v13 = vadd.f32 %v2144_v46, %v2117_v47 }
 0x19b   : > { %v2063_v43 = vpop.f32.mrf.mxu0 }
 0x19c   : > { %vm2156_vm11 = vcmp.ge.f32.partialorder %v2145_v13, 0.0  ;;  %v2163_v5 = vmul.f32 0.1, %v2145_v13  ;;  %v2064_v40 = vadd.f32 %v2063_v43, %v2036_v7  ;;  %v2091_v48 = vpop.f32.mrf.mxu1  ;;  %v2119_v49 = vpop.f32.mrf.mxu2 }
 0x19e   : > { %v2170_v50 = vsel %vm2156_vm11, %v2145_v13, %v2163_v5  ;;  %v2092_v20 = vadd.f32 %v2091_v48, %v2064_v40 }
 0x19f   : > { %v2177_v37 = vpack.c.bf16 %v2170_v50, %v2170_v50  ;;  %v2147_v51 = vpop.f32.mrf.mxu3 }
 0x1a0   : > { %v2120_v53 = vadd.f32 %v2119_v49, %v2092_v20 }
 0x1a1   : > { %2185 = vst.msk [vmem:[%s3594_s26 + $0x14] sm:$0xf] %vm2179_vm6, %v2177_v37 }
 0x1a2   : > { %v2148_v54 = vadd.f32 %v2147_v51, %v2120_v53 }
 0x1a3   : > { %v2065_v55 = vpop.f32.mrf.mxu0 }
 0x1a4   : > { %vm2157_vm12 = vcmp.ge.f32.partialorder %v2148_v54, 0.0  ;;  %v2164_v45 = vmul.f32 0.1, %v2148_v54  ;;  %v2093_v1 = vpop.f32.mrf.mxu1  ;;  %v2121_v59 = vpop.f32.mrf.mxu2 }
 0x1a6   : > { %v2171_v52 = vsel %vm2157_vm12, %v2148_v54, %v2164_v45 }
 0x1a7   : > { %v2178_v58 = vpack.c.bf16 %v2171_v52, %v2171_v52  ;;  %v2149_v21 = vpop.f32.mrf.mxu3 }
 0x1a9   : > { %2186 = vst.msk [vmem:[%s3594_s26 + $0x18] sm:$0xf] %vm2179_vm6, %v2178_v58 }
 0x1aa PF: > { %s13_s12 = sadd.s32 1, %s2700_s12  }
 0x1ab   : > { %p10_p4 = scmp.ge.s32.totalorder %s13_s12, 4  }
 0x1ad   :  { %12 = sbr.rel (!%p10_p4) target bundleno = 1 (0x1), region = 62 }

// kernel: _lambda_.50
= control target key start
LH: loop header
LB: loop body
LE: loop exit
PB: predicated region body
PF: predicated region fallthrough
CT: control target
= control target key end

     0   :  { %s2485_s12 = smov 0   ;;  %s3249_s0 = inlined_call_operand.vmem [shape: bf16[2,66,64], index: 0, kind: input, shape index: {}]   ;;  %s3250_s1 = inlined_call_operand.vmem [shape: bf16[960,32], index: 1, kind: input, shape index: {}]   ;;  %s3251_s2 = inlined_call_operand.vmem [shape: f32[1,32], index: 2, kind: input, shape index: {}]   ;;  %s3252_s3 = inlined_call_operand.vmem [shape: bf16[2,48,32], index: 3, kind: output, shape index: {}]  }
   0x1 LB: > { %s2004_s13 = sadd.s32 4294967295, %s2462_s12   ;;  %p2008_p0 = scmp.ge.s32.totalorder %s2462_s12, 1  ;;  %s2462_s12 = sphi %s2485_s12, %s13_s12  }
   0x2   : > { %p137_p1 = scmp.lt.s32.totalorder %s2462_s12, 3 }
   0x4   : > { %p138_p2 = pnand %p2008_p0, %p137_p1 }
   0x5   : > { %p161_p3 = scmp.lt.s32.totalorder (!%p138_p2), %s2004_s13, 1  ;;  %s2464_s18 = smov (!%p138_p2), 64  }
   0x6   : > { %141 = sbr.rel (%p138_p2) target bundleno = 401 (0x191), region = 32 }
   0xb   : > { %s3268_s13 = smov (!%p161_p3, %s2004_s13), 1  ;;  %vm496_vm0 = vcmask 1040384   ;;  %vm497_vm1 = vcmask 1044484   ;;  %vm192_vm3 = vsmask.f32 3328  ;;  %vm298_vm11 = vcmask 1042432  }
   0xc   : > { %s2444_s14 = smul.u32 36, %s3268_s13  ;;  %vm2501_vm2 = vmor %vm496_vm0, %vm497_vm1  ;;  %vm193_vm4 = vsmask.f32 7440  ;;  %vm339_vm6 = vsmask.f32 2304  ;;  %vm299_vm12 = vcmask 1046532  }
   0xd   : > { %vm2520_vm5 = vmor %vm192_vm3, %vm193_vm4  ;;  %vm340_vm7 = vsmask.f32 6416  ;;  %vm549_vm9 = vsmask.f32 256  ;;  %vm550_vm10 = vsmask.f32 4368 }
   0xe   : > { %s2499_s17 = scalar_lea.vmem %s3249_s0, %s2444_s14  ;;  %vm2535_vm8 = vmor %vm339_vm6, %vm340_vm7  ;;  %vm850_vm15 = vsmask.f32 1280  ;;  %vm851_vm0 = vsmask.f32 5392  ;;  %vm178_vm3 = vcmask 519168   ;;  %vm448_vm4 = vcmask 1041408  }
   0xf   : > { %v482_v1 = vld [vmem:[%s2499_s17] sm:$0x8]  ;;  %v483_v2 = vld [vmem:[%s2499_s17 + $0x4] sm:$0xf]  ;;  %v484_v11 = vld [vmem:[%s2499_s17 + $0x8] sm:$0xf] }
  0x10   : > { %v185_v3 = vld [vmem:[%s2499_s17] sm:$0xf]  ;;  %v2013_v4 = vrot.slane %v482_v1, 11  ;;  %v501_v5 = vrot.slane %v483_v2, 7  ;;  %v186_v6 = vld [vmem:[%s2499_s17 + $0x4] sm:$0xf]  ;;  %vm2619_vm13 = vmor %vm549_vm9, %vm550_vm10 }
  0x11   : > { %v196_v7 = vshrl.u32 %v185_v3, 16  ;;  %v199_v8 = vshll.u32 %v185_v3, 16  ;;  %v205_v9 = vshll.u32 %v186_v6, 16  ;;  %v209_v10 = vshrl.u32 %v186_v6, 16  ;;  %v622_v12 = vld [vmem:[%s2499_s17 + $0x4] sm:$0xf]  ;;  %vm2629_vm14 = vmor %vm298_vm11, %vm299_vm12 }
  0x12   : > { %v502_v13 = vsel %vm2501_vm2, %v2013_v4, %v501_v5  ;;  %634 = vrot.lane.b32.xlu2 %v622_v12, %s2464_s18  ;;  %v187_v16 = vld [vmem:[%s2499_s17 + $0x8] sm:$0xf]  ;;  %v503_v19 = vrot.slane %v501_v5, 4  ;;  %v504_v20 = vrot.slane %v484_v11, 7  ;;  %v332_v21 = vld [vmem:[%s2499_s17] sm:$0xe]  ;;  %vm2662_vm1 = vmor %vm850_vm15, %vm851_vm0 }
  0x13   : > { %v198_v14 = vrot.slane %v196_v7, 4  ;;  %v201_v15 = vrot.slane %v199_v8, 5  ;;  %518 = vrot.lane.b32.xlu0 %v502_v13, %s2464_s18  ;;  %v207_v17 = vrot.slane %v205_v9, 5  ;;  %v211_v18 = vrot.slane %v209_v10, 4  ;;  %v333_v23 = vld [vmem:[%s2499_s17 + $0x4] sm:$0xf] }
  0x14   : > { %v343_v24 = vshrl.u32 %v332_v21, 16  ;;  %v346_v25 = vshll.u32 %v332_v21, 16  ;;  %v215_v28 = vshll.u32 %v187_v16, 16  ;;  %v352_v29 = vshrl.u32 %v333_v23, 16  ;;  %v334_v34 = vld [vmem:[%s2499_s17 + $0x8] sm:$0xf] }
  0x15   : > { %v202_v22 = vor.u32 %v201_v15, %v198_v14  ;;  %v212_v27 = vor.u32 %v211_v18, %v207_v17  ;;  %v355_v33 = vshll.u32 %v333_v23, 16  ;;  %v505_v35 = vsel %vm2501_vm2, %v503_v19, %v504_v20  ;;  %v623_v36 = vld [vmem:[%s2499_s17 + $0x8] sm:$0xf]  ;;  %v485_v45 = vld [vmem:[%s2499_s17 + $0xc] sm:$0xf]  ;;  %s2445_s22 = smul.u32 24, %s3268_s13 }
  0x16   : > { %v345_v31 = vrot.slane %v343_v24, 5  ;;  %v348_v32 = vrot.slane %v346_v25, 6  ;;  %v354_v39 = vrot.slane %v352_v29, 5  ;;  %v362_v41 = vshrl.u32 %v334_v34, 16  ;;  %v188_v46 = vld [vmem:[%s2499_s17 + $0xc] sm:$0xf] }
  0x17   : > { %v203_v30 = vrot.slane %v202_v22, 4  ;;  %v357_v40 = vrot.slane %v355_v33, 6  ;;  %v365_v42 = vshll.u32 %v334_v34, 16  ;;  %v213_v43 = vrot.slane %v212_v27, 4  ;;  %v189_v58 = vld [vmem:[%s2499_s17 + $0x10] sm:$0xf]  ;;  %s3223_s25 = scalar_lea.vmem %s3252_s3, %s2445_s22 }
  0x18   : > { %v349_v38 = vor.u32 %v348_v32, %v345_v31  ;;  %v217_v44 = vrot.slane %v215_v28, 5  ;;  %v219_v49 = vshrl.u32 %v187_v16, 16  ;;  %v364_v51 = vrot.slane %v362_v41, 5  ;;  %v486_v62 = vld [vmem:[%s2499_s17 + $0x10] sm:$0xf] }
  0x19   : > { %v208_v37 = vsel %vm2520_vm5, %v203_v30, %v207_v17  ;;  %v358_v48 = vor.u32 %v357_v40, %v354_v39  ;;  %v367_v52 = vrot.slane %v365_v42, 6  ;;  %v507_v53 = vrot.slane %v485_v45, 7  ;;  %v335_v3 = vld [vmem:[%s2499_s17 + $0xc] sm:$0xf]  ;;  %v336_v17 = vld [vmem:[%s2499_s17 + $0x10] sm:$0xf] }
  0x1a   : > { %259 = vrot.lane.b32.xlu1 %v208_v37, %s2464_s18  ;;  %636 = vrot.lane.b32.xlu2 %v623_v36, %s2464_s18  ;;  %v350_v47 = vrot.slane %v349_v38, 4  ;;  %v218_v54 = vsel %vm2520_vm5, %v213_v43, %v217_v44  ;;  %v225_v55 = vshll.u32 %v188_v46, 16  ;;  %v229_v56 = vshrl.u32 %v188_v46, 16  ;;  %v487_v27 = vld [vmem:[%s2499_s17 + $0x14] sm:$0xf] }
  0x1b   : > { %520 = vrot.lane.b32.xlu0 %v505_v35, %s2464_s18  ;;  %v506_v57 = vrot.slane %v504_v20, 4  ;;  %v368_v61 = vor.u32 %v367_v52, %v364_v51  ;;  %v221_v63 = vrot.slane %v219_v49, 4  ;;  %v360_v1 = vrot.slane %v358_v48, 4  ;;  %v624_v29 = vld [vmem:[%s2499_s17 + $0xc] sm:$0xf] }
  0x1c   : > { %v359_v59 = vsel %vm2535_vm8, %v350_v47, %v358_v48  ;;  %v227_v2 = vrot.slane %v225_v55, 5  ;;  %v235_v4 = vshll.u32 %v189_v58, 16  ;;  %v231_v5 = vrot.slane %v229_v56, 4  ;;  %v488_v34 = vld [vmem:[%s2499_s17 + $0x18] sm:$0x7] }
  0x1d   : > { %v508_v60 = vsel %vm2501_vm2, %v506_v57, %v507_v53  ;;  %v509_v6 = vrot.slane %v507_v53, 4  ;;  %v510_v7 = vrot.slane %v486_v62, 7  ;;  %v372_v9 = vshrl.u32 %v335_v3, 16  ;;  %v190_v40 = vld [vmem:[%s2499_s17 + $0x14] sm:$0xf] }
  0x1e   : > { %v232_v8 = vor.u32 %v231_v5, %v227_v2  ;;  %v375_v10 = vshll.u32 %v335_v3, 16  ;;  %v369_v11 = vsel %vm2535_vm8, %v360_v1, %v368_v61  ;;  %v222_v12 = vor.u32 %v221_v63, %v217_v44  ;;  %v625_v41 = vld [vmem:[%s2499_s17 + $0x10] sm:$0xf]  ;;  %v337_v43 = vld [vmem:[%s2499_s17 + $0x14] sm:$0xf] }
  0x1f   : > { %v237_v13 = vrot.slane %v235_v4, 5  ;;  %v511_v15 = vsel %vm2501_vm2, %v509_v6, %v510_v7  ;;  %v374_v18 = vrot.slane %v372_v9, 5  ;;  %v370_v21 = vrot.slane %v368_v61, 4  ;;  %v191_v49 = vld [vmem:[%s2499_s17 + $0x18] sm:$0x1] }
  0x20   : > { %v233_v14 = vrot.slane %v232_v8, 4  ;;  %v377_v19 = vrot.slane %v375_v10, 6  ;;  %v223_v20 = vrot.slane %v222_v12, 4  ;;  %v382_v22 = vshrl.u32 %v336_v17, 16  ;;  %v626_v61 = vld [vmem:[%s2499_s17 + $0x14] sm:$0xf] }
  0x21   : > { %v385_v23 = vshll.u32 %v336_v17, 16  ;;  %v239_v32 = vshrl.u32 %v189_v58, 16  ;;  %v513_v33 = vrot.slane %v487_v27, 7  ;;  %v516_v39 = vrot.slane %v488_v34, 7  ;;  %v991_v63 = vld [vmem:[%s2499_s17 + $0x8] sm:$0xf] }
  0x22   : > { %261 = vrot.lane.b32.xlu1 %v218_v54, %s2464_s18  ;;  %522 = vrot.lane.b32.xlu2 %v508_v60, %s2464_s18  ;;  %v238_v16 = vsel %vm2520_vm5, %v233_v14, %v237_v13  ;;  %v378_v24 = vor.u32 %v377_v19, %v374_v18  ;;  %v228_v25 = vsel %vm2520_vm5, %v223_v20, %v227_v2  ;;  %v384_v30 = vrot.slane %v382_v22, 5  ;;  %v338_v2 = vld [vmem:[%s2499_s17 + $0x18] sm:$0x3]  ;;  %v990_v8 = vld [vmem:[%s2499_s17 + $0x4] sm:$0x8] }
  0x23   : > { %410 = vrot.lane.b32.xlu0 %v359_v59, %s2464_s18  ;;  %v387_v31 = vrot.slane %v385_v23, 6  ;;  %v515_v35 = vrot.slane %v513_v33, 4  ;;  %v241_v38 = vrot.slane %v239_v32, 4  ;;  %v249_v42 = vshrl.u32 %v190_v40, 16  ;;  %v992_v18 = vld [vmem:[%s2499_s17 + $0xc] sm:$0xf] }
  0x24   : > { %v379_v28 = vsel %vm2535_vm8, %v370_v21, %v378_v24  ;;  %v380_v36 = vrot.slane %v378_v24, 4  ;;  %v245_v47 = vshll.u32 %v190_v40, 16  ;;  %v512_v48 = vrot.slane %v510_v7, 4  ;;  %v627_v19 = vld [vmem:[%s2499_s17 + $0x18] sm:$0xf] }
  0x25   : > { %v2571_v37 = vor.u32 %v387_v31, %v384_v30  ;;  %v517_v44 = vsel %vm2501_vm2, %v515_v35, %v516_v39  ;;  %v242_v46 = vor.u32 %v241_v38, %v237_v13  ;;  %v251_v51 = vrot.slane %v249_v42, 4  ;;  %v844_v13 = vld [vmem:[%s2499_s17 + $0x8] sm:$0xf]  ;;  %v843_v22 = vld [vmem:[%s2499_s17 + $0x4] sm:$0xc]  ;;  %v2415_v31 = vld [vmem:[%s3250_s1 + $0xf8] sm:$0xff] }
  0x26   : > { %v392_v52 = vshrl.u32 %v337_v43, 16  ;;  %v395_v53 = vshll.u32 %v337_v43, 16  ;;  %v247_v55 = vrot.slane %v245_v47, 5  ;;  %v255_v56 = vshll.u32 %v191_v49, 16  ;;  %v742_v21 = vld [vmem:[%s2499_s17 + $0x8] sm:$0xf]  ;;  %1798 = vmatpush.bf16.msra.mxu3 %v2415_v31 }
  0x27   : > { %v389_v45 = vsel %vm2535_vm8, %v380_v36, %v2571_v37  ;;  %v243_v54 = vrot.slane %v242_v46, 4  ;;  %v514_v57 = vsel %vm2501_vm2, %v512_v48, %v513_v33  ;;  %v402_v5 = vshrl.u32 %v338_v2, 16  ;;  %v741_v32 = vld [vmem:[%s2499_s17 + $0x4] sm:$0xe]  ;;  %v993_v46 = vld [vmem:[%s2499_s17 + $0x10] sm:$0xf] }
  0x28   : > { %v252_v58 = vor.u32 %v251_v51, %v247_v55  ;;  %v394_v59 = vrot.slane %v392_v52, 5  ;;  %v397_v60 = vrot.slane %v395_v53, 6  ;;  %v257_v1 = vrot.slane %v255_v56, 5  ;;  %v743_v50 = vld [vmem:[%s2499_s17 + $0xc] sm:$0xf] }
  0x29   : > { %v248_v62 = vsel %vm2520_vm5, %v243_v54, %v247_v55  ;;  %v405_v6 = vshll.u32 %v338_v2, 16  ;;  %v1003_v7 = vshrl.u32 %v991_v63, 16  ;;  %v404_v10 = vrot.slane %v402_v5, 5  ;;  %v2414_v55 = vld [vmem:[%s3250_s1 + $0xf0] sm:$0xff] }
  0x2a   : > { %412 = vrot.lane.b32.xlu1 %v369_v11, %s2464_s18  ;;  %265 = vrot.lane.b32.xlu2 %v238_v16, %s2464_s18  ;;  %v253_v3 = vrot.slane %v252_v58, 4  ;;  %v398_v4 = vor.u32 %v397_v60, %v394_v59  ;;  %v1006_v17 = vshll.u32 %v991_v63, 16  ;;  %v863_v23 = vshrl.u32 %v844_v13, 16  ;;  %v2413_v59 = vld [vmem:[%s3250_s1 + $0xe8] sm:$0xff]  ;;  %v2407_v60 = vld [vmem:[%s3250_s1 + $0xb8] sm:$0xff] }
  0x2b   : > { %524 = vrot.lane.b32.xlu0 %v511_v15, %s2464_s18  ;;  %v407_v11 = vrot.slane %v405_v6, 6  ;;  %v998_v15 = vshrl.u32 %v990_v8, 16  ;;  %v2599_v16 = vrot.slane %v1003_v7, 7  ;;  %v866_v24 = vshll.u32 %v844_v13, 16  ;;  %1799 = vmatpush.bf16.msra.mxu3 %v2414_v55  ;;  %v994_v2 = vld [vmem:[%s2499_s17 + $0x14] sm:$0xf] }
  0x2c   : > { %v400_v9 = vrot.slane %v398_v4, 4  ;;  %v258_v12 = vsel %vm2520_vm5, %v253_v3, %v257_v1  ;;  %v1012_v27 = vshrl.u32 %v992_v18, 16  ;;  %v757_v33 = vrot.slane %v742_v21, 5  ;;  %1774 = vmatpush.bf16.msra.mxu2 %v2407_v60  ;;  %v847_v21 = vld [vmem:[%s2499_s17 + $0x14] sm:$0xf] }
  0x2d   : > { %v408_v14 = vor.u32 %v407_v11, %v404_v10  ;;  %v1008_v30 = vor.u32 %v1006_v17, %v2599_v16  ;;  %v854_v34 = vshrl.u32 %v843_v22, 16  ;;  %v857_v35 = vshll.u32 %v843_v22, 16  ;;  %v546_v5 = vld [vmem:[%s2499_s17 + $0x10] sm:$0xf] }
  0x2e   : > { %v2015_v36 = vrot.slane %v741_v32, 9  ;;  %v865_v38 = vrot.slane %v863_v23, 6  ;;  %v868_v39 = vrot.slane %v866_v24, 7  ;;  %v2625_v43 = vrot.slane %v1012_v27, 7  ;;  %v2406_v24 = vld [vmem:[%s3250_s1 + $0xb0] sm:$0xff]  ;;  %v2411_v27 = vld [vmem:[%s3250_s1 + $0xd8] sm:$0xff] }
  0x2f   : > { %v409_v20 = vsel %vm2535_vm8, %v400_v9, %v408_v14  ;;  %v856_v49 = vrot.slane %v854_v34, 6  ;;  %v859_v51 = vrot.slane %v857_v35, 7  ;;  %v1010_v56 = vrot.slane %v2599_v16, 4  ;;  %1800 = vmatpush.bf16.msra.mxu3 %v2413_v59  ;;  %v846_v14 = vld [vmem:[%s2499_s17 + $0x10] sm:$0xf]  ;;  %v2405_v35 = vld [vmem:[%s3250_s1 + $0xa8] sm:$0xff] }
  0x30   : > { %v758_v47 = vsel %vm2629_vm14, %v2015_v36, %v757_v33  ;;  %v2640_v52 = vor.u32 %v868_v39, %v865_v38  ;;  %v1021_v58 = vshrl.u32 %v993_v46, 16  ;;  %v760_v63 = vrot.slane %v743_v50, 5  ;;  %v542_v16 = vld [vmem:[%s2499_s17] sm:$0x8]  ;;  %1775 = vmatpush.bf16.msra.mxu2 %v2406_v24  ;;  %v544_v38 = vld [vmem:[%s2499_s17 + $0x8] sm:$0xf] }
  0x31   : > { %v860_v1 = vor.u32 %v859_v51, %v856_v49  ;;  %v1024_v7 = vshll.u32 %v993_v46, 16  ;;  %v1030_v11 = vshrl.u32 %v994_v2, 16  ;;  %v1019_v13 = vrot.slane %v2625_v43, 4  ;;  %v2712_v51 = vld [vmem:[%s2499_s17 + $0x18] sm:$0xf]  ;;  %v2404_v59 = vld [vmem:[%s3250_s1 + $0xa0] sm:$0xff] }
  0x32   : > { %263 = vrot.lane.b32.xlu1 %v228_v25, %s2464_s18  ;;  %414 = vrot.lane.b32.xlu2 %v379_v28, %s2464_s18  ;;  %v390_v25 = vrot.slane %v2571_v37, 4  ;;  %v845_v28 = vld [vmem:[%s2499_s17 + $0xc] sm:$0xf]  ;;  %v2666_v6 = vrot.slane %v1021_v58, 7  ;;  %v883_v31 = vshrl.u32 %v846_v14, 16  ;;  %v886_v32 = vshll.u32 %v846_v14, 16 }
  0x33   : > { %638 = vrot.lane.b32.xlu0 %v624_v29, %s2464_s18  ;;  %v2018_v29 = vrot.slane %v998_v15, 11  ;;  %v873_v40 = vshrl.u32 %v845_v28, 16  ;;  %v861_v10 = vrot.slane %v860_v1, 4  ;;  %v2412_v15 = vld [vmem:[%s3250_s1 + $0xe0] sm:$0xff]  ;;  %v893_v36 = vshrl.u32 %v847_v21, 16  ;;  %v2410_v58 = vld [vmem:[%s3250_s1 + $0xd0] sm:$0xff] }
  0x34   : > { %v399_v42 = vsel %vm2535_vm8, %v390_v25, %v398_v4  ;;  %v1026_v17 = vor.u32 %v1024_v7, %v2666_v6  ;;  %1801 = vmatpush.bf16.msra.mxu3 %v2412_v15  ;;  %v2391_v25 = vld [vmem:[%s3250_s1 + $0x38] sm:$0xff]  ;;  %v888_v49 = vrot.slane %v886_v32, 7  ;;  %1776 = vmatpush.bf16.msra.mxu2 %v2405_v35  ;;  %vm449_vm6 = vcmask 1045508   ;;  %v2389_v14 = vld [vmem:[%s3250_s1 + $0x28] sm:$0xff] }
  0x35   : > { %v1009_v48 = vsel %vm2619_vm13, %v2018_v29, %v1008_v30  ;;  %v875_v53 = vrot.slane %v873_v40, 6  ;;  %v2695_v29 = vrot.slane %v1030_v11, 7  ;;  %1726 = vmatpush.bf16.msra.mxu0 %v2391_v25  ;;  %v870_v39 = vsel %vm2662_vm1, %v861_v10, %v2640_v52  ;;  %vm2744_vm7 = vmor %vm448_vm4, %vm449_vm6  ;;  %v435_v10 = vld [vmem:[%s2499_s17 + $0x4] sm:$0xf]  ;;  %v2399_v15 = vld [vmem:[%s3250_s1 + $0x78] sm:$0xff] }
  0x36   : > { %v1027_v40 = vsel %vm2619_vm13, %v1019_v13, %v1026_v17  ;;  %v453_v13 = vrot.slane %v435_v10, 6  ;;  %1750 = vmatpush.bf16.msra.mxu1 %v2399_v15  ;;  %v2388_v25 = vld [vmem:[%s3250_s1 + $0x20] sm:$0xff]  ;;  %vm277_vm8 = vcmask 1043968   ;;  %vm1942_vm9 = vcmask 257024  }
  0x37   : > { %v284_v15 = vld [vmem:[%s2499_s17] sm:$0xe] }
  0x38   : > { %1802 = vmatpush.bf16.msra.mxu3 %v2411_v27  ;;  %1777 = vmatpush.bf16.msra.mxu2 %v2404_v59  ;;  %v2398_v27 = vld [vmem:[%s3250_s1 + $0x70] sm:$0xff] }
  0x39   : > { %v2386_v59 = vld [vmem:[%s3250_s1 + $0x10] sm:$0xff] }
  0x3a   : > { %640 = vrot.lane.b32.xlu1 %v625_v41, %s2464_s18  ;;  %528 = vrot.lane.b32.xlu2 %v517_v44, %s2464_s18  ;;  %v876_v41 = vshll.u32 %v845_v28, 16  ;;  %v1015_v44 = vshll.u32 %v992_v18, 16  ;;  %v1033_v18 = vshll.u32 %v994_v2, 16  ;;  %v762_v28 = vrot.slane %v760_v63, 4 }
  0x3b   : > { %416 = vrot.lane.b32.xlu0 %v389_v45, %s2464_s18  ;;  %v1039_v2 = vshrl.u32 %v2712_v51, 16  ;;  %1751 = vmatpush.bf16.msra.mxu1 %v2398_v27  ;;  %v2419_v45 = vld [vmem:[%s3250_s1 + $0x118] sm:$0xff] }
  0x3c   : > { %v878_v54 = vrot.slane %v876_v41, 7  ;;  %v896_v41 = vshll.u32 %v847_v21, 16  ;;  %1803 = vmatpush.bf16.msra.mxu3 %v2410_v58  ;;  %v1042_v21 = vshll.u32 %v2712_v51, 16 }
  0x3e   : > { %v2657_v3 = vor.u32 %v878_v54, %v875_v53  ;;  %v1028_v53 = vrot.slane %v2666_v6, 4  ;;  %v1035_v54 = vor.u32 %v1033_v18, %v2695_v29  ;;  %v898_v60 = vrot.slane %v896_v41, 7 }
  0x40   : > { %v1036_v7 = vsel %vm2619_vm13, %v1028_v53, %v1035_v54  ;;  %v881_v32 = vrot.slane %v2657_v3, 4 }
  0x42   : > { %526 = vrot.lane.b32.xlu1 %v514_v57, %s2464_s18  ;;  %642 = vrot.lane.b32.xlu2 %v626_v61, %s2464_s18  ;;  %v1017_v57 = vor.u32 %v1015_v44, %v2625_v43  ;;  %v871_v61 = vrot.slane %v2640_v52, 4  ;;  %v2707_v43 = vld [vmem:[%s2499_s17 + $0x14] sm:$0xf] }
  0x43   : > { %267 = vrot.lane.b32.xlu0 %v248_v62, %s2464_s18  ;;  %v759_v62 = vrot.slane %v757_v33, 4 }
  0x44   : > { %v1018_v4 = vsel %vm2619_vm13, %v1010_v56, %v1017_v57  ;;  %v880_v8 = vsel %vm2662_vm1, %v871_v61, %v2657_v3  ;;  %v895_v56 = vrot.slane %v893_v36, 6  ;;  %v2390_v57 = vld [vmem:[%s3250_s1 + $0x30] sm:$0xff]  ;;  %v1037_v36 = vrot.slane %v2695_v29, 4 }
  0x45   : > { %v761_v9 = vsel %vm2629_vm14, %v759_v62, %v760_v63  ;;  %v766_v63 = vrot.slane %v2707_v43, 5  ;;  %1727 = vmatpush.bf16.msra.mxu0 %v2390_v57  ;;  %v2396_v43 = vld [vmem:[%s3250_s1 + $0x60] sm:$0xff] }
  0x46   : > { %v2750_v11 = vor.u32 %v898_v60, %v895_v56 }
  0x47   : > { %v768_v53 = vrot.slane %v766_v63, 4 }
  0x49   : > { %1728 = vmatpush.bf16.msra.mxu0 %v2389_v14 }
  0x4a   : > { %269 = vrot.lane.b32.xlu1 %v258_v12, %s2464_s18  ;;  %420 = vrot.lane.b32.xlu2 %v409_v20, %s2464_s18  ;;  %v744_v12 = vld [vmem:[%s2499_s17 + $0x10] sm:$0xf]  ;;  %v553_v20 = vshrl.u32 %v542_v16, 16  ;;  %v2409_v16 = vld [vmem:[%s3250_s1 + $0xc8] sm:$0xff] }
  0x4b   : > { %644 = vrot.lane.b32.xlu0 %v627_v19, %s2464_s18  ;;  %v543_v19 = vld [vmem:[%s2499_s17 + $0x4] sm:$0xf]  ;;  %v763_v30 = vrot.slane %v744_v12, 5  ;;  %1804 = vmatpush.bf16.msra.mxu3 %v2409_v16 }
  0x4c   : > { %v558_v22 = vshrl.u32 %v543_v19, 16  ;;  %v561_v23 = vshll.u32 %v543_v19, 16  ;;  %v2014_v33 = vrot.slane %v553_v20, 11  ;;  %v2403_v19 = vld [vmem:[%s3250_s1 + $0x98] sm:$0xff]  ;;  %v2768_v20 = vrot.slane %v1039_v2, 7 }
  0x4d   : > { %v764_v46 = vsel %vm2629_vm14, %v762_v28, %v763_v30  ;;  %v765_v62 = vrot.slane %v763_v30, 4  ;;  %v2408_v30 = vld [vmem:[%s3250_s1 + $0xc0] sm:$0xff]  ;;  %1778 = vmatpush.bf16.msra.mxu2 %v2403_v19  ;;  %1729 = vmatpush.bf16.msra.mxu0 %v2388_v25  ;;  %v2385_v19 = vld [vmem:[%s3250_s1 + $0x8] sm:$0xff] }
  0x4e   : > { %v560_v34 = vrot.slane %v558_v22, 7  ;;  %v848_v22 = vld [vmem:[%s2499_s17 + $0x18] sm:$0xf]  ;;  %v1044_v3 = vor.u32 %v1042_v21, %v2768_v20  ;;  %v1046_v60 = vrot.slane %v2768_v20, 4  ;;  %v285_v16 = vld [vmem:[%s2499_s17 + $0x4] sm:$0xf] }
  0x4f   : > { %v767_v18 = vsel %vm2629_vm14, %v765_v62, %v766_v63  ;;  %v903_v41 = vshrl.u32 %v848_v22, 16  ;;  %1805 = vmatpush.bf16.msra.mxu3 %v2408_v30  ;;  %v849_v62 = vld [vmem:[%s2499_s17 + $0x1c] sm:$0x7]  ;;  %v173_v63 = vld [vmem:[%s2499_s17 + $0x4] sm:$0xf] }
  0x50   : > { %v563_v44 = vor.u32 %v561_v23, %v560_v34  ;;  %v565_v50 = vrot.slane %v560_v34, 4  ;;  %v455_v34 = vrot.slane %v453_v13, 4  ;;  %v1045_v54 = vsel %vm2619_vm13, %v1037_v36, %v1044_v3  ;;  %180 = vst.msk [vmem:[#allocation2 + $0x20] sm:$0xf] %vm178_vm3, %v173_v63  ;;  %v2395_v20 = vld [vmem:[%s3250_s1 + $0x58] sm:$0xff]  ;;  %v2384_v30 = vld [vmem:[%s3250_s1] sm:$0xff] }
  0x51   : > { %v905_v56 = vrot.slane %v903_v41, 6  ;;  %v916_v2 = vshll.u32 %v849_v62, 16  ;;  %v286_v25 = vld [vmem:[%s2499_s17 + $0x8] sm:$0xf]  ;;  %v901_v3 = vrot.slane %v2750_v11, 4 }
  0x52   : > { %418 = vrot.lane.b32.xlu1 %v399_v42, %s2464_s18  ;;  %774 = vrot.lane.b32.xlu2 %v758_v47, %s2464_s18  ;;  %v567_v42 = vshrl.u32 %v544_v38, 16  ;;  %v570_v47 = vshll.u32 %v544_v38, 16  ;;  %v564_v55 = vsel %vm2619_vm13, %v2014_v33, %v563_v44  ;;  %v172_v33 = vld [vmem:[%s2499_s17] sm:$0xf]  ;;  %v746_v38 = vld [vmem:[%s2499_s17 + $0x18] sm:$0xf] }
  0x53   : > { %1055 = vrot.lane.b32.xlu0 %v1009_v48, %s2464_s18  ;;  %v885_v48 = vrot.slane %v883_v31, 6  ;;  %616 = vst.msk [vmem:[#allocation2 + $0xc] sm:$0xf] %vm178_vm3, %v564_v55  ;;  %v2790_v31 = vld [vmem:[%s2499_s17 + $0x8] sm:$0xf]  ;;  %v769_v51 = vrot.slane %v746_v38, 5 }
  0x54   : > { %v2714_v52 = vrot.slane %v567_v42, 7  ;;  %v456_v35 = vrot.slane %v2790_v31, 6  ;;  %179 = vst.msk [vmem:[#allocation2] sm:$0xf] %vm178_vm3, %v172_v33  ;;  %v906_v42 = vshll.u32 %v848_v22, 16  ;;  %v306_v38 = vrot.slane %v286_v25, 5 }
  0x55   : > { %v889_v1 = vor.u32 %v888_v49, %v885_v48  ;;  %v2397_v48 = vld [vmem:[%s3250_s1 + $0x68] sm:$0xff]  ;;  %v747_v55 = vld [vmem:[%s2499_s17 + $0x1c] sm:$0x1]  ;;  %v770_v58 = vsel %vm2629_vm14, %v768_v53, %v769_v51 }
  0x56   : > { %v572_v61 = vor.u32 %v570_v47, %v2714_v52  ;;  %v457_v29 = vsel %vm2744_vm7, %v455_v34, %v456_v35  ;;  %v2387_v47 = vld [vmem:[%s3250_s1 + $0x18] sm:$0xff]  ;;  %v908_v57 = vrot.slane %v906_v42, 7  ;;  %1752 = vmatpush.bf16.msra.mxu1 %v2397_v48  ;;  %v458_v33 = vrot.slane %v456_v35, 4  ;;  %v174_v53 = vld [vmem:[%s2499_s17 + $0x8] sm:$0xf] }
  0x57   : > { %v891_v17 = vrot.slane %v889_v1, 4  ;;  %v890_v49 = vsel %vm2662_vm1, %v881_v32, %v889_v1  ;;  %477 = vst.msk [vmem:[#allocation2 + $0x28] sm:$0xf] %vm178_vm3, %v457_v29  ;;  %1730 = vmatpush.bf16.msra.mxu0 %v2387_v47  ;;  %v913_v1 = vshrl.u32 %v849_v62, 16  ;;  %v2394_v32 = vld [vmem:[%s3250_s1 + $0x50] sm:$0xff]  ;;  %v2393_v47 = vld [vmem:[%s3250_s1 + $0x48] sm:$0xff] }
  0x58   : > { %v573_v6 = vsel %vm2619_vm13, %v565_v50, %v572_v61  ;;  %v2401_v50 = vld [vmem:[%s3250_s1 + $0x88] sm:$0xff]  ;;  %181 = vst.msk [vmem:[#allocation2 + $0x40] sm:$0xf] %vm178_vm3, %v174_v53  ;;  %v588_v62 = vshll.u32 %v546_v5, 16 }
  0x59   : > { %617 = vst.msk [vmem:[#allocation2 + $0x2c] sm:$0xf] %vm178_vm3, %v573_v6  ;;  %v900_v24 = vsel %vm2662_vm1, %v891_v17, %v2750_v11  ;;  %v772_v6 = vrot.slane %v747_v55, 5  ;;  %v2011_v17 = vrot.slane %v284_v15, 9  ;;  %v287_v63 = vld [vmem:[%s2499_s17 + $0xc] sm:$0xf] }
  0x5a   : > { %1057 = vrot.lane.b32.xlu1 %v1018_v4, %s2464_s18  ;;  %923 = vrot.lane.b32.xlu2 %v880_v8, %s2464_s18  ;;  %v2737_v4 = vld [vmem:[%s2499_s17 + $0x1c] sm:$0xf] }
  0x5b   : > { %776 = vrot.lane.b32.xlu0 %v761_v9, %s2464_s18  ;;  %v434_v9 = vld [vmem:[%s2499_s17] sm:$0xc]  ;;  %v1048_v28 = vshrl.u32 %v2737_v4, 16  ;;  %1731 = vmatpush.bf16.msra.mxu0 %v2386_v59  ;;  %v585_v59 = vshrl.u32 %v546_v5, 16 }
  0x5c   : > { %v2012_v12 = vrot.slane %v434_v9, 10  ;;  %v909_v9 = vor.u32 %v908_v57, %v905_v56  ;;  %1753 = vmatpush.bf16.msra.mxu1 %v2396_v43  ;;  %v574_v56 = vrot.slane %v2714_v52, 4  ;;  %v2439_v52 = vld [vmem:[%s3250_s1 + $0x1b8] sm:$0xff] }
  0x5d   : > { %v1050_v44 = vrot.slane %v1048_v28, 7 }
  0x5e   : > { %v454_v23 = vsel %vm2744_vm7, %v2012_v12, %v453_v13  ;;  %v915_v12 = vrot.slane %v913_v1, 6  ;;  %v918_v13 = vrot.slane %v916_v2, 7  ;;  %v911_v21 = vrot.slane %v909_v9, 4 }
  0x5f   : > { %476 = vst.msk [vmem:[#allocation2 + $0x8] sm:$0xf] %vm178_vm3, %v454_v23  ;;  %1732 = vmatpush.bf16.msra.mxu0 %v2385_v19  ;;  %v910_v48 = vsel %vm2662_vm1, %v901_v3, %v909_v9  ;;  %v308_v2 = vrot.slane %v306_v38, 4  ;;  %v2922_v9 = vld [vmem:[%s2499_s17 + $0x10] sm:$0xf] }
  0x60   : > { %v919_v22 = vor.u32 %v918_v13, %v915_v12  ;;  %1754 = vmatpush.bf16.msra.mxu1 %v2395_v20  ;;  %v312_v13 = vrot.slane %v2922_v9, 5 }
  0x62   : > { %921 = vrot.lane.b32.xlu1 %v870_v39, %s2464_s18  ;;  %778 = vrot.lane.b32.xlu2 %v764_v46, %s2464_s18  ;;  %v2402_v39 = vld [vmem:[%s3250_s1 + $0x90] sm:$0xff]  ;;  %v1051_v46 = vshll.u32 %v2737_v4, 16  ;;  %v771_v4 = vrot.slane %v769_v51, 4  ;;  %v920_v28 = vsel %vm2662_vm1, %v911_v21, %v919_v22  ;;  %v2392_v51 = vld [vmem:[%s3250_s1 + $0x40] sm:$0xff]  ;;  %v314_v37 = vrot.slane %v312_v13, 4 }
  0x63   : > { %1059 = vrot.lane.b32.xlu0 %v1027_v40, %s2464_s18  ;;  %1779 = vmatpush.bf16.msra.mxu2 %v2402_v39  ;;  %v2875_v39 = vld [vmem:[%s2499_s17 + $0x10] sm:$0xf]  ;;  %v439_v21 = vld [vmem:[%s2499_s17 + $0x14] sm:$0xf]  ;;  %v2431_v22 = vld [vmem:[%s3250_s1 + $0x178] sm:$0xff] }
  0x64   : > { %v1053_v61 = vor.u32 %v1051_v46, %v1050_v44  ;;  %v773_v23 = vsel %vm2629_vm14, %v771_v4, %v772_v6  ;;  %v462_v31 = vrot.slane %v2875_v39, 6  ;;  %1733 = vmatpush.bf16.msra.mxu0 %v2384_v30  ;;  %1755 = vmatpush.bf16.msra.mxu1 %v2394_v32  ;;  %v309_v4 = vrot.slane %v287_v63, 5  ;;  %v2436_v63 = vld [vmem:[%s3250_s1 + $0x1a0] sm:$0xff] }
  0x65   : > { %v465_v25 = vrot.slane %v439_v21, 6 }
  0x66   : > { %v1054_v14 = vsel %vm2619_vm13, %v1046_v60, %v1053_v61  ;;  %v2911_v61 = vrot.slane %v585_v59, 7  ;;  %v311_v12 = vrot.slane %v309_v4, 4 }
  0x67   : > { %1780 = vmatpush.bf16.msra.mxu2 %v2401_v50  ;;  %v545_v50 = vld [vmem:[%s2499_s17 + $0xc] sm:$0xf]  ;;  %v467_v30 = vrot.slane %v465_v25, 4 }
  0x68   : > { %1756 = vmatpush.bf16.msra.mxu1 %v2393_v47  ;;  %v313_v20 = vsel %vm2629_vm14, %v311_v12, %v312_v13  ;;  %v548_v47 = vld [vmem:[%s2499_s17 + $0x18] sm:$0xf] }
  0x69   : > { %329 = vst.msk [vmem:[#allocation2 + $0x64] sm:$0xf] %vm178_vm3, %v313_v20  ;;  %v606_v5 = vshll.u32 %v548_v47, 16 }
  0x6a   : > { %1061 = vrot.lane.b32.xlu1 %v1036_v7, %s2464_s18  ;;  %927 = vrot.lane.b32.xlu2 %v900_v24, %s2464_s18  ;;  %v2400_v7 = vld [vmem:[%s3250_s1 + $0x80] sm:$0xff]  ;;  %v437_v24 = vld [vmem:[%s2499_s17 + $0xc] sm:$0xf] }
  0x6b   : > { %780 = vrot.lane.b32.xlu0 %v767_v18, %s2464_s18  ;;  %1781 = vmatpush.bf16.msra.mxu2 %v2400_v7  ;;  %v303_v18 = vrot.slane %v285_v16, 5  ;;  %v459_v34 = vrot.slane %v437_v24, 6  ;;  %v590_v7 = vor.u32 %v588_v62, %v2911_v61  ;;  %v2422_v24 = vld [vmem:[%s3250_s1 + $0x130] sm:$0xff] }
  0x6c   : > { %v635_v40 = vpop.permute.xlu2 %634  ;;  %1757 = vmatpush.bf16.msra.mxu1 %v2392_v51  ;;  %v2429_v51 = vld [vmem:[%s3250_s1 + $0x168] sm:$0xff]  ;;  %v177_v62 = vld [vmem:[%s2499_s17 + $0x14] sm:$0xf] }
  0x6d   : > { %652 = vst.msk [vmem:[#allocation2 + $0xc] sm:$0xf] %vm277_vm8, %v635_v40  ;;  %v304_v27 = vsel %vm2629_vm14, %v2011_v17, %v303_v18  ;;  %v305_v36 = vrot.slane %v303_v18, 4  ;;  %v460_v41 = vsel %vm2744_vm7, %v458_v33, %v459_v34  ;;  %v461_v42 = vrot.slane %v459_v34, 4  ;;  %v2423_v17 = vld [vmem:[%s3250_s1 + $0x138] sm:$0xff] }
  0x6e   : > { %326 = vst.msk [vmem:[#allocation2 + $0x4] sm:$0xf] %vm178_vm3, %v304_v27  ;;  %v2443_v18 = vld [vmem:[%s3250_s1 + $0x1d8] sm:$0xff]  ;;  %1822 = vmatpush.bf16.msrb.mxu0 %v2423_v17 }
  0x6f   : > { %478 = vst.msk [vmem:[#allocation2 + $0x48] sm:$0xf] %vm178_vm3, %v460_v41  ;;  %v307_v35 = vsel %vm2629_vm14, %v305_v36, %v306_v38  ;;  %v463_v44 = vsel %vm2744_vm7, %v461_v42, %v462_v31  ;;  %1870 = vmatpush.bf16.msrb.mxu2 %v2439_v52  ;;  %1898 = vmatpush.bf16.msrb.mxu3 %v2443_v18  ;;  %v440_v27 = vld [vmem:[%s2499_s17 + $0x18] sm:$0x3]  ;;  %v547_v38 = vld [vmem:[%s2499_s17 + $0x14] sm:$0xf] }
  0x70   : > { %327 = vst.msk [vmem:[#allocation2 + $0x24] sm:$0xf] %vm178_vm3, %v307_v35  ;;  %1846 = vmatpush.bf16.msrb.mxu1 %v2431_v22  ;;  %v468_v32 = vrot.slane %v440_v27, 6  ;;  %v594_v41 = vshrl.u32 %v547_v38, 16  ;;  %v176_v35 = vld [vmem:[%s2499_s17 + $0x10] sm:$0xf] }
  0x71   : > { %479 = vst.msk [vmem:[#allocation2 + $0x68] sm:$0xf] %vm178_vm3, %v463_v44  ;;  %v658_v18 = vld [vmem:[%s2499_s17 + $0x4] sm:$0xf] }
  0x72   : > { %925 = vrot.lane.b32.xlu1 %v890_v49, %s2464_s18  ;;  %782 = vrot.lane.b32.xlu2 %v770_v58, %s2464_s18  ;;  %v175_v49 = vld [vmem:[%s2499_s17 + $0xc] sm:$0xf]  ;;  %v579_v58 = vshll.u32 %v545_v50, 16  ;;  %v469_v34 = vsel %vm2744_vm7, %v467_v30, %v468_v32  ;;  %v596_v44 = vrot.slane %v594_v41, 7  ;;  %183 = vst.msk [vmem:[#allocation2 + $0x80] sm:$0xf] %vm178_vm3, %v176_v35 }
  0x73   : > { %1063 = vrot.lane.b32.xlu0 %v1045_v54, %s2464_s18  ;;  %182 = vst.msk [vmem:[#allocation2 + $0x60] sm:$0xf] %vm178_vm3, %v175_v49  ;;  %v576_v54 = vshrl.u32 %v545_v50, 16  ;;  %1823 = vmatpush.bf16.msrb.mxu0 %v2422_v24  ;;  %v2442_v49 = vld [vmem:[%s3250_s1 + $0x1d0] sm:$0xff]  ;;  %v592_v50 = vrot.slane %v2911_v61, 4  ;;  %v666_v9 = vshrl.u32 %v658_v18, 16 }
  0x74   : > { %v637_v10 = vpop.permute.xlu2 %636  ;;  %v2361_v40 = vld [vmem:[#allocation2 + $0xc] sm:$0xf]  ;;  %481 = vst.msk [vmem:[#allocation2 + $0xa8] sm:$0xf] %vm178_vm3, %v469_v34  ;;  %1899 = vmatpush.bf16.msrb.mxu3 %v2442_v49  ;;  %v669_v13 = vshll.u32 %v658_v18, 16 }
  0x75   : > { %653 = vst.msk [vmem:[#allocation2 + $0x2c] sm:$0xf] %vm277_vm8, %v637_v10  ;;  %v578_v57 = vrot.slane %v576_v54, 7  ;;  %v310_v10 = vsel %vm2629_vm14, %v308_v2, %v309_v4  ;;  %v603_v54 = vshrl.u32 %v548_v47, 16  ;;  %v289_v2 = vld [vmem:[%s2499_s17 + $0x14] sm:$0xf] }
  0x76   : > { %328 = vst.msk [vmem:[#allocation2 + $0x44] sm:$0xf] %vm178_vm3, %v310_v10  ;;  %v2435_v10 = vld [vmem:[%s3250_s1 + $0x198] sm:$0xff]  ;;  %v315_v12 = vrot.slane %v289_v2, 5  ;;  %v659_v24 = vld [vmem:[%s2499_s17 + $0x8] sm:$0xf] }
  0x77   : > { %v581_v60 = vor.u32 %v579_v58, %v578_v57  ;;  %v583_v6 = vrot.slane %v578_v57, 4  ;;  %v605_v57 = vrot.slane %v603_v54, 7  ;;  %184 = vst.msk [vmem:[#allocation2 + $0xa0] sm:$0xf] %vm178_vm3, %v177_v62  ;;  %v945_v30 = vld [vmem:[%s2499_s17 + $0x4] sm:$0x8] }
  0x78   : > { %v316_v17 = vsel %vm2629_vm14, %v314_v37, %v315_v12  ;;  %v946_v34 = vld [vmem:[%s2499_s17 + $0x8] sm:$0xf]  ;;  %v679_v35 = vshrl.u32 %v659_v24, 16 }
  0x79   : > { %v582_v1 = vsel %vm2619_vm13, %v574_v56, %v581_v60  ;;  %v591_v16 = vsel %vm2619_vm13, %v583_v6, %v590_v7  ;;  %v601_v56 = vrot.slane %v596_v44, 4  ;;  %v2420_v6 = vld [vmem:[%s3250_s1 + $0x120] sm:$0xff]  ;;  %330 = vst.msk [vmem:[#allocation2 + $0x84] sm:$0xf] %vm178_vm3, %v316_v17  ;;  %v2417_v2 = vld [vmem:[%s3250_s1 + $0x108] sm:$0xff] }
  0x7a   : > { %1065 = vrot.lane.b32.xlu1 %v1054_v14, %s2464_s18  ;;  %931 = vrot.lane.b32.xlu2 %v920_v28, %s2464_s18  ;;  %618 = vst.msk [vmem:[#allocation2 + $0x4c] sm:$0xf] %vm178_vm3, %v582_v1  ;;  %v464_v28 = vrot.slane %v462_v31, 4  ;;  %v608_v1 = vor.u32 %v606_v5, %v605_v57  ;;  %v2428_v7 = vld [vmem:[%s3250_s1 + $0x160] sm:$0xff] }
  0x7b   : > { %784 = vrot.lane.b32.xlu0 %v773_v23, %s2464_s18  ;;  %v2438_v23 = vld [vmem:[%s3250_s1 + $0x1b0] sm:$0xff]  ;;  %619 = vst.msk [vmem:[#allocation2 + $0x6c] sm:$0xf] %vm178_vm3, %v591_v16  ;;  %v798_v17 = vld [vmem:[%s2499_s17 + $0x4] sm:$0xc] }
  0x7c   : > { %v2031_v29 = vld [vmem:[#allocation2 + $0x28] sm:$0xf0]  ;;  %v523_v11 = vpop.permute.xlu2 %522  ;;  %1871 = vmatpush.bf16.msrb.mxu2 %v2438_v23  ;;  %v466_v33 = vsel %vm2744_vm7, %v464_v28, %v465_v25  ;;  %v609_v4 = vsel %vm2619_vm13, %v601_v56, %v608_v1 }
  0x7d   : > { %v2034_v46 = vor.u32 %v2361_v40, %v2031_v29  ;;  %538 = vst.msk [vmem:[#allocation2 + $0x48] sm:$0xf] %vm277_vm8, %v523_v11  ;;  %v2430_v40 = vld [vmem:[%s3250_s1 + $0x170] sm:$0xff]  ;;  %v2437_v11 = vld [vmem:[%s3250_s1 + $0x1a8] sm:$0xff] }
  0x7e   : > { %480 = vst.msk [vmem:[#allocation2 + $0x88] sm:$0xf] %vm178_vm3, %v466_v33  ;;  %1847 = vmatpush.bf16.msrb.mxu1 %v2430_v40  ;;  %v2441_v28 = vld [vmem:[%s3250_s1 + $0x1c8] sm:$0xff]  ;;  %v668_v40 = vrot.slane %v666_v9, 4 }
  0x7f   : > { %1806 = vmatmul.bf16.vlgmr.msra.gmra.mxu3 %v2034_v46  ;;  %v597_v46 = vshll.u32 %v547_v38, 16  ;;  %621 = vst.msk [vmem:[#allocation2 + $0xac] sm:$0xf] %vm178_vm3, %v609_v4  ;;  %v2017_v38 = vrot.slane %v945_v30, 11  ;;  %v2440_v4 = vld [vmem:[%s3250_s1 + $0x1c0] sm:$0xff] }
  0x80   : > { %1872 = vmatpush.bf16.msrb.mxu2 %v2437_v11  ;;  %1900 = vmatpush.bf16.msrb.mxu3 %v2441_v28  ;;  %v2434_v11 = vld [vmem:[%s3250_s1 + $0x190] sm:$0xff]  ;;  %v1079_v9 = vld [vmem:[%s2499_s17 + $0x8] sm:$0xf] }
  0x81   : > { %v599_v53 = vor.u32 %v597_v46, %v596_v44  ;;  %v2418_v44 = vld [vmem:[%s3250_s1 + $0x110] sm:$0xff]  ;;  %v947_v46 = vld [vmem:[%s2499_s17 + $0xc] sm:$0xf]  ;;  %1085 = vst.msk [vmem:[#allocation2 + $0x1c] sm:$0xf] %vm178_vm3, %v1079_v9 }
  0x82   : > { %929 = vrot.lane.b32.xlu1 %v910_v48, %s2464_s18  ;;  %v2421_v48 = vld [vmem:[%s3250_s1 + $0x128] sm:$0xff]  ;;  %1848 = vmatpush.bf16.msrb.mxu1 %v2429_v51  ;;  %v964_v51 = vrot.slane %v947_v46, 7  ;;  %v1081_v9 = vld [vmem:[%s2499_s17 + $0x10] sm:$0xf] }
  0x83   : > { %1824 = vmatpush.bf16.msrb.mxu0 %v2421_v48  ;;  %1087 = vst.msk [vmem:[#allocation2 + $0x5c] sm:$0xf] %vm178_vm3, %v1081_v9 }
  0x84   : > { %v266_v55 = vpop.permute.xlu2 %265  ;;  %1873 = vmatpush.bf16.msrb.mxu2 %v2436_v63  ;;  %v2061_v23 = vld [vmem:[#allocation2 + $0x48] sm:$0xf]  ;;  %1901 = vmatpush.bf16.msrb.mxu3 %v2440_v4  ;;  %v966_v28 = vrot.slane %v964_v51, 4 }
  0x85   : > { %v519_v43 = vpop.permute.xlu0 %518  ;;  %281 = vst.msk [vmem:[#allocation2 + $0x60] sm:$0xf] %vm277_vm8, %v266_v55  ;;  %v600_v55 = vsel %vm2619_vm13, %v592_v50, %v599_v53  ;;  %v3047_v50 = vld [vmem:[%s2499_s17 + $0xc] sm:$0xf]  ;;  %v681_v53 = vrot.slane %v679_v35, 4  ;;  %v2424_v35 = vld [vmem:[%s3250_s1 + $0x140] sm:$0xff] }
  0x86   : > { %536 = vst.msk [vmem:[#allocation2 + $0x8] sm:$0xf] %vm277_vm8, %v519_v43  ;;  %1849 = vmatpush.bf16.msrb.mxu1 %v2428_v7  ;;  %v685_v54 = vshll.u32 %v3047_v50, 16  ;;  %v799_v7 = vld [vmem:[%s2499_s17 + $0x8] sm:$0xf] }
  0x87   : > { %620 = vst.msk [vmem:[#allocation2 + $0x8c] sm:$0xf] %vm178_vm3, %v600_v55  ;;  %1825 = vmatpush.bf16.msrb.mxu0 %v2420_v6  ;;  %v2425_v6 = vld [vmem:[%s3250_s1 + $0x148] sm:$0xff]  ;;  %v814_v37 = vrot.slane %v799_v7, 6 }
  0x88   : > { %1874 = vmatpush.bf16.msrb.mxu2 %v2435_v10 }
  0x8b   : > { %1826 = vmatpush.bf16.msrb.mxu0 %v2419_v45  ;;  %v948_v45 = vld [vmem:[%s2499_s17 + $0x10] sm:$0xf] }
  0x8c   : > { %v260_v14 = vpop.permute.xlu1 %259  ;;  %v415_v15 = vpop.permute.xlu2 %414  ;;  %v2372_v41 = vld [vmem:[#allocation2 + $0x5c] sm:$0xf0]  ;;  %1875 = vmatpush.bf16.msrb.mxu2 %v2434_v11  ;;  %v949_v11 = vld [vmem:[%s2499_s17 + $0x14] sm:$0xf] }
  0x8d   : > { %278 = vst.msk [vmem:[#allocation2] sm:$0xf] %vm277_vm8, %v260_v14  ;;  %v521_v19 = vpop.permute.xlu0 %520  ;;  %v2029_v39 = vld [vmem:[#allocation2 + $0x8] sm:$0xf]  ;;  %v290_v14 = vld [vmem:[%s2499_s17 + $0x18] sm:$0x1] }
  0x8e   : > { %430 = vst.msk [vmem:[#allocation2 + $0x44] sm:$0xf] %vm277_vm8, %v415_v15  ;;  %v317_v15 = vrot.slane %v315_v12, 4  ;;  %v318_v16 = vrot.slane %v290_v14, 5  ;;  %v2432_v12 = vld [vmem:[%s3250_s1 + $0x180] sm:$0xff] }
  0x8f   : > { %537 = vst.msk [vmem:[#allocation2 + $0x28] sm:$0xf] %vm277_vm8, %v521_v19  ;;  %1827 = vmatpush.bf16.msrb.mxu0 %v2418_v44  ;;  %v3084_v14 = vld [vmem:[%s2499_s17 + $0xc] sm:$0xf] }
  0x90   : > { %v319_v20 = vsel %vm2629_vm14, %v317_v15, %v318_v16  ;;  %v689_v15 = vshrl.u32 %v3047_v50, 16  ;;  %v817_v16 = vrot.slane %v3084_v14, 6 }
  0x91   : > { %331 = vst.msk [vmem:[#allocation2 + $0xa4] sm:$0xf] %vm178_vm3, %v319_v20  ;;  %v2016_v20 = vrot.slane %v798_v17, 10 }
  0x93   : > { %1828 = vmatpush.bf16.msrb.mxu0 %v2417_v2  ;;  %v819_v2 = vrot.slane %v817_v16, 4 }
  0x94   : > { %v262_v36 = vpop.permute.xlu1 %261  ;;  %v529_v3 = vpop.permute.xlu2 %528  ;;  %v2021_v59 = vld [vmem:[#allocation2] sm:$0xf] }
  0x95   : > { %279 = vst.msk [vmem:[#allocation2 + $0x20] sm:$0xf] %vm277_vm8, %v262_v36  ;;  %v411_v42 = vpop.permute.xlu0 %410 }
  0x96   : > { %v2365_v31 = vld [vmem:[#allocation2 + $0x24] sm:$0xf0]  ;;  %541 = vst.msk [vmem:[#allocation2 + $0xa8] sm:$0xf] %vm277_vm8, %v529_v3  ;;  %v2427_v3 = vld [vmem:[%s3250_s1 + $0x158] sm:$0xff] }
  0x97   : > { %428 = vst.msk [vmem:[#allocation2 + $0x4] sm:$0xf] %vm277_vm8, %v411_v42  ;;  %v2030_v29 = vor.u32 %v2365_v31, %v2029_v39  ;;  %v961_v39 = vrot.slane %v946_v34, 7  ;;  %v671_v42 = vrot.slane %v669_v13, 5  ;;  %v675_v31 = vshll.u32 %v659_v24, 16  ;;  %1850 = vmatpush.bf16.msrb.mxu1 %v2427_v3 }
  0x98   : > { %v967_v34 = vrot.slane %v948_v45, 7 }
  0x99   : > { %1782 = vmatmul.bf16.vlgmr.msra.gmra.mxu2 %v2030_v29  ;;  %v962_v29 = vsel %vm2501_vm2, %v2017_v38, %v961_v39  ;;  %v963_v47 = vrot.slane %v961_v39, 4  ;;  %v672_v48 = vor.u32 %v671_v42, %v668_v40  ;;  %v677_v49 = vrot.slane %v675_v31, 5  ;;  %v661_v39 = vld [vmem:[%s2499_s17 + $0x10] sm:$0xf] }
  0x9a   : > { %984 = vst.msk [vmem:[#allocation2 + $0x18] sm:$0xf] %vm178_vm3, %v962_v29  ;;  %v968_v40 = vsel %vm2501_vm2, %v966_v28, %v967_v34  ;;  %v695_v31 = vshll.u32 %v661_v39, 16  ;;  %v699_v29 = vshrl.u32 %v661_v39, 16 }
  0x9b   : > { %v673_v56 = vrot.slane %v672_v48, 4  ;;  %v965_v57 = vsel %vm2501_vm2, %v963_v47, %v964_v51  ;;  %986 = vst.msk [vmem:[#allocation2 + $0x58] sm:$0xf] %vm178_vm3, %v968_v40  ;;  %v969_v47 = vrot.slane %v967_v34, 4  ;;  %v970_v48 = vrot.slane %v949_v11, 7 }
  0x9c   : > { %v413_v58 = vpop.permute.xlu1 %412  ;;  %v2364_v43 = vld [vmem:[#allocation2 + $0x1c] sm:$0xf0]  ;;  %v643_v61 = vpop.permute.xlu2 %642  ;;  %985 = vst.msk [vmem:[#allocation2 + $0x38] sm:$0xf] %vm178_vm3, %v965_v57  ;;  %v697_v46 = vrot.slane %v695_v31, 5 }
  0x9d   : > { %429 = vst.msk [vmem:[#allocation2 + $0x24] sm:$0xf] %vm277_vm8, %v413_v58  ;;  %v2022_v60 = vor.u32 %v2364_v43, %v2021_v59  ;;  %v525_v52 = vpop.permute.xlu0 %524  ;;  %v2426_v43 = vld [vmem:[%s3250_s1 + $0x150] sm:$0xff]  ;;  %v678_v63 = vsel %vm2520_vm5, %v673_v56, %v677_v49  ;;  %v2381_v3 = vld [vmem:[#allocation2 + $0xa4] sm:$0xf0] }
  0x9e   : > { %656 = vst.msk [vmem:[#allocation2 + $0x8c] sm:$0xf] %vm277_vm8, %v643_v61  ;;  %v2360_v19 = vld [vmem:[#allocation2 + $0x4] sm:$0xf]  ;;  %v3056_v61 = vrot.slane %v685_v54, 5  ;;  %1851 = vmatpush.bf16.msrb.mxu1 %v2426_v43  ;;  %v701_v54 = vrot.slane %v699_v29, 4 }
  0x9f   : > { %539 = vst.msk [vmem:[#allocation2 + $0x68] sm:$0xf] %vm277_vm8, %v525_v52  ;;  %1734 = vmatmul.bf16.vlgmr.msra.gmra.mxu0 %v2022_v60  ;;  %v682_v60 = vor.u32 %v681_v53, %v677_v49  ;;  %v2433_v52 = vld [vmem:[%s3250_s1 + $0x188] sm:$0xff]  ;;  %v662_v49 = vld [vmem:[%s2499_s17 + $0x14] sm:$0xf] }
  0xa0   : > { %735 = vst.msk [vmem:[#allocation2 + $0x10] sm:$0xf] %vm178_vm3, %v678_v63  ;;  %1876 = vmatpush.bf16.msrb.mxu2 %v2433_v52  ;;  %v664_v40 = vld [vmem:[%s2499_s17 + $0x1c] sm:$0x1] }
  0xa1   : > { %v683_v1 = vrot.slane %v682_v60, 4  ;;  %v801_v60 = vld [vmem:[%s2499_s17 + $0x10] sm:$0xf]  ;;  %v725_v31 = vshll.u32 %v664_v40, 16 }
  0xa2   : > { %1852 = vmatpush.bf16.msrb.mxu1 %v2425_v6  ;;  %v820_v63 = vrot.slane %v801_v60, 6 }
  0xa3   : > { %v688_v10 = vsel %vm2520_vm5, %v683_v1, %v3056_v61  ;;  %v709_v1 = vshrl.u32 %v662_v49, 16 }
  0xa4   : > { %v264_v21 = vpop.permute.xlu1 %263  ;;  %v2023_v22 = vld [vmem:[#allocation2 + $0x20] sm:$0xf0]  ;;  %v421_v27 = vpop.permute.xlu2 %420  ;;  %736 = vst.msk [vmem:[#allocation2 + $0x30] sm:$0xf] %vm178_vm3, %v688_v10  ;;  %1877 = vmatpush.bf16.msrb.mxu2 %v2432_v12  ;;  %v822_v6 = vrot.slane %v820_v63, 4  ;;  %v821_v10 = vsel %vm2744_vm7, %v819_v2, %v820_v63 }
  0xa5   : > { %280 = vst.msk [vmem:[#allocation2 + $0x40] sm:$0xf] %vm277_vm8, %v264_v21  ;;  %v2026_v25 = vor.u32 %v2360_v19, %v2023_v22  ;;  %v639_v32 = vpop.permute.xlu0 %638  ;;  %v816_v19 = vrot.slane %v814_v37, 4  ;;  %v2368_v22 = vld [vmem:[#allocation2 + $0x44] sm:$0xf] }
  0xa6   : > { %v2373_v33 = vld [vmem:[#allocation2 + $0x64] sm:$0xf0]  ;;  %433 = vst.msk [vmem:[#allocation2 + $0xa4] sm:$0xf] %vm277_vm8, %v421_v27  ;;  %1853 = vmatpush.bf16.msrb.mxu1 %v2424_v35 }
  0xa7   : > { %654 = vst.msk [vmem:[#allocation2 + $0x4c] sm:$0xf] %vm277_vm8, %v639_v32  ;;  %1758 = vmatmul.bf16.vlgmr.msra.gmra.mxu1 %v2026_v25  ;;  %v2062_v36 = vor.u32 %v2373_v33, %v2061_v23  ;;  %v2416_v23 = vld [vmem:[%s3250_s1 + $0x100] sm:$0xff]  ;;  %v818_v25 = vsel %vm2744_vm7, %v816_v19, %v817_v16  ;;  %v815_v33 = vsel %vm2744_vm7, %v2016_v20, %v814_v37  ;;  %v663_v16 = vld [vmem:[%s2499_s17 + $0x18] sm:$0xf]  ;;  %v972_v20 = vrot.slane %v970_v48, 4 }
  0xa8   : > { %838 = vst.msk [vmem:[#allocation2 + $0x34] sm:$0xf] %vm178_vm3, %v818_v25  ;;  %1829 = vmatpush.bf16.msrb.mxu0 %v2416_v23  ;;  %v950_v19 = vld [vmem:[%s2499_s17 + $0x18] sm:$0xf]  ;;  %v719_v28 = vshrl.u32 %v663_v16, 16 }
  0xa9   : > { %1787 = vmatmul.bf16.gmra.mxu2 %v2062_v36  ;;  %v691_v36 = vrot.slane %v689_v15, 4  ;;  %837 = vst.msk [vmem:[#allocation2 + $0x14] sm:$0xf] %vm178_vm3, %v815_v33  ;;  %v2377_v15 = vld [vmem:[#allocation2 + $0x8c] sm:$0xf]  ;;  %v973_v23 = vrot.slane %v950_v19, 7 }
  0xaa   : > { %839 = vst.msk [vmem:[#allocation2 + $0x54] sm:$0xf] %vm178_vm3, %v821_v10  ;;  %v951_v33 = vld [vmem:[%s2499_s17 + $0x1c] sm:$0x7]  ;;  %v721_v39 = vrot.slane %v719_v28, 4 }
  0xab   : > { %v692_v42 = vor.u32 %v691_v36, %v3056_v61  ;;  %v975_v36 = vrot.slane %v973_v23, 4 }
  0xac   : > { %v641_v5 = vpop.permute.xlu1 %640  ;;  %v2053_v55 = vld [vmem:[#allocation2 + $0x40] sm:$0xf]  ;;  %v775_v59 = vpop.permute.xlu2 %774 }
  0xad   : > { %655 = vst.msk [vmem:[#allocation2 + $0x6c] sm:$0xf] %vm277_vm8, %v641_v5  ;;  %v2054_v58 = vor.u32 %v2372_v41, %v2053_v55  ;;  %v417_v62 = vpop.permute.xlu0 %416  ;;  %v1080_v41 = vld [vmem:[%s2499_s17 + $0xc] sm:$0xf]  ;;  %v693_v44 = vrot.slane %v692_v42, 4  ;;  %v705_v5 = vshll.u32 %v662_v49, 16 }
  0xae   : > { %431 = vst.msk [vmem:[#allocation2 + $0x64] sm:$0xf] %vm277_vm8, %v417_v62  ;;  %v2369_v18 = vld [vmem:[#allocation2 + $0x4c] sm:$0xf]  ;;  %v3129_v62 = vld [vmem:[%s2499_s17 + $0x14] sm:$0xf] }
  0xaf   : > { %1739 = vmatmul.bf16.gmra.mxu0 %v2054_v58  ;;  %792 = vst.msk [vmem:[#allocation2 + $0x10] sm:$0xf] %vm277_vm8, %v775_v59  ;;  %v698_v53 = vsel %vm2520_vm5, %v693_v44, %v697_v46  ;;  %v971_v58 = vsel %vm2501_vm2, %v969_v47, %v970_v48  ;;  %v702_v59 = vor.u32 %v701_v54, %v697_v46  ;;  %v707_v43 = vrot.slane %v705_v5, 5 }
  0xb0   : > { %1086 = vst.msk [vmem:[#allocation2 + $0x3c] sm:$0xf] %vm178_vm3, %v1080_v41  ;;  %v823_v52 = vrot.slane %v3129_v62, 6  ;;  %v727_v48 = vrot.slane %v725_v31, 5 }
  0xb1   : > { %737 = vst.msk [vmem:[#allocation2 + $0x50] sm:$0xf] %vm178_vm3, %v698_v53  ;;  %v703_v61 = vrot.slane %v702_v59, 4  ;;  %v804_v53 = vld [vmem:[%s2499_s17 + $0x1c] sm:$0x3] }
  0xb2   : > { %987 = vst.msk [vmem:[#allocation2 + $0x78] sm:$0xf] %vm178_vm3, %v971_v58  ;;  %v824_v14 = vsel %vm2744_vm7, %v822_v6, %v823_v52  ;;  %v829_v5 = vrot.slane %v804_v53, 6  ;;  %v825_v0 = vrot.slane %v823_v52, 4  ;;  %v1084_v6 = vld [vmem:[%s2499_s17 + $0x1c] sm:$0xf] }
  0xb3   : > { %v708_v4 = vsel %vm2520_vm5, %v703_v61, %v707_v43  ;;  %840 = vst.msk [vmem:[#allocation2 + $0x74] sm:$0xf] %vm178_vm3, %v824_v14  ;;  %v2371_v14 = vld [vmem:[#allocation2 + $0x5c] sm:$0xf] }
  0xb4   : > { %v527_v13 = vpop.permute.xlu1 %526  ;;  %v2063_v21 = vld [vmem:[#allocation2 + $0x68] sm:$0xf0]  ;;  %v924_v27 = vpop.permute.xlu2 %923  ;;  %738 = vst.msk [vmem:[#allocation2 + $0x70] sm:$0xf] %vm178_vm3, %v708_v4 }
  0xb5   : > { %540 = vst.msk [vmem:[#allocation2 + $0x88] sm:$0xf] %vm277_vm8, %v527_v13  ;;  %v2066_v24 = vor.u32 %v2369_v18, %v2063_v21  ;;  %v268_v30 = vpop.permute.xlu0 %267  ;;  %v2055_v32 = vld [vmem:[#allocation2 + $0x60] sm:$0xf0]  ;;  %v711_v13 = vrot.slane %v709_v1, 4 }
  0xb6   : > { %282 = vst.msk [vmem:[#allocation2 + $0x80] sm:$0xf] %vm277_vm8, %v268_v30  ;;  %v2058_v38 = vor.u32 %v2368_v22, %v2055_v32  ;;  %v974_v30 = vsel %vm2501_vm2, %v972_v20, %v973_v23  ;;  %v2037_v63 = vld [vmem:[#allocation2 + $0x10] sm:$0xf] }
  0xb7   : > { %1811 = vmatmul.bf16.gmra.mxu3 %v2066_v24  ;;  %940 = vst.msk [vmem:[#allocation2 + $0x34] sm:$0xf] %vm277_vm8, %v924_v27  ;;  %v715_v24 = vshll.u32 %v663_v16, 16  ;;  %v1082_v27 = vld [vmem:[%s2499_s17 + $0x14] sm:$0xf]  ;;  %v712_v45 = vor.u32 %v711_v13, %v707_v43 }
  0xb8   : > { %1763 = vmatmul.bf16.gmra.mxu1 %v2058_v38  ;;  %988 = vst.msk [vmem:[#allocation2 + $0x98] sm:$0xf] %vm178_vm3, %v974_v30  ;;  %v976_v38 = vrot.slane %v951_v33, 7 }
  0xb9   : > { %v717_v32 = vrot.slane %v715_v24, 5  ;;  %v713_v34 = vrot.slane %v712_v45, 4  ;;  %1088 = vst.msk [vmem:[#allocation2 + $0x7c] sm:$0xf] %vm178_vm3, %v1082_v27 }
  0xba   : > { %v977_v46 = vsel %vm2501_vm2, %v975_v36, %v976_v38  ;;  %vm1716_vm2 = vcmask 523264   ;;  %1090 = vst.msk [vmem:[#allocation2 + $0xbc] sm:$0xf] %vm178_vm3, %v1084_v6 }
  0xbb   : > { %v718_v41 = vsel %vm2520_vm5, %v713_v34, %v717_v32  ;;  %v722_v42 = vor.u32 %v721_v39, %v717_v32  ;;  %989 = vst.msk [vmem:[#allocation2 + $0xb8] sm:$0xf] %vm178_vm3, %v977_v46 }
  0xbc   : > { %v270_v51 = vpop.permute.xlu1 %269  ;;  %v2093_v50 = vld [vmem:[#allocation2 + $0x88] sm:$0xf]  ;;  %v779_v56 = vpop.permute.xlu2 %778  ;;  %739 = vst.msk [vmem:[#allocation2 + $0x90] sm:$0xf] %vm178_vm3, %v718_v41 }
  0xbd   : > { %283 = vst.msk [vmem:[#allocation2 + $0xa0] sm:$0xf] %vm277_vm8, %v270_v51  ;;  %v2094_v55 = vor.u32 %v2381_v3, %v2093_v50  ;;  %v645_v57 = vpop.permute.xlu0 %644  ;;  %v2085_v7 = vld [vmem:[#allocation2 + $0x80] sm:$0xf]  ;;  %v2087_v3 = vld [vmem:[#allocation2 + $0xa0] sm:$0xf0] }
  0xbe   : > { %657 = vst.msk [vmem:[#allocation2 + $0xac] sm:$0xf] %vm277_vm8, %v645_v57  ;;  %v723_v47 = vrot.slane %v722_v42, 4  ;;  %v803_v51 = vld [vmem:[%s2499_s17 + $0x18] sm:$0xf] }
  0xbf   : > { %1792 = vmatmul.bf16.gmra.mxu2 %v2094_v55  ;;  %794 = vst.msk [vmem:[#allocation2 + $0x50] sm:$0xf] %vm277_vm8, %v779_v56  ;;  %v826_v54 = vrot.slane %v803_v51, 6  ;;  %v1083_v55 = vld [vmem:[%s2499_s17 + $0x18] sm:$0xf] }
  0xc0   : > { %v728_v50 = vsel %vm2520_vm5, %v723_v47, %v727_v48  ;;  %v2363_v56 = vld [vmem:[#allocation2 + $0x1c] sm:$0xf]  ;;  %1089 = vst.msk [vmem:[#allocation2 + $0x9c] sm:$0xf] %vm178_vm3, %v1083_v55  ;;  %v2039_v8 = vld [vmem:[#allocation2 + $0x30] sm:$0xf0] }
  0xc1   : > { %740 = vst.msk [vmem:[#allocation2 + $0xb0] sm:$0xf] %vm178_vm3, %v728_v50  ;;  %v2047_v57 = vld [vmem:[#allocation2 + $0x38] sm:$0xf0]  ;;  %v828_v58 = vrot.slane %v826_v54, 4  ;;  %v827_v59 = vsel %vm2744_vm7, %v825_v0, %v826_v54 }
  0xc2   : > { %841 = vst.msk [vmem:[#allocation2 + $0x94] sm:$0xf] %vm178_vm3, %v827_v59  ;;  %v2050_v1 = vor.u32 %v2363_v56, %v2047_v57  ;;  %v2079_v16 = vld [vmem:[#allocation2 + $0x78] sm:$0xf0] }
  0xc3   : > { %v830_v61 = vsel %vm2744_vm7, %v828_v58, %v829_v5  ;;  %v2082_v9 = vor.u32 %v2371_v14, %v2079_v16  ;;  %v2111_v32 = vld [vmem:[#allocation2 + $0xb8] sm:$0xf0] }
  0xc4   : > { %v419_v12 = vpop.permute.xlu1 %418  ;;  %v2380_v37 = vld [vmem:[#allocation2 + $0x9c] sm:$0xf0]  ;;  %v928_v18 = vpop.permute.xlu2 %927  ;;  %842 = vst.msk [vmem:[#allocation2 + $0xb4] sm:$0xf] %vm178_vm3, %v830_v61 }
  0xc5   : > { %432 = vst.msk [vmem:[#allocation2 + $0x84] sm:$0xf] %vm277_vm8, %v419_v12  ;;  %v2086_v17 = vor.u32 %v2380_v37, %v2085_v7  ;;  %v1056_v21 = vpop.permute.xlu0 %1055  ;;  %v2095_v22 = vld [vmem:[#allocation2 + $0xa8] sm:$0xf0] }
  0xc6   : > { %1073 = vst.msk [vmem:[#allocation2 + $0x18] sm:$0xf] %vm277_vm8, %v1056_v21  ;;  %v2098_v25 = vor.u32 %v2377_v15, %v2095_v22  ;;  %v2069_v21 = vld [vmem:[#allocation2 + $0x50] sm:$0xf] }
  0xc7   : > { %1744 = vmatmul.bf16.gmra.mxu0 %v2086_v17  ;;  %942 = vst.msk [vmem:[#allocation2 + $0x74] sm:$0xf] %vm277_vm8, %v928_v18  ;;  %v2379_v30 = vld [vmem:[#allocation2 + $0x9c] sm:$0xf] }
  0xc8   : > { %1816 = vmatmul.bf16.gmra.mxu3 %v2098_v25  ;;  %v2114_v39 = vor.u32 %v2379_v30, %v2111_v32 }
  0xcc   : > { %v1058_v35 = vpop.permute.xlu1 %1057  ;;  %v2376_v29 = vld [vmem:[#allocation2 + $0x84] sm:$0xf]  ;;  %v783_v44 = vpop.permute.xlu2 %782 }
  0xcd   : > { %1074 = vst.msk [vmem:[#allocation2 + $0x38] sm:$0xf] %vm277_vm8, %v1058_v35  ;;  %v2090_v11 = vor.u32 %v2376_v29, %v2087_v3  ;;  %v777_v49 = vpop.permute.xlu0 %776  ;;  %v2045_v43 = vld [vmem:[#allocation2 + $0x18] sm:$0xf] }
  0xce   : > { %796 = vst.msk [vmem:[#allocation2 + $0x90] sm:$0xf] %vm277_vm8, %v783_v44  ;;  %v2071_v24 = vld [vmem:[#allocation2 + $0x70] sm:$0xf0] }
  0xcf   : > { %793 = vst.msk [vmem:[#allocation2 + $0x30] sm:$0xf] %vm277_vm8, %v777_v49  ;;  %1768 = vmatmul.bf16.gmra.mxu1 %v2090_v11 }
  0xd4   : > { %v922_v26 = vpop.permute.xlu1 %921  ;;  %v2367_v60 = vld [vmem:[#allocation2 + $0x34] sm:$0xf0]  ;;  %v932_v52 = vpop.permute.xlu2 %931 }
  0xd5   : > { %939 = vst.msk [vmem:[#allocation2 + $0x14] sm:$0xf] %vm277_vm8, %v922_v26  ;;  %v2046_v62 = vor.u32 %v2367_v60, %v2045_v43  ;;  %v1060_v2 = vpop.permute.xlu0 %1059  ;;  %v2101_v3 = vld [vmem:[#allocation2 + $0x90] sm:$0xf]  ;;  %v3204_v26 = vld [vmem:[%s3251_s2] ss:$0 sm:$0xff] }
  0xd6   : > { %v2366_v4 = vld [vmem:[#allocation2 + $0x2c] sm:$0xf0]  ;;  %1075 = vst.msk [vmem:[#allocation2 + $0x58] sm:$0xf] %vm277_vm8, %v1060_v2 }
  0xd7   : > { %1878 = vmatmul.bf16.vlgmr.msrb.gmra.mxu2 %v2046_v62  ;;  %v2038_v7 = vor.u32 %v2366_v4, %v2037_v63  ;;  %944 = vst.msk [vmem:[#allocation2 + $0xb4] sm:$0xf] %vm277_vm8, %v932_v52 }
  0xd8   : > { %2355 = vmatmul.msk.bf16.vlgmr.msrb.gmra.mxu3 %vm1716_vm2, %v2050_v1 }
  0xd9   : > { %1830 = vmatmul.bf16.vlgmr.msrb.gmra.mxu0 %v2038_v7 }
  0xdc   : > { %v1062_v10 = vpop.permute.xlu1 %1061  ;;  %v2362_v12 = vld [vmem:[#allocation2 + $0x14] sm:$0xf] }
  0xdd   : > { %1076 = vst.msk [vmem:[#allocation2 + $0x78] sm:$0xf] %vm277_vm8, %v1062_v10  ;;  %v2042_v37 = vor.u32 %v2362_v12, %v2039_v8  ;;  %v781_v15 = vpop.permute.xlu0 %780  ;;  %v2077_v18 = vld [vmem:[#allocation2 + $0x58] sm:$0xf] }
  0xde   : > { %795 = vst.msk [vmem:[#allocation2 + $0x70] sm:$0xf] %vm277_vm8, %v781_v15  ;;  %v2103_v42 = vld [vmem:[#allocation2 + $0xb0] sm:$0xf0] }
  0xdf   : > { %1854 = vmatmul.bf16.vlgmr.msrb.gmra.mxu1 %v2042_v37 }
  0xe4   : > { %v926_v17 = vpop.permute.xlu1 %925  ;;  %v2375_v19 = vld [vmem:[#allocation2 + $0x74] sm:$0xf0] }
  0xe5   : > { %941 = vst.msk [vmem:[#allocation2 + $0x54] sm:$0xf] %vm277_vm8, %v926_v17  ;;  %v2078_v20 = vor.u32 %v2375_v19, %v2077_v18  ;;  %v1064_v13 = vpop.permute.xlu0 %1063  ;;  %v2374_v22 = vld [vmem:[#allocation2 + $0x6c] sm:$0xf0] }
  0xe6   : > { %1077 = vst.msk [vmem:[#allocation2 + $0x98] sm:$0xf] %vm277_vm8, %v1064_v13  ;;  %v2070_v23 = vor.u32 %v2374_v22, %v2069_v21 }
  0xe7   : > { %1883 = vmatmul.bf16.gmra.mxu2 %v2078_v20 }
  0xe8   : > { %2356 = vmatmul.msk.bf16.gmra.mxu3 %vm1716_vm2, %v2082_v9 }
  0xe9   : > { %1835 = vmatmul.bf16.gmra.mxu0 %v2070_v23 }
  0xec   : > { %v1066_v25 = vpop.permute.xlu1 %1065  ;;  %v2370_v27 = vld [vmem:[#allocation2 + $0x54] sm:$0xf] }
  0xed   : > { %1078 = vst.msk [vmem:[#allocation2 + $0xb8] sm:$0xf] %vm277_vm8, %v1066_v25  ;;  %v2074_v45 = vor.u32 %v2370_v27, %v2071_v24  ;;  %v785_v28 = vpop.permute.xlu0 %784  ;;  %v2109_v34 = vld [vmem:[#allocation2 + $0x98] sm:$0xf] }
  0xee   : > { %797 = vst.msk [vmem:[#allocation2 + $0xb0] sm:$0xf] %vm277_vm8, %v785_v28 }
  0xef   : > { %1859 = vmatmul.bf16.gmra.mxu1 %v2074_v45 }
  0xf4   : > { %v930_v33 = vpop.permute.xlu1 %929  ;;  %v2383_v36 = vld [vmem:[#allocation2 + $0xb4] sm:$0xf0] }
  0xf5   : > { %943 = vst.msk [vmem:[#allocation2 + $0x94] sm:$0xf] %vm277_vm8, %v930_v33  ;;  %v2110_v38 = vor.u32 %v2383_v36, %v2109_v34  ;;  %v2382_v40 = vld [vmem:[#allocation2 + $0xac] sm:$0xf0] }
  0xf6   : > { %v2102_v41 = vor.u32 %v2382_v40, %v2101_v3 }
  0xf7   : > { %1888 = vmatmul.bf16.gmra.mxu2 %v2110_v38 }
  0xf8   : > { %2357 = vmatmul.msk.bf16.gmra.mxu3 %vm1716_vm2, %v2114_v39 }
  0xf9   : > { %1840 = vmatmul.bf16.gmra.mxu0 %v2102_v41 }
  0xfc   : > { %v2378_v31 = vld [vmem:[#allocation2 + $0x94] sm:$0xf] }
  0xfd   : > { %v2106_v35 = vor.u32 %v2378_v31, %v2103_v42 }
  0xff   : > { %1864 = vmatmul.bf16.gmra.mxu1 %v2106_v35 }
 0x102   : > { %v1807_v47 = vpop.f32.mrf.mxu3 }
 0x10a   : > { %v1809_v50 = vpop.f32.mrf.mxu3 }
 0x11c   : > { %v1735_v29 = vpop.f32.mrf.mxu0  ;;  %v1783_v11 = vpop.f32.mrf.mxu2 }
 0x11d   : > { %v1736_v62 = vadd.f32 %v3204_v26, %v1735_v29 }
 0x124   : > { %v1737_v44 = vpop.f32.mrf.mxu0  ;;  %v1759_v46 = vpop.f32.mrf.mxu1 }
 0x125   : > { %v1785_v48 = vpop.f32.mrf.mxu2  ;;  %v1760_v63 = vadd.f32 %v1759_v46, %v1736_v62  ;;  %v1738_v7 = vadd.f32 %v3204_v26, %v1737_v44 }
 0x127   : > { %v1784_v2 = vadd.f32 %v1783_v11, %v1760_v63 }
 0x129   : > { %v1808_v10 = vadd.f32 %v1807_v47, %v1784_v2 }
 0x12c   : > { %v1740_v49 = vpop.f32.mrf.mxu0  ;;  %v1761_v51 = vpop.f32.mrf.mxu1 }
 0x12d   : > { %v1788_v53 = vpop.f32.mrf.mxu2  ;;  %v1762_v8 = vadd.f32 %v1761_v51, %v1738_v7  ;;  %v1741_v19 = vadd.f32 %v3204_v26, %v1740_v49 }
 0x12f   : > { %v1786_v14 = vadd.f32 %v1785_v48, %v1762_v8 }
 0x131   : > { %v1810_v21 = vadd.f32 %v1809_v50, %v1786_v14 }
 0x134   : > { %v1742_v0 = vpop.f32.mrf.mxu0 }
 0x135   : > { %v1764_v54 = vpop.f32.mrf.mxu1  ;;  %v1790_v55 = vpop.f32.mrf.mxu2  ;;  %v1743_v34 = vadd.f32 %v3204_v26, %v1742_v0 }
 0x136   : > { %v1765_v9 = vadd.f32 %v1764_v54, %v1741_v19 }
 0x138   : > { %v1789_v27 = vadd.f32 %v1788_v53, %v1765_v9 }
 0x13a   : > { %v1812_v5 = vpop.f32.mrf.mxu3 }
 0x13b   : > { %v1813_v38 = vadd.f32 %v1812_v5, %v1789_v27 }
 0x13d   : > { %v1766_v56 = vpop.f32.mrf.mxu1 }
 0x13e   : > { %v1767_v39 = vadd.f32 %v1766_v56, %v1743_v34 }
 0x140   : > { %v1791_v35 = vadd.f32 %v1790_v55, %v1767_v39 }
 0x142   : > { %v1814_v58 = vpop.f32.mrf.mxu3  ;;  %v3199_v59 = vpop.f32.mrf.mxu2 }
 0x143   : > { %v1815_v51 = vadd.f32 %v1814_v58, %v1791_v35 }
 0x144   : > { %v1745_v57 = vpop.f32.mrf.mxu0 }
 0x145   : > { %v1746_v48 = vadd.f32 %v3204_v26, %v1745_v57 }
 0x14a   : > { %v3211_v1 = vpop.f32.mrf.mxu2 }
 0x14b   : > { %v3206_v60 = vpop.f32.mrf.mxu3 }
 0x14c   : > { %v1769_v43 = vpop.f32.mrf.mxu1  ;;  %v3208_v61 = vpop.f32.mrf.mxu0 }
 0x14d   : > { %v1770_v50 = vadd.f32 %v1769_v43, %v1746_v48  ;;  %v1748_v57 = vadd.f32 %v3204_v26, %v3208_v61 }
 0x14f   : > { %v1794_v55 = vadd.f32 %v3199_v59, %v1770_v50 }
 0x151   : > { %v1818_v58 = vadd.f32 %v3206_v60, %v1794_v55 }
 0x153   : > { %v3215_v4 = vpop.f32.mrf.mxu3 }
 0x154   : > { %v3213_v52 = vpop.f32.mrf.mxu1 }
 0x155   : > { %v1772_v43 = vadd.f32 %v3213_v52, %v1748_v57 }
 0x156   : > { %v1831_v6 = vpop.f32.mrf.mxu0 }
 0x157   : > { %v1832_v37 = vadd.f32 %v1831_v6, %v1808_v10  ;;  %v1796_v14 = vadd.f32 %v3211_v1, %v1772_v43 }
 0x159   : > { %v1820_v60 = vadd.f32 %v3215_v4, %v1796_v14 }
 0x15a   : > { %v1879_v12 = vpop.f32.mrf.mxu2 }
 0x15b   : > { %v1903_v17 = vpop.f32.mrf.mxu3 }
 0x15c   : > { %v1855_v15 = vpop.f32.mrf.mxu1 }
 0x15d   : > { %v1856_v16 = vadd.f32 %v1855_v15, %v1832_v37 }
 0x15e   : > { %v1833_v18 = vpop.f32.mrf.mxu0 }
 0x15f   : > { %v1880_v20 = vadd.f32 %v1879_v12, %v1856_v16  ;;  %v1834_v24 = vadd.f32 %v1833_v18, %v1810_v21 }
 0x161   : > { %v1904_v13 = vadd.f32 %v1903_v17, %v1880_v20 }
 0x162   : > { %v1881_v22 = vpop.f32.mrf.mxu2 }
 0x163   : > { %vm1918_vm5 = vcmp.ge.f32.partialorder %v1904_v13, 0.0  ;;  %v1924_v23 = vmul.f32 0.1, %v1904_v13  ;;  %v1905_v30 = vpop.f32.mrf.mxu3 }
 0x164   : > { %v1857_v25 = vpop.f32.mrf.mxu1 }
 0x165   : > { %v1930_v45 = vsel %vm1918_vm5, %v1904_v13, %v1924_v23  ;;  %v1858_v28 = vadd.f32 %v1857_v25, %v1834_v24 }
 0x166   : > { %v1936_v32 = vpack.c.bf16 %v1930_v45, %v1930_v45  ;;  %v1836_v33 = vpop.f32.mrf.mxu0 }
 0x167   : > { %v1882_v36 = vadd.f32 %v1881_v22, %v1858_v28  ;;  %v1837_v42 = vadd.f32 %v1836_v33, %v1813_v38 }
 0x168   : > { %1943 = vst.msk [vmem:[%s3223_s25] sm:$0xf] %vm1942_vm9, %v1936_v32 }
 0x169   : > { %v1906_v3 = vadd.f32 %v1905_v30, %v1882_v36 }
 0x16a   : > { %v1884_v40 = vpop.f32.mrf.mxu2 }
 0x16b   : > { %vm1919_vm10 = vcmp.ge.f32.partialorder %v1906_v3, 0.0  ;;  %v1925_v41 = vmul.f32 0.1, %v1906_v3  ;;  %v1908_v44 = vpop.f32.mrf.mxu3 }
 0x16c   : > { %v1860_v31 = vpop.f32.mrf.mxu1 }
 0x16d   : > { %v1931_v29 = vsel %vm1919_vm10, %v1906_v3, %v1925_v41  ;;  %v1861_v11 = vadd.f32 %v1860_v31, %v1837_v42 }
 0x16e   : > { %v1937_v46 = vpack.c.bf16 %v1931_v29, %v1931_v29  ;;  %v1838_v47 = vpop.f32.mrf.mxu0 }
 0x16f   : > { %v1885_v49 = vadd.f32 %v1884_v40, %v1861_v11  ;;  %v1839_v0 = vadd.f32 %v1838_v47, %v1815_v51 }
 0x170   : > { %1944 = vst.msk [vmem:[%s3223_s25 + $0x4] sm:$0xf] %vm1942_vm9, %v1937_v46 }
 0x171   : > { %v1909_v53 = vadd.f32 %v1908_v44, %v1885_v49 }
 0x172   : > { %v1886_v54 = vpop.f32.mrf.mxu2 }
 0x173   : > { %vm1920_vm11 = vcmp.ge.f32.partialorder %v1909_v53, 0.0  ;;  %v1926_v5 = vmul.f32 0.1, %v1909_v53  ;;  %v1910_v2 = vpop.f32.mrf.mxu3 }
 0x174   : > { %v1862_v56 = vpop.f32.mrf.mxu1 }
 0x175   : > { %v1932_v62 = vsel %vm1920_vm11, %v1909_v53, %v1926_v5  ;;  %v1863_v63 = vadd.f32 %v1862_v56, %v1839_v0 }
 0x176   : > { %v1938_v6 = vpack.c.bf16 %v1932_v62, %v1932_v62  ;;  %v1841_v7 = vpop.f32.mrf.mxu0 }
 0x177   : > { %v1887_v8 = vadd.f32 %v1886_v54, %v1863_v63  ;;  %v1842_v59 = vadd.f32 %v1841_v7, %v1818_v58 }
 0x178   : > { %1945 = vst.msk [vmem:[%s3223_s25 + $0x8] sm:$0xf] %vm1942_vm9, %v1938_v6 }
 0x179   : > { %v1911_v10 = vadd.f32 %v1910_v2, %v1887_v8 }
 0x17a   : > { %v1889_v37 = vpop.f32.mrf.mxu2 }
 0x17b   : > { %vm1921_vm12 = vcmp.ge.f32.partialorder %v1911_v10, 0.0  ;;  %v1927_v12 = vmul.f32 0.1, %v1911_v10  ;;  %v1913_v26 = vpop.f32.mrf.mxu3 }
 0x17c   : > { %v1865_v15 = vpop.f32.mrf.mxu1 }
 0x17d   : > { %v1933_v16 = vsel %vm1921_vm12, %v1911_v10, %v1927_v12  ;;  %v1866_v17 = vadd.f32 %v1865_v15, %v1842_v59 }
 0x17e   : > { %v1939_v18 = vpack.c.bf16 %v1933_v16, %v1933_v16  ;;  %v1843_v19 = vpop.f32.mrf.mxu0 }
 0x17f   : > { %v1890_v61 = vadd.f32 %v1889_v37, %v1866_v17  ;;  %v1844_v9 = vadd.f32 %v1843_v19, %v1820_v60 }
 0x180   : > { %1946 = vst.msk [vmem:[%s3223_s25 + $0xc] sm:$0xf] %vm1942_vm9, %v1939_v18 }
 0x181   : > { %v1914_v52 = vadd.f32 %v1913_v26, %v1890_v61 }
 0x182   : > { %v1891_v23 = vpop.f32.mrf.mxu2 }
 0x183   : > { %vm1922_vm13 = vcmp.ge.f32.partialorder %v1914_v52, 0.0  ;;  %v1928_v20 = vmul.f32 0.1, %v1914_v52  ;;  %v1915_v25 = vpop.f32.mrf.mxu3 }
 0x184   : > { %v1867_v13 = vpop.f32.mrf.mxu1 }
 0x185   : > { %v1934_v21 = vsel %vm1922_vm13, %v1914_v52, %v1928_v20  ;;  %v1868_v22 = vadd.f32 %v1867_v13, %v1844_v9 }
 0x186   : > { %v1940_v1 = vpack.c.bf16 %v1934_v21, %v1934_v21 }
 0x187   : > { %v1892_v24 = vadd.f32 %v1891_v23, %v1868_v22 }
 0x188   : > { %1947 = vst.msk [vmem:[%s3223_s25 + $0x10] sm:$0xf] %vm1942_vm9, %v1940_v1 }
 0x189   : > { %v1916_v27 = vadd.f32 %v1915_v25, %v1892_v24 }
 0x18b   : > { %vm1923_vm14 = vcmp.ge.f32.partialorder %v1916_v27, 0.0  ;;  %v1929_v45 = vmul.f32 0.1, %v1916_v27 }
 0x18d   : > { %v1935_v28 = vsel %vm1923_vm14, %v1916_v27, %v1929_v45 }
 0x18e   : > { %v1941_v30 = vpack.c.bf16 %v1935_v28, %v1935_v28 }
 0x190   : > { %1948 = vst.msk [vmem:[%s3223_s25 + $0x14] sm:$0xf] %vm1942_vm9, %v1941_v30 }
 0x191 PF: > { %s13_s12 = sadd.s32 1, %s2462_s12  }
 0x192   : > { %p10_p4 = scmp.ge.s32.totalorder %s13_s12, 4  }
 0x194   :  { %12 = sbr.rel (!%p10_p4) target bundleno = 1 (0x1), region = 62 }

// kernel: _lambda_.52
= control target key start
LH: loop header
LB: loop body
LE: loop exit
PB: predicated region body
PF: predicated region fallthrough
CT: control target
= control target key end

     0   :  { %s981_s12 = smov 0   ;;  %s1240_s0 = inlined_call_operand.vmem [shape: bf16[2,33,32], index: 0, kind: input, shape index: {}]   ;;  %s1241_s1 = inlined_call_operand.vmem [shape: bf16[288,32], index: 1, kind: input, shape index: {}]   ;;  %s1242_s2 = inlined_call_operand.vmem [shape: f32[1,32], index: 2, kind: input, shape index: {}]   ;;  %s1243_s3 = inlined_call_operand.vmem [shape: bf16[2,24,32], index: 3, kind: output, shape index: {}]  }
   0x1 LB: > { %s808_s13 = sadd.s32 4294967295, %s956_s12   ;;  %p812_p0 = scmp.ge.s32.totalorder %s956_s12, 1  ;;  %s956_s12 = sphi %s981_s12, %s13_s12  }
   0x2   : > { %p137_p1 = scmp.lt.s32.totalorder %s956_s12, 3 }
   0x4   : > { %p138_p2 = pnand %p812_p0, %p137_p1 }
   0x5   : > { %p161_p3 = scmp.lt.s32.totalorder (!%p138_p2), %s808_s13, 1  ;;  %s958_s18 = smov (!%p138_p2), 64  }
   0x6   : > { %141 = sbr.rel (%p138_p2) target bundleno = 337 (0x151), region = 32  ;;  %s959_s19 = smov (!%p138_p2), 32  }
   0x7   : > { %s960_s20 = smov (!%p138_p2), 96  }
   0xb   : > { %s1259_s13 = smov (!%p161_p3, %s808_s13), 1  ;;  %vm417_vm0 = vcmask 1040384   ;;  %vm418_vm1 = vcmask 1044484   ;;  %vm356_vm3 = vsmask.f32 1280  ;;  %vm241_vm12 = vcmask 1042432  }
   0xc   : > { %s936_s14 = smul.u32 20, %s1259_s13  ;;  %vm997_vm2 = vmor %vm417_vm0, %vm418_vm1  ;;  %vm357_vm4 = vsmask.f32 5392  ;;  %vm183_vm5 = vsmask.f32 3328  ;;  %vm242_vm13 = vcmask 1046532  }
   0xd   : > { %vm1017_vm6 = vmor %vm356_vm3, %vm357_vm4  ;;  %vm184_vm7 = vsmask.f32 7440  ;;  %vm446_vm8 = vsmask.f32 256  ;;  %vm447_vm9 = vsmask.f32 4368 }
   0xe   : > { %s995_s17 = scalar_lea.vmem %s1240_s0, %s936_s14  ;;  %vm1039_vm10 = vmor %vm446_vm8, %vm447_vm9  ;;  %vm271_vm15 = vsmask.f32 2304  ;;  %vm272_vm0 = vsmask.f32 6416  ;;  %vm334_vm3 = vcmask 1045508   ;;  %vm321_vm8 = vcmask 1044224  }
   0xf   : > { %v409_v1 = vld [vmem:[%s995_s17] sm:$0x8]  ;;  %v410_v2 = vld [vmem:[%s995_s17 + $0x4] sm:$0xf]  ;;  %v1006_v11 = vld [vmem:[%s995_s17 + $0x8] sm:$0xf] }
  0x10   : > { %v352_v3 = vld [vmem:[%s995_s17] sm:$0xc]  ;;  %v817_v4 = vrot.slane %v409_v1, 11  ;;  %v422_v5 = vrot.slane %v410_v2, 7  ;;  %v353_v6 = vld [vmem:[%s995_s17 + $0x4] sm:$0xf]  ;;  %vm1045_vm11 = vmor %vm183_vm5, %vm184_vm7 }
  0x11   : > { %v360_v7 = vshrl.u32 %v352_v3, 16  ;;  %v363_v8 = vshll.u32 %v352_v3, 16  ;;  %v369_v9 = vshrl.u32 %v353_v6, 16  ;;  %v372_v10 = vshll.u32 %v353_v6, 16  ;;  %v354_v12 = vld [vmem:[%s995_s17 + $0x8] sm:$0xf]  ;;  %vm1067_vm14 = vmor %vm241_vm12, %vm242_vm13 }
  0x12   : > { %v423_v13 = vsel %vm997_vm2, %v817_v4, %v422_v5  ;;  %v424_v16 = vrot.slane %v422_v5, 4  ;;  %v180_v17 = vld [vmem:[%s995_s17 + $0x4] sm:$0xf]  ;;  %v425_v20 = vrot.slane %v1006_v11, 7  ;;  %v379_v21 = vshrl.u32 %v354_v12, 16  ;;  %vm1106_vm1 = vmor %vm271_vm15, %vm272_vm0  ;;  %s937_s7 = smul.u32 12, %s1259_s13 }
  0x13   : > { %v362_v14 = vrot.slane %v360_v7, 6  ;;  %v365_v15 = vrot.slane %v363_v8, 7  ;;  %430 = vrot.lane.b32.xlu1 %v423_v13, %s958_s18  ;;  %v371_v18 = vrot.slane %v369_v9, 6  ;;  %v374_v19 = vrot.slane %v372_v10, 7  ;;  %v179_v26 = vld [vmem:[%s995_s17] sm:$0xf] }
  0x14   : > { %v382_v23 = vshll.u32 %v354_v12, 16  ;;  %v196_v24 = vshll.u32 %v180_v17, 16  ;;  %v200_v25 = vshrl.u32 %v180_v17, 16  ;;  %v381_v29 = vrot.slane %v379_v21, 6  ;;  %v181_v30 = vld [vmem:[%s995_s17 + $0x8] sm:$0xf]  ;;  %s170_s10 = scalar_lea.vmem %s1243_s3, %s937_s7 }
  0x15   : > { %v366_v22 = vor.u32 %v365_v15, %v362_v14  ;;  %v375_v28 = vor.u32 %v374_v19, %v371_v18  ;;  %v442_v31 = vld [vmem:[%s995_s17] sm:$0x8]  ;;  %v443_v36 = vld [vmem:[%s995_s17 + $0x4] sm:$0xf]  ;;  %v426_v37 = vsel %vm997_vm2, %v424_v16, %v425_v20  ;;  %v187_v38 = vshrl.u32 %v179_v26, 16 }
  0x16   : > { %v384_v33 = vrot.slane %v382_v23, 7  ;;  %v1023_v34 = vrot.slane %v196_v24, 5  ;;  %v202_v35 = vrot.slane %v200_v25, 4  ;;  %v206_v41 = vshll.u32 %v181_v30, 16  ;;  %v444_v50 = vld [vmem:[%s995_s17 + $0x8] sm:$0xf] }
  0x17   : > { %v367_v32 = vrot.slane %v366_v22, 4  ;;  %v190_v42 = vshll.u32 %v179_v26, 16  ;;  %v450_v43 = vshrl.u32 %v442_v31, 16  ;;  %v455_v44 = vshrl.u32 %v443_v36, 16  ;;  %v355_v1 = vld [vmem:[%s995_s17 + $0xc] sm:$0x7] }
  0x18   : > { %v203_v40 = vor.u32 %v202_v35, %v1023_v34  ;;  %v458_v45 = vshll.u32 %v443_v36, 16  ;;  %v377_v46 = vrot.slane %v375_v28, 4  ;;  %v1034_v47 = vor.u32 %v384_v33, %v381_v29  ;;  %v233_v4 = vld [vmem:[%s995_s17] sm:$0xe]  ;;  %v234_v5 = vld [vmem:[%s995_s17 + $0x4] sm:$0xf] }
  0x19   : > { %v376_v39 = vsel %vm1017_vm6, %v367_v32, %v375_v28  ;;  %v189_v48 = vrot.slane %v187_v38, 4  ;;  %v192_v49 = vrot.slane %v190_v42, 5  ;;  %v818_v51 = vrot.slane %v450_v43, 11  ;;  %v182_v13 = vld [vmem:[%s995_s17 + $0xc] sm:$0x1]  ;;  %v924_v38 = vld [vmem:[%s1241_s1 + $0x70] sm:$0xff] }
  0x1a   : > { %397 = vrot.lane.b32.xlu0 %v376_v39, %s959_s19  ;;  %v457_v52 = vrot.slane %v455_v44, 7  ;;  %v204_v53 = vrot.slane %v203_v40, 4  ;;  %v208_v54 = vrot.slane %v206_v41, 5  ;;  %v210_v57 = vshrl.u32 %v181_v30, 16  ;;  %v269_v21 = vld [vmem:[%s995_s17 + $0x8] sm:$0xf] }
  0x1b   : > { %432 = vrot.lane.b32.xlu1 %v426_v37, %s958_s18  ;;  %v464_v59 = vshrl.u32 %v444_v50, 16  ;;  %v386_v60 = vsel %vm1017_vm6, %v377_v46, %v1034_v47  ;;  %v193_v61 = vor.u32 %v192_v49, %v189_v48  ;;  %v467_v62 = vshll.u32 %v444_v50, 16  ;;  %v412_v26 = vld [vmem:[%s995_s17 + $0xc] sm:$0x7]  ;;  %v925_v30 = vld [vmem:[%s1241_s1 + $0x78] sm:$0xff] }
  0x1c   : > { %v460_v58 = vor.u32 %v458_v45, %v457_v52  ;;  %v209_v3 = vsel %vm1045_vm11, %v204_v53, %v208_v54  ;;  %v462_v6 = vrot.slane %v457_v52, 4  ;;  %v212_v8 = vrot.slane %v210_v57, 4  ;;  %v270_v33 = vld [vmem:[%s995_s17 + $0xc] sm:$0x3]  ;;  %v235_v36 = vld [vmem:[%s995_s17 + $0x8] sm:$0xf]  ;;  %702 = vmatpush.bf16.msra.mxu1 %v925_v30 }
  0x1d   : > { %v1055_v2 = vrot.slane %v464_v59, 7  ;;  %v194_v9 = vrot.slane %v193_v61, 4  ;;  %v389_v10 = vshrl.u32 %v355_v1, 16  ;;  %v392_v12 = vshll.u32 %v355_v1, 16  ;;  %v267_v37 = vld [vmem:[%s995_s17] sm:$0xe] }
  0x1e   : > { %v461_v63 = vsel %vm1039_vm10, %v818_v51, %v460_v58  ;;  %v815_v14 = vrot.slane %v233_v4, 9  ;;  %v246_v15 = vrot.slane %v234_v5, 5  ;;  %v213_v18 = vor.u32 %v212_v8, %v208_v54  ;;  %v268_v41 = vld [vmem:[%s995_s17 + $0x4] sm:$0xf]  ;;  %v236_v42 = vld [vmem:[%s995_s17 + $0xc] sm:$0x1] }
  0x1f   : > { %480 = vrot.lane.b32.xlu2 %v461_v63, %s960_s20  ;;  %v469_v7 = vor.u32 %v467_v62, %v1055_v2  ;;  %v216_v19 = vshll.u32 %v182_v13, 16  ;;  %v199_v22 = vsel %vm1045_vm11, %v194_v9, %v1023_v34  ;;  %v391_v23 = vrot.slane %v389_v10, 6 }
  0x20   : > { %v394_v24 = vrot.slane %v392_v12, 7  ;;  %v247_v25 = vsel %vm1067_vm14, %v815_v14, %v246_v15  ;;  %v294_v28 = vshrl.u32 %v269_v21, 16  ;;  %v297_v29 = vshll.u32 %v269_v21, 16  ;;  %703 = vmatpush.bf16.msra.mxu1 %v924_v38  ;;  %v923_v21 = vld [vmem:[%s1241_s1 + $0x68] sm:$0xff] }
  0x21   : > { %v470_v17 = vsel %vm1039_vm10, %v462_v6, %v469_v7  ;;  %v214_v31 = vrot.slane %v213_v18, 4  ;;  %v218_v32 = vrot.slane %v216_v19, 5  ;;  %v387_v34 = vrot.slane %v1034_v47, 4  ;;  %v445_v7 = vld [vmem:[%s995_s17 + $0xc] sm:$0xf] }
  0x22   : > { %399 = vrot.lane.b32.xlu0 %v386_v60, %s959_s19  ;;  %v395_v35 = vor.u32 %v394_v24, %v391_v23  ;;  %v427_v39 = vrot.slane %v425_v20, 4  ;;  %v428_v40 = vrot.slane %v412_v26, 7  ;;  %v296_v43 = vrot.slane %v294_v28, 5  ;;  %v325_v23 = vld [vmem:[%s995_s17] sm:$0xc]  ;;  %v921_v28 = vld [vmem:[%s1241_s1 + $0x58] sm:$0xff] }
  0x23   : > { %222 = vrot.lane.b32.xlu1 %v209_v3, %s959_s19  ;;  %v299_v44 = vrot.slane %v297_v29, 6  ;;  %v304_v45 = vshrl.u32 %v270_v33, 16  ;;  %v307_v46 = vshll.u32 %v270_v33, 16  ;;  %v249_v47 = vrot.slane %v235_v36, 5  ;;  %v922_v26 = vld [vmem:[%s1241_s1 + $0x60] sm:$0xff]  ;;  %v920_v33 = vld [vmem:[%s1241_s1 + $0x50] sm:$0xff] }
  0x24   : > { %v219_v48 = vsel %vm1045_vm11, %v214_v31, %v218_v32  ;;  %v275_v49 = vshrl.u32 %v267_v37, 16  ;;  %v278_v50 = vshll.u32 %v267_v37, 16  ;;  %v396_v51 = vsel %vm1017_vm6, %v387_v34, %v395_v35  ;;  %704 = vmatpush.bf16.msra.mxu1 %v923_v21  ;;  %v327_v29 = vld [vmem:[%s995_s17 + $0x8] sm:$0xf]  ;;  %v173_v35 = vld [vmem:[%s995_s17 + $0x4] sm:$0xf] }
  0x25   : > { %v284_v52 = vshrl.u32 %v268_v41, 16  ;;  %v287_v53 = vshll.u32 %v268_v41, 16  ;;  %v252_v11 = vrot.slane %v236_v42, 5  ;;  %v429_v20 = vsel %vm997_vm2, %v427_v39, %v428_v40  ;;  %v174_v34 = vld [vmem:[%s995_s17 + $0x8] sm:$0xf]  ;;  %v917_v37 = vld [vmem:[%s1241_s1 + $0x38] sm:$0xff] }
  0x26   : > { %v300_v54 = vor.u32 %v299_v44, %v296_v43  ;;  %v306_v57 = vrot.slane %v304_v45, 5  ;;  %v309_v58 = vrot.slane %v307_v46, 6  ;;  %v251_v56 = vrot.slane %v249_v47, 4  ;;  %v919_v36 = vld [vmem:[%s1241_s1 + $0x48] sm:$0xff]  ;;  %928 = vmatpush.bf16.msra.mxu3 %v917_v37  ;;  %v172_v39 = vld [vmem:[%s995_s17] sm:$0xf]  ;;  %684 = vmatpush.bf16.msra.mxu0 %v917_v37 }
  0x27   : > { %482 = vrot.lane.b32.xlu2 %v470_v17, %s960_s20  ;;  %v248_v59 = vrot.slane %v246_v15, 4  ;;  %v277_v60 = vrot.slane %v275_v49, 5  ;;  %v280_v27 = vrot.slane %v278_v50, 6  ;;  %v286_v61 = vrot.slane %v284_v52, 5  ;;  %v918_v40 = vld [vmem:[%s1241_s1 + $0x40] sm:$0xff]  ;;  %v916_v41 = vld [vmem:[%s1241_s1 + $0x30] sm:$0xff] }
  0x28   : > { %v289_v62 = vrot.slane %v287_v53, 6  ;;  %v302_v0 = vrot.slane %v300_v54, 4  ;;  %v310_v63 = vor.u32 %v309_v58, %v306_v57  ;;  %v253_v5 = vsel %vm1067_vm14, %v251_v56, %v252_v11  ;;  %705 = vmatpush.bf16.msra.mxu1 %v922_v26  ;;  %v328_v42 = vld [vmem:[%s995_s17 + $0xc] sm:$0x3]  ;;  %v492_v46 = vld [vmem:[%s995_s17 + $0x4] sm:$0xf] }
  0x29   : > { %v250_v3 = vsel %vm1067_vm14, %v248_v59, %v249_v47  ;;  %v281_v4 = vor.u32 %v280_v27, %v277_v60  ;;  %v473_v10 = vshrl.u32 %v445_v7, 16  ;;  %v476_v15 = vshll.u32 %v445_v7, 16  ;;  %v915_v43 = vld [vmem:[%s1241_s1 + $0x28] sm:$0xff]  ;;  %v914_v52 = vld [vmem:[%s1241_s1 + $0x20] sm:$0xff]  ;;  %v913_v11 = vld [vmem:[%s1241_s1 + $0x18] sm:$0xff] }
  0x2a   : > { %220 = vrot.lane.b32.xlu0 %v199_v22, %s959_s19  ;;  %v290_v6 = vor.u32 %v289_v62, %v286_v61  ;;  %v311_v8 = vsel %vm1106_vm1, %v302_v0, %v310_v63  ;;  %v471_v17 = vrot.slane %v1055_v2, 4  ;;  %vm333_vm2 = vcmask 1041408   ;;  %v326_v2 = vld [vmem:[%s995_s17 + $0x4] sm:$0xf]  ;;  %929 = vmatpush.bf16.msra.mxu3 %v916_v41  ;;  %v493_v47 = vld [vmem:[%s995_s17 + $0x8] sm:$0xf] }
  0x2b   : > { %254 = vrot.lane.b32.xlu1 %v247_v25, %s958_s18  ;;  %v282_v9 = vrot.slane %v281_v4, 4  ;;  %v475_v14 = vrot.slane %v473_v10, 7  ;;  %vm1133_vm4 = vmor %vm333_vm2, %vm334_vm3  ;;  %vm175_vm5 = vcmask 257024   ;;  %v816_v55 = vrot.slane %v325_v23, 10  ;;  %685 = vmatpush.bf16.msra.mxu0 %v916_v41  ;;  %v927_v50 = vld [vmem:[%s1241_s1 + $0x88] sm:$0xff]  ;;  %v926_v53 = vld [vmem:[%s1241_s1 + $0x80] sm:$0xff] }
  0x2c   : > { %v292_v12 = vrot.slane %v290_v6, 4  ;;  %v338_v24 = vrot.slane %v326_v2, 6  ;;  %v341_v31 = vrot.slane %v327_v29, 6  ;;  %706 = vmatpush.bf16.msra.mxu1 %v921_v28  ;;  %178 = vst.msk [vmem:[#allocation2 + $0x18] sm:$0xf] %vm175_vm5, %v174_v34  ;;  %v344_v45 = vrot.slane %v328_v42, 6  ;;  %726 = vmatpush.bf16.msra.mxu2 %v927_v50 }
  0x2d   : > { %v291_v13 = vsel %vm1106_vm1, %v282_v9, %v290_v6  ;;  %v478_v18 = vor.u32 %v476_v15, %v475_v14  ;;  %177 = vst.msk [vmem:[#allocation2 + $0xc] sm:$0xf] %vm175_vm5, %v173_v35  ;;  %vm229_vm6 = vcmask 519424   ;;  %vm263_vm7 = vcmask 781824   ;;  %v912_v60 = vld [vmem:[%s1241_s1 + $0x10] sm:$0xff]  ;;  %v911_v27 = vld [vmem:[%s1241_s1 + $0x8] sm:$0xff] }
  0x2e   : > { %v301_v16 = vsel %vm1106_vm1, %v292_v12, %v300_v54  ;;  %v339_v25 = vsel %vm1133_vm4, %v816_v55, %v338_v24  ;;  %v340_v30 = vrot.slane %v338_v24, 4  ;;  %176 = vst.msk [vmem:[#allocation2] sm:$0xf] %vm175_vm5, %v172_v39  ;;  %v343_v44 = vrot.slane %v341_v31, 4  ;;  %930 = vmatpush.bf16.msra.mxu3 %v915_v43  ;;  %v494_v61 = vld [vmem:[%s995_s17 + $0xc] sm:$0xf] }
  0x2f   : > { %224 = vrot.lane.b32.xlu2 %v219_v48, %s959_s19  ;;  %v479_v19 = vsel %vm1039_vm10, %v471_v17, %v478_v18  ;;  %349 = vst.msk [vmem:[#allocation2 + $0x4] sm:$0xf] %vm175_vm5, %v339_v25  ;;  %686 = vmatpush.bf16.msra.mxu0 %v915_v43  ;;  %vm677_vm9 = vcmask 261120   ;;  %v910_v63 = vld [vmem:[%s1241_s1] sm:$0xff] }
  0x30   : > { %v342_v32 = vsel %vm1133_vm4, %v340_v30, %v341_v31  ;;  %707 = vmatpush.bf16.msra.mxu1 %v920_v33  ;;  %v345_v49 = vsel %vm1133_vm4, %v343_v44, %v344_v45  ;;  %495 = vst.msk [vmem:[#allocation2 + $0x8] sm:$0xf] %vm175_vm5, %v492_v46  ;;  %727 = vmatpush.bf16.msra.mxu2 %v926_v53  ;;  %v949_v34 = vld [vmem:[%s1242_s2] ss:$0 sm:$0xff] }
  0x31   : > { %350 = vst.msk [vmem:[#allocation2 + $0x10] sm:$0xf] %vm175_vm5, %v342_v32 }
  0x32   : > { %401 = vrot.lane.b32.xlu0 %v396_v51, %s959_s19  ;;  %351 = vst.msk [vmem:[#allocation2 + $0x1c] sm:$0xf] %vm175_vm5, %v345_v49  ;;  %931 = vmatpush.bf16.msra.mxu3 %v914_v52 }
  0x33   : > { %434 = vrot.lane.b32.xlu1 %v429_v20, %s958_s18  ;;  %496 = vst.msk [vmem:[#allocation2 + $0x14] sm:$0xf] %vm175_vm5, %v493_v47  ;;  %687 = vmatpush.bf16.msra.mxu0 %v914_v52 }
  0x34   : > { %708 = vmatpush.bf16.msra.mxu1 %v919_v36  ;;  %497 = vst.msk [vmem:[#allocation2 + $0x20] sm:$0xf] %vm175_vm5, %v494_v61 }
  0x36   : > { %932 = vmatpush.bf16.msra.mxu3 %v913_v11 }
  0x37   : > { %256 = vrot.lane.b32.xlu2 %v250_v3, %s958_s18  ;;  %v829_v20 = vld [vmem:[#allocation2 + $0x8] sm:$0xf]  ;;  %688 = vmatpush.bf16.msra.mxu0 %v913_v11 }
  0x38   : > { %709 = vmatpush.bf16.msra.mxu1 %v918_v40 }
  0x3a   : > { %258 = vrot.lane.b32.xlu0 %v253_v5, %s958_s18  ;;  %v909_v58 = vld [vmem:[#allocation2 + $0x10] sm:$0xf0]  ;;  %933 = vmatpush.bf16.msra.mxu3 %v912_v60 }
  0x3b   : > { %316 = vrot.lane.b32.xlu1 %v311_v8, %s960_s20  ;;  %v830_v56 = vor.u32 %v909_v58, %v829_v20  ;;  %689 = vmatpush.bf16.msra.mxu0 %v912_v60  ;;  %v503_v3 = vld [vmem:[#allocation2 + $0x20] sm:$0xf] }
  0x3c   : > { %v558_v4 = vunpack.c.l.b16 %v503_v3 }
  0x3d   : > { %903 = vmatmul.msk.bf16.vlgmr.msra.gmra.mxu2 %vm677_vm9, %v830_v56 }
  0x3e   : > { %934 = vmatpush.bf16.msra.mxu3 %v911_v27  ;;  %v564_v6 = vpack.c.b16 %v558_v4, %v558_v4 }
  0x3f   : > { %312 = vrot.lane.b32.xlu2 %v291_v13, %s960_s20  ;;  %690 = vmatpush.bf16.msra.mxu0 %v911_v27 }
  0x42   : > { %314 = vrot.lane.b32.xlu0 %v301_v16, %s960_s20  ;;  %935 = vmatpush.bf16.msra.mxu3 %v910_v63 }
  0x43   : > { %691 = vmatpush.bf16.msra.mxu0 %v910_v63 }
  0x47   : > { %484 = vrot.lane.b32.xlu2 %v479_v19, %s960_s20 }
  0x4d   : > { %904 = vmatmul.msk.bf16.gmra.mxu2 %vm677_vm9, %v564_v6 }
  0x79   : > { %v481_v38 = vpop.permute.xlu2 %480 }
  0x81   : > { %v483_v48 = vpop.permute.xlu2 %482 }
  0x85   : > { %v431_v51 = vpop.permute.xlu1 %430 }
  0x89   : > { %v225_v54 = vpop.permute.xlu2 %224 }
  0x8a   : > { %232 = vst.msk [vmem:[#allocation2 + $0x18] sm:$0xf] %vm229_vm6, %v225_v54 }
  0x8c   : > { %v398_v57 = vpop.permute.xlu0 %397 }
  0x8d   : > { %406 = vst.msk [vmem:[#allocation2 + $0x4] sm:$0xf] %vm229_vm6, %v398_v57  ;;  %v433_v59 = vpop.permute.xlu1 %432 }
  0x8e   : > { %439 = vst.msk [vmem:[#allocation2 + $0x4] sm:$0xf] %vm263_vm7, %v431_v51 }
  0x8f   : > { %489 = vst.msk [vmem:[#allocation2 + $0x4] sm:$0xf] %vm321_vm8, %v481_v38 }
  0x91   : > { %v257_v62 = vpop.permute.xlu2 %256 }
  0x94   : > { %v400_v0 = vpop.permute.xlu0 %399 }
  0x95   : > { %407 = vst.msk [vmem:[#allocation2 + $0x10] sm:$0xf] %vm229_vm6, %v400_v0  ;;  %v223_v1 = vpop.permute.xlu1 %222 }
  0x96   : > { %440 = vst.msk [vmem:[#allocation2 + $0x10] sm:$0xf] %vm263_vm7, %v433_v59  ;;  %v907_v9 = vld [vmem:[#allocation2 + $0x4] sm:$0xf] }
  0x97   : > { %490 = vst.msk [vmem:[#allocation2 + $0x10] sm:$0xf] %vm321_vm8, %v483_v48 }
  0x98   : > { %231 = vst.msk [vmem:[#allocation2 + $0xc] sm:$0xf] %vm229_vm6, %v223_v1 }
  0x99   : > { %265 = vst.msk [vmem:[#allocation2 + $0xc] sm:$0xf] %vm263_vm7, %v257_v62  ;;  %v313_v5 = vpop.permute.xlu2 %312 }
  0x9c   : > { %v221_v7 = vpop.permute.xlu0 %220 }
  0x9d   : > { %230 = vst.msk [vmem:[#allocation2] sm:$0xf] %vm229_vm6, %v221_v7  ;;  %v255_v8 = vpop.permute.xlu1 %254 }
  0x9e   : > { %v823_v10 = vld [vmem:[#allocation2 + $0xc] sm:$0xf0]  ;;  %264 = vst.msk [vmem:[#allocation2] sm:$0xf] %vm263_vm7, %v255_v8 }
  0x9f   : > { %v826_v12 = vor.u32 %v907_v9, %v823_v10  ;;  %322 = vst.msk [vmem:[#allocation2] sm:$0xf] %vm321_vm8, %v313_v5 }
  0xa1   : > { %710 = vmatmul.bf16.vlgmr.msra.gmra.mxu1 %v826_v12  ;;  %v485_v14 = vpop.permute.xlu2 %484 }
  0xa4   : > { %v402_v13 = vpop.permute.xlu0 %401 }
  0xa5   : > { %408 = vst.msk [vmem:[#allocation2 + $0x1c] sm:$0xf] %vm229_vm6, %v402_v13  ;;  %v435_v15 = vpop.permute.xlu1 %434 }
  0xa6   : > { %441 = vst.msk [vmem:[#allocation2 + $0x1c] sm:$0xf] %vm263_vm7, %v435_v15  ;;  %v821_v55 = vld [vmem:[#allocation2] sm:$0xf] }
  0xa7   : > { %491 = vst.msk [vmem:[#allocation2 + $0x1c] sm:$0xf] %vm321_vm8, %v485_v14 }
  0xac   : > { %v259_v16 = vpop.permute.xlu0 %258 }
  0xad   : > { %266 = vst.msk [vmem:[#allocation2 + $0x18] sm:$0xf] %vm263_vm7, %v259_v16  ;;  %v317_v17 = vpop.permute.xlu1 %316 }
  0xae   : > { %324 = vst.msk [vmem:[#allocation2 + $0x18] sm:$0xf] %vm321_vm8, %v317_v17 }
  0xb4   : > { %v315_v18 = vpop.permute.xlu0 %314 }
  0xb5   : > { %323 = vst.msk [vmem:[#allocation2 + $0xc] sm:$0xf] %vm321_vm8, %v315_v18  ;;  %v502_v19 = vld [vmem:[#allocation2 + $0x18] sm:$0xff] }
  0xb6   : > { %v556_v21 = vunpack.c.l.b16 %v502_v19  ;;  %v557_v22 = vunpack.c.h.b16 %v502_v19 }
  0xb8   : > { %v562_v23 = vpack.c.b16 %v556_v21, %v556_v21  ;;  %v563_v2 = vpack.c.b16 %v557_v22, %v557_v22 }
  0xba   : > { %697 = vmatmul.bf16.vlgmr.msra.gmra.mxu3 %v562_v23  ;;  %715 = vmatmul.bf16.gmra.mxu1 %v563_v2 }
  0xbc   : > { %v908_v24 = vld [vmem:[#allocation2 + $0x8] sm:$0xf0] }
  0xbd   : > { %v822_v25 = vor.u32 %v908_v24, %v821_v55 }
  0xbf   : > { %692 = vmatmul.bf16.vlgmr.msra.gmra.mxu0 %v822_v25 }
  0xc0   : > { %v729_v26 = vpop.f32.mrf.mxu2 }
  0xc8   : > { %v731_v28 = vpop.f32.mrf.mxu2 }
  0xd0   : > { %v734_v29 = vpop.f32.mrf.mxu2 }
  0xd8   : > { %v736_v31 = vpop.f32.mrf.mxu2 }
 0x11e   : > { %v711_v30 = vpop.f32.mrf.mxu1 }
 0x126   : > { %v713_v32 = vpop.f32.mrf.mxu1 }
 0x137   : > { %v716_v33 = vpop.f32.mrf.mxu1 }
 0x13c   : > { %v693_v35 = vpop.f32.mrf.mxu0 }
 0x13d   : > { %v694_v36 = vadd.f32 %v949_v34, %v693_v35  ;;  %v698_v37 = vpop.f32.mrf.mxu3 }
 0x13e   : > { %v699_v39 = vadd.f32 %v949_v34, %v698_v37 }
 0x13f   : > { %v712_v38 = vadd.f32 %v711_v30, %v694_v36  ;;  %v718_v40 = vpop.f32.mrf.mxu1 }
 0x140   : > { %v717_v42 = vadd.f32 %v716_v33, %v699_v39 }
 0x141   : > { %v730_v41 = vadd.f32 %v729_v26, %v712_v38 }
 0x142   : > { %v735_v44 = vadd.f32 %v734_v29, %v717_v42 }
 0x143   : > { %vm738_vm10 = vcmp.ge.f32.partialorder %v730_v41, 0.0  ;;  %v741_v43 = vmul.f32 0.1, %v730_v41 }
 0x144   : > { %v695_v45 = vpop.f32.mrf.mxu0  ;;  %vm740_vm11 = vcmp.ge.f32.partialorder %v735_v44, 0.0  ;;  %v743_v47 = vmul.f32 0.1, %v735_v44 }
 0x145   : > { %v744_v46 = vsel %vm738_vm10, %v730_v41, %v741_v43  ;;  %v696_v48 = vadd.f32 %v949_v34, %v695_v45  ;;  %v700_v50 = vpop.f32.mrf.mxu3 }
 0x146   : > { %v747_v49 = vpack.c.bf16 %v744_v46, %v744_v46  ;;  %v746_v51 = vsel %vm740_vm11, %v735_v44, %v743_v47 }
 0x147   : > { %v714_v52 = vadd.f32 %v713_v32, %v696_v48  ;;  %v749_v53 = vpack.c.bf16 %v746_v51, %v746_v51 }
 0x148   : > { %750 = vst.msk [vmem:[%s170_s10] sm:$0xf] %vm175_vm5, %v747_v49 }
 0x149   : > { %v732_v11 = vadd.f32 %v731_v28, %v714_v52  ;;  %752 = vst.msk [vmem:[%s170_s10 + $0x8] sm:$0xf] %vm175_vm5, %v749_v53 }
 0x14b   : > { %vm739_vm12 = vcmp.ge.f32.partialorder %v732_v11, 0.0  ;;  %v742_v20 = vmul.f32 0.1, %v732_v11 }
 0x14d   : > { %v745_v54 = vsel %vm739_vm12, %v732_v11, %v742_v20 }
 0x14e   : > { %v748_v57 = vpack.c.bf16 %v745_v54, %v745_v54 }
 0x150   : > { %751 = vst.msk [vmem:[%s170_s10 + $0x4] sm:$0xf] %vm175_vm5, %v748_v57 }
 0x151 PF: > { %s13_s12 = sadd.s32 1, %s956_s12  }
 0x152   : > { %p10_p4 = scmp.ge.s32.totalorder %s13_s12, 4  }
 0x154   :  { %12 = sbr.rel (!%p10_p4) target bundleno = 1 (0x1), region = 62 }

// kernel: _lambda_.51
= control target key start
LH: loop header
LB: loop body
LE: loop exit
PB: predicated region body
PF: predicated region fallthrough
CT: control target
= control target key end

     0   :  { %s2338_s12 = smov 0   ;;  %s2982_s0 = inlined_call_operand.vmem [shape: bf16[2,55,64], index: 0, kind: input, shape index: {}]   ;;  %s2983_s1 = inlined_call_operand.vmem [shape: bf16[960,32], index: 1, kind: input, shape index: {}]   ;;  %s2984_s2 = inlined_call_operand.vmem [shape: f32[1,32], index: 2, kind: input, shape index: {}]   ;;  %s2985_s3 = inlined_call_operand.vmem [shape: bf16[2,40,32], index: 3, kind: output, shape index: {}]  }
   0x1 LB: > { %s1898_s13 = sadd.s32 4294967295, %s2315_s12   ;;  %p1902_p0 = scmp.ge.s32.totalorder %s2315_s12, 1  ;;  %s2315_s12 = sphi %s2338_s12, %s13_s12  }
   0x2   : > { %p137_p1 = scmp.lt.s32.totalorder %s2315_s12, 3 }
   0x4   : > { %p138_p2 = pnand %p1902_p0, %p137_p1 }
   0x5   : > { %p161_p3 = scmp.lt.s32.totalorder (!%p138_p2), %s1898_s13, 1  ;;  %s2317_s18 = smov (!%p138_p2), 64  }
   0x6   : > { %141 = sbr.rel (%p138_p2) target bundleno = 392 (0x188), region = 32 }
   0xb   : > { %s3001_s13 = smov (!%p161_p3, %s1898_s13), 1  ;;  %vm442_vm0 = vsmask.f32 1280  ;;  %vm443_vm1 = vsmask.f32 5392  ;;  %vm535_vm12 = vcmask 1040384  }
   0xc   : > { %s2297_s14 = smul.u32 28, %s3001_s13  ;;  %vm189_vm2 = vsmask.f32 3328  ;;  %vm190_vm3 = vsmask.f32 7440  ;;  %vm2365_vm5 = vmor %vm442_vm0, %vm443_vm1  ;;  %vm536_vm13 = vcmask 1044484  }
   0xd   : > { %vm570_vm4 = vsmask.f32 256  ;;  %vm571_vm6 = vsmask.f32 4368  ;;  %vm2373_vm7 = vmor %vm189_vm2, %vm190_vm3  ;;  %vm314_vm9 = vsmask.f32 2304 }
   0xe   : > { %s2352_s17 = scalar_lea.vmem %s2982_s0, %s2297_s14  ;;  %vm2394_vm8 = vmor %vm570_vm4, %vm571_vm6  ;;  %vm315_vm10 = vsmask.f32 6416  ;;  %vm177_vm15 = vcmask 519168   ;;  %vm407_vm0 = vcmask 1041408   ;;  %vm408_vm1 = vcmask 1045508   ;;  %v2249_v33 = vld [vmem:[%s2983_s1 + $0x60] sm:$0xff] }
   0xf   : > { %v436_v0 = vld [vmem:[%s2352_s17] sm:$0xc]  ;;  %v437_v1 = vld [vmem:[%s2352_s17 + $0x4] sm:$0xf]  ;;  %v438_v12 = vld [vmem:[%s2352_s17 + $0x8] sm:$0xf] }
  0x10   : > { %v183_v2 = vld [vmem:[%s2352_s17] sm:$0xf]  ;;  %v446_v3 = vshrl.u32 %v436_v0, 16  ;;  %v449_v4 = vshll.u32 %v436_v0, 16  ;;  %v455_v5 = vshrl.u32 %v437_v1, 16  ;;  %v458_v6 = vshll.u32 %v437_v1, 16  ;;  %vm2414_vm11 = vmor %vm314_vm9, %vm315_vm10 }
  0x11   : > { %v184_v7 = vld [vmem:[%s2352_s17 + $0x4] sm:$0xf]  ;;  %v193_v8 = vshrl.u32 %v183_v2, 16  ;;  %v196_v9 = vshll.u32 %v183_v2, 16  ;;  %v2360_v17 = vld [vmem:[%s2352_s17 + $0x8] sm:$0xf]  ;;  %vm2554_vm14 = vmor %vm535_vm12, %vm536_vm13 }
  0x12   : > { %v202_v10 = vshll.u32 %v184_v7, 16  ;;  %v206_v11 = vshrl.u32 %v184_v7, 16  ;;  %v448_v13 = vrot.slane %v446_v3, 6  ;;  %v451_v14 = vrot.slane %v449_v4, 7  ;;  %v564_v26 = vld [vmem:[%s2352_s17] sm:$0x8]  ;;  %vm2619_vm2 = vmor %vm407_vm0, %vm408_vm1 }
  0x13   : > { %v457_v15 = vrot.slane %v455_v5, 6  ;;  %v460_v16 = vrot.slane %v458_v6, 7  ;;  %v195_v18 = vrot.slane %v193_v8, 4  ;;  %v198_v19 = vrot.slane %v196_v9, 5  ;;  %v565_v31 = vld [vmem:[%s2352_s17 + $0x4] sm:$0xf] }
  0x14   : > { %v204_v20 = vrot.slane %v202_v10, 5  ;;  %v208_v21 = vrot.slane %v206_v11, 4  ;;  %v452_v22 = vor.u32 %v451_v14, %v448_v13  ;;  %v465_v24 = vshrl.u32 %v438_v12, 16  ;;  %v308_v36 = vld [vmem:[%s2352_s17] sm:$0xe]  ;;  %s2298_s22 = smul.u32 20, %s3001_s13 }
  0x15   : > { %v461_v23 = vor.u32 %v460_v16, %v457_v15  ;;  %v468_v25 = vshll.u32 %v438_v12, 16  ;;  %v199_v28 = vor.u32 %v198_v19, %v195_v18  ;;  %v212_v30 = vshll.u32 %v2360_v17, 16  ;;  %v309_v41 = vld [vmem:[%s2352_s17 + $0x4] sm:$0xf]  ;;  %v310_v46 = vld [vmem:[%s2352_s17 + $0x8] sm:$0xf] }
  0x16   : > { %v209_v29 = vor.u32 %v208_v21, %v204_v20  ;;  %v453_v32 = vrot.slane %v452_v22, 4  ;;  %v467_v34 = vrot.slane %v465_v24, 6  ;;  %v216_v39 = vshrl.u32 %v2360_v17, 16  ;;  %v566_v55 = vld [vmem:[%s2352_s17 + $0x8] sm:$0xf]  ;;  %s2964_s24 = scalar_lea.vmem %s2985_s3, %s2298_s22 }
  0x17   : > { %v470_v35 = vrot.slane %v468_v25, 7  ;;  %v200_v37 = vrot.slane %v199_v28, 4  ;;  %v574_v40 = vshrl.u32 %v564_v26, 16  ;;  %v2382_v43 = vrot.slane %v212_v30, 5  ;;  %v439_v61 = vld [vmem:[%s2352_s17 + $0xc] sm:$0xf] }
  0x18   : > { %v210_v38 = vrot.slane %v209_v29, 4  ;;  %v462_v42 = vsel %vm2365_vm5, %v453_v32, %v461_v23  ;;  %v579_v44 = vshrl.u32 %v565_v31, 16  ;;  %v582_v45 = vshll.u32 %v565_v31, 16  ;;  %v440_v13 = vld [vmem:[%s2352_s17 + $0x10] sm:$0xf] }
  0x19   : > { %503 = vrot.lane.b32.xlu0 %v462_v42, %s2317_s18  ;;  %v205_v47 = vsel %vm2373_vm7, %v200_v37, %v204_v20  ;;  %v463_v48 = vrot.slane %v461_v23, 4  ;;  %v2388_v49 = vor.u32 %v470_v35, %v467_v34  ;;  %v318_v50 = vshrl.u32 %v308_v36, 16  ;;  %v186_v28 = vld [vmem:[%s2352_s17 + $0xc] sm:$0xf]  ;;  %v397_v22 = vld [vmem:[%s2352_s17 + $0x8] sm:$0xf] }
  0x1a   : > { %246 = vrot.lane.b32.xlu1 %v205_v47, %s2317_s18  ;;  %v1908_v51 = vrot.slane %v574_v40, 11  ;;  %v581_v52 = vrot.slane %v579_v44, 7  ;;  %v321_v53 = vshll.u32 %v308_v36, 16  ;;  %v327_v54 = vshrl.u32 %v309_v41, 16  ;;  %v567_v34 = vld [vmem:[%s2352_s17 + $0xc] sm:$0xf] }
  0x1b   : > { %v320_v57 = vrot.slane %v318_v50, 5  ;;  %v330_v58 = vshll.u32 %v309_v41, 16  ;;  %v337_v59 = vshrl.u32 %v310_v46, 16  ;;  %v340_v60 = vshll.u32 %v310_v46, 16  ;;  %v311_v41 = vld [vmem:[%s2352_s17 + $0xc] sm:$0xf] }
  0x1c   : > { %v215_v62 = vsel %vm2373_vm7, %v210_v38, %v2382_v43  ;;  %v584_v63 = vor.u32 %v582_v45, %v581_v52  ;;  %v323_v0 = vrot.slane %v321_v53, 6  ;;  %v329_v1 = vrot.slane %v327_v54, 5  ;;  %v568_v38 = vld [vmem:[%s2352_s17 + $0x10] sm:$0xf] }
  0x1d   : > { %v472_v2 = vsel %vm2365_vm5, %v463_v48, %v2388_v49  ;;  %v332_v3 = vrot.slane %v330_v58, 6  ;;  %v339_v4 = vrot.slane %v337_v59, 5  ;;  %v588_v5 = vshrl.u32 %v566_v55, 16 }
  0x1e   : > { %v585_v6 = vsel %vm2394_vm8, %v1908_v51, %v584_v63  ;;  %v324_v7 = vor.u32 %v323_v0, %v320_v57  ;;  %v591_v8 = vshll.u32 %v566_v55, 16  ;;  %v475_v9 = vshrl.u32 %v439_v61, 16  ;;  %v312_v55 = vld [vmem:[%s2352_s17 + $0x10] sm:$0xf] }
  0x1f   : > { %622 = vrot.lane.b32.xlu2 %v585_v6, %s2317_s18  ;;  %v333_v10 = vor.u32 %v332_v3, %v329_v1  ;;  %v342_v11 = vrot.slane %v340_v60, 6  ;;  %v2408_v12 = vrot.slane %v588_v5, 7  ;;  %v478_v14 = vshll.u32 %v439_v61, 16 }
  0x20   : > { %v586_v15 = vrot.slane %v581_v52, 4  ;;  %v325_v16 = vrot.slane %v324_v7, 4  ;;  %v477_v18 = vrot.slane %v475_v9, 6  ;;  %v485_v20 = vshrl.u32 %v440_v13, 16 }
  0x21   : > { %505 = vrot.lane.b32.xlu0 %v472_v2, %s2317_s18  ;;  %v593_v17 = vor.u32 %v591_v8, %v2408_v12  ;;  %v480_v19 = vrot.slane %v478_v14, 7  ;;  %v488_v21 = vshll.u32 %v440_v13, 16  ;;  %v335_v23 = vrot.slane %v333_v10, 4 }
  0x22   : > { %248 = vrot.lane.b32.xlu1 %v215_v62, %s2317_s18  ;;  %v2418_v24 = vor.u32 %v342_v11, %v339_v4  ;;  %v218_v25 = vrot.slane %v216_v39, 4  ;;  %v334_v29 = vsel %vm2414_vm11, %v325_v16, %v333_v10  ;;  %v487_v31 = vrot.slane %v485_v20, 6  ;;  %v441_v62 = vld [vmem:[%s2352_s17 + $0x14] sm:$0x7] }
  0x23   : > { %v594_v26 = vsel %vm2394_vm8, %v586_v15, %v593_v17  ;;  %v481_v30 = vor.u32 %v480_v19, %v477_v18  ;;  %v490_v32 = vrot.slane %v488_v21, 7  ;;  %v222_v37 = vshll.u32 %v186_v28, 16  ;;  %v569_v16 = vld [vmem:[%s2352_s17 + $0x14] sm:$0xf] }
  0x24   : > { %v344_v35 = vsel %vm2414_vm11, %v335_v23, %v2418_v24  ;;  %v219_v36 = vor.u32 %v218_v25, %v2382_v43  ;;  %v473_v39 = vrot.slane %v2388_v49, 4  ;;  %v597_v40 = vshrl.u32 %v567_v34, 16  ;;  %v187_v43 = vld [vmem:[%s2352_s17 + $0x10] sm:$0xf]  ;;  %v313_v23 = vld [vmem:[%s2352_s17 + $0x14] sm:$0x3] }
  0x25   : > { %v483_v42 = vrot.slane %v481_v30, 4  ;;  %v2436_v44 = vor.u32 %v490_v32, %v487_v31  ;;  %v226_v45 = vshrl.u32 %v186_v28, 16  ;;  %v224_v47 = vrot.slane %v222_v37, 5 }
  0x26   : > { %v220_v46 = vrot.slane %v219_v36, 4  ;;  %v606_v48 = vshrl.u32 %v568_v38, 16  ;;  %v482_v50 = vsel %vm2365_vm5, %v473_v39, %v481_v30  ;;  %v347_v49 = vshrl.u32 %v311_v41, 16 }
  0x27   : > { %624 = vrot.lane.b32.xlu2 %v594_v26, %s2317_s18  ;;  %v599_v51 = vrot.slane %v597_v40, 7  ;;  %v600_v52 = vshll.u32 %v567_v34, 16  ;;  %v350_v53 = vshll.u32 %v311_v41, 16  ;;  %v492_v54 = vsel %vm2365_vm5, %v483_v42, %v2436_v44  ;;  %v893_v26 = vld [vmem:[%s2352_s17 + $0x8] sm:$0xf] }
  0x28   : > { %v232_v57 = vshll.u32 %v187_v43, 16  ;;  %v228_v58 = vrot.slane %v226_v45, 4  ;;  %v225_v59 = vsel %vm2373_vm7, %v220_v46, %v224_v47  ;;  %v2447_v60 = vrot.slane %v606_v48, 7  ;;  %v188_v34 = vld [vmem:[%s2352_s17 + $0x14] sm:$0x1] }
  0x29   : > { %375 = vrot.lane.b32.xlu0 %v334_v29, %s2317_s18  ;;  %v609_v61 = vshll.u32 %v568_v38, 16  ;;  %v595_v63 = vrot.slane %v2408_v12, 4  ;;  %v349_v0 = vrot.slane %v347_v49, 5  ;;  %v602_v2 = vor.u32 %v600_v52, %v599_v51  ;;  %v894_v38 = vld [vmem:[%s2352_s17 + $0xc] sm:$0xf] }
  0x2a   : > { %377 = vrot.lane.b32.xlu1 %v344_v35, %s2317_s18  ;;  %v229_v1 = vor.u32 %v228_v58, %v224_v47  ;;  %v352_v3 = vrot.slane %v350_v53, 6  ;;  %v357_v4 = vshrl.u32 %v312_v55, 16  ;;  %v360_v5 = vshll.u32 %v312_v55, 16  ;;  %v652_v45 = vld [vmem:[%s2352_s17 + $0x4] sm:$0xf] }
  0x2b   : > { %v495_v6 = vshrl.u32 %v441_v62, 16  ;;  %v498_v7 = vshll.u32 %v441_v62, 16  ;;  %v234_v8 = vrot.slane %v232_v57, 5  ;;  %v604_v10 = vrot.slane %v599_v51, 4 }
  0x2c   : > { %v230_v9 = vrot.slane %v229_v1, 4  ;;  %v611_v11 = vor.u32 %v609_v61, %v2447_v60  ;;  %v353_v13 = vor.u32 %v352_v3, %v349_v0  ;;  %v359_v14 = vrot.slane %v357_v4, 5 }
  0x2d   : > { %v362_v15 = vrot.slane %v360_v5, 6  ;;  %v603_v17 = vsel %vm2394_vm8, %v595_v63, %v602_v2  ;;  %v497_v18 = vrot.slane %v495_v6, 6  ;;  %v500_v19 = vrot.slane %v498_v7, 7  ;;  %v653_v2 = vld [vmem:[%s2352_s17 + $0x8] sm:$0xf] }
  0x2e   : > { %v235_v12 = vsel %vm2373_vm7, %v230_v9, %v234_v8  ;;  %v236_v20 = vshrl.u32 %v187_v43, 16  ;;  %v612_v21 = vsel %vm2394_vm8, %v604_v10, %v611_v11  ;;  %v345_v25 = vrot.slane %v2418_v24, 4  ;;  %v770_v7 = vld [vmem:[%s2352_s17 + $0x4] sm:$0xe] }
  0x2f   : > { %507 = vrot.lane.b32.xlu2 %v482_v50, %s2317_s18  ;;  %v615_v28 = vshrl.u32 %v569_v16, 16  ;;  %v355_v29 = vrot.slane %v353_v13, 4  ;;  %v363_v30 = vor.u32 %v362_v15, %v359_v14  ;;  %v493_v31 = vrot.slane %v2436_v44, 4  ;;  %v771_v15 = vld [vmem:[%s2352_s17 + $0x8] sm:$0xf] }
  0x30   : > { %v501_v32 = vor.u32 %v500_v19, %v497_v18  ;;  %v238_v35 = vrot.slane %v236_v20, 4  ;;  %v367_v36 = vshrl.u32 %v313_v23, 16  ;;  %v370_v37 = vshll.u32 %v313_v23, 16 }
  0x31   : > { %509 = vrot.lane.b32.xlu0 %v492_v54, %s2317_s18  ;;  %v908_v39 = vshrl.u32 %v893_v26, 16  ;;  %v354_v24 = vsel %vm2414_vm11, %v345_v25, %v353_v13  ;;  %v911_v40 = vshll.u32 %v893_v26, 16  ;;  %v617_v41 = vrot.slane %v615_v28, 7  ;;  %v895_v25 = vld [vmem:[%s2352_s17 + $0x10] sm:$0xf] }
  0x32   : > { %250 = vrot.lane.b32.xlu1 %v225_v59, %s2317_s18  ;;  %v618_v42 = vshll.u32 %v569_v16, 16  ;;  %v364_v44 = vsel %vm2414_vm11, %v355_v29, %v363_v30  ;;  %v242_v46 = vshll.u32 %v188_v34, 16  ;;  %v502_v47 = vsel %vm2365_vm5, %v493_v31, %v501_v32  ;;  %v892_v59 = vld [vmem:[%s2352_s17 + $0x4] sm:$0xc] }
  0x33   : > { %v239_v48 = vor.u32 %v238_v35, %v234_v8  ;;  %v369_v43 = vrot.slane %v367_v36, 5  ;;  %v372_v50 = vrot.slane %v370_v37, 6  ;;  %v910_v49 = vrot.slane %v908_v39, 6  ;;  %v2268_v37 = vld [vmem:[%s2983_s1 + $0xf8] sm:$0xff] }
  0x34   : > { %v918_v51 = vshrl.u32 %v894_v38, 16  ;;  %v659_v52 = vshrl.u32 %v652_v45, 16  ;;  %v662_v53 = vshll.u32 %v652_v45, 16  ;;  %v913_v54 = vrot.slane %v911_v40, 7  ;;  %v654_v40 = vld [vmem:[%s2352_s17 + $0xc] sm:$0xf]  ;;  %1702 = vmatpush.bf16.msra.mxu3 %v2268_v37 }
  0x35   : > { %v921_v55 = vshll.u32 %v894_v38, 16  ;;  %v613_v57 = vrot.slane %v2447_v60, 4  ;;  %v620_v58 = vor.u32 %v618_v42, %v617_v41  ;;  %v244_v61 = vrot.slane %v242_v46, 5 }
  0x36   : > { %v899_v62 = vshrl.u32 %v892_v59, 16  ;;  %v240_v63 = vrot.slane %v239_v48, 4  ;;  %v365_v0 = vrot.slane %v363_v30, 4  ;;  %v373_v1 = vor.u32 %v372_v50, %v369_v43  ;;  %v896_v50 = vld [vmem:[%s2352_s17 + $0x14] sm:$0xf] }
  0x37   : > { %252 = vrot.lane.b32.xlu2 %v235_v12, %s2317_s18  ;;  %v902_v3 = vshll.u32 %v892_v59, 16  ;;  %v920_v4 = vrot.slane %v918_v51, 6  ;;  %v661_v5 = vrot.slane %v659_v52, 4  ;;  %v664_v6 = vrot.slane %v662_v53, 5 }
  0x38   : > { %v901_v60 = vrot.slane %v899_v62, 6  ;;  %v914_v8 = vor.u32 %v913_v54, %v910_v49  ;;  %v923_v9 = vrot.slane %v921_v55, 7  ;;  %v621_v10 = vsel %vm2394_vm8, %v613_v57, %v620_v58  ;;  %v655_v55 = vld [vmem:[%s2352_s17 + $0x10] sm:$0xf] }
  0x39   : > { %626 = vrot.lane.b32.xlu0 %v603_v17, %s2317_s18  ;;  %v904_v11 = vrot.slane %v902_v3, 7  ;;  %v668_v12 = vshll.u32 %v653_v2, 16  ;;  %v672_v13 = vshrl.u32 %v653_v2, 16  ;;  %v245_v14 = vsel %vm2373_vm7, %v240_v63, %v244_v61  ;;  %v773_v62 = vld [vmem:[%s2352_s17 + $0x10] sm:$0xf]  ;;  %v2244_v3 = vld [vmem:[%s2983_s1 + $0x38] sm:$0xff] }
  0x3a   : > { %628 = vrot.lane.b32.xlu1 %v612_v21, %s2317_s18  ;;  %v777_v16 = vshrl.u32 %v770_v7, 16  ;;  %v780_v17 = vshll.u32 %v770_v7, 16  ;;  %v374_v19 = vsel %vm2414_vm11, %v365_v0, %v373_v1  ;;  %v665_v20 = vor.u32 %v664_v6, %v661_v5  ;;  %v772_v21 = vld [vmem:[%s2352_s17 + $0xc] sm:$0xf]  ;;  %v2267_v2 = vld [vmem:[%s2983_s1 + $0xf0] sm:$0xff]  ;;  %1633 = vmatpush.bf16.msra.mxu0 %v2244_v3 }
  0x3b   : > { %v905_v18 = vor.u32 %v904_v11, %v901_v60  ;;  %v916_v56 = vrot.slane %v914_v8, 4  ;;  %v2494_v23 = vor.u32 %v923_v9, %v920_v4  ;;  %v670_v28 = vrot.slane %v668_v12, 5  ;;  %v2260_v4 = vld [vmem:[%s2983_s1 + $0xb8] sm:$0xff]  ;;  %1703 = vmatpush.bf16.msra.mxu3 %v2267_v2  ;;  %v2266_v12 = vld [vmem:[%s2983_s1 + $0xe8] sm:$0xff] }
  0x3c   : > { %v786_v29 = vshrl.u32 %v771_v15, 16  ;;  %v789_v30 = vshll.u32 %v771_v15, 16  ;;  %v674_v31 = vrot.slane %v672_v13, 4  ;;  %v779_v32 = vrot.slane %v777_v16, 5  ;;  %v2243_v13 = vld [vmem:[%s2983_s1 + $0x30] sm:$0xff]  ;;  %1679 = vmatpush.bf16.msra.mxu2 %v2260_v4 }
  0x3d   : > { %v906_v26 = vrot.slane %v905_v18, 4  ;;  %v782_v34 = vrot.slane %v780_v17, 6  ;;  %v796_v35 = vshrl.u32 %v772_v21, 16  ;;  %v799_v36 = vshll.u32 %v772_v21, 16  ;;  %v2259_v16 = vld [vmem:[%s2983_s1 + $0xb0] sm:$0xff] }
  0x3e   : > { %v666_v38 = vrot.slane %v665_v20, 4  ;;  %v928_v39 = vshrl.u32 %v895_v25, 16  ;;  %v675_v42 = vor.u32 %v674_v31, %v670_v28  ;;  %v925_v45 = vsel %vm2365_vm5, %v916_v56, %v2494_v23  ;;  %v774_v18 = vld [vmem:[%s2352_s17 + $0x14] sm:$0xf]  ;;  %1634 = vmatpush.bf16.msra.mxu0 %v2243_v13 }
  0x3f   : > { %379 = vrot.lane.b32.xlu2 %v354_v24, %s2317_s18  ;;  %v931_v24 = vshll.u32 %v895_v25, 16  ;;  %v915_v41 = vsel %vm2365_vm5, %v906_v26, %v914_v8  ;;  %v791_v46 = vrot.slane %v789_v30, 6  ;;  %v798_v48 = vrot.slane %v796_v35, 5  ;;  %1704 = vmatpush.bf16.msra.mxu3 %v2266_v12  ;;  %v2265_v30 = vld [vmem:[%s2983_s1 + $0xe0] sm:$0xff] }
  0x40   : > { %v801_v43 = vrot.slane %v799_v36, 6  ;;  %v678_v49 = vshll.u32 %v654_v40, 16  ;;  %v671_v51 = vsel %vm2373_vm7, %v666_v38, %v670_v28  ;;  %v930_v52 = vrot.slane %v928_v39, 6  ;;  %1680 = vmatpush.bf16.msra.mxu2 %v2259_v16  ;;  %v524_v36 = vld [vmem:[%s2352_s17 + $0x4] sm:$0xf]  ;;  %v2242_v39 = vld [vmem:[%s2983_s1 + $0x28] sm:$0xff] }
  0x41   : > { %381 = vrot.lane.b32.xlu0 %v364_v44, %s2317_s18  ;;  %v788_v44 = vrot.slane %v786_v29, 5  ;;  %v933_v53 = vrot.slane %v931_v24, 7  ;;  %v682_v54 = vshrl.u32 %v654_v40, 16  ;;  %v676_v57 = vrot.slane %v675_v42, 4  ;;  %v2252_v24 = vld [vmem:[%s2983_s1 + $0x78] sm:$0xff]  ;;  %v2258_v40 = vld [vmem:[%s2983_s1 + $0xa8] sm:$0xff] }
  0x42   : > { %511 = vrot.lane.b32.xlu1 %v502_v47, %s2317_s18  ;;  %v783_v47 = vor.u32 %v782_v34, %v779_v32  ;;  %v938_v59 = vshrl.u32 %v896_v50, 16  ;;  %v941_v61 = vshll.u32 %v896_v50, 16  ;;  %v2516_v0 = vor.u32 %v801_v43, %v798_v48  ;;  %v656_v42 = vld [vmem:[%s2352_s17 + $0x14] sm:$0xf]  ;;  %1635 = vmatpush.bf16.msra.mxu0 %v2242_v39  ;;  %v2241_v48 = vld [vmem:[%s2983_s1 + $0x20] sm:$0xff] }
  0x43   : > { %v792_v58 = vor.u32 %v791_v46, %v788_v44  ;;  %v680_v1 = vrot.slane %v678_v49, 5  ;;  %v934_v6 = vor.u32 %v933_v53, %v930_v52  ;;  %v684_v7 = vrot.slane %v682_v54, 4  ;;  %1705 = vmatpush.bf16.msra.mxu3 %v2265_v30  ;;  %1656 = vmatpush.bf16.msra.mxu1 %v2252_v24  ;;  %v2251_v49 = vld [vmem:[%s2983_s1 + $0x70] sm:$0xff]  ;;  %v172_v39 = vld [vmem:[%s2352_s17] sm:$0xf]  ;;  %v2250_v24 = vld [vmem:[%s2983_s1 + $0x68] sm:$0xff] }
  0x44   : > { %v784_v63 = vrot.slane %v783_v47, 4  ;;  %v688_v60 = vshll.u32 %v655_v55, 16  ;;  %v692_v8 = vshrl.u32 %v655_v55, 16  ;;  %v806_v9 = vshrl.u32 %v773_v62, 16  ;;  %v2264_v47 = vld [vmem:[%s2983_s1 + $0xd8] sm:$0xff]  ;;  %1681 = vmatpush.bf16.msra.mxu2 %v2258_v40  ;;  %v2257_v55 = vld [vmem:[%s2983_s1 + $0xa0] sm:$0xff] }
  0x45   : > { %v794_v5 = vrot.slane %v792_v58, 4  ;;  %v681_v11 = vsel %vm2373_vm7, %v676_v57, %v680_v1  ;;  %v943_v15 = vrot.slane %v941_v61, 7  ;;  %v936_v20 = vrot.slane %v934_v6, 4  ;;  %v2263_v61 = vld [vmem:[%s2983_s1 + $0xd0] sm:$0xff]  ;;  %178 = vst.msk [vmem:[#allocation2] sm:$0xf] %vm177_vm15, %v172_v39 }
  0x46   : > { %v793_v17 = vsel %vm2414_vm11, %v784_v63, %v792_v58  ;;  %v685_v21 = vor.u32 %v684_v7, %v680_v1  ;;  %v690_v56 = vrot.slane %v688_v60, 5  ;;  %v808_v25 = vrot.slane %v806_v9, 5  ;;  %v775_v58 = vld [vmem:[%s2352_s17 + $0x18] sm:$0x3]  ;;  %1636 = vmatpush.bf16.msra.mxu0 %v2241_v48  ;;  %v2601_v1 = vld [vmem:[%s2352_s17 + $0x8] sm:$0xf] }
  0x47   : > { %630 = vrot.lane.b32.xlu2 %v621_v10, %s2317_s18  ;;  %v809_v10 = vshll.u32 %v773_v62, 16  ;;  %v926_v28 = vrot.slane %v2494_v23, 4  ;;  %v694_v29 = vrot.slane %v692_v8, 4  ;;  %v816_v32 = vshrl.u32 %v774_v18, 16  ;;  %v523_v23 = vld [vmem:[%s2352_s17] sm:$0x8]  ;;  %1706 = vmatpush.bf16.msra.mxu3 %v2264_v47 }
  0x48   : > { %v819_v34 = vshll.u32 %v774_v18, 16  ;;  %v1907_v37 = vrot.slane %v523_v23, 11  ;;  %v540_v38 = vrot.slane %v524_v36, 7  ;;  %v698_v53 = vshll.u32 %v656_v42, 16  ;;  %1657 = vmatpush.bf16.msra.mxu1 %v2251_v49  ;;  %1682 = vmatpush.bf16.msra.mxu2 %v2257_v55  ;;  %v657_v7 = vld [vmem:[%s2352_s17 + $0x18] sm:$0x1] }
  0x49   : > { %254 = vrot.lane.b32.xlu0 %v245_v14, %s2317_s18  ;;  %v940_v14 = vrot.slane %v938_v59, 6  ;;  %v811_v26 = vrot.slane %v809_v10, 6  ;;  %v695_v44 = vor.u32 %v694_v29, %v690_v56  ;;  %v702_v54 = vshrl.u32 %v656_v42, 16  ;;  %v897_v10 = vld [vmem:[%s2352_s17 + $0x18] sm:$0x7]  ;;  %v2238_v49 = vld [vmem:[%s2983_s1 + $0x8] sm:$0xff] }
  0x4a   : > { %383 = vrot.lane.b32.xlu1 %v374_v19, %s2317_s18  ;;  %v803_v19 = vsel %vm2414_vm11, %v794_v5, %v2516_v0  ;;  %v541_v46 = vsel %vm2554_vm14, %v1907_v37, %v540_v38  ;;  %v821_v52 = vrot.slane %v819_v34, 6  ;;  %v804_v62 = vrot.slane %v2516_v0, 4  ;;  %v2256_v40 = vld [vmem:[%s2983_s1 + $0x98] sm:$0xff] }
  0x4b   : > { %v2550_v31 = vor.u32 %v943_v15, %v940_v14  ;;  %v812_v50 = vor.u32 %v811_v26, %v808_v25  ;;  %559 = vst.msk [vmem:[#allocation2 + $0xc] sm:$0xf] %vm177_vm15, %v541_v46  ;;  %v696_v59 = vrot.slane %v695_v44, 4  ;;  %v542_v2 = vrot.slane %v540_v38, 4  ;;  %1707 = vmatpush.bf16.msra.mxu3 %v2263_v61  ;;  %v396_v25 = vld [vmem:[%s2352_s17 + $0x4] sm:$0xf] }
  0x4c   : > { %v700_v4 = vrot.slane %v698_v53, 5  ;;  %v704_v5 = vrot.slane %v702_v54, 4  ;;  %v826_v60 = vshrl.u32 %v775_v58, 16  ;;  %v829_v8 = vshll.u32 %v775_v58, 16  ;;  %1658 = vmatpush.bf16.msra.mxu1 %v2250_v24  ;;  %1683 = vmatpush.bf16.msra.mxu2 %v2256_v40  ;;  %v2255_v44 = vld [vmem:[%s2983_s1 + $0x90] sm:$0xff]  ;;  %v2261_v46 = vld [vmem:[%s2983_s1 + $0xc0] sm:$0xff] }
  0x4d   : > { %v945_v43 = vsel %vm2365_vm5, %v936_v20, %v2550_v31  ;;  %v814_v63 = vrot.slane %v812_v50, 4  ;;  %v951_v12 = vshll.u32 %v897_v10, 16  ;;  %v813_v13 = vsel %vm2414_vm11, %v804_v62, %v812_v50  ;;  %v173_v50 = vld [vmem:[%s2352_s17 + $0x4] sm:$0xf]  ;;  %v2247_v54 = vld [vmem:[%s2983_s1 + $0x50] sm:$0xff]  ;;  %v2276_v24 = vld [vmem:[%s2983_s1 + $0x138] sm:$0xff] }
  0x4e   : > { %v701_v0 = vsel %vm2373_vm7, %v696_v59, %v700_v4  ;;  %v705_v15 = vor.u32 %v704_v5, %v700_v4  ;;  %v708_v16 = vshll.u32 %v657_v7, 16  ;;  %v831_v18 = vrot.slane %v829_v8, 6  ;;  %179 = vst.msk [vmem:[#allocation2 + $0x20] sm:$0xf] %vm177_vm15, %v173_v50  ;;  %v2237_v53 = vld [vmem:[%s2983_s1] sm:$0xff]  ;;  %v2296_v40 = vld [vmem:[%s2983_s1 + $0x1d8] sm:$0xff] }
  0x4f   : > { %956 = vrot.lane.b32.xlu2 %v915_v41, %s2317_s18  ;;  %v686_v41 = vrot.slane %v685_v21, 4  ;;  %v953_v20 = vrot.slane %v951_v12, 7  ;;  %v946_v29 = vrot.slane %v2550_v31, 4  ;;  %v2240_v31 = vld [vmem:[%s2983_s1 + $0x18] sm:$0xff]  ;;  %v415_v48 = vrot.slane %v397_v22, 6 }
  0x50   : > { %v710_v34 = vrot.slane %v708_v16, 5  ;;  %1637 = vmatpush.bf16.msra.mxu0 %v2240_v31  ;;  %1659 = vmatpush.bf16.msra.mxu1 %v2249_v33  ;;  %vm279_vm3 = vcmask 1042432   ;;  %vm280_vm4 = vcmask 1046532   ;;  %v398_v58 = vld [vmem:[%s2352_s17 + $0xc] sm:$0xf]  ;;  %vm1837_vm9 = vcmask 257024  }
  0x51   : > { %958 = vrot.lane.b32.xlu0 %v925_v45, %s2317_s18  ;;  %v935_v45 = vsel %vm2365_vm5, %v926_v28, %v934_v6  ;;  %v691_v57 = vsel %vm2373_vm7, %v686_v41, %v690_v56  ;;  %v543_v6 = vrot.slane %v2601_v1, 7  ;;  %v395_v56 = vld [vmem:[%s2352_s17] sm:$0xc]  ;;  %v412_v28 = vrot.slane %v396_v25, 6  ;;  %v2262_v41 = vld [vmem:[%s2983_s1 + $0xc8] sm:$0xff]  ;;  %1684 = vmatpush.bf16.msra.mxu2 %v2255_v44  ;;  %vm2692_vm6 = vmor %vm279_vm3, %vm280_vm4 }
  0x52   : > { %712 = vrot.lane.b32.xlu1 %v671_v51, %s2317_s18  ;;  %v818_v51 = vrot.slane %v816_v32, 5  ;;  %v1906_v26 = vrot.slane %v395_v56, 10  ;;  %v706_v32 = vrot.slane %v705_v15, 4  ;;  %1708 = vmatpush.bf16.msra.mxu3 %v2262_v41  ;;  %v417_v55 = vrot.slane %v415_v48, 4  ;;  %v268_v59 = vld [vmem:[%s2352_s17 + $0x4] sm:$0xf] }
  0x53   : > { %v544_v9 = vsel %vm2554_vm14, %v542_v2, %v543_v6  ;;  %v414_v47 = vrot.slane %v412_v28, 4  ;;  %v418_v61 = vrot.slane %v398_v58, 6  ;;  %v284_v2 = vrot.slane %v268_v59, 5  ;;  %v2292_v56 = vld [vmem:[%s2983_s1 + $0x1b8] sm:$0xff]  ;;  %v271_v33 = vld [vmem:[%s2352_s17 + $0x10] sm:$0xf] }
  0x54   : > { %v822_v3 = vor.u32 %v821_v52, %v818_v51  ;;  %560 = vst.msk [vmem:[#allocation2 + $0x2c] sm:$0xf] %vm177_vm15, %v544_v9  ;;  %v413_v37 = vsel %vm2619_vm2, %v1906_v26, %v412_v28  ;;  %v711_v27 = vsel %vm2373_vm7, %v706_v32, %v710_v34  ;;  %v2248_v51 = vld [vmem:[%s2983_s1 + $0x58] sm:$0xff]  ;;  %v2254_v52 = vld [vmem:[%s2983_s1 + $0x88] sm:$0xff]  ;;  %v545_v25 = vrot.slane %v543_v6, 4  ;;  %v2283_v58 = vld [vmem:[%s2983_s1 + $0x170] sm:$0xff] }
  0x55   : > { %431 = vst.msk [vmem:[#allocation2 + $0x8] sm:$0xf] %vm177_vm15, %v413_v37  ;;  %1660 = vmatpush.bf16.msra.mxu1 %v2248_v51  ;;  %1685 = vmatpush.bf16.msra.mxu2 %v2254_v52  ;;  %v286_v8 = vrot.slane %v284_v2, 4  ;;  %v420_v12 = vrot.slane %v418_v61, 4  ;;  %v527_v28 = vld [vmem:[%s2352_s17 + $0x10] sm:$0xf] }
  0x56   : > { %v823_v14 = vsel %vm2414_vm11, %v814_v63, %v822_v3  ;;  %v824_v23 = vrot.slane %v822_v3, 4  ;;  %1709 = vmatpush.bf16.msra.mxu3 %v2261_v46  ;;  %v267_v63 = vld [vmem:[%s2352_s17] sm:$0xe]  ;;  %v269_v3 = vld [vmem:[%s2352_s17 + $0x8] sm:$0xf]  ;;  %v2284_v41 = vld [vmem:[%s2983_s1 + $0x178] sm:$0xff] }
  0x57   : > { %714 = vrot.lane.b32.xlu2 %v681_v11, %s2317_s18  ;;  %v948_v11 = vshrl.u32 %v897_v10, 16  ;;  %v1905_v5 = vrot.slane %v267_v63, 9  ;;  %v287_v7 = vrot.slane %v269_v3, 5  ;;  %v2246_v10 = vld [vmem:[%s2983_s1 + $0x48] sm:$0xff]  ;;  %v528_v44 = vld [vmem:[%s2352_s17 + $0x14] sm:$0x7] }
  0x58   : > { %v400_v50 = vld [vmem:[%s2352_s17 + $0x14] sm:$0x3]  ;;  %v2290_v59 = vld [vmem:[%s2983_s1 + $0x1a8] sm:$0xff]  ;;  %vm1623_vm7 = vcmask 523264  }
  0x59   : > { %834 = vrot.lane.b32.xlu0 %v793_v17, %s2317_s18  ;;  %v828_v17 = vrot.slane %v826_v60, 5  ;;  %v419_v60 = vsel %vm2619_vm2, %v417_v55, %v418_v61  ;;  %1661 = vmatpush.bf16.msra.mxu1 %v2247_v54  ;;  %v288_v9 = vsel %vm2692_vm6, %v286_v8, %v287_v7  ;;  %v289_v39 = vrot.slane %v287_v7, 4  ;;  %v2274_v61 = vld [vmem:[%s2983_s1 + $0x128] sm:$0xff]  ;;  %v2295_v63 = vld [vmem:[%s2983_s1 + $0x1d0] sm:$0xff] }
  0x5a   : > { %836 = vrot.lane.b32.xlu1 %v803_v19, %s2317_s18  ;;  %v950_v19 = vrot.slane %v948_v11, 6  ;;  %433 = vst.msk [vmem:[#allocation2 + $0x48] sm:$0xf] %vm177_vm15, %v419_v60  ;;  %v399_v11 = vld [vmem:[%s2352_s17 + $0x10] sm:$0xf]  ;;  %1798 = vmatpush.bf16.msrb.mxu3 %v2296_v40  ;;  %v2280_v40 = vld [vmem:[%s2983_s1 + $0x158] sm:$0xff] }
  0x5b   : > { %v832_v36 = vor.u32 %v831_v18, %v828_v17  ;;  %304 = vst.msk [vmem:[#allocation2 + $0x24] sm:$0xf] %vm177_vm15, %v288_v9  ;;  %v175_v17 = vld [vmem:[%s2352_s17 + $0xc] sm:$0xf]  ;;  %v174_v18 = vld [vmem:[%s2352_s17 + $0x8] sm:$0xf] }
  0x5c   : > { %v954_v30 = vor.u32 %v953_v20, %v950_v19  ;;  %181 = vst.msk [vmem:[#allocation2 + $0x60] sm:$0xf] %vm177_vm15, %v175_v17  ;;  %v526_v19 = vld [vmem:[%s2352_s17 + $0xc] sm:$0xf]  ;;  %v272_v3 = vld [vmem:[%s2352_s17 + $0x14] sm:$0x1] }
  0x5d   : > { %v833_v42 = vsel %vm2414_vm11, %v824_v23, %v832_v36  ;;  %1662 = vmatpush.bf16.msra.mxu1 %v2246_v10  ;;  %180 = vst.msk [vmem:[#allocation2 + $0x40] sm:$0xf] %vm177_vm15, %v174_v18  ;;  %v546_v26 = vrot.slane %v526_v19, 7  ;;  %v549_v23 = vrot.slane %v527_v28, 7  ;;  %v296_v7 = vrot.slane %v272_v3, 5  ;;  %v2273_v17 = vld [vmem:[%s2983_s1 + $0x120] sm:$0xff] }
  0x5e   : > { %v955_v38 = vsel %vm2365_vm5, %v946_v29, %v954_v30  ;;  %vm261_vm5 = vcmask 1043968   ;;  %1799 = vmatpush.bf16.msrb.mxu3 %v2295_v63  ;;  %v176_v10 = vld [vmem:[%s2352_s17 + $0x10] sm:$0xf]  ;;  %v2288_v18 = vld [vmem:[%s2983_s1 + $0x198] sm:$0xff]  ;;  %v855_v19 = vld [vmem:[%s2352_s17 + $0x8] sm:$0xf] }
  0x5f   : > { %960 = vrot.lane.b32.xlu2 %v935_v45, %s2317_s18  ;;  %v2239_v45 = vld [vmem:[%s2983_s1 + $0x10] sm:$0xff]  ;;  %v547_v32 = vsel %vm2554_vm14, %v545_v25, %v546_v26  ;;  %v548_v34 = vrot.slane %v546_v26, 4  ;;  %182 = vst.msk [vmem:[#allocation2 + $0x80] sm:$0xf] %vm177_vm15, %v176_v10  ;;  %v854_v25 = vld [vmem:[%s2352_s17 + $0x4] sm:$0xc] }
  0x60   : > { %1638 = vmatpush.bf16.msra.mxu0 %v2239_v45  ;;  %561 = vst.msk [vmem:[#allocation2 + $0x4c] sm:$0xf] %vm177_vm15, %v547_v32  ;;  %v2275_v45 = vld [vmem:[%s2983_s1 + $0x130] sm:$0xff]  ;;  %v868_v26 = vrot.slane %v855_v19, 6  ;;  %v1910_v28 = vrot.slane %v854_v25, 10 }
  0x61   : > { %962 = vrot.lane.b32.xlu0 %v945_v43, %s2317_s18  ;;  %v416_v43 = vsel %vm2619_vm2, %v414_v47, %v415_v48  ;;  %v550_v1 = vsel %vm2554_vm14, %v548_v34, %v549_v23  ;;  %v293_v47 = vrot.slane %v271_v33, 5  ;;  %v551_v48 = vrot.slane %v549_v23, 4  ;;  %v2287_v23 = vld [vmem:[%s2983_s1 + $0x190] sm:$0xff]  ;;  %v976_v63 = vld [vmem:[%s2352_s17 + $0x4] sm:$0x8] }
  0x62   : > { %716 = vrot.lane.b32.xlu1 %v691_v57, %s2317_s18  ;;  %432 = vst.msk [vmem:[#allocation2 + $0x28] sm:$0xf] %vm177_vm15, %v416_v43  ;;  %v2253_v57 = vld [vmem:[%s2983_s1 + $0x80] sm:$0xff]  ;;  %v552_v43 = vrot.slane %v528_v44, 7  ;;  %v2271_v33 = vld [vmem:[%s2983_s1 + $0x110] sm:$0xff] }
  0x63   : > { %1686 = vmatpush.bf16.msra.mxu2 %v2253_v57  ;;  %562 = vst.msk [vmem:[#allocation2 + $0x6c] sm:$0xf] %vm177_vm15, %v550_v1  ;;  %v643_v44 = vld [vmem:[%s2352_s17 + $0x8] sm:$0xf]  ;;  %v857_v3 = vld [vmem:[%s2352_s17 + $0x10] sm:$0xf] }
  0x64   : > { %1639 = vmatpush.bf16.msra.mxu0 %v2238_v49  ;;  %v553_v55 = vsel %vm2554_vm14, %v551_v48, %v552_v43  ;;  %v732_v48 = vld [vmem:[%s2352_s17 + $0x4] sm:$0xe]  ;;  %v977_v43 = vld [vmem:[%s2352_s17 + $0x8] sm:$0xf]  ;;  %648 = vst.msk [vmem:[#allocation2 + $0x30] sm:$0xf] %vm177_vm15, %v643_v44 }
  0x65   : > { %563 = vst.msk [vmem:[#allocation2 + $0x8c] sm:$0xf] %vm177_vm15, %v553_v55  ;;  %v1909_v55 = vrot.slane %v732_v48, 9 }
  0x67   : > { %718 = vrot.lane.b32.xlu2 %v701_v0, %s2317_s18  ;;  %v285_v0 = vsel %vm2692_vm6, %v1905_v5, %v284_v2  ;;  %1771 = vmatpush.bf16.msrb.mxu2 %v2292_v56  ;;  %v2282_v2 = vld [vmem:[%s2983_s1 + $0x168] sm:$0xff]  ;;  %v295_v5 = vrot.slane %v293_v47, 4  ;;  %v2281_v56 = vld [vmem:[%s2983_s1 + $0x160] sm:$0xff] }
  0x68   : > { %1640 = vmatpush.bf16.msra.mxu0 %v2237_v53  ;;  %303 = vst.msk [vmem:[#allocation2 + $0x4] sm:$0xf] %vm177_vm15, %v285_v0  ;;  %v424_v53 = vrot.slane %v400_v50, 6 }
  0x69   : > { %838 = vrot.lane.b32.xlu0 %v813_v13, %s2317_s18  ;;  %v2245_v13 = vld [vmem:[%s2983_s1 + $0x40] sm:$0xff] }
  0x6a   : > { %840 = vrot.lane.b32.xlu1 %v823_v14, %s2317_s18  ;;  %v421_v14 = vrot.slane %v399_v11, 6  ;;  %1663 = vmatpush.bf16.msra.mxu1 %v2245_v13 }
  0x6c   : > { %v422_v16 = vsel %vm2619_vm2, %v420_v12, %v421_v14  ;;  %1725 = vmatpush.bf16.msrb.mxu0 %v2276_v24  ;;  %v423_v49 = vrot.slane %v421_v14, 4  ;;  %v297_v14 = vsel %vm2692_vm6, %v295_v5, %v296_v7  ;;  %v2293_v7 = vld [vmem:[%s2983_s1 + $0x1c0] sm:$0xff] }
  0x6d   : > { %434 = vst.msk [vmem:[#allocation2 + $0x68] sm:$0xf] %vm177_vm15, %v422_v16 }
  0x6e   : > { %1748 = vmatpush.bf16.msrb.mxu1 %v2284_v41  ;;  %v425_v57 = vsel %vm2619_vm2, %v423_v49, %v424_v53  ;;  %307 = vst.msk [vmem:[#allocation2 + $0x84] sm:$0xf] %vm177_vm15, %v297_v14 }
  0x6f   : > { %964 = vrot.lane.b32.xlu2 %v955_v38, %s2317_s18  ;;  %v270_v38 = vld [vmem:[%s2352_s17 + $0xc] sm:$0xf]  ;;  %435 = vst.msk [vmem:[#allocation2 + $0x88] sm:$0xf] %vm177_vm15, %v425_v57 }
  0x70   : > { %v290_v31 = vrot.slane %v270_v38, 5  ;;  %1726 = vmatpush.bf16.msrb.mxu0 %v2275_v45  ;;  %v869_v38 = vsel %vm2619_vm2, %v1910_v28, %v868_v26 }
  0x71   : > { %720 = vrot.lane.b32.xlu0 %v711_v27, %s2317_s18  ;;  %887 = vst.msk [vmem:[#allocation2 + $0x18] sm:$0xf] %vm177_vm15, %v869_v38  ;;  %v645_v38 = vld [vmem:[%s2352_s17 + $0x10] sm:$0xf] }
  0x72   : > { %842 = vrot.lane.b32.xlu1 %v833_v42, %s2317_s18  ;;  %v291_v27 = vsel %vm2692_vm6, %v289_v39, %v290_v31  ;;  %v2291_v42 = vld [vmem:[%s2983_s1 + $0x1b0] sm:$0xff]  ;;  %v292_v46 = vrot.slane %v290_v31, 4  ;;  %1749 = vmatpush.bf16.msrb.mxu1 %v2283_v58  ;;  %650 = vst.msk [vmem:[#allocation2 + $0x70] sm:$0xf] %vm177_vm15, %v645_v38 }
  0x73   : > { %305 = vst.msk [vmem:[#allocation2 + $0x44] sm:$0xf] %vm177_vm15, %v291_v27  ;;  %1772 = vmatpush.bf16.msrb.mxu2 %v2291_v42  ;;  %v2286_v42 = vld [vmem:[%s2983_s1 + $0x188] sm:$0xff] }
  0x74   : > { %v294_v52 = vsel %vm2692_vm6, %v292_v46, %v293_v47  ;;  %1727 = vmatpush.bf16.msrb.mxu0 %v2274_v61  ;;  %v2279_v46 = vld [vmem:[%s2983_s1 + $0x150] sm:$0xff]  ;;  %v2285_v47 = vld [vmem:[%s2983_s1 + $0x180] sm:$0xff]  ;;  %v2270_v61 = vld [vmem:[%s2983_s1 + $0x108] sm:$0xff] }
  0x75   : > { %306 = vst.msk [vmem:[#allocation2 + $0x64] sm:$0xf] %vm177_vm15, %v294_v52 }
  0x76   : > { %1750 = vmatpush.bf16.msrb.mxu1 %v2282_v2  ;;  %v990_v2 = vrot.slane %v977_v43, 7 }
  0x77   : > { %1773 = vmatpush.bf16.msrb.mxu2 %v2290_v59 }
  0x78   : > { %1728 = vmatpush.bf16.msrb.mxu0 %v2273_v17  ;;  %v858_v17 = vld [vmem:[%s2352_s17 + $0x14] sm:$0xf]  ;;  %v992_v19 = vrot.slane %v990_v2, 4 }
  0x79   : > { %v623_v4 = vpop.permute.xlu2 %622 }
  0x7a   : > { %637 = vst.msk [vmem:[#allocation2 + $0xc] sm:$0xf] %vm261_vm5, %v623_v4  ;;  %1751 = vmatpush.bf16.msrb.mxu1 %v2281_v56 }
  0x7e   : > { %1752 = vmatpush.bf16.msrb.mxu1 %v2280_v40  ;;  %v980_v40 = vld [vmem:[%s2352_s17 + $0x14] sm:$0xf] }
  0x7f   : > { %v999_v44 = vrot.slane %v980_v40, 7 }
  0x81   : > { %v625_v15 = vpop.permute.xlu2 %624  ;;  %v2222_v20 = vld [vmem:[#allocation2 + $0xc] sm:$0xf] }
  0x82   : > { %638 = vst.msk [vmem:[#allocation2 + $0x2c] sm:$0xf] %vm261_vm5, %v625_v15  ;;  %v2289_v15 = vld [vmem:[%s2983_s1 + $0x1a0] sm:$0xff]  ;;  %1753 = vmatpush.bf16.msrb.mxu1 %v2279_v46  ;;  %v735_v46 = vld [vmem:[%s2352_s17 + $0x10] sm:$0xf] }
  0x83   : > { %1774 = vmatpush.bf16.msrb.mxu2 %v2289_v15  ;;  %v752_v43 = vrot.slane %v735_v46, 5 }
  0x87   : > { %1775 = vmatpush.bf16.msrb.mxu2 %v2288_v18 }
  0x89   : > { %v1924_v29 = vld [vmem:[#allocation2 + $0x28] sm:$0xf0]  ;;  %v508_v30 = vpop.permute.xlu2 %507 }
  0x8a   : > { %v1927_v36 = vor.u32 %v2222_v20, %v1924_v29  ;;  %520 = vst.msk [vmem:[#allocation2 + $0x48] sm:$0xf] %vm261_vm5, %v508_v30  ;;  %v2272_v29 = vld [vmem:[%s2983_s1 + $0x118] sm:$0xff]  ;;  %v2294_v30 = vld [vmem:[%s2983_s1 + $0x1c8] sm:$0xff] }
  0x8b   : > { %v504_v37 = vpop.permute.xlu0 %503  ;;  %1729 = vmatpush.bf16.msrb.mxu0 %v2272_v29  ;;  %1800 = vmatpush.bf16.msrb.mxu3 %v2294_v30 }
  0x8c   : > { %518 = vst.msk [vmem:[#allocation2 + $0x8] sm:$0xf] %vm261_vm5, %v504_v37  ;;  %v247_v6 = vpop.permute.xlu1 %246  ;;  %1710 = vmatmul.bf16.vlgmr.msra.gmra.mxu3 %v1927_v36  ;;  %v856_v36 = vld [vmem:[%s2352_s17 + $0xc] sm:$0xf]  ;;  %v870_v37 = vrot.slane %v868_v26, 4  ;;  %1776 = vmatpush.bf16.msrb.mxu2 %v2287_v23  ;;  %v877_v26 = vrot.slane %v858_v17, 6 }
  0x8d   : > { %262 = vst.msk [vmem:[#allocation2] sm:$0xf] %vm261_vm5, %v247_v6  ;;  %v871_v39 = vrot.slane %v856_v36, 6 }
  0x8f   : > { %v872_v24 = vsel %vm2619_vm2, %v870_v37, %v871_v39  ;;  %1730 = vmatpush.bf16.msrb.mxu0 %v2271_v33  ;;  %1801 = vmatpush.bf16.msrb.mxu3 %v2293_v7 }
  0x90   : > { %888 = vst.msk [vmem:[#allocation2 + $0x38] sm:$0xf] %vm177_vm15, %v872_v24  ;;  %1777 = vmatpush.bf16.msrb.mxu2 %v2286_v42 }
  0x91   : > { %v253_v22 = vpop.permute.xlu2 %252  ;;  %v1954_v41 = vld [vmem:[#allocation2 + $0x48] sm:$0xf] }
  0x92   : > { %265 = vst.msk [vmem:[#allocation2 + $0x60] sm:$0xf] %vm261_vm5, %v253_v22  ;;  %v642_v22 = vld [vmem:[%s2352_s17 + $0x4] sm:$0xf] }
  0x93   : > { %v506_v51 = vpop.permute.xlu0 %505  ;;  %v1922_v60 = vld [vmem:[#allocation2 + $0x8] sm:$0xf]  ;;  %647 = vst.msk [vmem:[#allocation2 + $0x10] sm:$0xf] %vm177_vm15, %v642_v22  ;;  %1731 = vmatpush.bf16.msrb.mxu0 %v2270_v61 }
  0x94   : > { %519 = vst.msk [vmem:[#allocation2 + $0x28] sm:$0xf] %vm261_vm5, %v506_v51  ;;  %v249_v54 = vpop.permute.xlu1 %248  ;;  %v1914_v0 = vld [vmem:[#allocation2] sm:$0xf]  ;;  %v733_v51 = vld [vmem:[%s2352_s17 + $0x8] sm:$0xf]  ;;  %1778 = vmatpush.bf16.msrb.mxu2 %v2285_v47 }
  0x95   : > { %263 = vst.msk [vmem:[#allocation2 + $0x20] sm:$0xf] %vm261_vm5, %v249_v54  ;;  %v746_v57 = vrot.slane %v733_v51, 5 }
  0x97   : > { %v747_v59 = vsel %vm2692_vm6, %v1909_v55, %v746_v57  ;;  %v748_v10 = vrot.slane %v746_v57, 4  ;;  %v879_v57 = vrot.slane %v877_v26, 4 }
  0x98   : > { %765 = vst.msk [vmem:[#allocation2 + $0x14] sm:$0xf] %vm177_vm15, %v747_v59 }
  0x99   : > { %v380_v4 = vpop.permute.xlu2 %379  ;;  %v2233_v27 = vld [vmem:[#allocation2 + $0x5c] sm:$0xf0] }
  0x9a   : > { %392 = vst.msk [vmem:[#allocation2 + $0x44] sm:$0xf] %vm261_vm5, %v380_v4  ;;  %v2864_v4 = vld [vmem:[%s2352_s17 + $0xc] sm:$0xf] }
  0x9b   : > { %v376_v8 = vpop.permute.xlu0 %375  ;;  %v2226_v9 = vld [vmem:[#allocation2 + $0x24] sm:$0xf0] }
  0x9c   : > { %390 = vst.msk [vmem:[#allocation2 + $0x4] sm:$0xf] %vm261_vm5, %v376_v8  ;;  %v378_v11 = vpop.permute.xlu1 %377  ;;  %v2225_v12 = vld [vmem:[#allocation2 + $0x1c] sm:$0xf0]  ;;  %v1923_v13 = vor.u32 %v2226_v9, %v1922_v60  ;;  %v2278_v60 = vld [vmem:[%s2983_s1 + $0x148] sm:$0xff]  ;;  %v873_v8 = vrot.slane %v871_v39, 4 }
  0x9d   : > { %391 = vst.msk [vmem:[#allocation2 + $0x24] sm:$0xf] %vm261_vm5, %v378_v11  ;;  %v1915_v16 = vor.u32 %v2225_v12, %v1914_v0  ;;  %v874_v0 = vrot.slane %v857_v3, 6  ;;  %v978_v9 = vld [vmem:[%s2352_s17 + $0xc] sm:$0xf]  ;;  %v749_v11 = vrot.slane %v2864_v4, 5  ;;  %1754 = vmatpush.bf16.msrb.mxu1 %v2278_v60 }
  0x9e   : > { %1687 = vmatmul.bf16.vlgmr.msra.gmra.mxu2 %v1923_v13  ;;  %v2269_v12 = vld [vmem:[%s2983_s1 + $0x100] sm:$0xff]  ;;  %v1911_v13 = vrot.slane %v976_v63, 11  ;;  %v993_v28 = vrot.slane %v978_v9, 7  ;;  %v644_v39 = vld [vmem:[%s2352_s17 + $0xc] sm:$0xf] }
  0x9f   : > { %1641 = vmatmul.bf16.vlgmr.msra.gmra.mxu0 %v1915_v16  ;;  %v875_v16 = vsel %vm2619_vm2, %v873_v8, %v874_v0  ;;  %v876_v18 = vrot.slane %v874_v0, 4  ;;  %v750_v25 = vsel %vm2692_vm6, %v748_v10, %v749_v11  ;;  %649 = vst.msk [vmem:[#allocation2 + $0x50] sm:$0xf] %vm177_vm15, %v644_v39  ;;  %v981_v8 = vld [vmem:[%s2352_s17 + $0x18] sm:$0x7] }
  0xa0   : > { %1732 = vmatpush.bf16.msrb.mxu0 %v2269_v12  ;;  %889 = vst.msk [vmem:[#allocation2 + $0x58] sm:$0xf] %vm177_vm15, %v875_v16  ;;  %v994_v23 = vsel %vm2554_vm14, %v992_v19, %v993_v28  ;;  %v737_v10 = vld [vmem:[%s2352_s17 + $0x18] sm:$0x1]  ;;  %v1002_v12 = vrot.slane %v981_v8, 7 }
  0xa1   : > { %v631_v20 = vpop.permute.xlu2 %630  ;;  %v878_v30 = vsel %vm2619_vm2, %v876_v18, %v877_v26  ;;  %766 = vst.msk [vmem:[#allocation2 + $0x34] sm:$0xf] %vm177_vm15, %v750_v25  ;;  %v2229_v37 = vld [vmem:[#allocation2 + $0x44] sm:$0xf]  ;;  %v758_v16 = vrot.slane %v737_v10, 5 }
  0xa2   : > { %641 = vst.msk [vmem:[#allocation2 + $0x8c] sm:$0xf] %vm261_vm5, %v631_v20 }
  0xa3   : > { %v510_v32 = vpop.permute.xlu0 %509  ;;  %v2221_v34 = vld [vmem:[#allocation2 + $0x4] sm:$0xf]  ;;  %890 = vst.msk [vmem:[#allocation2 + $0x78] sm:$0xf] %vm177_vm15, %v878_v30 }
  0xa4   : > { %521 = vst.msk [vmem:[#allocation2 + $0x68] sm:$0xf] %vm261_vm5, %v510_v32  ;;  %v251_v1 = vpop.permute.xlu1 %250  ;;  %v1916_v6 = vld [vmem:[#allocation2 + $0x20] sm:$0xf0]  ;;  %v991_v32 = vsel %vm2554_vm14, %v1911_v13, %v990_v2 }
  0xa5   : > { %264 = vst.msk [vmem:[#allocation2 + $0x40] sm:$0xf] %vm261_vm5, %v251_v1  ;;  %v1919_v31 = vor.u32 %v2221_v34, %v1916_v6  ;;  %v979_v34 = vld [vmem:[%s2352_s17 + $0x10] sm:$0xf]  ;;  %v2277_v6 = vld [vmem:[%s2983_s1 + $0x140] sm:$0xff] }
  0xa6   : > { %v996_v36 = vrot.slane %v979_v34, 7  ;;  %1009 = vst.msk [vmem:[#allocation2 + $0x1c] sm:$0xf] %vm177_vm15, %v991_v32  ;;  %1755 = vmatpush.bf16.msrb.mxu1 %v2277_v6 }
  0xa7   : > { %1664 = vmatmul.bf16.vlgmr.msra.gmra.mxu1 %v1919_v31  ;;  %1010 = vst.msk [vmem:[#allocation2 + $0x3c] sm:$0xf] %vm177_vm15, %v994_v23 }
  0xa8   : > { %v998_v33 = vrot.slane %v996_v36, 4 }
  0xa9   : > { %v957_v45 = vpop.permute.xlu2 %956 }
  0xaa   : > { %971 = vst.msk [vmem:[#allocation2 + $0x18] sm:$0xf] %vm261_vm5, %v957_v45  ;;  %v995_v45 = vrot.slane %v993_v28, 4  ;;  %v1000_v51 = vsel %vm2554_vm14, %v998_v33, %v999_v44 }
  0xab   : > { %v627_v50 = vpop.permute.xlu0 %626  ;;  %v2234_v49 = vld [vmem:[#allocation2 + $0x64] sm:$0xf0]  ;;  %1012 = vst.msk [vmem:[#allocation2 + $0x7c] sm:$0xf] %vm177_vm15, %v1000_v51 }
  0xac   : > { %639 = vst.msk [vmem:[#allocation2 + $0x4c] sm:$0xf] %vm261_vm5, %v627_v50  ;;  %v629_v52 = vpop.permute.xlu1 %628  ;;  %v1946_v53 = vld [vmem:[#allocation2 + $0x40] sm:$0xf]  ;;  %v1955_v54 = vor.u32 %v2234_v49, %v1954_v41  ;;  %v997_v47 = vsel %vm2554_vm14, %v995_v45, %v996_v36  ;;  %v736_v49 = vld [vmem:[%s2352_s17 + $0x14] sm:$0xf] }
  0xad   : > { %640 = vst.msk [vmem:[#allocation2 + $0x6c] sm:$0xf] %vm261_vm5, %v629_v52  ;;  %v1947_v58 = vor.u32 %v2233_v27, %v1946_v53  ;;  %v751_v53 = vrot.slane %v749_v11, 4  ;;  %v755_v55 = vrot.slane %v736_v49, 5  ;;  %v1001_v11 = vrot.slane %v999_v44, 4 }
  0xae   : > { %1692 = vmatmul.bf16.gmra.mxu2 %v1955_v54  ;;  %1011 = vst.msk [vmem:[#allocation2 + $0x5c] sm:$0xf] %vm177_vm15, %v997_v47  ;;  %v754_v54 = vrot.slane %v752_v43, 4  ;;  %v2224_v28 = vld [vmem:[#allocation2 + $0x1c] sm:$0xf] }
  0xaf   : > { %1646 = vmatmul.bf16.gmra.mxu0 %v1947_v58  ;;  %v859_v58 = vld [vmem:[%s2352_s17 + $0x18] sm:$0x3]  ;;  %v753_v61 = vsel %vm2692_vm6, %v751_v53, %v752_v43  ;;  %v1003_v25 = vsel %vm2554_vm14, %v1001_v11, %v1002_v12 }
  0xb0   : > { %v880_v63 = vrot.slane %v859_v58, 6  ;;  %v756_v4 = vsel %vm2692_vm6, %v754_v54, %v755_v55  ;;  %767 = vst.msk [vmem:[#allocation2 + $0x54] sm:$0xf] %vm177_vm15, %v753_v61 }
  0xb1   : > { %v715_v5 = vpop.permute.xlu2 %714  ;;  %768 = vst.msk [vmem:[#allocation2 + $0x74] sm:$0xf] %vm177_vm15, %v756_v4  ;;  %v1938_v21 = vld [vmem:[#allocation2 + $0x18] sm:$0xf] }
  0xb2   : > { %728 = vst.msk [vmem:[#allocation2 + $0x30] sm:$0xf] %vm261_vm5, %v715_v5  ;;  %v881_v60 = vsel %vm2619_vm2, %v879_v57, %v880_v63 }
  0xb3   : > { %v382_v14 = vpop.permute.xlu0 %381  ;;  %v2230_v15 = vld [vmem:[#allocation2 + $0x4c] sm:$0xf]  ;;  %891 = vst.msk [vmem:[#allocation2 + $0x98] sm:$0xf] %vm177_vm15, %v881_v60 }
  0xb4   : > { %393 = vst.msk [vmem:[#allocation2 + $0x64] sm:$0xf] %vm261_vm5, %v382_v14  ;;  %v512_v20 = vpop.permute.xlu1 %511  ;;  %v1956_v56 = vld [vmem:[#allocation2 + $0x68] sm:$0xf0]  ;;  %v646_v14 = vld [vmem:[%s2352_s17 + $0x14] sm:$0xf] }
  0xb5   : > { %522 = vst.msk [vmem:[#allocation2 + $0x88] sm:$0xf] %vm261_vm5, %v512_v20  ;;  %v1959_v29 = vor.u32 %v2230_v15, %v1956_v56  ;;  %v757_v15 = vrot.slane %v755_v55, 4  ;;  %v2232_v40 = vld [vmem:[#allocation2 + $0x5c] sm:$0xf] }
  0xb6   : > { %651 = vst.msk [vmem:[#allocation2 + $0x90] sm:$0xf] %vm177_vm15, %v646_v14 }
  0xb7   : > { %1715 = vmatmul.bf16.gmra.mxu3 %v1959_v29  ;;  %v759_v19 = vsel %vm2692_vm6, %v757_v15, %v758_v16  ;;  %1013 = vst.msk [vmem:[#allocation2 + $0x9c] sm:$0xf] %vm177_vm15, %v1003_v25  ;;  %v1940_v29 = vld [vmem:[#allocation2 + $0x38] sm:$0xf0]  ;;  %v2308_v16 = vld [vmem:[%s2984_s2] ss:$0 sm:$0xff] }
  0xb8   : > { %769 = vst.msk [vmem:[#allocation2 + $0x94] sm:$0xf] %vm177_vm15, %v759_v19  ;;  %v1943_v30 = vor.u32 %v2224_v28, %v1940_v29 }
  0xb9   : > { %v961_v1 = vpop.permute.xlu2 %960  ;;  %v2227_v34 = vld [vmem:[#allocation2 + $0x2c] sm:$0xf0] }
  0xba   : > { %973 = vst.msk [vmem:[#allocation2 + $0x58] sm:$0xf] %vm261_vm5, %v961_v1 }
  0xbb   : > { %v255_v31 = vpop.permute.xlu0 %254  ;;  %v1948_v24 = vld [vmem:[#allocation2 + $0x60] sm:$0xf0] }
  0xbc   : > { %266 = vst.msk [vmem:[#allocation2 + $0x80] sm:$0xf] %vm261_vm5, %v255_v31  ;;  %v384_v27 = vpop.permute.xlu1 %383  ;;  %v1951_v41 = vor.u32 %v2229_v37, %v1948_v24  ;;  %v1031_v42 = vld [vmem:[#allocation2 + $0x88] sm:$0xff] }
  0xbd   : > { %394 = vst.msk [vmem:[#allocation2 + $0x84] sm:$0xf] %vm261_vm5, %v384_v27  ;;  %v1212_v22 = vunpack.c.l.b16 %v1031_v42  ;;  %v1213_v50 = vunpack.c.h.b16 %v1031_v42  ;;  %v1972_v27 = vld [vmem:[#allocation2 + $0x78] sm:$0xf0] }
  0xbe   : > { %1669 = vmatmul.bf16.gmra.mxu1 %v1951_v41  ;;  %v1975_v41 = vor.u32 %v2232_v40, %v1972_v27 }
  0xbf   : > { %v1236_v48 = vpack.c.b16 %v1212_v22, %v1212_v22  ;;  %v1237_v5 = vpack.c.b16 %v1213_v50, %v1213_v50 }
  0xc1   : > { %1697 = vmatmul.bf16.gmra.mxu2 %v1236_v48  ;;  %v719_v52 = vpop.permute.xlu2 %718  ;;  %v1970_v6 = vld [vmem:[#allocation2 + $0x58] sm:$0xf] }
  0xc2   : > { %730 = vst.msk [vmem:[#allocation2 + $0x70] sm:$0xf] %vm261_vm5, %v719_v52 }
  0xc3   : > { %v959_v59 = vpop.permute.xlu0 %958 }
  0xc4   : > { %972 = vst.msk [vmem:[#allocation2 + $0x38] sm:$0xf] %vm261_vm5, %v959_v59  ;;  %v1030_v2 = vld [vmem:[#allocation2 + $0x80] sm:$0xff]  ;;  %v713_v3 = vpop.permute.xlu1 %712 }
  0xc5   : > { %v1210_v7 = vunpack.c.l.b16 %v1030_v2  ;;  %727 = vst.msk [vmem:[#allocation2 + $0x10] sm:$0xf] %vm261_vm5, %v713_v3  ;;  %v1211_v9 = vunpack.c.h.b16 %v1030_v2 }
  0xc7   : > { %1720 = vmatmul.bf16.gmra.mxu3 %v1237_v5  ;;  %v1234_v0 = vpack.c.b16 %v1210_v7, %v1210_v7  ;;  %v1235_v20 = vpack.c.b16 %v1211_v9, %v1211_v9 }
  0xc9   : > { %1651 = vmatmul.bf16.gmra.mxu0 %v1234_v0  ;;  %v965_v13 = vpop.permute.xlu2 %964  ;;  %v2235_v33 = vld [vmem:[#allocation2 + $0x6c] sm:$0xf0] }
  0xca   : > { %975 = vst.msk [vmem:[#allocation2 + $0x98] sm:$0xf] %vm261_vm5, %v965_v13 }
  0xcb   : > { %v835_v17 = vpop.permute.xlu0 %834  ;;  %v2228_v18 = vld [vmem:[#allocation2 + $0x34] sm:$0xf0] }
  0xcc   : > { %849 = vst.msk [vmem:[#allocation2 + $0x14] sm:$0xf] %vm261_vm5, %v835_v17  ;;  %v837_v56 = vpop.permute.xlu1 %836  ;;  %v1939_v26 = vor.u32 %v2228_v18, %v1938_v21  ;;  %v1930_v32 = vld [vmem:[#allocation2 + $0x10] sm:$0xf] }
  0xcd   : > { %850 = vst.msk [vmem:[#allocation2 + $0x34] sm:$0xf] %vm261_vm5, %v837_v56  ;;  %v1931_v23 = vor.u32 %v2227_v34, %v1930_v32 }
  0xce   : > { %1674 = vmatmul.bf16.gmra.mxu1 %v1235_v20 }
  0xd1   : > { %1779 = vmatmul.bf16.vlgmr.msrb.gmra.mxu2 %v1939_v26  ;;  %v1033_v22 = vld [vmem:[#allocation2 + $0x98] sm:$0xff] }
  0xd2   : > { %v1216_v43 = vunpack.c.l.b16 %v1033_v22  ;;  %v1217_v52 = vunpack.c.h.b16 %v1033_v22 }
  0xd3   : > { %v963_v62 = vpop.permute.xlu0 %962  ;;  %v2223_v36 = vld [vmem:[#allocation2 + $0x14] sm:$0xf] }
  0xd4   : > { %974 = vst.msk [vmem:[#allocation2 + $0x78] sm:$0xf] %vm261_vm5, %v963_v62  ;;  %v717_v35 = vpop.permute.xlu1 %716  ;;  %v1932_v37 = vld [vmem:[#allocation2 + $0x30] sm:$0xf0]  ;;  %v1240_v49 = vpack.c.b16 %v1216_v43, %v1216_v43  ;;  %v1241_v54 = vpack.c.b16 %v1217_v52, %v1217_v52 }
  0xd5   : > { %729 = vst.msk [vmem:[#allocation2 + $0x50] sm:$0xf] %vm261_vm5, %v717_v35  ;;  %v1935_v1 = vor.u32 %v2223_v36, %v1932_v37 }
  0xd7   : > { %2216 = vmatmul.msk.bf16.vlgmr.msrb.gmra.mxu3 %vm1623_vm7, %v1943_v30 }
  0xd9   : > { %1733 = vmatmul.bf16.vlgmr.msrb.gmra.mxu0 %v1931_v23 }
  0xdb   : > { %v2236_v38 = vld [vmem:[#allocation2 + $0x74] sm:$0xf0]  ;;  %v839_v39 = vpop.permute.xlu0 %838 }
  0xdc   : > { %851 = vst.msk [vmem:[#allocation2 + $0x54] sm:$0xf] %vm261_vm5, %v839_v39  ;;  %v841_v31 = vpop.permute.xlu1 %840  ;;  %v1971_v24 = vor.u32 %v2236_v38, %v1970_v6  ;;  %v1962_v45 = vld [vmem:[#allocation2 + $0x50] sm:$0xf] }
  0xdd   : > { %852 = vst.msk [vmem:[#allocation2 + $0x74] sm:$0xf] %vm261_vm5, %v841_v31  ;;  %v1963_v46 = vor.u32 %v2235_v33, %v1962_v45 }
  0xde   : > { %1756 = vmatmul.bf16.vlgmr.msrb.gmra.mxu1 %v1935_v1 }
  0xe1   : > { %1784 = vmatmul.bf16.gmra.mxu2 %v1971_v24 }
  0xe3   : > { %v721_v42 = vpop.permute.xlu0 %720  ;;  %v2231_v47 = vld [vmem:[#allocation2 + $0x54] sm:$0xf] }
  0xe4   : > { %731 = vst.msk [vmem:[#allocation2 + $0x90] sm:$0xf] %vm261_vm5, %v721_v42  ;;  %v843_v44 = vpop.permute.xlu1 %842  ;;  %v1964_v48 = vld [vmem:[#allocation2 + $0x70] sm:$0xf0] }
  0xe5   : > { %853 = vst.msk [vmem:[#allocation2 + $0x94] sm:$0xf] %vm261_vm5, %v843_v44  ;;  %v1967_v50 = vor.u32 %v2231_v47, %v1964_v48 }
  0xe7   : > { %2217 = vmatmul.msk.bf16.gmra.mxu3 %vm1623_vm7, %v1975_v41 }
  0xe9   : > { %1738 = vmatmul.bf16.gmra.mxu0 %v1963_v46 }
  0xec   : > { %v1032_v51 = vld [vmem:[#allocation2 + $0x90] sm:$0xff] }
  0xed   : > { %v1214_v53 = vunpack.c.l.b16 %v1032_v51  ;;  %v1215_v57 = vunpack.c.h.b16 %v1032_v51 }
  0xee   : > { %1761 = vmatmul.bf16.gmra.mxu1 %v1967_v50 }
  0xef   : > { %v1238_v55 = vpack.c.b16 %v1214_v53, %v1214_v53  ;;  %v1239_v58 = vpack.c.b16 %v1215_v57, %v1215_v57 }
  0xf1   : > { %1789 = vmatmul.bf16.gmra.mxu2 %v1240_v49 }
  0xf7   : > { %2218 = vmatmul.msk.bf16.gmra.mxu3 %vm1623_vm7, %v1241_v54 }
  0xf9   : > { %1743 = vmatmul.bf16.gmra.mxu0 %v1238_v55 }
  0xfe   : > { %1766 = vmatmul.bf16.gmra.mxu1 %v1239_v58 }
 0x10f   : > { %v1711_v63 = vpop.f32.mrf.mxu3 }
 0x117   : > { %v1713_v5 = vpop.f32.mrf.mxu3 }
 0x11c   : > { %v1642_v59 = vpop.f32.mrf.mxu0 }
 0x11d   : > { %v1643_v19 = vadd.f32 %v2308_v16, %v1642_v59 }
 0x121   : > { %v1688_v61 = vpop.f32.mrf.mxu2 }
 0x124   : > { %v1665_v2 = vpop.f32.mrf.mxu1  ;;  %v1644_v4 = vpop.f32.mrf.mxu0 }
 0x125   : > { %v1666_v56 = vadd.f32 %v1665_v2, %v1643_v19  ;;  %v1645_v62 = vadd.f32 %v2308_v16, %v1644_v4 }
 0x127   : > { %v1689_v28 = vadd.f32 %v1688_v61, %v1666_v56 }
 0x129   : > { %v1690_v3 = vpop.f32.mrf.mxu2  ;;  %v1712_v34 = vadd.f32 %v1711_v63, %v1689_v28 }
 0x12c   : > { %v1667_v60 = vpop.f32.mrf.mxu1  ;;  %v1647_v8 = vpop.f32.mrf.mxu0 }
 0x12d   : > { %v1668_v32 = vadd.f32 %v1667_v60, %v1645_v62  ;;  %v1648_v38 = vadd.f32 %v2308_v16, %v1647_v8 }
 0x12f   : > { %v1691_v37 = vadd.f32 %v1690_v3, %v1668_v32 }
 0x131   : > { %v1693_v7 = vpop.f32.mrf.mxu2  ;;  %v1714_v27 = vadd.f32 %v1713_v5, %v1691_v37 }
 0x134   : > { %v1649_v11 = vpop.f32.mrf.mxu0 }
 0x135   : > { %v1650_v43 = vadd.f32 %v2308_v16, %v1649_v11 }
 0x139   : > { %v1695_v10 = vpop.f32.mrf.mxu2 }
 0x13a   : > { %v1716_v0 = vpop.f32.mrf.mxu3 }
 0x13b   : > { %v1670_v9 = vpop.f32.mrf.mxu1 }
 0x13c   : > { %v1671_v24 = vadd.f32 %v1670_v9, %v1648_v38 }
 0x13e   : > { %v1694_v44 = vadd.f32 %v1693_v7, %v1671_v24 }
 0x140   : > { %v1717_v53 = vadd.f32 %v1716_v0, %v1694_v44 }
 0x142   : > { %v2951_v12 = vpop.f32.mrf.mxu3 }
 0x143   : > { %v1672_v13 = vpop.f32.mrf.mxu1 }
 0x144   : > { %v2953_v14 = vpop.f32.mrf.mxu2  ;;  %v1673_v51 = vadd.f32 %v1672_v13, %v1650_v43 }
 0x146   : > { %v1652_v15 = vpop.f32.mrf.mxu0  ;;  %v1696_v59 = vadd.f32 %v1695_v10, %v1673_v51 }
 0x147   : > { %v1653_v61 = vadd.f32 %v2308_v16, %v1652_v15 }
 0x148   : > { %v1719_v0 = vadd.f32 %v2951_v12, %v1696_v59 }
 0x14a   : > { %v2958_v21 = vpop.f32.mrf.mxu3 }
 0x14b   : > { %v1675_v17 = vpop.f32.mrf.mxu1 }
 0x14c   : > { %v1700_v18 = vpop.f32.mrf.mxu2  ;;  %v1676_v60 = vadd.f32 %v1675_v17, %v1653_v61 }
 0x14e   : > { %v1654_v20 = vpop.f32.mrf.mxu0  ;;  %v1699_v10 = vadd.f32 %v2953_v14, %v1676_v60 }
 0x152   : > { %v1723_v25 = vpop.f32.mrf.mxu3 }
 0x153   : > { %v1677_v26 = vpop.f32.mrf.mxu1 }
 0x154   : > { %v1780_v29 = vpop.f32.mrf.mxu2  ;;  %v1722_v26 = vadd.f32 %v2958_v21, %v1699_v10 }
 0x156   : > { %v1734_v30 = vpop.f32.mrf.mxu0 }
 0x157   : > { %v1735_v35 = vadd.f32 %v1734_v30, %v1712_v34 }
 0x15a   : > { %v1803_v23 = vpop.f32.mrf.mxu3 }
 0x15b   : > { %v1757_v36 = vpop.f32.mrf.mxu1 }
 0x15c   : > { %v1758_v1 = vadd.f32 %v1757_v36, %v1735_v35  ;;  %v1782_v6 = vpop.f32.mrf.mxu2 }
 0x15e   : > { %v1781_v39 = vadd.f32 %v1780_v29, %v1758_v1  ;;  %v1736_v31 = vpop.f32.mrf.mxu0 }
 0x15f   : > { %v1737_v42 = vadd.f32 %v1736_v31, %v1714_v27 }
 0x160   : > { %v1804_v40 = vadd.f32 %v1803_v23, %v1781_v39 }
 0x162   : > { %vm1817_vm8 = vcmp.ge.f32.partialorder %v1804_v40, 0.0  ;;  %v1822_v41 = vmul.f32 0.1, %v1804_v40  ;;  %v1805_v45 = vpop.f32.mrf.mxu3 }
 0x163   : > { %v1759_v33 = vpop.f32.mrf.mxu1 }
 0x164   : > { %v1827_v22 = vsel %vm1817_vm8, %v1804_v40, %v1822_v41  ;;  %v1760_v46 = vadd.f32 %v1759_v33, %v1737_v42  ;;  %v1785_v47 = vpop.f32.mrf.mxu2 }
 0x165   : > { %v1832_v48 = vpack.c.bf16 %v1827_v22, %v1827_v22 }
 0x166   : > { %v1783_v50 = vadd.f32 %v1782_v6, %v1760_v46  ;;  %v1739_v49 = vpop.f32.mrf.mxu0 }
 0x167   : > { %1838 = vst.msk [vmem:[%s2964_s24] sm:$0xf] %vm1837_vm9, %v1832_v48  ;;  %v1740_v55 = vadd.f32 %v1739_v49, %v1717_v53 }
 0x168   : > { %v1806_v52 = vadd.f32 %v1805_v45, %v1783_v50 }
 0x16a   : > { %vm1818_vm10 = vcmp.ge.f32.partialorder %v1806_v52, 0.0  ;;  %v1823_v54 = vmul.f32 0.1, %v1806_v52  ;;  %v1808_v57 = vpop.f32.mrf.mxu3 }
 0x16b   : > { %v1762_v58 = vpop.f32.mrf.mxu1 }
 0x16c   : > { %v1828_v63 = vsel %vm1818_vm10, %v1806_v52, %v1823_v54  ;;  %v1763_v2 = vadd.f32 %v1762_v58, %v1740_v55  ;;  %v1787_v3 = vpop.f32.mrf.mxu2 }
 0x16d   : > { %v1833_v4 = vpack.c.bf16 %v1828_v63, %v1828_v63 }
 0x16e   : > { %v1786_v5 = vadd.f32 %v1785_v47, %v1763_v2  ;;  %v1741_v7 = vpop.f32.mrf.mxu0 }
 0x16f   : > { %1839 = vst.msk [vmem:[%s2964_s24 + $0x4] sm:$0xf] %vm1837_vm9, %v1833_v4  ;;  %v1742_v11 = vadd.f32 %v1741_v7, %v1719_v0 }
 0x170   : > { %v1809_v8 = vadd.f32 %v1808_v57, %v1786_v5 }
 0x172   : > { %vm1819_vm11 = vcmp.ge.f32.partialorder %v1809_v8, 0.0  ;;  %v1824_v9 = vmul.f32 0.1, %v1809_v8  ;;  %v1810_v13 = vpop.f32.mrf.mxu3 }
 0x173   : > { %v1764_v18 = vpop.f32.mrf.mxu1 }
 0x174   : > { %v1829_v15 = vsel %vm1819_vm11, %v1809_v8, %v1824_v9  ;;  %v1765_v16 = vadd.f32 %v1764_v18, %v1742_v11  ;;  %v1790_v19 = vpop.f32.mrf.mxu2 }
 0x175   : > { %v1834_v20 = vpack.c.bf16 %v1829_v15, %v1829_v15 }
 0x176   : > { %v1788_v56 = vadd.f32 %v1787_v3, %v1765_v16  ;;  %v1744_v25 = vpop.f32.mrf.mxu0 }
 0x177   : > { %1840 = vst.msk [vmem:[%s2964_s24 + $0x8] sm:$0xf] %vm1837_vm9, %v1834_v20  ;;  %v1745_v28 = vadd.f32 %v1744_v25, %v1722_v26 }
 0x178   : > { %v1811_v17 = vadd.f32 %v1810_v13, %v1788_v56 }
 0x17a   : > { %vm1820_vm12 = vcmp.ge.f32.partialorder %v1811_v17, 0.0  ;;  %v1825_v12 = vmul.f32 0.1, %v1811_v17  ;;  %v1813_v29 = vpop.f32.mrf.mxu3 }
 0x17b   : > { %v1767_v62 = vpop.f32.mrf.mxu1 }
 0x17c   : > { %v1830_v30 = vsel %vm1820_vm12, %v1811_v17, %v1825_v12  ;;  %v1768_v14 = vadd.f32 %v1767_v62, %v1745_v28  ;;  %v1792_v32 = vpop.f32.mrf.mxu2 }
 0x17d   : > { %v1835_v34 = vpack.c.bf16 %v1830_v30, %v1830_v30 }
 0x17e   : > { %v1791_v35 = vadd.f32 %v1790_v19, %v1768_v14  ;;  %v1746_v23 = vpop.f32.mrf.mxu0 }
 0x17f   : > { %1841 = vst.msk [vmem:[%s2964_s24 + $0xc] sm:$0xf] %vm1837_vm9, %v1835_v34 }
 0x180   : > { %v1814_v36 = vadd.f32 %v1813_v29, %v1791_v35 }
 0x182   : > { %vm1821_vm13 = vcmp.ge.f32.partialorder %v1814_v36, 0.0  ;;  %v1826_v37 = vmul.f32 0.1, %v1814_v36  ;;  %v1815_v1 = vpop.f32.mrf.mxu3 }
 0x183   : > { %v1769_v6 = vpop.f32.mrf.mxu1 }
 0x184   : > { %v1831_v21 = vsel %vm1821_vm13, %v1814_v36, %v1826_v37 }
 0x185   : > { %v1836_v38 = vpack.c.bf16 %v1831_v21, %v1831_v21 }
 0x187   : > { %1842 = vst.msk [vmem:[%s2964_s24 + $0x10] sm:$0xf] %vm1837_vm9, %v1836_v38 }
 0x188 PF: > { %s13_s12 = sadd.s32 1, %s2315_s12  }
 0x189   : > { %p10_p4 = scmp.ge.s32.totalorder %s13_s12, 4  }
 0x18b   :  { %12 = sbr.rel (!%p10_p4) target bundleno = 1 (0x1), region = 62 }

// kernel: _lambda_.43
= control target key start
LH: loop header
LB: loop body
LE: loop exit
PB: predicated region body
PF: predicated region fallthrough
CT: control target
= control target key end

     0   :  { %s409_s12 = smov 0   ;;  %s445_s0 = inlined_call_operand.vmem [shape: bf16[2,36,64], index: 0, kind: input, shape index: {}]   ;;  %s446_s1 = inlined_call_operand.vmem [shape: bf16[64,32], index: 1, kind: input, shape index: {}]   ;;  %s447_s2 = inlined_call_operand.vmem [shape: f32[1,32], index: 2, kind: input, shape index: {}]   ;;  %s448_s3 = inlined_call_operand.vmem [shape: bf16[2,32,32], index: 3, kind: output, shape index: {}]  }
   0x1 LB: > { %s324_s13 = sadd.s32 4294967295, %s387_s12   ;;  %p328_p0 = scmp.ge.s32.totalorder %s387_s12, 1  ;;  %s387_s12 = sphi %s409_s12, %s13_s12  }
   0x2   : > { %p137_p1 = scmp.lt.s32.totalorder %s387_s12, 3 }
   0x4   : > { %p138_p2 = pnand %p328_p0, %p137_p1 }
   0x5   : > { %p161_p3 = scmp.lt.s32.totalorder (!%p138_p2), %s324_s13, 1 }
   0x6   : > { %141 = sbr.rel (%p138_p2) target bundleno = 170 (0xaa), region = 32 }
   0xb   : > { %v366_v0 = vld [vmem:[%s446_s1 + $0x18] sm:$0xff]  ;;  %v365_v1 = vld [vmem:[%s446_s1 + $0x10] sm:$0xff]  ;;  %s450_s13 = smov (!%p161_p3, %s324_s13), 1  ;;  %v364_v2 = vld [vmem:[%s446_s1 + $0x8] sm:$0xff]  ;;  %vm222_vm0 = vcmask 523264   ;;  %vm264_vm3 = vcmask 257024  }
   0xc   : > { %233 = vmatpush.bf16.msra.mxu0 %v366_v0  ;;  %367 = vmatpush.bf16.msra.mxu1 %v366_v0  ;;  %s371_s20 = smul.u32 20, %s450_s13  ;;  %v363_v3 = vld [vmem:[%s446_s1] sm:$0xff]  ;;  %s360_s28 = sshll.u32 %s450_s13, 4 }
   0xd   : > { %v380_v6 = vld [vmem:[%s447_s2] ss:$0 sm:$0xff]  ;;  %s170_s4 = scalar_lea.vmem %s448_s3, %s360_s28 }
   0xe   : > { %s165_s25 = scalar_lea.vmem %s445_s0, %s371_s20 }
   0xf   : > { %v361_v4 = vld [vmem:[%s165_s25] sm:$0xff]  ;;  %v362_v5 = vld [vmem:[%s165_s25 + $0x8] sm:$0xff] }
  0x10   : > { %234 = vmatpush.bf16.msra.mxu0 %v365_v1  ;;  %368 = vmatpush.bf16.msra.mxu1 %v365_v1 }
  0x14   : > { %235 = vmatpush.bf16.msra.mxu0 %v364_v2  ;;  %369 = vmatpush.bf16.msra.mxu1 %v364_v2 }
  0x18   : > { %236 = vmatpush.bf16.msra.mxu0 %v363_v3  ;;  %370 = vmatpush.bf16.msra.mxu1 %v363_v3 }
  0x1b   : > { %356 = vmatmul.msk.bf16.vlgmr.msra.gmra.mxu0 %vm222_vm0, %v361_v4  ;;  %357 = vmatmul.msk.bf16.vlgmr.msra.gmra.mxu1 %vm222_vm0, %v362_v5 }
  0x98   : > { %v238_v7 = vpop.f32.mrf.mxu0  ;;  %v243_v8 = vpop.f32.mrf.mxu1 }
  0x99   : > { %v239_v9 = vadd.f32 %v380_v6, %v238_v7  ;;  %v244_v10 = vadd.f32 %v380_v6, %v243_v8 }
  0x9b   : > { %vm248_vm1 = vcmp.ge.f32.partialorder %v239_v9, 0.0  ;;  %v252_v11 = vmul.f32 0.1, %v239_v9  ;;  %vm250_vm2 = vcmp.ge.f32.partialorder %v244_v10, 0.0  ;;  %v254_v12 = vmul.f32 0.1, %v244_v10 }
  0x9d   : > { %v256_v13 = vsel %vm248_vm1, %v239_v9, %v252_v11  ;;  %v258_v14 = vsel %vm250_vm2, %v244_v10, %v254_v12 }
  0x9e   : > { %v260_v15 = vpack.c.bf16 %v256_v13, %v256_v13  ;;  %v262_v16 = vpack.c.bf16 %v258_v14, %v258_v14 }
  0xa0   : > { %265 = vst.msk [vmem:[%s170_s4] sm:$0xf] %vm264_vm3, %v260_v15  ;;  %v240_v17 = vpop.f32.mrf.mxu0  ;;  %v245_v18 = vpop.f32.mrf.mxu1 }
  0xa1   : > { %267 = vst.msk [vmem:[%s170_s4 + $0x8] sm:$0xf] %vm264_vm3, %v262_v16  ;;  %v241_v19 = vadd.f32 %v380_v6, %v240_v17  ;;  %v246_v20 = vadd.f32 %v380_v6, %v245_v18 }
  0xa3   : > { %vm249_vm4 = vcmp.ge.f32.partialorder %v241_v19, 0.0  ;;  %v253_v21 = vmul.f32 0.1, %v241_v19  ;;  %vm251_vm5 = vcmp.ge.f32.partialorder %v246_v20, 0.0  ;;  %v255_v22 = vmul.f32 0.1, %v246_v20 }
  0xa5   : > { %v257_v23 = vsel %vm249_vm4, %v241_v19, %v253_v21  ;;  %v259_v24 = vsel %vm251_vm5, %v246_v20, %v255_v22 }
  0xa6   : > { %v261_v25 = vpack.c.bf16 %v257_v23, %v257_v23  ;;  %v263_v26 = vpack.c.bf16 %v259_v24, %v259_v24 }
  0xa8   : > { %266 = vst.msk [vmem:[%s170_s4 + $0x4] sm:$0xf] %vm264_vm3, %v261_v25 }
  0xa9   : > { %268 = vst.msk [vmem:[%s170_s4 + $0xc] sm:$0xf] %vm264_vm3, %v263_v26 }
  0xaa PF: > { %s13_s12 = sadd.s32 1, %s387_s12  }
  0xab   : > { %p10_p4 = scmp.ge.s32.totalorder %s13_s12, 4  }
  0xad   :  { %12 = sbr.rel (!%p10_p4) target bundleno = 1 (0x1), region = 62 }

// kernel: _lambda_.33
= control target key start
LH: loop header
LB: loop body
LE: loop exit
PB: predicated region body
PF: predicated region fallthrough
CT: control target
= control target key end

     0   :  { %s395_s12 = smov 0   ;;  %s431_s0 = inlined_call_operand.vmem [shape: bf16[2,27,64], index: 0, kind: input, shape index: {}]   ;;  %s432_s1 = inlined_call_operand.vmem [shape: bf16[64,32], index: 1, kind: input, shape index: {}]   ;;  %s433_s2 = inlined_call_operand.vmem [shape: f32[1,32], index: 2, kind: input, shape index: {}]   ;;  %s434_s3 = inlined_call_operand.vmem [shape: bf16[2,24,32], index: 3, kind: output, shape index: {}]  }
   0x1 LB: > { %s315_s13 = sadd.s32 4294967295, %s373_s12   ;;  %p319_p0 = scmp.ge.s32.totalorder %s373_s12, 1  ;;  %s373_s12 = sphi %s395_s12, %s13_s12  }
   0x2   : > { %p137_p1 = scmp.lt.s32.totalorder %s373_s12, 3 }
   0x4   : > { %p138_p2 = pnand %p319_p0, %p137_p1 }
   0x5   : > { %p161_p3 = scmp.lt.s32.totalorder (!%p138_p2), %s315_s13, 1 }
   0x6   : > { %141 = sbr.rel (%p138_p2) target bundleno = 169 (0xa9), region = 32 }
   0xb   : > { %v352_v0 = vld [vmem:[%s432_s1 + $0x18] sm:$0xff]  ;;  %v351_v1 = vld [vmem:[%s432_s1 + $0x10] sm:$0xff]  ;;  %s436_s13 = smov (!%p161_p3, %s315_s13), 1  ;;  %v350_v2 = vld [vmem:[%s432_s1 + $0x8] sm:$0xff]  ;;  %vm219_vm0 = vcmask 523264   ;;  %vm256_vm3 = vcmask 257024  }
   0xc   : > { %230 = vmatpush.bf16.msra.mxu0 %v352_v0  ;;  %353 = vmatpush.bf16.msra.mxu1 %v352_v0  ;;  %s347_s18 = sshll.u32 %s436_s13, 4  ;;  %v349_v5 = vld [vmem:[%s432_s1] sm:$0xff]  ;;  %s357_s28 = smul.u32 12, %s436_s13 }
   0xd   : > { %s165_s21 = scalar_lea.vmem %s431_s0, %s347_s18  ;;  %v366_v8 = vld [vmem:[%s433_s2] ss:$0 sm:$0xff] }
   0xe   : > { %v174_v3 = vld [vmem:[%s165_s21 + $0x8] sm:$0xf]  ;;  %v348_v6 = vld [vmem:[%s165_s21] sm:$0xff]  ;;  %s170_s4 = scalar_lea.vmem %s434_s3, %s357_s28 }
   0xf   : > { %v192_v4 = vunpack.c.l.b16 %v174_v3 }
  0x10   : > { %231 = vmatpush.bf16.msra.mxu0 %v351_v1  ;;  %354 = vmatpush.bf16.msra.mxu1 %v351_v1 }
  0x11   : > { %v194_v7 = vpack.c.b16 %v192_v4, %v192_v4 }
  0x14   : > { %232 = vmatpush.bf16.msra.mxu0 %v350_v2  ;;  %355 = vmatpush.bf16.msra.mxu1 %v350_v2 }
  0x18   : > { %233 = vmatpush.bf16.msra.mxu0 %v349_v5  ;;  %356 = vmatpush.bf16.msra.mxu1 %v349_v5 }
  0x1b   : > { %343 = vmatmul.msk.bf16.vlgmr.msra.gmra.mxu0 %vm219_vm0, %v348_v6  ;;  %344 = vmatmul.msk.bf16.vlgmr.msra.gmra.mxu1 %vm219_vm0, %v194_v7 }
  0x98   : > { %v235_v9 = vpop.f32.mrf.mxu0  ;;  %v240_v10 = vpop.f32.mrf.mxu1 }
  0x99   : > { %v236_v11 = vadd.f32 %v366_v8, %v235_v9  ;;  %v241_v12 = vadd.f32 %v366_v8, %v240_v10 }
  0x9b   : > { %vm244_vm1 = vcmp.ge.f32.partialorder %v236_v11, 0.0  ;;  %v247_v13 = vmul.f32 0.1, %v236_v11  ;;  %vm246_vm2 = vcmp.ge.f32.partialorder %v241_v12, 0.0  ;;  %v249_v14 = vmul.f32 0.1, %v241_v12 }
  0x9d   : > { %v250_v15 = vsel %vm244_vm1, %v236_v11, %v247_v13  ;;  %v252_v16 = vsel %vm246_vm2, %v241_v12, %v249_v14 }
  0x9e   : > { %v253_v17 = vpack.c.bf16 %v250_v15, %v250_v15  ;;  %v255_v18 = vpack.c.bf16 %v252_v16, %v252_v16 }
  0xa0   : > { %257 = vst.msk [vmem:[%s170_s4] sm:$0xf] %vm256_vm3, %v253_v17  ;;  %v237_v19 = vpop.f32.mrf.mxu0  ;;  %v242_v20 = vpop.f32.mrf.mxu1 }
  0xa1   : > { %259 = vst.msk [vmem:[%s170_s4 + $0x8] sm:$0xf] %vm256_vm3, %v255_v18  ;;  %v238_v21 = vadd.f32 %v366_v8, %v237_v19 }
  0xa3   : > { %vm245_vm4 = vcmp.ge.f32.partialorder %v238_v21, 0.0  ;;  %v248_v22 = vmul.f32 0.1, %v238_v21 }
  0xa5   : > { %v251_v23 = vsel %vm245_vm4, %v238_v21, %v248_v22 }
  0xa6   : > { %v254_v24 = vpack.c.bf16 %v251_v23, %v251_v23 }
  0xa8   : > { %258 = vst.msk [vmem:[%s170_s4 + $0x4] sm:$0xf] %vm256_vm3, %v254_v24 }
  0xa9 PF: > { %s13_s12 = sadd.s32 1, %s373_s12  }
  0xaa   : > { %p10_p4 = scmp.ge.s32.totalorder %s13_s12, 4  }
  0xac   :  { %12 = sbr.rel (!%p10_p4) target bundleno = 1 (0x1), region = 62 }

// kernel: _lambda_.28
= control target key start
LH: loop header
LB: loop body
LE: loop exit
PB: predicated region body
PF: predicated region fallthrough
CT: control target
= control target key end

     0   :  { %s352_s12 = smov 0   ;;  %s384_s0 = inlined_call_operand.vmem [shape: bf16[2,9,64], index: 0, kind: input, shape index: {}]   ;;  %s385_s1 = inlined_call_operand.vmem [shape: bf16[64,32], index: 1, kind: input, shape index: {}]   ;;  %s386_s2 = inlined_call_operand.vmem [shape: f32[1,32], index: 2, kind: input, shape index: {}]   ;;  %s387_s3 = inlined_call_operand.vmem [shape: bf16[2,8,32], index: 3, kind: output, shape index: {}]  }
   0x1 LB: > { %s283_s13 = sadd.s32 4294967295, %s330_s12   ;;  %p287_p0 = scmp.ge.s32.totalorder %s330_s12, 1  ;;  %s330_s12 = sphi %s352_s12, %s13_s12  }
   0x2   : > { %p137_p1 = scmp.lt.s32.totalorder %s330_s12, 3 }
   0x4   : > { %p138_p2 = pnand %p287_p0, %p137_p1 }
   0x5   : > { %p160_p3 = scmp.lt.s32.totalorder (!%p138_p2), %s283_s13, 1 }
   0x6   : > { %141 = sbr.rel (%p138_p2) target bundleno = 161 (0xa1), region = 32 }
   0xb   : > { %v314_v0 = vld [vmem:[%s385_s1 + $0x18] sm:$0xff]  ;;  %v313_v1 = vld [vmem:[%s385_s1 + $0x10] sm:$0xff]  ;;  %s389_s13 = smov (!%p160_p3, %s283_s13), 1  ;;  %v312_v2 = vld [vmem:[%s385_s1 + $0x8] sm:$0xff]  ;;  %vm207_vm0 = vcmask 523264   ;;  %vm228_vm2 = vcmask 257024  }
   0xc   : > { %215 = vmatpush.bf16.msra.mxu0 %v314_v0  ;;  %s310_s20 = sshll.u32 %s389_s13, 3  ;;  %v311_v3 = vld [vmem:[%s385_s1] sm:$0xff]  ;;  %s290_s28 = sshll.u32 %s389_s13, 2 }
   0xd   : > { %s164_s25 = scalar_lea.vmem %s384_s0, %s310_s20  ;;  %v323_v5 = vld [vmem:[%s386_s2] ss:$0 sm:$0xff]  ;;  %s168_s4 = scalar_lea.vmem %s387_s3, %s290_s28 }
   0xe   : > { %v170_v4 = vld [vmem:[%s164_s25] sm:$0xf] }
  0x10   : > { %216 = vmatpush.bf16.msra.mxu0 %v313_v1 }
  0x14   : > { %217 = vmatpush.bf16.msra.mxu0 %v312_v2 }
  0x18   : > { %218 = vmatpush.bf16.msra.mxu0 %v311_v3 }
  0x1b   : > { %307 = vmatmul.msk.bf16.vlgmr.msra.gmra.mxu0 %vm207_vm0, %v170_v4 }
  0x98   : > { %v220_v6 = vpop.f32.mrf.mxu0 }
  0x99   : > { %v221_v7 = vadd.f32 %v323_v5, %v220_v6 }
  0x9b   : > { %vm224_vm1 = vcmp.ge.f32.partialorder %v221_v7, 0.0  ;;  %v225_v8 = vmul.f32 0.1, %v221_v7 }
  0x9d   : > { %v226_v9 = vsel %vm224_vm1, %v221_v7, %v225_v8 }
  0x9e   : > { %v227_v10 = vpack.c.bf16 %v226_v9, %v226_v9 }
  0xa0   : > { %229 = vst.msk [vmem:[%s168_s4] sm:$0xf] %vm228_vm2, %v227_v10  ;;  %v222_v11 = vpop.f32.mrf.mxu0 }
  0xa1 PF: > { %s13_s12 = sadd.s32 1, %s330_s12  }
  0xa2   : > { %p10_p4 = scmp.ge.s32.totalorder %s13_s12, 4  }
  0xa4   :  { %12 = sbr.rel (!%p10_p4) target bundleno = 1 (0x1), region = 62 }

// kernel: _lambda_.53
= control target key start
LH: loop header
LB: loop body
LE: loop exit
PB: predicated region body
PF: predicated region fallthrough
CT: control target
= control target key end

     0   :  { %s1384_s12 = smov 0   ;;  %s1876_s0 = inlined_call_operand.vmem [shape: bf16[2,77,32], index: 0, kind: input, shape index: {}]   ;;  %s1877_s1 = inlined_call_operand.vmem [shape: bf16[288,32], index: 1, kind: input, shape index: {}]   ;;  %s1878_s2 = inlined_call_operand.vmem [shape: f32[1,32], index: 2, kind: input, shape index: {}]   ;;  %s1879_s3 = inlined_call_operand.vmem [shape: bf16[2,56,32], index: 3, kind: output, shape index: {}]  }
   0x1 LB: > { %s1171_s13 = sadd.s32 4294967295, %s1359_s12   ;;  %p1175_p0 = scmp.ge.s32.totalorder %s1359_s12, 1  ;;  %s1359_s12 = sphi %s1384_s12, %s13_s12  }
   0x2   : > { %p137_p1 = scmp.lt.s32.totalorder %s1359_s12, 3 }
   0x4   : > { %p138_p2 = pnand %p1175_p0, %p137_p1 }
   0x5   : > { %p161_p3 = scmp.lt.s32.totalorder (!%p138_p2), %s1171_s13, 1  ;;  %s1361_s18 = smov (!%p138_p2), 64  }
   0x6   : > { %141 = sbr.rel (%p138_p2) target bundleno = 397 (0x18d), region = 32  ;;  %s1362_s19 = smov (!%p138_p2), 32  }
   0x7   : > { %s1363_s20 = smov (!%p138_p2), 96  }
   0xb   : > { %s1889_s13 = smov (!%p161_p3, %s1171_s13), 1  ;;  %vm317_vm0 = vcmask 1042432   ;;  %vm318_vm1 = vcmask 1046532   ;;  %vm195_vm2 = vsmask.f32 3328  ;;  %vm618_vm9 = vcmask 1040384  }
   0xc   : > { %s1339_s14 = smul.u32 40, %s1889_s13  ;;  %vm196_vm3 = vsmask.f32 7440  ;;  %vm379_vm4 = vsmask.f32 256  ;;  %vm1407_vm5 = vmor %vm317_vm0, %vm318_vm1  ;;  %vm619_vm10 = vcmask 1044484  }
   0xd   : > { %vm1431_vm6 = vmor %vm195_vm2, %vm196_vm3  ;;  %vm380_vm7 = vsmask.f32 4368  ;;  %vm179_vm12 = vcmask 257024   ;;  %v1687_v8 = vld [vmem:[%s1877_s1 + $0x78] sm:$0xff]  ;;  %v1306_v26 = vld [vmem:[%s1877_s1 + $0x8] sm:$0xff]  ;;  %vm1005_vm13 = vcmask 261120  }
   0xe   : > { %s1398_s17 = scalar_lea.vmem %s1876_s0, %s1339_s14  ;;  %vm1466_vm8 = vmor %vm379_vm4, %vm380_vm7  ;;  %1331 = vmatpush.bf16.msra.mxu1 %v1687_v8  ;;  %vm293_vm14 = vcmask 519424   ;;  %vm363_vm15 = vcmask 781824   ;;  %vm470_vm0 = vcmask 1044224   ;;  %s1340_s7 = smul.u32 28, %s1889_s13 }
   0xf   : > { %v1401_v0 = vld [vmem:[%s1398_s17 + $0x8] sm:$0xf]  ;;  %v304_v1 = vld [vmem:[%s1398_s17 + $0xc] sm:$0xf]  ;;  %v1412_v11 = vld [vmem:[%s1398_s17 + $0x10] sm:$0xf] }
  0x10   : > { %v189_v2 = vld [vmem:[%s1398_s17 + $0x8] sm:$0xf]  ;;  %v325_v3 = vrot.slane %v1401_v0, 5  ;;  %v328_v4 = vrot.slane %v304_v1, 5  ;;  %v190_v5 = vld [vmem:[%s1398_s17 + $0xc] sm:$0xf]  ;;  %vm1517_vm11 = vmor %vm618_vm9, %vm619_vm10  ;;  %s1857_s10 = scalar_lea.vmem %s1879_s3, %s1340_s7 }
  0x11   : > { %v218_v6 = vshll.u32 %v189_v2, 16  ;;  %v222_v7 = vshrl.u32 %v189_v2, 16  ;;  %v228_v9 = vshll.u32 %v190_v5, 16  ;;  %v232_v10 = vshrl.u32 %v190_v5, 16  ;;  %v1415_v12 = vld [vmem:[%s1398_s17 + $0x10] sm:$0xf] }
  0x12   : > { %v327_v13 = vrot.slane %v325_v3, 4  ;;  %v495_v16 = vld [vmem:[%s1398_s17 + $0x10] sm:$0xf]  ;;  %v330_v19 = vrot.slane %v328_v4, 4  ;;  %v331_v20 = vrot.slane %v1412_v11, 5  ;;  %v238_v23 = vshll.u32 %v1415_v12, 16 }
  0x13   : > { %v1419_v14 = vrot.slane %v218_v6, 5  ;;  %v224_v15 = vrot.slane %v222_v7, 4  ;;  %v230_v17 = vrot.slane %v228_v9, 5  ;;  %v234_v18 = vrot.slane %v232_v10, 4  ;;  %v494_v25 = vld [vmem:[%s1398_s17 + $0xc] sm:$0xf] }
  0x14   : > { %v329_v21 = vsel %vm1407_vm5, %v327_v13, %v328_v4  ;;  %v530_v24 = vshll.u32 %v495_v16, 16  ;;  %v534_v28 = vshrl.u32 %v495_v16, 16  ;;  %v1436_v29 = vld [vmem:[%s1398_s17 + $0x8] sm:$0xf]  ;;  %v374_v30 = vld [vmem:[%s1398_s17 + $0xc] sm:$0xf]  ;;  %v332_v34 = vsel %vm1407_vm5, %v330_v19, %v331_v20 }
  0x15   : > { %v225_v22 = vor.u32 %v224_v15, %v1419_v14  ;;  %346 = vrot.lane.b32.xlu1 %v329_v21, %s1361_s18  ;;  %v235_v27 = vor.u32 %v234_v18, %v230_v17  ;;  %v1440_v32 = vld [vmem:[%s1398_s17 + $0x14] sm:$0xf]  ;;  %v520_v36 = vshll.u32 %v494_v25, 16  ;;  %v524_v37 = vshrl.u32 %v494_v25, 16  ;;  %v1458_v46 = vld [vmem:[%s1398_s17 + $0xc] sm:$0xf] }
  0x16   : > { %v1442_v33 = vrot.slane %v530_v24, 5  ;;  %v536_v35 = vrot.slane %v534_v28, 4  ;;  %v1450_v39 = vrot.slane %v238_v23, 5  ;;  %v397_v40 = vshrl.u32 %v1436_v29, 16  ;;  %v674_v51 = vld [vmem:[%s1398_s17 + $0x10] sm:$0xf] }
  0x17   : > { %v226_v31 = vrot.slane %v225_v22, 4  ;;  %v406_v41 = vshrl.u32 %v374_v30, 16  ;;  %v236_v42 = vrot.slane %v235_v27, 4  ;;  %v540_v43 = vshll.u32 %v1440_v32, 16  ;;  %v375_v56 = vld [vmem:[%s1398_s17 + $0x10] sm:$0xf] }
  0x18   : > { %v1455_v44 = vrot.slane %v520_v36, 5  ;;  %v526_v45 = vrot.slane %v524_v37, 4  ;;  %v537_v47 = vor.u32 %v536_v35, %v1442_v33  ;;  %v1461_v48 = vrot.slane %v397_v40, 7  ;;  %v188_v2 = vld [vmem:[%s1398_s17 + $0x4] sm:$0xf] }
  0x19   : > { %v231_v38 = vsel %vm1431_vm6, %v226_v31, %v230_v17  ;;  %v408_v49 = vrot.slane %v406_v41, 7  ;;  %v409_v50 = vshll.u32 %v374_v30, 16  ;;  %v694_v55 = vshrl.u32 %v1458_v46, 16  ;;  %v605_v6 = vld [vmem:[%s1398_s17 + $0x10] sm:$0xf] }
  0x1a   : > { %276 = vrot.lane.b32.xlu0 %v231_v38, %s1362_s19  ;;  %v404_v53 = vrot.slane %v1461_v48, 4  ;;  %v527_v57 = vor.u32 %v526_v45, %v1455_v44  ;;  %v703_v58 = vshrl.u32 %v674_v51, 16  ;;  %v241_v59 = vsel %vm1431_vm6, %v236_v42, %v1450_v39  ;;  %v1491_v15 = vld [vmem:[%s1398_s17 + $0xc] sm:$0xf]  ;;  %v187_v21 = vld [vmem:[%s1398_s17] sm:$0xf] }
  0x1b   : > { %v411_v54 = vor.u32 %v409_v50, %v408_v49  ;;  %v538_v60 = vrot.slane %v537_v47, 4  ;;  %v1478_v61 = vrot.slane %v540_v43, 5  ;;  %v415_v63 = vshrl.u32 %v375_v56, 16  ;;  %v675_v30 = vld [vmem:[%s1398_s17 + $0x14] sm:$0xf] }
  0x1c   : > { %v418_v1 = vshll.u32 %v375_v56, 16  ;;  %v1484_v4 = vrot.slane %v694_v55, 7  ;;  %v706_v5 = vshll.u32 %v674_v51, 16  ;;  %v528_v7 = vrot.slane %v527_v57, 4  ;;  %v1508_v31 = vld [vmem:[%s1398_s17 + $0x14] sm:$0xf] }
  0x1d   : > { %348 = vrot.lane.b32.xlu1 %v332_v34, %s1361_s18  ;;  %v412_v62 = vsel %vm1466_vm8, %v404_v53, %v411_v54  ;;  %v705_v9 = vrot.slane %v703_v58, 7  ;;  %v413_v10 = vrot.slane %v408_v49, 4  ;;  %v1488_v13 = vrot.slane %v415_v63, 7  ;;  %v192_v50 = vld [vmem:[%s1398_s17 + $0x14] sm:$0xf] }
  0x1e   : > { %453 = vrot.lane.b32.xlu2 %v412_v62, %s1363_s20  ;;  %v543_v16 = vsel %vm1431_vm6, %v538_v60, %v1478_v61  ;;  %v208_v17 = vshll.u32 %v188_v2, 16  ;;  %v212_v18 = vshrl.u32 %v188_v2, 16  ;;  %v629_v22 = vrot.slane %v605_v6, 7  ;;  %v1315_v43 = vld [vmem:[%s1877_s1 + $0x50] sm:$0xff] }
  0x1f   : > { %v420_v19 = vor.u32 %v418_v1, %v1488_v13  ;;  %v626_v23 = vrot.slane %v1491_v15, 7  ;;  %v533_v24 = vsel %vm1431_vm6, %v528_v7, %v1442_v33  ;;  %v701_v25 = vrot.slane %v1484_v4, 4  ;;  %v776_v15 = vld [vmem:[%s1398_s17 + $0x10] sm:$0xf] }
  0x20   : > { %v708_v27 = vor.u32 %v706_v5, %v705_v9  ;;  %v210_v34 = vrot.slane %v208_v17, 5  ;;  %v214_v35 = vrot.slane %v212_v18, 4  ;;  %v199_v36 = vshrl.u32 %v187_v21, 16  ;;  %v301_v5 = vld [vmem:[%s1398_s17] sm:$0xe] }
  0x21   : > { %v421_v28 = vsel %vm1466_vm8, %v413_v10, %v420_v19  ;;  %v202_v37 = vshll.u32 %v187_v21, 16  ;;  %v628_v33 = vrot.slane %v626_v23, 4  ;;  %v712_v38 = vshrl.u32 %v675_v30, 16  ;;  %v302_v10 = vld [vmem:[%s1398_s17 + $0x4] sm:$0xf] }
  0x22   : > { %278 = vrot.lane.b32.xlu0 %v241_v59, %s1362_s19  ;;  %v631_v40 = vrot.slane %v629_v22, 4  ;;  %v632_v41 = vrot.slane %v1508_v31, 7  ;;  %v709_v42 = vsel %vm1466_vm8, %v701_v25, %v708_v27  ;;  %v215_v45 = vor.u32 %v214_v35, %v210_v34  ;;  %v376_v35 = vld [vmem:[%s1398_s17 + $0x14] sm:$0xf]  ;;  %783 = vst.msk [vmem:[#allocation2 + $0x20] sm:$0xf] %vm179_vm12, %v776_v15 }
  0x23   : > { %v201_v47 = vrot.slane %v199_v36, 4  ;;  %v204_v49 = vrot.slane %v202_v37, 5  ;;  %v242_v51 = vshrl.u32 %v1415_v12, 16  ;;  %v630_v53 = vsel %vm1517_vm11, %v628_v33, %v629_v22 }
  0x24   : > { %v1525_v54 = vrot.slane %v712_v38, 7  ;;  %v715_v55 = vshll.u32 %v675_v30, 16  ;;  %v633_v56 = vsel %vm1517_vm11, %v631_v40, %v632_v41  ;;  %v216_v57 = vrot.slane %v215_v45, 4  ;;  %v497_v45 = vld [vmem:[%s1398_s17 + $0x18] sm:$0xf] }
  0x25   : > { %580 = vrot.lane.b32.xlu1 %v543_v16, %s1362_s19  ;;  %v205_v58 = vor.u32 %v204_v49, %v201_v47  ;;  %v248_v59 = vshll.u32 %v192_v50, 16  ;;  %v252_v12 = vshrl.u32 %v192_v50, 16  ;;  %v710_v60 = vrot.slane %v705_v9, 4  ;;  %v1541_v16 = vld [vmem:[%s1398_s17 + $0x18] sm:$0xf] }
  0x26   : > { %455 = vrot.lane.b32.xlu2 %v421_v28, %s1363_s20  ;;  %v717_v62 = vor.u32 %v715_v55, %v1525_v54  ;;  %v244_v63 = vrot.slane %v242_v51, 4  ;;  %v221_v1 = vsel %vm1431_vm6, %v216_v57, %v1419_v14  ;;  %v1178_v18 = vrot.slane %v301_v5, 9 }
  0x27   : > { %v206_v2 = vrot.slane %v205_v58, 4  ;;  %v250_v6 = vrot.slane %v248_v59, 5  ;;  %v254_v7 = vrot.slane %v252_v12, 4  ;;  %v322_v19 = vrot.slane %v302_v10, 5 }
  0x28   : > { %v718_v9 = vsel %vm1466_vm8, %v710_v60, %v717_v62  ;;  %v245_v17 = vor.u32 %v244_v63, %v1450_v39  ;;  %v258_v22 = vshll.u32 %v1541_v16, 16  ;;  %v424_v40 = vshrl.u32 %v376_v35, 16 }
  0x29   : > { %v211_v14 = vsel %vm1431_vm6, %v206_v2, %v210_v34  ;;  %v255_v21 = vor.u32 %v254_v7, %v250_v6  ;;  %v323_v39 = vsel %vm1407_vm5, %v1178_v18, %v322_v19  ;;  %v1558_v34 = vld [vmem:[%s1398_s17 + $0x18] sm:$0xf]  ;;  %v324_v47 = vrot.slane %v322_v19, 4 }
  0x2a   : > { %578 = vrot.lane.b32.xlu0 %v533_v24, %s1362_s19  ;;  %v306_v24 = vld [vmem:[%s1398_s17 + $0x14] sm:$0xf]  ;;  %v246_v25 = vrot.slane %v245_v17, 4  ;;  %v1555_v28 = vrot.slane %v258_v22, 5  ;;  %v337_v38 = vrot.slane %v1558_v34, 5  ;;  %v333_v49 = vrot.slane %v331_v20, 4 }
  0x2b   : > { %v256_v27 = vrot.slane %v255_v21, 4  ;;  %v334_v30 = vrot.slane %v306_v24, 5  ;;  %v427_v50 = vshll.u32 %v376_v35, 16  ;;  %v550_v57 = vshll.u32 %v497_v45, 16  ;;  %v676_v19 = vld [vmem:[%s1398_s17 + $0x18] sm:$0xf] }
  0x2c   : > { %v251_v36 = vsel %vm1431_vm6, %v246_v25, %v250_v6  ;;  %v554_v58 = vshrl.u32 %v497_v45, 16  ;;  %v326_v59 = vsel %vm1407_vm5, %v324_v47, %v325_v3  ;;  %v544_v12 = vshrl.u32 %v1440_v32, 16  ;;  %v498_v3 = vld [vmem:[%s1398_s17 + $0x1c] sm:$0xf]  ;;  %v607_v47 = vld [vmem:[%s1398_s17 + $0x18] sm:$0xf] }
  0x2d   : > { %750 = vrot.lane.b32.xlu1 %v709_v42, %s1363_s20  ;;  %v261_v37 = vsel %vm1431_vm6, %v256_v27, %v1555_v28  ;;  %v336_v33 = vrot.slane %v334_v30, 4  ;;  %v372_v42 = vld [vmem:[%s1398_s17 + $0x4] sm:$0xf]  ;;  %v422_v60 = vrot.slane %v1488_v13, 4  ;;  %v400_v63 = vshll.u32 %v1436_v29, 16 }
  0x2e   : > { %647 = vrot.lane.b32.xlu2 %v630_v53, %s1361_s18  ;;  %v388_v51 = vshrl.u32 %v372_v42, 16  ;;  %v371_v53 = vld [vmem:[%s1398_s17] sm:$0x8]  ;;  %v391_v20 = vshll.u32 %v372_v42, 16  ;;  %v335_v2 = vsel %vm1407_vm5, %v333_v49, %v334_v30  ;;  %v552_v5 = vrot.slane %v550_v57, 5 }
  0x2f   : > { %v338_v55 = vsel %vm1407_vm5, %v336_v33, %v337_v38  ;;  %v383_v11 = vshrl.u32 %v371_v53, 16  ;;  %v556_v6 = vrot.slane %v554_v58, 4  ;;  %v560_v18 = vshll.u32 %v498_v3, 16  ;;  %v1619_v57 = vld [vmem:[%s1398_s17 + $0x1c] sm:$0xf] }
  0x30   : > { %v390_v62 = vrot.slane %v388_v51, 7  ;;  %v721_v30 = vshrl.u32 %v676_v19, 16  ;;  %v724_v45 = vshll.u32 %v676_v19, 16  ;;  %v635_v49 = vrot.slane %v607_v47, 7  ;;  %v499_v58 = vld [vmem:[%s1398_s17 + $0x20] sm:$0x1] }
  0x31   : > { %v1179_v7 = vrot.slane %v383_v11, 11  ;;  %v557_v17 = vor.u32 %v556_v6, %v552_v5  ;;  %v262_v51 = vshrl.u32 %v1541_v16, 16  ;;  %v634_v11 = vrot.slane %v632_v41, 4 }
  0x32   : > { %649 = vrot.lane.b32.xlu0 %v633_v56, %s1361_s18  ;;  %v426_v56 = vrot.slane %v424_v40, 7  ;;  %v393_v32 = vor.u32 %v391_v20, %v390_v62  ;;  %v395_v13 = vrot.slane %v390_v62, 4  ;;  %v723_v42 = vrot.slane %v721_v30, 7 }
  0x33   : > { %v637_v16 = vrot.slane %v635_v49, 4  ;;  %v638_v20 = vrot.slane %v1619_v57, 7  ;;  %v636_v31 = vsel %vm1517_vm11, %v634_v11, %v635_v49  ;;  %v1310_v49 = vld [vmem:[%s1877_s1 + $0x28] sm:$0xff] }
  0x34   : > { %v429_v0 = vor.u32 %v427_v50, %v426_v56  ;;  %v394_v21 = vsel %vm1466_vm8, %v1179_v7, %v393_v32  ;;  %v431_v35 = vrot.slane %v426_v56, 4  ;;  %v726_v56 = vor.u32 %v724_v45, %v723_v42  ;;  %v609_v45 = vld [vmem:[%s1398_s17 + $0x20] sm:$0x7]  ;;  %v174_v11 = vld [vmem:[%s1398_s17 + $0x8] sm:$0xf] }
  0x35   : > { %274 = vrot.lane.b32.xlu1 %v221_v1, %s1362_s19  ;;  %v377_v1 = vld [vmem:[%s1398_s17 + $0x18] sm:$0xf]  ;;  %182 = vst.msk [vmem:[#allocation2 + $0x18] sm:$0xf] %vm179_vm12, %v174_v11  ;;  %v172_v11 = vld [vmem:[%s1398_s17] sm:$0xf] }
  0x36   : > { %752 = vrot.lane.b32.xlu2 %v718_v9, %s1363_s20  ;;  %v433_v10 = vshrl.u32 %v377_v1, 16  ;;  %v402_v9 = vor.u32 %v400_v63, %v1461_v48  ;;  %v430_v29 = vsel %vm1466_vm8, %v422_v60, %v429_v0  ;;  %v436_v24 = vshll.u32 %v377_v1, 16  ;;  %v378_v0 = vld [vmem:[%s1398_s17 + $0x1c] sm:$0xf]  ;;  %180 = vst.msk [vmem:[#allocation2] sm:$0xf] %vm179_vm12, %v172_v11 }
  0x37   : > { %v558_v48 = vrot.slane %v557_v17, 4  ;;  %v570_v60 = vshll.u32 %v499_v58, 16  ;;  %v264_v63 = vrot.slane %v262_v51, 4 }
  0x38   : > { %v1599_v22 = vrot.slane %v433_v10, 7  ;;  %v403_v25 = vsel %vm1466_vm8, %v395_v13, %v402_v9  ;;  %v442_v10 = vshrl.u32 %v378_v0, 16  ;;  %v728_v9 = vrot.slane %v723_v42, 4 }
  0x39   : > { %v265_v7 = vor.u32 %v264_v63, %v1555_v28  ;;  %v492_v28 = vld [vmem:[%s1398_s17 + $0x4] sm:$0xf] }
  0x3a   : > { %272 = vrot.lane.b32.xlu0 %v211_v14, %s1362_s19  ;;  %v546_v14 = vrot.slane %v544_v12, 4  ;;  %v504_v30 = vshll.u32 %v492_v28, 16 }
  0x3c   : > { %v547_v27 = vor.u32 %v546_v14, %v1478_v61  ;;  %v266_v14 = vrot.slane %v265_v7, 4 }
  0x3d   : > { %342 = vrot.lane.b32.xlu1 %v323_v39, %s1361_s18  ;;  %v562_v39 = vrot.slane %v560_v18, 5  ;;  %v1311_v18 = vld [vmem:[%s1877_s1 + $0x30] sm:$0xff] }
  0x3e   : > { %280 = vrot.lane.b32.xlu2 %v251_v36, %s1362_s19  ;;  %v438_v36 = vor.u32 %v436_v24, %v1599_v22  ;;  %v548_v40 = vrot.slane %v547_v27, 4  ;;  %v445_v24 = vshll.u32 %v378_v0, 16  ;;  %v501_v27 = vshrl.u32 %v492_v28, 16  ;;  %v1308_v0 = vld [vmem:[%s1877_s1 + $0x18] sm:$0xff] }
  0x3f   : > { %v563_v33 = vsel %vm1431_vm6, %v558_v48, %v562_v39  ;;  %v678_v48 = vld [vmem:[%s1398_s17 + $0x20] sm:$0xf] }
  0x40   : > { %v439_v61 = vsel %vm1466_vm8, %v431_v35, %v438_v36  ;;  %v553_v53 = vsel %vm1431_vm6, %v548_v40, %v552_v5  ;;  %v639_v5 = vsel %vm1517_vm11, %v637_v16, %v638_v20  ;;  %v440_v40 = vrot.slane %v1599_v22, 4  ;;  %v1309_v16 = vld [vmem:[%s1877_s1 + $0x20] sm:$0xff] }
  0x41   : > { %v739_v47 = vshrl.u32 %v678_v48, 16  ;;  %v503_v51 = vrot.slane %v501_v27, 4  ;;  %v640_v22 = vrot.slane %v638_v20, 4  ;;  %v742_v58 = vshll.u32 %v678_v48, 16  ;;  %v481_v48 = vld [vmem:[%s1398_s17 + $0x10] sm:$0xf] }
  0x42   : > { %282 = vrot.lane.b32.xlu0 %v261_v37, %s1362_s19  ;;  %v564_v37 = vshrl.u32 %v498_v3, 16  ;;  %v572_v3 = vrot.slane %v570_v60, 5  ;;  %v1321_v27 = vld [vmem:[%s1877_s1 + $0x80] sm:$0xff]  ;;  %488 = vst.msk [vmem:[#allocation2 + $0x28] sm:$0xf] %vm179_vm12, %v481_v48 }
  0x44   : > { %v566_v50 = vrot.slane %v564_v37, 4  ;;  %v308_v37 = vld [vmem:[%s1398_s17 + $0x1c] sm:$0x1] }
  0x45   : > { %352 = vrot.lane.b32.xlu1 %v338_v55, %s1361_s18  ;;  %v719_v55 = vrot.slane %v1525_v54, 4  ;;  %v1312_v54 = vld [vmem:[%s1877_s1 + $0x38] sm:$0xff] }
  0x46   : > { %344 = vrot.lane.b32.xlu2 %v326_v59, %s1361_s18  ;;  %v677_v59 = vld [vmem:[%s1398_s17 + $0x1c] sm:$0xf]  ;;  %v567_v12 = vor.u32 %v566_v50, %v562_v39  ;;  %1323 = vmatpush.bf16.msra.mxu3 %v1312_v54  ;;  %v340_v50 = vrot.slane %v308_v37, 5 }
  0x47   : > { %v727_v62 = vsel %vm1466_vm8, %v719_v55, %v726_v56  ;;  %v730_v1 = vshrl.u32 %v677_v59, 16  ;;  %1018 = vmatpush.bf16.msra.mxu0 %v1312_v54  ;;  %v733_v41 = vshll.u32 %v677_v59, 16  ;;  %v641_v55 = vrot.slane %v609_v45, 7  ;;  %v672_v59 = vld [vmem:[%s1398_s17 + $0x8] sm:$0xf]  ;;  %v1317_v45 = vld [vmem:[%s1877_s1 + $0x60] sm:$0xff] }
  0x48   : > { %v568_v6 = vrot.slane %v567_v12, 4  ;;  %v685_v54 = vshrl.u32 %v672_v59, 16 }
  0x49   : > { %v1641_v13 = vrot.slane %v730_v1, 7 }
  0x4a   : > { %350 = vrot.lane.b32.xlu0 %v335_v2, %s1361_s18  ;;  %v194_v2 = vld [vmem:[%s1398_s17 + $0x1c] sm:$0x1]  ;;  %v573_v17 = vsel %vm1431_vm6, %v568_v6, %v572_v3  ;;  %1324 = vmatpush.bf16.msra.mxu3 %v1311_v18  ;;  %v1697_v7 = vrot.slane %v685_v54, 7  ;;  %v177_v54 = vld [vmem:[%s1398_s17 + $0x14] sm:$0xf] }
  0x4b   : > { %v268_v32 = vshll.u32 %v194_v2, 16  ;;  %1019 = vmatpush.bf16.msra.mxu0 %v1311_v18  ;;  %v737_v63 = vrot.slane %v1641_v13, 4  ;;  %v671_v2 = vld [vmem:[%s1398_s17 + $0x4] sm:$0x8]  ;;  %v1307_v18 = vld [vmem:[%s1877_s1 + $0x10] sm:$0xff] }
  0x4c   : > { %v680_v3 = vshrl.u32 %v671_v2, 16  ;;  %185 = vst.msk [vmem:[#allocation2 + $0x3c] sm:$0xf] %vm179_vm12, %v177_v54 }
  0x4d   : > { %457 = vrot.lane.b32.xlu1 %v430_v29, %s1363_s20  ;;  %v735_v29 = vor.u32 %v733_v41, %v1641_v13  ;;  %v270_v19 = vrot.slane %v268_v32, 5  ;;  %v774_v41 = vld [vmem:[%s1398_s17 + $0x8] sm:$0xf]  ;;  %v688_v32 = vshll.u32 %v672_v59, 16  ;;  %v175_v13 = vld [vmem:[%s1398_s17 + $0xc] sm:$0xf] }
  0x4e   : > { %449 = vrot.lane.b32.xlu2 %v394_v21, %s1363_s20  ;;  %v444_v21 = vrot.slane %v442_v10, 7  ;;  %1325 = vmatpush.bf16.msra.mxu3 %v1310_v49  ;;  %781 = vst.msk [vmem:[#allocation2 + $0x8] sm:$0xf] %vm179_vm12, %v774_v41 }
  0x4f   : > { %v736_v39 = vsel %vm1466_vm8, %v728_v9, %v735_v29  ;;  %1020 = vmatpush.bf16.msra.mxu0 %v1310_v49  ;;  %v1319_v9 = vld [vmem:[%s1877_s1 + $0x70] sm:$0xff]  ;;  %v1322_v29 = vld [vmem:[%s1877_s1 + $0x88] sm:$0xff]  ;;  %183 = vst.msk [vmem:[#allocation2 + $0x24] sm:$0xf] %vm179_vm12, %v175_v13  ;;  %v697_v49 = vshll.u32 %v1458_v46, 16  ;;  %v692_v46 = vrot.slane %v1697_v7, 4 }
  0x50   : > { %v447_v42 = vor.u32 %v445_v24, %v444_v21  ;;  %1332 = vmatpush.bf16.msra.mxu1 %v1319_v9  ;;  %1080 = vmatpush.bf16.msra.mxu2 %v1322_v29  ;;  %v1181_v24 = vrot.slane %v680_v3, 11  ;;  %v483_v3 = vld [vmem:[%s1398_s17 + $0x18] sm:$0xf]  ;;  %v482_v13 = vld [vmem:[%s1398_s17 + $0x14] sm:$0xf] }
  0x51   : > { %490 = vst.msk [vmem:[#allocation2 + $0x40] sm:$0xf] %vm179_vm12, %v483_v3 }
  0x52   : > { %451 = vrot.lane.b32.xlu0 %v403_v25, %s1363_s20  ;;  %v493_v25 = vld [vmem:[%s1398_s17 + $0x8] sm:$0xf]  ;;  %v448_v34 = vsel %vm1466_vm8, %v440_v40, %v447_v42  ;;  %1326 = vmatpush.bf16.msra.mxu3 %v1309_v16  ;;  %489 = vst.msk [vmem:[#allocation2 + $0x34] sm:$0xf] %vm179_vm12, %v482_v13 }
  0x53   : > { %v510_v35 = vshll.u32 %v493_v25, 16  ;;  %v514_v36 = vshrl.u32 %v493_v25, 16  ;;  %1021 = vmatpush.bf16.msra.mxu0 %v1309_v16  ;;  %v690_v25 = vor.u32 %v688_v32, %v1697_v7  ;;  %v1313_v16 = vld [vmem:[%s1877_s1 + $0x40] sm:$0xff] }
  0x54   : > { %1081 = vmatpush.bf16.msra.mxu2 %v1321_v27 }
  0x55   : > { %584 = vrot.lane.b32.xlu1 %v563_v33, %s1362_s19  ;;  %v271_v33 = vsel %vm1431_vm6, %v266_v14, %v270_v19  ;;  %v512_v56 = vrot.slane %v510_v35, 5  ;;  %v516_v57 = vrot.slane %v514_v36, 4  ;;  %v602_v14 = vld [vmem:[%s1398_s17 + $0x4] sm:$0x8]  ;;  %v480_v35 = vld [vmem:[%s1398_s17 + $0xc] sm:$0xf]  ;;  %v691_v40 = vsel %vm1466_vm8, %v1181_v24, %v690_v25 }
  0x56   : > { %459 = vrot.lane.b32.xlu2 %v439_v61, %s1363_s20  ;;  %v339_v61 = vrot.slane %v337_v38, 4  ;;  %v741_v38 = vrot.slane %v739_v47, 7  ;;  %1327 = vmatpush.bf16.msra.mxu3 %v1308_v0  ;;  %487 = vst.msk [vmem:[#allocation2 + $0x1c] sm:$0xf] %vm179_vm12, %v480_v35  ;;  %v1305_v47 = vld [vmem:[%s1877_s1] sm:$0xff] }
  0x57   : > { %v517_v60 = vor.u32 %v516_v57, %v512_v56  ;;  %1022 = vmatpush.bf16.msra.mxu0 %v1308_v0  ;;  %v484_v24 = vld [vmem:[%s1398_s17 + $0x1c] sm:$0xf] }
  0x58   : > { %v341_v20 = vsel %vm1407_vm5, %v339_v61, %v340_v50  ;;  %v744_v1 = vor.u32 %v742_v58, %v741_v38  ;;  %v1204_v38 = vld [vmem:[#allocation2 + $0x20] sm:$0xf]  ;;  %491 = vst.msk [vmem:[#allocation2 + $0x4c] sm:$0xf] %vm179_vm12, %v484_v24 }
  0x59   : > { %v518_v6 = vrot.slane %v517_v60, 4 }
  0x5a   : > { %582 = vrot.lane.b32.xlu0 %v553_v53, %s1362_s19  ;;  %v506_v53 = vrot.slane %v504_v30, 5  ;;  %v745_v10 = vsel %vm1466_vm8, %v737_v63, %v744_v1  ;;  %1328 = vmatpush.bf16.msra.mxu3 %v1307_v18  ;;  %v1192_v30 = vld [vmem:[#allocation2 + $0x8] sm:$0xf] }
  0x5b   : > { %v523_v19 = vsel %vm1431_vm6, %v518_v6, %v1455_v44  ;;  %1023 = vmatpush.bf16.msra.mxu0 %v1307_v18  ;;  %v1180_v44 = vrot.slane %v602_v14, 11  ;;  %v779_v14 = vld [vmem:[%s1398_s17 + $0x1c] sm:$0xf] }
  0x5c   : > { %v507_v12 = vor.u32 %v506_v53, %v503_v51  ;;  %v1316_v51 = vld [vmem:[%s1877_s1 + $0x58] sm:$0xff]  ;;  %v699_v53 = vor.u32 %v697_v49, %v1484_v4  ;;  %v176_v4 = vld [vmem:[%s1398_s17 + $0x10] sm:$0xf]  ;;  %786 = vst.msk [vmem:[#allocation2 + $0x44] sm:$0xf] %vm179_vm12, %v779_v14 }
  0x5d   : > { %754 = vrot.lane.b32.xlu1 %v727_v62, %s1363_s20  ;;  %v642_v62 = vsel %vm1517_vm11, %v640_v22, %v641_v55  ;;  %v777_v22 = vld [vmem:[%s1398_s17 + $0x14] sm:$0xf]  ;;  %184 = vst.msk [vmem:[#allocation2 + $0x30] sm:$0xf] %vm179_vm12, %v176_v4 }
  0x5e   : > { %651 = vrot.lane.b32.xlu2 %v636_v31, %s1361_s18  ;;  %v508_v31 = vrot.slane %v507_v12, 4  ;;  %1329 = vmatpush.bf16.msra.mxu3 %v1306_v26  ;;  %784 = vst.msk [vmem:[#allocation2 + $0x2c] sm:$0xf] %vm179_vm12, %v777_v22  ;;  %v700_v55 = vsel %vm1466_vm8, %v692_v46, %v699_v53  ;;  %v780_v53 = vld [vmem:[%s1398_s17 + $0x20] sm:$0xf] }
  0x5f   : > { %1024 = vmatpush.bf16.msra.mxu0 %v1306_v26  ;;  %v178_v26 = vld [vmem:[%s1398_s17 + $0x18] sm:$0xf]  ;;  %787 = vst.msk [vmem:[#allocation2 + $0x50] sm:$0xf] %vm179_vm12, %v780_v53 }
  0x60   : > { %v513_v28 = vsel %vm1431_vm6, %v508_v31, %v512_v56  ;;  %v1314_v56 = vld [vmem:[%s1877_s1 + $0x48] sm:$0xff]  ;;  %186 = vst.msk [vmem:[#allocation2 + $0x48] sm:$0xf] %vm179_vm12, %v178_v26 }
  0x62   : > { %653 = vrot.lane.b32.xlu0 %v639_v5, %s1361_s18  ;;  %v775_v5 = vld [vmem:[%s1398_s17 + $0xc] sm:$0xf]  ;;  %1330 = vmatpush.bf16.msra.mxu3 %v1305_v47 }
  0x63   : > { %782 = vst.msk [vmem:[#allocation2 + $0x14] sm:$0xf] %vm179_vm12, %v775_v5  ;;  %1025 = vmatpush.bf16.msra.mxu0 %v1305_v47  ;;  %v1304_v27 = vld [vmem:[#allocation2 + $0x40] sm:$0xf0] }
  0x65   : > { %586 = vrot.lane.b32.xlu1 %v573_v17, %s1362_s19  ;;  %v603_v17 = vld [vmem:[%s1398_s17 + $0x8] sm:$0xf]  ;;  %v1301_v58 = vld [vmem:[#allocation2 + $0x28] sm:$0xf0] }
  0x66   : > { %756 = vrot.lane.b32.xlu2 %v736_v39, %s1363_s20  ;;  %v623_v21 = vrot.slane %v603_v17, 7  ;;  %v1318_v39 = vld [vmem:[%s1877_s1 + $0x68] sm:$0xff]  ;;  %v1205_v59 = vor.u32 %v1301_v58, %v1204_v38 }
  0x67   : > { %1333 = vmatpush.bf16.msra.mxu1 %v1318_v39  ;;  %1046 = vmatpush.bf16.msrb.mxu0 %v1687_v8 }
  0x68   : > { %v624_v61 = vsel %vm1517_vm11, %v1180_v44, %v623_v21 }
  0x6a   : > { %284 = vrot.lane.b32.xlu0 %v271_v33, %s1362_s19  ;;  %v1298_v37 = vld [vmem:[#allocation2 + $0x10] sm:$0xf0]  ;;  %v625_v33 = vrot.slane %v623_v21, 4 }
  0x6b   : > { %v1193_v42 = vor.u32 %v1298_v37, %v1192_v30  ;;  %1334 = vmatpush.bf16.msra.mxu1 %v1317_v45  ;;  %1047 = vmatpush.bf16.msrb.mxu0 %v1319_v9 }
  0x6c   : > { %v627_v50 = vsel %vm1517_vm11, %v625_v33, %v626_v23  ;;  %v478_v33 = vld [vmem:[%s1398_s17 + $0x4] sm:$0xf] }
  0x6d   : > { %461 = vrot.lane.b32.xlu1 %v448_v34, %s1363_s20  ;;  %1290 = vmatmul.msk.bf16.vlgmr.msra.gmra.mxu2 %vm1005_vm13, %v1193_v42  ;;  %v173_v34 = vld [vmem:[%s1398_s17 + $0x4] sm:$0xf]  ;;  %485 = vst.msk [vmem:[#allocation2 + $0x4] sm:$0xf] %vm179_vm12, %v478_v33 }
  0x6e   : > { %354 = vrot.lane.b32.xlu2 %v341_v20, %s1361_s18  ;;  %181 = vst.msk [vmem:[#allocation2 + $0xc] sm:$0xf] %vm179_vm12, %v173_v34 }
  0x6f   : > { %1335 = vmatpush.bf16.msra.mxu1 %v1316_v51  ;;  %1048 = vmatpush.bf16.msrb.mxu0 %v1318_v39 }
  0x72   : > { %655 = vrot.lane.b32.xlu0 %v642_v62, %s1361_s18 }
  0x73   : > { %1336 = vmatpush.bf16.msra.mxu1 %v1315_v43  ;;  %1049 = vmatpush.bf16.msrb.mxu0 %v1317_v45 }
  0x75   : > { %758 = vrot.lane.b32.xlu1 %v745_v10, %s1363_s20 }
  0x76   : > { %574 = vrot.lane.b32.xlu2 %v513_v28, %s1362_s19  ;;  %v778_v28 = vld [vmem:[%s1398_s17 + $0x18] sm:$0xf] }
  0x77   : > { %1337 = vmatpush.bf16.msra.mxu1 %v1314_v56  ;;  %1050 = vmatpush.bf16.msrb.mxu0 %v1316_v51  ;;  %785 = vst.msk [vmem:[#allocation2 + $0x38] sm:$0xf] %vm179_vm12, %v778_v28 }
  0x78   : > { %v454_v36 = vpop.permute.xlu2 %453 }
  0x7a   : > { %576 = vrot.lane.b32.xlu0 %v523_v19, %s1362_s19 }
  0x7b   : > { %1338 = vmatpush.bf16.msra.mxu1 %v1313_v16  ;;  %1051 = vmatpush.bf16.msrb.mxu0 %v1315_v43 }
  0x7d   : > { %746 = vrot.lane.b32.xlu1 %v691_v40, %s1363_s20  ;;  %1291 = vmatmul.msk.bf16.gmra.mxu2 %vm1005_vm13, %v1205_v59 }
  0x7e   : > { %643 = vrot.lane.b32.xlu2 %v624_v61, %s1361_s18  ;;  %v1216_v39 = vld [vmem:[#allocation2 + $0x38] sm:$0xf]  ;;  %v479_v61 = vld [vmem:[%s1398_s17 + $0x8] sm:$0xf] }
  0x7f   : > { %1052 = vmatpush.bf16.msrb.mxu0 %v1314_v56  ;;  %v1217_v30 = vor.u32 %v1304_v27, %v1216_v39  ;;  %486 = vst.msk [vmem:[#allocation2 + $0x10] sm:$0xf] %vm179_vm12, %v479_v61 }
  0x80   : > { %v456_v23 = vpop.permute.xlu2 %455 }
  0x82   : > { %645 = vrot.lane.b32.xlu0 %v627_v50, %s1361_s18 }
  0x83   : > { %1053 = vmatpush.bf16.msrb.mxu0 %v1313_v16 }
  0x86   : > { %748 = vrot.lane.b32.xlu2 %v700_v55, %s1363_s20  ;;  %v801_v55 = vld [vmem:[#allocation2 + $0x50] sm:$0xf] }
  0x87   : > { %v347_v57 = vpop.permute.xlu1 %346  ;;  %v876_v4 = vunpack.c.l.b16 %v801_v55 }
  0x88   : > { %v648_v52 = vpop.permute.xlu2 %647 }
  0x8c   : > { %v277_v20 = vpop.permute.xlu0 %276 }
  0x8d   : > { %296 = vst.msk [vmem:[#allocation2 + $0x18] sm:$0xf] %vm293_vm14, %v277_v20  ;;  %1292 = vmatmul.msk.bf16.gmra.mxu2 %vm1005_vm13, %v1217_v30 }
  0x8e   : > { %366 = vst.msk [vmem:[#allocation2 + $0x18] sm:$0xf] %vm363_vm15, %v347_v57  ;;  %v888_v57 = vpack.c.b16 %v876_v4, %v876_v4 }
  0x8f   : > { %473 = vst.msk [vmem:[#allocation2 + $0x18] sm:$0xf] %vm470_vm0, %v454_v36  ;;  %v349_v12 = vpop.permute.xlu1 %348 }
  0x90   : > { %v753_v60 = vpop.permute.xlu2 %752 }
  0x94   : > { %v279_v62 = vpop.permute.xlu0 %278 }
  0x95   : > { %297 = vst.msk [vmem:[#allocation2 + $0x24] sm:$0xf] %vm293_vm14, %v279_v62 }
  0x96   : > { %367 = vst.msk [vmem:[#allocation2 + $0x24] sm:$0xf] %vm363_vm15, %v349_v12  ;;  %v1196_v8 = vld [vmem:[#allocation2 + $0x18] sm:$0xf] }
  0x97   : > { %474 = vst.msk [vmem:[#allocation2 + $0x24] sm:$0xf] %vm470_vm0, %v456_v23  ;;  %v581_v63 = vpop.permute.xlu1 %580 }
  0x98   : > { %598 = vst.msk [vmem:[#allocation2 + $0x28] sm:$0xf] %vm293_vm14, %v581_v63  ;;  %v281_v1 = vpop.permute.xlu2 %280 }
  0x99   : > { %298 = vst.msk [vmem:[#allocation2 + $0x30] sm:$0xf] %vm293_vm14, %v281_v1 }
  0x9c   : > { %v579_v2 = vpop.permute.xlu0 %578 }
  0x9d   : > { %597 = vst.msk [vmem:[#allocation2 + $0x1c] sm:$0xf] %vm293_vm14, %v579_v2  ;;  %1293 = vmatmul.msk.bf16.gmra.mxu2 %vm1005_vm13, %v888_v57 }
  0x9e   : > { %666 = vst.msk [vmem:[#allocation2 + $0x1c] sm:$0xf] %vm363_vm15, %v648_v52  ;;  %v1300_v0 = vld [vmem:[#allocation2 + $0x20] sm:$0xf0] }
  0x9f   : > { %v1197_v31 = vor.u32 %v1300_v0, %v1196_v8  ;;  %v751_v41 = vpop.permute.xlu1 %750 }
  0xa0   : > { %769 = vst.msk [vmem:[#allocation2 + $0x1c] sm:$0xf] %vm470_vm0, %v751_v41  ;;  %v345_v5 = vpop.permute.xlu2 %344 }
  0xa1   : > { %1031 = vmatmul.bf16.vlgmr.msra.gmra.mxu3 %v1197_v31 }
  0xa4   : > { %v650_v6 = vpop.permute.xlu0 %649 }
  0xa5   : > { %667 = vst.msk [vmem:[#allocation2 + $0x28] sm:$0xf] %vm363_vm15, %v650_v6 }
  0xa6   : > { %770 = vst.msk [vmem:[#allocation2 + $0x28] sm:$0xf] %vm470_vm0, %v753_v60 }
  0xa7   : > { %v275_v7 = vpop.permute.xlu1 %274  ;;  %v1299_v10 = vld [vmem:[#allocation2 + $0x1c] sm:$0xf] }
  0xa8   : > { %295 = vst.msk [vmem:[#allocation2 + $0xc] sm:$0xf] %vm293_vm14, %v275_v7  ;;  %v450_v32 = vpop.permute.xlu2 %449 }
  0xa9   : > { %365 = vst.msk [vmem:[#allocation2 + $0xc] sm:$0xf] %vm363_vm15, %v345_v5 }
  0xac   : > { %v273_v9 = vpop.permute.xlu0 %272 }
  0xad   : > { %294 = vst.msk [vmem:[#allocation2] sm:$0xf] %vm293_vm14, %v273_v9  ;;  %v1198_v29 = vld [vmem:[#allocation2 + $0x24] sm:$0xf0] }
  0xae   : > { %v1201_v17 = vor.u32 %v1299_v10, %v1198_v29 }
  0xaf   : > { %v343_v18 = vpop.permute.xlu1 %342 }
  0xb0   : > { %1059 = vmatmul.bf16.vlgmr.msra.gmra.mxu1 %v1201_v17  ;;  %364 = vst.msk [vmem:[#allocation2] sm:$0xf] %vm363_vm15, %v343_v18  ;;  %v460_v19 = vpop.permute.xlu2 %459 }
  0xb1   : > { %471 = vst.msk [vmem:[#allocation2] sm:$0xf] %vm470_vm0, %v450_v32  ;;  %v1352_v32 = vld [vmem:[%s1878_s2] ss:$0 sm:$0xff] }
  0xb4   : > { %v283_v21 = vpop.permute.xlu0 %282 }
  0xb5   : > { %299 = vst.msk [vmem:[#allocation2 + $0x3c] sm:$0xf] %vm293_vm14, %v283_v21 }
  0xb7   : > { %v353_v25 = vpop.permute.xlu1 %352 }
  0xb8   : > { %369 = vst.msk [vmem:[#allocation2 + $0x3c] sm:$0xf] %vm363_vm15, %v353_v25  ;;  %v652_v48 = vpop.permute.xlu2 %651  ;;  %v1184_v51 = vld [vmem:[#allocation2] sm:$0xf] }
  0xb9   : > { %476 = vst.msk [vmem:[#allocation2 + $0x3c] sm:$0xf] %vm470_vm0, %v460_v19 }
  0xbc   : > { %v351_v44 = vpop.permute.xlu0 %350 }
  0xbd   : > { %368 = vst.msk [vmem:[#allocation2 + $0x30] sm:$0xf] %vm363_vm15, %v351_v44 }
  0xbf   : > { %v458_v35 = vpop.permute.xlu1 %457 }
  0xc0   : > { %475 = vst.msk [vmem:[#allocation2 + $0x30] sm:$0xf] %vm470_vm0, %v458_v35  ;;  %v757_v36 = vpop.permute.xlu2 %756  ;;  %v1303_v40 = vld [vmem:[#allocation2 + $0x38] sm:$0xf0] }
  0xc4   : > { %v452_v37 = vpop.permute.xlu0 %451 }
  0xc5   : > { %472 = vst.msk [vmem:[#allocation2 + $0xc] sm:$0xf] %vm470_vm0, %v452_v37 }
  0xc7   : > { %v585_v42 = vpop.permute.xlu1 %584  ;;  %v1208_v45 = vld [vmem:[#allocation2 + $0x30] sm:$0xf] }
  0xc8   : > { %600 = vst.msk [vmem:[#allocation2 + $0x40] sm:$0xf] %vm293_vm14, %v585_v42  ;;  %v1209_v47 = vor.u32 %v1303_v40, %v1208_v45  ;;  %v355_v49 = vpop.permute.xlu2 %354 }
  0xca   : > { %1036 = vmatmul.bf16.gmra.mxu3 %v1209_v47 }
  0xcc   : > { %v583_v50 = vpop.permute.xlu0 %582  ;;  %v1297_v46 = vld [vmem:[#allocation2 + $0x8] sm:$0xf0] }
  0xcd   : > { %599 = vst.msk [vmem:[#allocation2 + $0x34] sm:$0xf] %vm293_vm14, %v583_v50  ;;  %v1185_v15 = vor.u32 %v1297_v46, %v1184_v51 }
  0xce   : > { %668 = vst.msk [vmem:[#allocation2 + $0x34] sm:$0xf] %vm363_vm15, %v652_v48 }
  0xcf   : > { %1026 = vmatmul.bf16.vlgmr.msra.gmra.mxu0 %v1185_v15  ;;  %v755_v22 = vpop.permute.xlu1 %754 }
  0xd0   : > { %771 = vst.msk [vmem:[#allocation2 + $0x34] sm:$0xf] %vm470_vm0, %v755_v22  ;;  %v575_v23 = vpop.permute.xlu2 %574 }
  0xd1   : > { %595 = vst.msk [vmem:[#allocation2 + $0x4] sm:$0xf] %vm293_vm14, %v575_v23 }
  0xd4   : > { %v654_v43 = vpop.permute.xlu0 %653 }
  0xd5   : > { %669 = vst.msk [vmem:[#allocation2 + $0x40] sm:$0xf] %vm363_vm15, %v654_v43 }
  0xd6   : > { %772 = vst.msk [vmem:[#allocation2 + $0x40] sm:$0xf] %vm470_vm0, %v757_v36 }
  0xd7   : > { %v587_v56 = vpop.permute.xlu1 %586  ;;  %v1302_v38 = vld [vmem:[#allocation2 + $0x34] sm:$0xf] }
  0xd8   : > { %601 = vst.msk [vmem:[#allocation2 + $0x4c] sm:$0xf] %vm293_vm14, %v587_v56  ;;  %v644_v34 = vpop.permute.xlu2 %643 }
  0xd9   : > { %664 = vst.msk [vmem:[#allocation2 + $0x4] sm:$0xf] %vm363_vm15, %v644_v34 }
  0xdc   : > { %v285_v52 = vpop.permute.xlu0 %284 }
  0xdd   : > { %300 = vst.msk [vmem:[#allocation2 + $0x48] sm:$0xf] %vm293_vm14, %v285_v52  ;;  %v1210_v58 = vld [vmem:[#allocation2 + $0x3c] sm:$0xf0] }
  0xde   : > { %370 = vst.msk [vmem:[#allocation2 + $0x48] sm:$0xf] %vm363_vm15, %v355_v49  ;;  %v1213_v59 = vor.u32 %v1302_v38, %v1210_v58 }
  0xdf   : > { %v462_v11 = vpop.permute.xlu1 %461 }
  0xe0   : > { %1064 = vmatmul.bf16.gmra.mxu1 %v1213_v59  ;;  %477 = vst.msk [vmem:[#allocation2 + $0x48] sm:$0xf] %vm470_vm0, %v462_v11  ;;  %v749_v1 = vpop.permute.xlu2 %748 }
  0xe4   : > { %v656_v16 = vpop.permute.xlu0 %655 }
  0xe5   : > { %670 = vst.msk [vmem:[#allocation2 + $0x4c] sm:$0xf] %vm363_vm15, %v656_v16 }
  0xe7   : > { %v759_v20 = vpop.permute.xlu1 %758 }
  0xe8   : > { %773 = vst.msk [vmem:[#allocation2 + $0x4c] sm:$0xf] %vm470_vm0, %v759_v20 }
  0xec   : > { %v577_v12 = vpop.permute.xlu0 %576 }
  0xed   : > { %596 = vst.msk [vmem:[#allocation2 + $0x10] sm:$0xf] %vm293_vm14, %v577_v12 }
  0xef   : > { %v747_v60 = vpop.permute.xlu1 %746  ;;  %v800_v54 = vld [vmem:[#allocation2 + $0x48] sm:$0xff] }
  0xf0   : > { %767 = vst.msk [vmem:[#allocation2 + $0x4] sm:$0xf] %vm470_vm0, %v747_v60  ;;  %v874_v62 = vunpack.c.l.b16 %v800_v54  ;;  %v875_v63 = vunpack.c.h.b16 %v800_v54  ;;  %v1083_v6 = vpop.f32.mrf.mxu2 }
  0xf2   : > { %v886_v2 = vpack.c.b16 %v874_v62, %v874_v62  ;;  %v887_v8 = vpack.c.b16 %v875_v63, %v875_v63 }
  0xf4   : > { %v646_v0 = vpop.permute.xlu0 %645  ;;  %1041 = vmatmul.bf16.gmra.mxu3 %v886_v2  ;;  %1069 = vmatmul.bf16.gmra.mxu1 %v887_v8 }
  0xf5   : > { %665 = vst.msk [vmem:[#allocation2 + $0x10] sm:$0xf] %vm363_vm15, %v646_v0 }
  0xf6   : > { %768 = vst.msk [vmem:[#allocation2 + $0x10] sm:$0xf] %vm470_vm0, %v749_v1 }
  0xf7   : > { %v1296_v31 = vld [vmem:[#allocation2 + $0x4] sm:$0xf] }
  0xf8   : > { %v1085_v3 = vpop.f32.mrf.mxu2 }
  0xfd   : > { %v1186_v41 = vld [vmem:[#allocation2 + $0xc] sm:$0xf0] }
  0xfe   : > { %v1189_v5 = vor.u32 %v1296_v31, %v1186_v41 }
 0x100   : > { %1054 = vmatmul.bf16.vlgmr.msrb.gmra.mxu0 %v1189_v5  ;;  %v1088_v10 = vpop.f32.mrf.mxu2 }
 0x108   : > { %v1090_v21 = vpop.f32.mrf.mxu2 }
 0x110   : > { %v1093_v39 = vpop.f32.mrf.mxu2 }
 0x118   : > { %v1095_v27 = vpop.f32.mrf.mxu2 }
 0x120   : > { %v1098_v36 = vpop.f32.mrf.mxu2 }
 0x124   : > { %v1032_v7 = vpop.f32.mrf.mxu3 }
 0x125   : > { %v1033_v13 = vadd.f32 %v1352_v32, %v1032_v7 }
 0x128   : > { %v1100_v61 = vpop.f32.mrf.mxu2 }
 0x12c   : > { %v1034_v18 = vpop.f32.mrf.mxu3 }
 0x12d   : > { %v1060_v9 = vpop.f32.mrf.mxu1  ;;  %v1035_v14 = vadd.f32 %v1352_v32, %v1034_v18 }
 0x12e   : > { %v1061_v29 = vadd.f32 %v1060_v9, %v1033_v13 }
 0x130   : > { %v1089_v17 = vadd.f32 %v1088_v10, %v1061_v29 }
 0x132   : > { %v1104_v28 = vpack.c.bf16 %v1089_v17, %v1089_v17 }
 0x134   : > { %1111 = vst.msk [vmem:[%s1857_s10 + $0x8] sm:$0xf] %vm179_vm12, %v1104_v28 }
 0x135   : > { %v1062_v19 = vpop.f32.mrf.mxu1 }
 0x136   : > { %v1063_v24 = vadd.f32 %v1062_v19, %v1035_v14 }
 0x138   : > { %v1091_v25 = vadd.f32 %v1090_v21, %v1063_v24 }
 0x13a   : > { %v1105_v48 = vpack.c.bf16 %v1091_v25, %v1091_v25 }
 0x13c   : > { %1112 = vst.msk [vmem:[%s1857_s10 + $0xc] sm:$0xf] %vm179_vm12, %v1105_v48 }
 0x14c   : > { %v1027_v51 = vpop.f32.mrf.mxu0 }
 0x14d   : > { %v1037_v26 = vpop.f32.mrf.mxu3  ;;  %v1028_v55 = vadd.f32 %v1352_v32, %v1027_v51 }
 0x14e   : > { %v1038_v44 = vadd.f32 %v1352_v32, %v1037_v26 }
 0x154   : > { %v1029_v53 = vpop.f32.mrf.mxu0 }
 0x155   : > { %v1039_v33 = vpop.f32.mrf.mxu3  ;;  %v1030_v59 = vadd.f32 %v1352_v32, %v1029_v53 }
 0x156   : > { %v1040_v42 = vadd.f32 %v1352_v32, %v1039_v33 }
 0x15d   : > { %v1065_v30 = vpop.f32.mrf.mxu1 }
 0x15e   : > { %v1066_v35 = vadd.f32 %v1065_v30, %v1038_v44 }
 0x160   : > { %v1094_v37 = vadd.f32 %v1093_v39, %v1066_v35 }
 0x162   : > { %v1106_v40 = vpack.c.bf16 %v1094_v37, %v1094_v37 }
 0x164   : > { %1113 = vst.msk [vmem:[%s1857_s10 + $0x10] sm:$0xf] %vm179_vm12, %v1106_v40 }
 0x165   : > { %v1067_v45 = vpop.f32.mrf.mxu1 }
 0x166   : > { %v1068_v47 = vadd.f32 %v1067_v45, %v1040_v42 }
 0x168   : > { %v1096_v49 = vadd.f32 %v1095_v27, %v1068_v47 }
 0x16a   : > { %v1107_v50 = vpack.c.bf16 %v1096_v49, %v1096_v49 }
 0x16c   : > { %1114 = vst.msk [vmem:[%s1857_s10 + $0x14] sm:$0xf] %vm179_vm12, %v1107_v50 }
 0x171   : > { %v1070_v46 = vpop.f32.mrf.mxu1 }
 0x177   : > { %v1042_v15 = vpop.f32.mrf.mxu3 }
 0x178   : > { %v1043_v22 = vadd.f32 %v1352_v32, %v1042_v15 }
 0x179   : > { %v1072_v23 = vpop.f32.mrf.mxu1 }
 0x17a   : > { %v1071_v43 = vadd.f32 %v1070_v46, %v1043_v22 }
 0x17c   : > { %v1099_v4 = vadd.f32 %v1098_v36, %v1071_v43 }
 0x17d   : > { %v1055_v56 = vpop.f32.mrf.mxu0 }
 0x17e   : > { %v1056_v57 = vadd.f32 %v1055_v56, %v1028_v55  ;;  %v1108_v34 = vpack.c.bf16 %v1099_v4, %v1099_v4 }
 0x17f   : > { %v1044_v52 = vpop.f32.mrf.mxu3 }
 0x180   : > { %v1084_v38 = vadd.f32 %v1083_v6, %v1056_v57  ;;  %1115 = vst.msk [vmem:[%s1857_s10 + $0x18] sm:$0xf] %vm179_vm12, %v1108_v34 }
 0x182   : > { %v1102_v58 = vpack.c.bf16 %v1084_v38, %v1084_v38 }
 0x184   : > { %1109 = vst.msk [vmem:[%s1857_s10] sm:$0xf] %vm179_vm12, %v1102_v58 }
 0x185   : > { %v1057_v11 = vpop.f32.mrf.mxu0 }
 0x186   : > { %v1058_v16 = vadd.f32 %v1057_v11, %v1030_v59 }
 0x188   : > { %v1086_v20 = vadd.f32 %v1085_v3, %v1058_v16 }
 0x18a   : > { %v1103_v12 = vpack.c.bf16 %v1086_v20, %v1086_v20 }
 0x18c   : > { %1110 = vst.msk [vmem:[%s1857_s10 + $0x4] sm:$0xf] %vm179_vm12, %v1103_v12 }
 0x18d PF: > { %s13_s12 = sadd.s32 1, %s1359_s12  }
 0x18e   : > { %p10_p4 = scmp.ge.s32.totalorder %s13_s12, 4  }
 0x190   :  { %12 = sbr.rel (!%p10_p4) target bundleno = 1 (0x1), region = 62 }

</bundles_post_ra>
